<compile_context>
chip_gen: v6e
topology: v6e:2x2x1
jax: 0.10.0
libtpu: 0.0.40
codegen_flags: <defaults>
</compile_context>

<pallas_src>
import jax
import jax.numpy as jnp
from jax import lax
from jax.experimental import pallas as pl
from jax.experimental.pallas import tpu as pltpu


def _round_up(n, m):
    return ((n + m - 1) // m) * m


# -----------------------------------------------------------------------------
# Fused whole-network kernel:
#   a0 = cast_bf16(x)            (x block arrives f32; cast on-chip)
#   a_{l+1} = relu(a_l @ D_l + b_l)   (bf16 dot -> f32 acc, epilogue f32)
#   out = relu(a_4 @ Dfc + bfc)       (f32, lane-padded to 128 -> unmasked vst)
# -----------------------------------------------------------------------------
def _fused_net_kernel(x_ref, d1_ref, d2_ref, d3_ref, d4_ref, dfc_ref,
                      b1_ref, b2_ref, b3_ref, b4_ref, bfc_ref, o_ref):
    def layer(a_bf16, d_ref, b_ref):
        y = jnp.dot(a_bf16, d_ref[...], preferred_element_type=jnp.float32)
        return jnp.maximum(y + b_ref[...], 0.0)

    a = x_ref[...].astype(jnp.bfloat16)            # in-kernel cast (VPU, hidden under MXU)
    a = layer(a, d1_ref, b1_ref).astype(jnp.bfloat16)
    a = layer(a, d2_ref, b2_ref).astype(jnp.bfloat16)
    a = layer(a, d3_ref, b3_ref).astype(jnp.bfloat16)
    a = layer(a, d4_ref, b4_ref).astype(jnp.bfloat16)
    o_ref[...] = layer(a, dfc_ref, bfc_ref)


def _fused_forward_2d(x_flat_f32, ops):
    """x_flat_f32: (M, K0) f32 CHW-flattened images -> (M, 128) f32."""
    ds, bs = ops["ds"], ops["bs"]
    M, K0 = x_flat_f32.shape
    assert K0 == ds[0].shape[0], (K0, ds[0].shape)
    n_out = ds[-1].shape[1]

    # Row-tile selection:
    #   tiny batch  -> one full block (always layout-legal),
    #   medium      -> 128-row blocks (>=2 grid steps so both v7x TCs get work),
    #   large batch -> 256-row blocks to amortize the ~0.35us per-step overhead
    #                  while still leaving >=2 grid steps and fitting v7x VMEM.
    if M <= 128:
        bm = M
    elif M <= 512:
        bm = 128
    else:
        bm = 256
    grid = (pl.cdiv(M, bm),)          # Pallas masks the last partial block's store

    # Constant (grid-invariant) operands: single-buffered -> half the VMEM residency.
    const_specs = (
        [pl.BlockSpec(d.shape, lambda i: (0, 0), pipeline_mode=pl.Buffered(1))
         for d in ds]
        + [pl.BlockSpec(b.shape, lambda i: (0, 0), pipeline_mode=pl.Buffered(1))
           for b in bs])
    in_specs = [pl.BlockSpec((bm, K0), lambda i: (i, 0))] + const_specs

    return pl.pallas_call(
        _fused_net_kernel,
        out_shape=jax.ShapeDtypeStruct((M, n_out), jnp.float32),
        grid=grid,
        in_specs=in_specs,
        out_specs=pl.BlockSpec((bm, n_out), lambda i: (i, 0)),
        compiler_params=pltpu.CompilerParams(
            dimension_semantics=("parallel",),
            vmem_limit_bytes=48 * 1024 * 1024),
    )(x_flat_f32, *ds, *bs)


# -----------------------------------------------------------------------------
# Parameter init (deterministic, synthetic; shapes mirror the PyTorch module)
# -----------------------------------------------------------------------------
def init_params(key, input_shape=16, n_hidden=32):
    n_filters = 32
    chans = [(3, n_filters), (n_filters, n_filters),
             (n_filters, 2 * n_filters), (2 * n_filters, 2 * n_filters)]
    eps = 1e-5
    keys = jax.random.split(key, 4 * len(chans) + 2)
    convs = []
    for li, (cin, cout) in enumerate(chans):
        kw, kg, kb, km = keys[4 * li:4 * li + 4]
        w = 0.1 * jax.random.normal(kw, (cout, cin, 3, 3), jnp.float32)   # OIHW
        gamma = 1.0 + 0.1 * jax.random.normal(kg, (cout,), jnp.float32)
        beta = 0.1 * jax.random.normal(kb, (cout,), jnp.float32)
        running_mean = 0.1 * jax.random.normal(km, (cout,), jnp.float32)
        running_var = jnp.ones((cout,), jnp.float32)
        scale = gamma / jnp.sqrt(running_var + eps)
        shift = beta - running_mean * scale
        convs.append({"w": w, "scale": scale, "shift": shift})
    out_features = ((input_shape + 2 * 1 - 1 - 1 * (3 - 1)) // 2 + 1) ** 2
    kfw, kfb = keys[-2:]
    w_fc = 0.1 * jax.random.normal(kfw, (out_features, n_hidden), jnp.float32)
    b_fc = 0.1 * jax.random.normal(kfb, (n_hidden,), jnp.float32)
    return {"convs": convs, "fc": (w_fc, b_fc)}


def _conv_scale_linear(x_nchw, w_oihw, scale):
    y = lax.conv_general_dilated(
        x_nchw, w_oihw, window_strides=(2, 2), padding=((1, 1), (1, 1)),
        dimension_numbers=("NCHW", "OIHW", "NCHW"),
        precision=lax.Precision.HIGHEST)
    return y * scale[None, :, None, None]


def build_kernel_operands(params, input_shape):
    """One-time fold of conv+BN(eval) layers into dense bf16 matrices + f32 biases."""
    ds, bs = [], []
    cin, s = 3, input_shape
    for layer in params["convs"]:
        n_in = cin * s * s
        basis = jnp.eye(n_in, dtype=jnp.float32).reshape(n_in, cin, s, s)
        y = _conv_scale_linear(basis, layer["w"], layer["scale"])   # (n_in, cout, so, so)
        cout, so = y.shape[1], y.shape[2]
        ds.append(y.reshape(n_in, cout * so * so))                  # CHW-flat linear map
        bs.append(jnp.repeat(layer["shift"], so * so))              # BN shift over space
        cin, s = cout, so

    w_fc, b_fc = params["fc"]
    assert w_fc.shape[0] == ds[-1].shape[1], "Linear.in_features must match conv output"
    ds.append(w_fc)
    bs.append(b_fc)

    # Pad the conv4->FC junction and the FC output to 128 lanes (lane-dense stores).
    n4, n4p = ds[3].shape[1], _round_up(ds[3].shape[1], 128)
    if n4p != n4:
        ds[3] = jnp.pad(ds[3], ((0, 0), (0, n4p - n4)))
        bs[3] = jnp.pad(bs[3], (0, n4p - n4))
        ds[4] = jnp.pad(ds[4], ((0, n4p - ds[4].shape[0]), (0, 0)))
    nf, nfp = ds[4].shape[1], _round_up(ds[4].shape[1], 128)
    if nfp != nf:
        ds[4] = jnp.pad(ds[4], ((0, 0), (0, nfp - nf)))
        bs[4] = jnp.pad(bs[4], (0, nfp - nf))

    return {"ds": [d.astype(jnp.bfloat16) for d in ds],
            "bs": [b.reshape(1, -1).astype(jnp.float32) for b in bs]}


# -----------------------------------------------------------------------------
# Forward pass (single pallas_call per forward, no transposes / im2col / pads)
# -----------------------------------------------------------------------------
def make_forward(n_hidden):
    @jax.jit
    def forward(x, ops):
        def run4(x4):
            B = x4.shape[0]
            xf = x4.reshape(B, -1)                 # NCHW flatten == torch view order
            y = _fused_forward_2d(xf, ops)         # (B, 128) f32, rows already exact
            return y[:, :n_hidden]                 # drop FC lane padding only

        if x.ndim == 5:
            b, nc = x.shape[:2]
            y = run4(x.reshape((b * nc,) + x.shape[2:]))
            return y.reshape(b, nc, n_hidden)
        return run4(x)

    return forward


# -----------------------------------------------------------------------------
# Pure-JAX reference (f32, highest precision) for a sanity check
# -----------------------------------------------------------------------------
def reference_forward(x, params):
    if x.ndim == 5:
        b, nc = x.shape[:2]
        y = reference_forward(x.reshape((b * nc,) + x.shape[2:]), params)
        return y.reshape(b, nc, -1)
    h = x
    for layer in params["convs"]:
        y = lax.conv_general_dilated(
            h, layer["w"], window_strides=(2, 2), padding=((1, 1), (1, 1)),
            dimension_numbers=("NCHW", "OIHW", "NCHW"),
            precision=lax.Precision.HIGHEST)
        h = jnp.maximum(y * layer["scale"][None, :, None, None]
                        + layer["shift"][None, :, None, None], 0.0)
    feat = h.reshape(h.shape[0], -1)
    w_fc, b_fc = params["fc"]
    return jnp.maximum(
        jnp.dot(feat, w_fc, precision=lax.Precision.HIGHEST) + b_fc, 0.0)


if __name__ == "__main__":
    key = jax.random.PRNGKey(0)
    kp, kx, kx5, kxl = jax.random.split(key, 4)
    # input_shape=16 makes Linear.in_features (=64) consistent with the flattened
    # convnet output (64 channels x 1 x 1), as the module requires.
    input_shape, n_hidden = 16, 32
    params = init_params(kp, input_shape=input_shape, n_hidden=n_hidden)
    ops = build_kernel_operands(params, input_shape)
    forward = make_forward(n_hidden)

    # 4-D input (B, C, H, W)
    x = jax.random.normal(kx, (2, 3, input_shape, input_shape), jnp.float32)
    out = jax.block_until_ready(forward(x, ops))
    assert out.shape == (2, n_hidden), out.shape
    ref = reference_forward(x, params)
    assert jnp.allclose(out, ref, rtol=2e-2, atol=2e-2), \
        float(jnp.max(jnp.abs(out - ref)))

    # 5-D input (B, n_candidates, C, H, W)
    x5 = jax.random.normal(kx5, (2, 3, 3, input_shape, input_shape), jnp.float32)
    out5 = jax.block_until_ready(forward(x5, ops))
    assert out5.shape == (2, 3, n_hidden), out5.shape
    ref5 = reference_forward(x5, params)
    assert jnp.allclose(out5, ref5, rtol=2e-2, atol=2e-2), \
        float(jnp.max(jnp.abs(out5 - ref5)))

    # Larger batch: exercises the multi-block parallel grid and the masked
    # edge-block store path (200 rows -> two 128-row blocks, last one partial).
    xl = jax.random.normal(kxl, (200, 3, input_shape, input_shape), jnp.float32)
    outl = jax.block_until_ready(forward(xl, ops))
    assert outl.shape == (200, n_hidden), outl.shape
    refl = reference_forward(xl, params)
    assert jnp.allclose(outl, refl, rtol=3e-2, atol=3e-2), \
        float(jnp.max(jnp.abs(outl - refl)))

    print("KERNEL_OK")
</pallas_src>

<mosaic_0001>
module attributes {stable_mosaic.version = 11 : i64} {
  func.func @_fused_net_kernel(%arg0: i32, %arg1: memref<2x768xf32, #tpu.memory_space<vmem>>, %arg2: memref<768x2048xbf16, #tpu.memory_space<vmem>>, %arg3: memref<2048x512xbf16, #tpu.memory_space<vmem>>, %arg4: memref<512x256xbf16, #tpu.memory_space<vmem>>, %arg5: memref<256x128xbf16, #tpu.memory_space<vmem>>, %arg6: memref<128x128xbf16, #tpu.memory_space<vmem>>, %arg7: memref<1x2048xf32, #tpu.memory_space<vmem>>, %arg8: memref<1x512xf32, #tpu.memory_space<vmem>>, %arg9: memref<1x256xf32, #tpu.memory_space<vmem>>, %arg10: memref<1x128xf32, #tpu.memory_space<vmem>>, %arg11: memref<1x128xf32, #tpu.memory_space<vmem>>, %arg12: memref<2x128xf32, #tpu.memory_space<vmem>>) attributes {dimension_semantics = [#tpu.dimension_semantics<parallel>], iteration_bounds = array<i64: 1>, scalar_prefetch = 0 : i64, scratch_operands = 0 : i64, tpu.core_type = #tpu.core_type<tc>, window_params = [{transform_indices = @transform_0, window_bounds = array<i64: 2, 768>}, {pipeline_mode = #tpu.pipeline_mode<synchronous>, transform_indices = @transform_1, window_bounds = array<i64: 768, 2048>}, {pipeline_mode = #tpu.pipeline_mode<synchronous>, transform_indices = @transform_2, window_bounds = array<i64: 2048, 512>}, {pipeline_mode = #tpu.pipeline_mode<synchronous>, transform_indices = @transform_3, window_bounds = array<i64: 512, 256>}, {pipeline_mode = #tpu.pipeline_mode<synchronous>, transform_indices = @transform_4, window_bounds = array<i64: 256, 128>}, {pipeline_mode = #tpu.pipeline_mode<synchronous>, transform_indices = @transform_5, window_bounds = array<i64: 128, 128>}, {pipeline_mode = #tpu.pipeline_mode<synchronous>, transform_indices = @transform_6, window_bounds = array<i64: 1, 2048>}, {pipeline_mode = #tpu.pipeline_mode<synchronous>, transform_indices = @transform_7, window_bounds = array<i64: 1, 512>}, {pipeline_mode = #tpu.pipeline_mode<synchronous>, transform_indices = @transform_8, window_bounds = array<i64: 1, 256>}, {pipeline_mode = #tpu.pipeline_mode<synchronous>, transform_indices = @transform_9, window_bounds = array<i64: 1, 128>}, {pipeline_mode = #tpu.pipeline_mode<synchronous>, transform_indices = @transform_10, window_bounds = array<i64: 1, 128>}, {transform_indices = @transform_11, window_bounds = array<i64: 2, 128>}]} {
    %c0 = arith.constant 0 : index
    %c0_0 = arith.constant 0 : index
    %0 = vector.load %arg1[%c0, %c0_0] : memref<2x768xf32, #tpu.memory_space<vmem>>, vector<2x768xf32>
    %1 = arith.truncf %0 : vector<2x768xf32> to vector<2x768xbf16>
    %c0_1 = arith.constant 0 : index
    %c0_2 = arith.constant 0 : index
    %2 = vector.load %arg2[%c0_1, %c0_2] : memref<768x2048xbf16, #tpu.memory_space<vmem>>, vector<768x2048xbf16>
    %cst = arith.constant dense<0.000000e+00> : vector<2x2048xf32>
    %3 = tpu.matmul %1, %2, %cst {dimension_numbers = #tpu.dot_dimension_numbers<[1], [0], [0], [1], [0, 0, 1, 1], [], []>} : vector<2x768xbf16>, vector<768x2048xbf16>, vector<2x2048xf32> -> vector<2x2048xf32>
    %c0_3 = arith.constant 0 : index
    %c0_4 = arith.constant 0 : index
    %4 = vector.load %arg7[%c0_3, %c0_4] : memref<1x2048xf32, #tpu.memory_space<vmem>>, vector<1x2048xf32>
    %5 = vector.broadcast %4 : vector<1x2048xf32> to vector<2x2048xf32>
    %6 = arith.addf %3, %5 : vector<2x2048xf32>
    %cst_5 = arith.constant 0.000000e+00 : f32
    %7 = vector.broadcast %cst_5 : f32 to vector<2x2048xf32>
    %8 = arith.maximumf %6, %7 : vector<2x2048xf32>
    %9 = arith.truncf %8 : vector<2x2048xf32> to vector<2x2048xbf16>
    %c0_6 = arith.constant 0 : index
    %c0_7 = arith.constant 0 : index
    %10 = vector.load %arg3[%c0_6, %c0_7] : memref<2048x512xbf16, #tpu.memory_space<vmem>>, vector<2048x512xbf16>
    %cst_8 = arith.constant dense<0.000000e+00> : vector<2x512xf32>
    %11 = tpu.matmul %9, %10, %cst_8 {dimension_numbers = #tpu.dot_dimension_numbers<[1], [0], [0], [1], [0, 0, 1, 1], [], []>} : vector<2x2048xbf16>, vector<2048x512xbf16>, vector<2x512xf32> -> vector<2x512xf32>
    %c0_9 = arith.constant 0 : index
    %c0_10 = arith.constant 0 : index
    %12 = vector.load %arg8[%c0_9, %c0_10] : memref<1x512xf32, #tpu.memory_space<vmem>>, vector<1x512xf32>
    %13 = vector.broadcast %12 : vector<1x512xf32> to vector<2x512xf32>
    %14 = arith.addf %11, %13 : vector<2x512xf32>
    %cst_11 = arith.constant 0.000000e+00 : f32
    %15 = vector.broadcast %cst_11 : f32 to vector<2x512xf32>
    %16 = arith.maximumf %14, %15 : vector<2x512xf32>
    %17 = arith.truncf %16 : vector<2x512xf32> to vector<2x512xbf16>
    %c0_12 = arith.constant 0 : index
    %c0_13 = arith.constant 0 : index
    %18 = vector.load %arg4[%c0_12, %c0_13] : memref<512x256xbf16, #tpu.memory_space<vmem>>, vector<512x256xbf16>
    %cst_14 = arith.constant dense<0.000000e+00> : vector<2x256xf32>
    %19 = tpu.matmul %17, %18, %cst_14 {dimension_numbers = #tpu.dot_dimension_numbers<[1], [0], [0], [1], [0, 0, 1, 1], [], []>} : vector<2x512xbf16>, vector<512x256xbf16>, vector<2x256xf32> -> vector<2x256xf32>
    %c0_15 = arith.constant 0 : index
    %c0_16 = arith.constant 0 : index
    %20 = vector.load %arg9[%c0_15, %c0_16] : memref<1x256xf32, #tpu.memory_space<vmem>>, vector<1x256xf32>
    %21 = vector.broadcast %20 : vector<1x256xf32> to vector<2x256xf32>
    %22 = arith.addf %19, %21 : vector<2x256xf32>
    %cst_17 = arith.constant 0.000000e+00 : f32
    %23 = vector.broadcast %cst_17 : f32 to vector<2x256xf32>
    %24 = arith.maximumf %22, %23 : vector<2x256xf32>
    %25 = arith.truncf %24 : vector<2x256xf32> to vector<2x256xbf16>
    %c0_18 = arith.constant 0 : index
    %c0_19 = arith.constant 0 : index
    %26 = vector.load %arg5[%c0_18, %c0_19] : memref<256x128xbf16, #tpu.memory_space<vmem>>, vector<256x128xbf16>
    %cst_20 = arith.constant dense<0.000000e+00> : vector<2x128xf32>
    %27 = tpu.matmul %25, %26, %cst_20 {dimension_numbers = #tpu.dot_dimension_numbers<[1], [0], [0], [1], [0, 0, 1, 1], [], []>} : vector<2x256xbf16>, vector<256x128xbf16>, vector<2x128xf32> -> vector<2x128xf32>
    %c0_21 = arith.constant 0 : index
    %c0_22 = arith.constant 0 : index
    %28 = vector.load %arg10[%c0_21, %c0_22] : memref<1x128xf32, #tpu.memory_space<vmem>>, vector<1x128xf32>
    %29 = vector.broadcast %28 : vector<1x128xf32> to vector<2x128xf32>
    %30 = arith.addf %27, %29 : vector<2x128xf32>
    %cst_23 = arith.constant 0.000000e+00 : f32
    %31 = vector.broadcast %cst_23 : f32 to vector<2x128xf32>
    %32 = arith.maximumf %30, %31 : vector<2x128xf32>
    %33 = arith.truncf %32 : vector<2x128xf32> to vector<2x128xbf16>
    %c0_24 = arith.constant 0 : index
    %c0_25 = arith.constant 0 : index
    %34 = vector.load %arg6[%c0_24, %c0_25] : memref<128x128xbf16, #tpu.memory_space<vmem>>, vector<128x128xbf16>
    %cst_26 = arith.constant dense<0.000000e+00> : vector<2x128xf32>
    %35 = tpu.matmul %33, %34, %cst_26 {dimension_numbers = #tpu.dot_dimension_numbers<[1], [0], [0], [1], [0, 0, 1, 1], [], []>} : vector<2x128xbf16>, vector<128x128xbf16>, vector<2x128xf32> -> vector<2x128xf32>
    %c0_27 = arith.constant 0 : index
    %c0_28 = arith.constant 0 : index
    %36 = vector.load %arg11[%c0_27, %c0_28] : memref<1x128xf32, #tpu.memory_space<vmem>>, vector<1x128xf32>
    %37 = vector.broadcast %36 : vector<1x128xf32> to vector<2x128xf32>
    %38 = arith.addf %35, %37 : vector<2x128xf32>
    %cst_29 = arith.constant 0.000000e+00 : f32
    %39 = vector.broadcast %cst_29 : f32 to vector<2x128xf32>
    %40 = arith.maximumf %38, %39 : vector<2x128xf32>
    %c0_30 = arith.constant 0 : index
    %c0_31 = arith.constant 0 : index
    %41 = vector.load %arg12[%c0_30, %c0_31] : memref<2x128xf32, #tpu.memory_space<vmem>>, vector<2x128xf32>
    tpu.vector_store %arg12[%c0_30, %c0_31], %40 {strides = array<i32>} : memref<2x128xf32, #tpu.memory_space<vmem>>, vector<2x128xf32>,
    return
  }
  func.func @transform_0(%arg0: i32) -> (i32, i32) {
    %c0_i32 = arith.constant 0 : i32
    %c0_i32_0 = arith.constant 0 : i32
    return %arg0, %c0_i32 : i32, i32
  }
  func.func @transform_1(%arg0: i32) -> (i32, i32) {
    %c0_i32 = arith.constant 0 : i32
    %c0_i32_0 = arith.constant 0 : i32
    %c0_i32_1 = arith.constant 0 : i32
    return %c0_i32, %c0_i32_0 : i32, i32
  }
  func.func @transform_2(%arg0: i32) -> (i32, i32) {
    %c0_i32 = arith.constant 0 : i32
    %c0_i32_0 = arith.constant 0 : i32
    %c0_i32_1 = arith.constant 0 : i32
    return %c0_i32, %c0_i32_0 : i32, i32
  }
  func.func @transform_3(%arg0: i32) -> (i32, i32) {
    %c0_i32 = arith.constant 0 : i32
    %c0_i32_0 = arith.constant 0 : i32
    %c0_i32_1 = arith.constant 0 : i32
    return %c0_i32, %c0_i32_0 : i32, i32
  }
  func.func @transform_4(%arg0: i32) -> (i32, i32) {
    %c0_i32 = arith.constant 0 : i32
    %c0_i32_0 = arith.constant 0 : i32
    %c0_i32_1 = arith.constant 0 : i32
    return %c0_i32, %c0_i32_0 : i32, i32
  }
  func.func @transform_5(%arg0: i32) -> (i32, i32) {
    %c0_i32 = arith.constant 0 : i32
    %c0_i32_0 = arith.constant 0 : i32
    %c0_i32_1 = arith.constant 0 : i32
    return %c0_i32, %c0_i32_0 : i32, i32
  }
  func.func @transform_6(%arg0: i32) -> (i32, i32) {
    %c0_i32 = arith.constant 0 : i32
    %c0_i32_0 = arith.constant 0 : i32
    %c0_i32_1 = arith.constant 0 : i32
    return %c0_i32, %c0_i32_0 : i32, i32
  }
  func.func @transform_7(%arg0: i32) -> (i32, i32) {
    %c0_i32 = arith.constant 0 : i32
    %c0_i32_0 = arith.constant 0 : i32
    %c0_i32_1 = arith.constant 0 : i32
    return %c0_i32, %c0_i32_0 : i32, i32
  }
  func.func @transform_8(%arg0: i32) -> (i32, i32) {
    %c0_i32 = arith.constant 0 : i32
    %c0_i32_0 = arith.constant 0 : i32
    %c0_i32_1 = arith.constant 0 : i32
    return %c0_i32, %c0_i32_0 : i32, i32
  }
  func.func @transform_9(%arg0: i32) -> (i32, i32) {
    %c0_i32 = arith.constant 0 : i32
    %c0_i32_0 = arith.constant 0 : i32
    %c0_i32_1 = arith.constant 0 : i32
    return %c0_i32, %c0_i32_0 : i32, i32
  }
  func.func @transform_10(%arg0: i32) -> (i32, i32) {
    %c0_i32 = arith.constant 0 : i32
    %c0_i32_0 = arith.constant 0 : i32
    %c0_i32_1 = arith.constant 0 : i32
    return %c0_i32, %c0_i32_0 : i32, i32
  }
  func.func @transform_11(%arg0: i32) -> (i32, i32) {
    %c0_i32 = arith.constant 0 : i32
    %c0_i32_0 = arith.constant 0 : i32
    return %arg0, %c0_i32 : i32, i32
  }
}

</mosaic_0001>

<bundles_post_ra>
// kernel: forward.1
= control target key start
LH: loop header
LB: loop body
LE: loop exit
PB: predicated region body
PF: predicated region fallthrough
CT: control target
= control target key end

     0   :  { %16 = vsyncpa [#allocation3], 0  ;;  %s13500_s0 = inlined_call_operand.vmem [shape: f32[2,768], index: 0, kind: input, shape index: {}]   ;;  %s13501_s1 = inlined_call_operand.hbm [shape: bf16[768,2048], index: 1, kind: input, shape index: {}]   ;;  %s13502_s2 = inlined_call_operand.hbm [shape: bf16[2048,512], index: 2, kind: input, shape index: {}]   ;;  %s13503_s3 = inlined_call_operand.hbm [shape: bf16[512,256], index: 3, kind: input, shape index: {}]   ;;  %s13504_s4 = inlined_call_operand.hbm [shape: bf16[256,128], index: 4, kind: input, shape index: {}]   ;;  %s13505_s5 = inlined_call_operand.hbm [shape: bf16[128,128], index: 5, kind: input, shape index: {}]   ;;  %s13506_s6 = inlined_call_operand.hbm [shape: f32[1,2048], index: 6, kind: input, shape index: {}]   ;;  %s13507_s7 = inlined_call_operand.hbm [shape: f32[1,512], index: 7, kind: input, shape index: {}]   ;;  %s13508_s8 = inlined_call_operand.hbm [shape: f32[1,256], index: 8, kind: input, shape index: {}]   ;;  %s13509_s9 = inlined_call_operand.hbm [shape: f32[1,128], index: 9, kind: input, shape index: {}]   ;;  %s13510_s10 = inlined_call_operand.hbm [shape: f32[1,128], index: 10, kind: input, shape index: {}]   ;;  %s13511_s11 = inlined_call_operand.hbm [shape: f32[2,128], index: 11, kind: output, shape index: {}]  }
   0x1   :  { %17 = vsyncpa [#allocation6], 0 }
   0x2   :  { %18 = vsyncpa [#allocation9], 0 }
   0x3   :  { %19 = vsyncpa [#allocation12], 0 }
   0x4   :  { %20 = vsyncpa [#allocation15], 0 }
   0x5   :  { %21 = vsyncpa [#allocation18], 0 }
   0x6   :  { %22 = vsyncpa [#allocation4], 0  ;;  %s13035_s17 = smov [#allocation5]  }
   0x7   :  { %s42_s18 = sshll.u32 %s13035_s17, 4  ;;  %s43_s18 = int_to_ptr.vmem [resolvable:$true] %s42_s18 }
   0x8   :  { %s12809_s19 = scalar_lea.vmem %s43_s18, 65536  ;;  %p12814_p1 = scmp.lt.s32.totalorder %s43_s18, %s43_s18 }
   0x9   :  { %p12810_p0 = scmp.ne.s32.totalorder %s43_s18, %s12809_s19  ;;  %p12815_p2 = scmp.lt.s32.totalorder %s12809_s19, %s12809_s19 }
   0xb   :  { %p12816_p3 = por %p12815_p2, %p12814_p1 }
   0xd   :  { %p12817_p4 = pnand %p12816_p3, %p12810_p0 }
   0xf   :  { %12820 = shalt.err (!%p12817_p4)
}
  0x10   :  { %s13036_s20 = smov 256   ;;  %s13037_s21 = smov 16  }
  0x11   :  { %48 = dma.hbm_to_vmem [thread:$0]  %s13502_s2, 65536, %s43_s18, [#allocation6], %s13036_s20, %s13036_s20, %s13037_s21  }
  0x12   :  { %s13038_s24 = smov [#allocation8]   ;;  %s13039_s26 = smov [#allocation11]  }
  0x13   :  { %s66_s25 = sshll.u32 %s13038_s24, 4  ;;  %s91_s27 = sshll.u32 %s13039_s26, 4  ;;  %s67_s25 = int_to_ptr.vmem [resolvable:$true] %s66_s25  ;;  %s92_s27 = int_to_ptr.vmem [resolvable:$true] %s91_s27 }
  0x14   :  { %s12829_s28 = scalar_lea.vmem %s67_s25, 2048  ;;  %p12834_p6 = scmp.lt.s32.totalorder %s67_s25, %s67_s25 }
  0x15   :  { %p12830_p5 = scmp.ne.s32.totalorder %s67_s25, %s12829_s28  ;;  %p12835_p7 = scmp.lt.s32.totalorder %s12829_s28, %s12829_s28 }
  0x17   :  { %p12836_p8 = por %p12835_p7, %p12834_p6 }
  0x19   :  { %p12837_p9 = pnand %p12836_p8, %p12830_p5 }
  0x1b   :  { %12840 = shalt.err (!%p12837_p9)
}
  0x1c   :  { %s13040_s29 = smov 64   ;;  %s13041_s30 = smov 4  }
  0x1d   :  { %72 = dma.hbm_to_vmem [thread:$0]  %s13504_s4, 2048, %s67_s25, [#allocation9], %s13040_s29, %s13040_s29, %s13041_s30  }
  0x1e   :  { %s12849_s2 = scalar_lea.vmem %s92_s27, 256  ;;  %p12854_p11 = scmp.lt.s32.totalorder %s92_s27, %s92_s27 }
  0x1f   :  { %p12850_p10 = scmp.ne.s32.totalorder %s92_s27, %s12849_s2  ;;  %p12855_p12 = scmp.lt.s32.totalorder %s12849_s2, %s12849_s2 }
  0x21   :  { %p12856_p13 = por %p12855_p12, %p12854_p11 }
  0x23   :  { %p12857_p0 = pnand %p12856_p13, %p12850_p10 }
  0x25   :  { %12860 = shalt.err (!%p12857_p0)
}
  0x26   :  { %94 = dma.hbm_to_vmem [thread:$0]  %s13506_s6, 256, %s92_s27, [#allocation12]  }
  0x27   :  { %s13042_s16 = smov [#allocation14]   ;;  %s13043_s18 = smov [#allocation2]  }
  0x28   :  { %s111_s17 = sshll.u32 %s13042_s16, 4  ;;  %s30_s19 = sshll.u32 %s13043_s18, 4  ;;  %s112_s17 = int_to_ptr.vmem [resolvable:$true] %s111_s17  ;;  %s31_s19 = int_to_ptr.vmem [resolvable:$true] %s30_s19 }
  0x29   :  { %s12869_s20 = scalar_lea.vmem %s112_s17, 32  ;;  %p12874_p2 = scmp.lt.s32.totalorder %s112_s17, %s112_s17 }
  0x2a   :  { %p12870_p1 = scmp.ne.s32.totalorder %s112_s17, %s12869_s20  ;;  %p12875_p3 = scmp.lt.s32.totalorder %s12869_s20, %s12869_s20 }
  0x2c   :  { %p12876_p4 = por %p12875_p3, %p12874_p2 }
  0x2e   :  { %p12877_p5 = pnand %p12876_p4, %p12870_p1 }
  0x30   :  { %12880 = shalt.err (!%p12877_p5)
}
  0x31   :  { %114 = dma.hbm_to_vmem [thread:$0]  %s13508_s8, 32, %s112_s17, [#allocation15]  }
  0x32   :  { %s12889_s22 = scalar_lea.vmem %s31_s19, 98304  ;;  %p12894_p7 = scmp.lt.s32.totalorder %s31_s19, %s31_s19 }
  0x33   :  { %p12890_p6 = scmp.ne.s32.totalorder %s31_s19, %s12889_s22  ;;  %p12895_p8 = scmp.lt.s32.totalorder %s12889_s22, %s12889_s22 }
  0x35   :  { %p12896_p9 = por %p12895_p8, %p12894_p7 }
  0x37   :  { %p12897_p10 = pnand %p12896_p9, %p12890_p6 }
  0x39   :  { %12900 = shalt.err (!%p12897_p10)
}
  0x3a   :  { %s13044_s6 = smov 1024   ;;  %s13045_s25 = smov [#allocation7]  }
  0x3b   :  { %36 = dma.hbm_to_vmem [thread:$0]  %s13501_s1, 98304, %s31_s19, [#allocation3], %s13044_s6, %s13044_s6, %s13040_s29  }
  0x3c   :  { %s54_s26 = sshll.u32 %s13045_s25, 4  ;;  %s55_s26 = int_to_ptr.vmem [resolvable:$true] %s54_s26 }
  0x3d   :  { %s12909_s27 = scalar_lea.vmem %s55_s26, 8192  ;;  %p12914_p12 = scmp.lt.s32.totalorder %s55_s26, %s55_s26 }
  0x3e   :  { %p12910_p11 = scmp.ne.s32.totalorder %s55_s26, %s12909_s27  ;;  %p12915_p13 = scmp.lt.s32.totalorder %s12909_s27, %s12909_s27 }
  0x40   :  { %p12916_p0 = por %p12915_p13, %p12914_p12 }
  0x42   :  { %p12917_p1 = pnand %p12916_p0, %p12910_p11 }
  0x44   :  { %12920 = shalt.err (!%p12917_p1)
}
  0x45   :  { %s13046_s8 = smov 128   ;;  %s13047_s28 = smov 8  }
  0x46   :  { %60 = dma.hbm_to_vmem [thread:$0]  %s13503_s3, 8192, %s55_s26, [#allocation6], %s13046_s8, %s13046_s8, %s13047_s28  }
  0x47   :  { %s13048_s2 = smov [#allocation10]   ;;  %s13049_s1 = smov [#allocation13]  }
  0x48   :  { %s78_s14 = sshll.u32 %s13048_s2, 4  ;;  %s101_s15 = sshll.u32 %s13049_s1, 4  ;;  %s79_s14 = int_to_ptr.vmem [resolvable:$true] %s78_s14  ;;  %s102_s15 = int_to_ptr.vmem [resolvable:$true] %s101_s15 }
  0x49   :  { %s12929_s16 = scalar_lea.vmem %s79_s14, 1024  ;;  %p12934_p3 = scmp.lt.s32.totalorder %s79_s14, %s79_s14 }
  0x4a   :  { %p12930_p2 = scmp.ne.s32.totalorder %s79_s14, %s12929_s16  ;;  %p12935_p4 = scmp.lt.s32.totalorder %s12929_s16, %s12929_s16 }
  0x4c   :  { %p12936_p5 = por %p12935_p4, %p12934_p3 }
  0x4e   :  { %p12937_p6 = pnand %p12936_p5, %p12930_p2 }
  0x50   :  { %12940 = shalt.err (!%p12937_p6)
}
  0x51   :  { %84 = dma.hbm_to_vmem [thread:$0]  %s13505_s5, 1024, %s79_s14, [#allocation9], %s13040_s29, %s13040_s29, %s13041_s30  }
  0x52   :  { %s12949_s3 = scalar_lea.vmem %s102_s15, 64  ;;  %p12954_p8 = scmp.lt.s32.totalorder %s102_s15, %s102_s15 }
  0x53   :  { %p12950_p7 = scmp.ne.s32.totalorder %s102_s15, %s12949_s3  ;;  %p12955_p9 = scmp.lt.s32.totalorder %s12949_s3, %s12949_s3 }
  0x55   :  { %p12956_p10 = por %p12955_p9, %p12954_p8 }
  0x57   :  { %p12957_p11 = pnand %p12956_p10, %p12950_p7 }
  0x59   :  { %12960 = shalt.err (!%p12957_p11)
}
  0x5a   :  { %104 = dma.hbm_to_vmem [thread:$0]  %s13507_s7, 64, %s102_s15, [#allocation12]  }
  0x5b   :  { %s13050_s4 = smov [#allocation16]   ;;  %s13051_s22 = smov [#allocation17]  }
  0x5c   :  { %s121_s21 = sshll.u32 %s13050_s4, 4  ;;  %s131_s6 = sshll.u32 %s13051_s22, 4  ;;  %s122_s21 = int_to_ptr.vmem [resolvable:$true] %s121_s21  ;;  %s132_s6 = int_to_ptr.vmem [resolvable:$true] %s131_s6 }
  0x5d   :  { %s12969_s23 = scalar_lea.vmem %s122_s21, 16  ;;  %s12973_s5 = scalar_lea.vmem %s122_s21, 32 }
  0x5e   :  { %p12970_p12 = scmp.ne.s32.totalorder %s122_s21, %s12969_s23  ;;  %p12974_p13 = scmp.lt.s32.totalorder %s122_s21, %s122_s21 }
  0x5f   :  { %p12975_p0 = scmp.lt.s32.totalorder %s12973_s5, %s12969_s23 }
  0x61   :  { %p12976_p1 = por %p12975_p0, %p12974_p13 }
  0x63   :  { %p12977_p2 = pnand %p12976_p1, %p12970_p12 }
  0x65   :  { %12980 = shalt.err (!%p12977_p2)
}
  0x66   :  { %124 = dma.hbm_to_vmem [thread:$0]  %s13509_s9, 16, %s122_s21, [#allocation15]  }
  0x67   :  { %s12989_s24 = scalar_lea.vmem %s132_s6, 16  ;;  %s12993_s7 = scalar_lea.vmem %s132_s6, 32 }
  0x68   :  { %p12990_p3 = scmp.ne.s32.totalorder %s132_s6, %s12989_s24  ;;  %p12994_p4 = scmp.lt.s32.totalorder %s132_s6, %s132_s6 }
  0x69   :  { %p12995_p5 = scmp.lt.s32.totalorder %s12993_s7, %s12989_s24 }
  0x6b   :  { %p12996_p6 = por %p12995_p5, %p12994_p4 }
  0x6d   :  { %p12997_p7 = pnand %p12996_p6, %p12990_p3 }
  0x6f   :  { %13000 = shalt.err (!%p12997_p7)
}
  0x70   :  { %134 = dma.hbm_to_vmem [thread:$0]  %s13510_s10, 16, %s132_s6, [#allocation18]  }
  0x71   :  { %13021 = dma.done.wait [#allocation3], 98304  }
  0x72   :  { %13022 = vsyncadd [#allocation3], 4294868992 }
  0x73   :  { %13023 = dma.done.wait [#allocation6], 73728  }
  0x74   :  { %13024 = vsyncadd [#allocation6], 4294893568 }
  0x75   :  { %13025 = dma.done.wait [#allocation9], 3072  }
  0x76   :  { %13026 = vsyncadd [#allocation9], 4294964224 }
  0x77   :  { %13027 = dma.done.wait [#allocation12], 320  }
  0x78   :  { %13028 = vsyncadd [#allocation12], 4294966976 }
  0x79   :  { %13029 = dma.done.wait [#allocation15], 48  }
  0x7a   :  { %13030 = vsyncadd [#allocation15], 4294967248 }
  0x7b   :  { %13031 = dma.done.wait [#allocation18], 16  }
  0x7c   :  { %13032 = vsyncadd [#allocation18], 4294967280  ;;  %v319_v0 = vld [vmem:[#allocation2 + $0x380] sm:$0xff]  ;;  %v13052_v32 = vmov 1983009808   ;;  %v174_v34 = vlaneseq  ;;  %vm13054_vm0 = vmmov 0  }
  0x7d   :  { %v327_v1 = vld [vmem:[#allocation2 + $0x3c0] sm:$0xff]  ;;  %v172_v33 = vunpack.c.l.s4 %v13052_v32 }
  0x7e   :  { %v575_v2 = vld [vmem:[#allocation2 + $0xb80] sm:$0xff]  ;;  %v10579_v3 = vcombine.high %v319_v0, %v327_v1  ;;  %v10578_v5 = vcombine.low %v319_v0, %v327_v1  ;;  %v13153_v44 = vshrl.u32 %v174_v34, 7 }
  0x7f   :  { %v583_v4 = vld [vmem:[#allocation2 + $0xbc0] sm:$0xff]  ;;  %v173_v43 = vunpack.c.0.s8 %v172_v33 }
  0x80   :  { %v303_v6 = vld [vmem:[#allocation2 + $0x300] sm:$0xff]  ;;  %v10835_v8 = vcombine.high %v575_v2, %v583_v4  ;;  %v10834_v9 = vcombine.low %v575_v2, %v583_v4  ;;  %4899 = vmatprep.subr.bf16.mxu0 %v10579_v3 }
  0x81   :  { %v311_v7 = vld [vmem:[#allocation2 + $0x340] sm:$0xff]  ;;  %4900 = vmatpush1.bf16.msra.mxu0 %v10578_v5  ;;  %v176_v53 = vsub.s32 %v173_v43, %v13153_v44 }
  0x82   :  { %v10563_v10 = vcombine.high %v303_v6, %v311_v7  ;;  %v559_v11 = vld [vmem:[#allocation2 + $0xb00] sm:$0xff]  ;;  %4940 = vmatprep.subr.bf16.mxu1 %v10835_v8  ;;  %v10562_v18 = vcombine.low %v303_v6, %v311_v7 }
  0x83   :  { %v567_v12 = vld [vmem:[#allocation2 + $0xb40] sm:$0xff]  ;;  %4941 = vmatpush1.bf16.msra.mxu1 %v10834_v9 }
  0x84   :  { %v287_v13 = vld [vmem:[#allocation2 + $0x280] sm:$0xff]  ;;  %v10819_v14 = vcombine.high %v559_v11, %v567_v12  ;;  %4901 = vmatprep.subr.bf16.mxu0 %v10563_v10  ;;  %v10818_v19 = vcombine.low %v559_v11, %v567_v12 }
  0x85   :  { %v295_v15 = vld [vmem:[#allocation2 + $0x2c0] sm:$0xff]  ;;  %4902 = vmatpush1.bf16.msra.mxu0 %v10562_v18 }
  0x86   :  { %v543_v16 = vld [vmem:[#allocation2 + $0xa80] sm:$0xff]  ;;  %v10547_v20 = vcombine.high %v287_v13, %v295_v15  ;;  %4942 = vmatprep.subr.bf16.mxu1 %v10819_v14  ;;  %v10546_v26 = vcombine.low %v287_v13, %v295_v15 }
  0x87   :  { %v551_v17 = vld [vmem:[#allocation2 + $0xac0] sm:$0xff]  ;;  %4943 = vmatpush1.bf16.msra.mxu1 %v10818_v19 }
  0x88   :  { %v10803_v21 = vcombine.high %v543_v16, %v551_v17  ;;  %v271_v22 = vld [vmem:[#allocation2 + $0x200] sm:$0xff]  ;;  %4903 = vmatprep.subr.bf16.mxu0 %v10547_v20  ;;  %v10802_v27 = vcombine.low %v543_v16, %v551_v17 }
  0x89   :  { %v279_v23 = vld [vmem:[#allocation2 + $0x240] sm:$0xff]  ;;  %4904 = vmatpush1.bf16.msra.mxu0 %v10546_v26 }
  0x8a   :  { %v527_v24 = vld [vmem:[#allocation2 + $0xa00] sm:$0xff]  ;;  %v10531_v28 = vcombine.high %v271_v22, %v279_v23  ;;  %4944 = vmatprep.subr.bf16.mxu1 %v10803_v21  ;;  %v10530_v37 = vcombine.low %v271_v22, %v279_v23 }
  0x8b   :  { %v535_v25 = vld [vmem:[#allocation2 + $0xa40] sm:$0xff]  ;;  %4945 = vmatpush1.bf16.msra.mxu1 %v10802_v27 }
  0x8c   :  { %v10787_v29 = vcombine.high %v527_v24, %v535_v25  ;;  %v255_v30 = vld [vmem:[#allocation2 + $0x180] sm:$0xff]  ;;  %4905 = vmatprep.subr.bf16.mxu0 %v10531_v28  ;;  %v10786_v38 = vcombine.low %v527_v24, %v535_v25 }
  0x8d   :  { %v263_v31 = vld [vmem:[#allocation2 + $0x1c0] sm:$0xff]  ;;  %4906 = vmatpush1.bf16.msra.mxu0 %v10530_v37 }
  0x8e   :  { %v511_v35 = vld [vmem:[#allocation2 + $0x980] sm:$0xff]  ;;  %v10515_v39 = vcombine.high %v255_v30, %v263_v31  ;;  %4946 = vmatprep.subr.bf16.mxu1 %v10787_v29  ;;  %v10514_v47 = vcombine.low %v255_v30, %v263_v31 }
  0x8f   :  { %v519_v36 = vld [vmem:[#allocation2 + $0x9c0] sm:$0xff]  ;;  %4947 = vmatpush1.bf16.msra.mxu1 %v10786_v38 }
  0x90   :  { %v10771_v40 = vcombine.high %v511_v35, %v519_v36  ;;  %v239_v41 = vld [vmem:[#allocation2 + $0x100] sm:$0xff]  ;;  %4907 = vmatprep.subr.bf16.mxu0 %v10515_v39  ;;  %v10770_v48 = vcombine.low %v511_v35, %v519_v36 }
  0x91   :  { %v247_v42 = vld [vmem:[#allocation2 + $0x140] sm:$0xff]  ;;  %4908 = vmatpush1.bf16.msra.mxu0 %v10514_v47 }
  0x92   :  { %v495_v45 = vld [vmem:[#allocation2 + $0x900] sm:$0xff]  ;;  %v10499_v49 = vcombine.high %v239_v41, %v247_v42  ;;  %4948 = vmatprep.subr.bf16.mxu1 %v10771_v40  ;;  %v10498_v56 = vcombine.low %v239_v41, %v247_v42 }
  0x93   :  { %v503_v46 = vld [vmem:[#allocation2 + $0x940] sm:$0xff]  ;;  %4949 = vmatpush1.bf16.msra.mxu1 %v10770_v48 }
  0x94   :  { %v10755_v50 = vcombine.high %v495_v45, %v503_v46  ;;  %v223_v51 = vld [vmem:[#allocation2 + $0x80] sm:$0xff]  ;;  %4909 = vmatprep.subr.bf16.mxu0 %v10499_v49  ;;  %v10754_v57 = vcombine.low %v495_v45, %v503_v46 }
  0x95   :  { %v231_v52 = vld [vmem:[#allocation2 + $0xc0] sm:$0xff]  ;;  %4910 = vmatpush1.bf16.msra.mxu0 %v10498_v56 }
  0x96   :  { %v479_v54 = vld [vmem:[#allocation2 + $0x880] sm:$0xff]  ;;  %v10483_v58 = vcombine.high %v223_v51, %v231_v52  ;;  %4950 = vmatprep.subr.bf16.mxu1 %v10755_v50  ;;  %v10482_v3 = vcombine.low %v223_v51, %v231_v52 }
  0x97   :  { %v487_v55 = vld [vmem:[#allocation2 + $0x8c0] sm:$0xff]  ;;  %4951 = vmatpush1.bf16.msra.mxu1 %v10754_v57 }
  0x98   :  { %v166_v59 = vld [vmem:[%s13500_s0] sm:$0xff]  ;;  %v10739_v60 = vcombine.high %v479_v54, %v487_v55  ;;  %4911 = vmatprep.subr.bf16.mxu0 %v10483_v58  ;;  %v10738_v6 = vcombine.low %v479_v54, %v487_v55 }
  0x99   :  { %v207_v61 = vld [vmem:[#allocation2] sm:$0xff]  ;;  %v13159_v63 = vrot.slane %v166_v59, %v176_v53  ;;  %v170_v0 = vcombine.high %v166_v59, %v166_v59  ;;  %4912 = vmatpush1.bf16.msra.mxu0 %v10482_v3 }
  0x9a   :  { %v215_v62 = vld [vmem:[#allocation2 + $0x40] sm:$0xff]  ;;  %4952 = vmatprep.subr.bf16.mxu1 %v10739_v60 }
  0x9b   :  { %v463_v1 = vld [vmem:[#allocation2 + $0x800] sm:$0xff]  ;;  %v185_v4 = vcombine.high %v13159_v63, %v13159_v63  ;;  %v13163_v5 = vrot.slane %v170_v0, %v176_v53  ;;  %v10467_v7 = vcombine.high %v207_v61, %v215_v62  ;;  %v10466_v15 = vcombine.low %v207_v61, %v215_v62  ;;  %4953 = vmatpush1.bf16.msra.mxu1 %v10738_v6 }
  0x9c   :  { %v471_v2 = vld [vmem:[#allocation2 + $0x840] sm:$0xff] }
  0x9d   :  { %v10723_v8 = vcombine.high %v463_v1, %v471_v2  ;;  %v447_v9 = vld [vmem:[#allocation2 + $0x780] sm:$0xff]  ;;  %v13165_v11 = vpack.c.bf16 %v185_v4, %v185_v4  ;;  %v186_v12 = vcombine.high %v13163_v5, %v13163_v5  ;;  %4913 = vmatprep.subr.bf16.mxu0 %v10467_v7  ;;  %v10722_v17 = vcombine.low %v463_v1, %v471_v2 }
  0x9e   :  { %v455_v10 = vld [vmem:[#allocation2 + $0x7c0] sm:$0xff]  ;;  %4914 = vmatpush1.bf16.msra.mxu0 %v10466_v15 }
  0x9f   :  { %v703_v13 = vld [vmem:[#allocation2 + $0xf80] sm:$0xff]  ;;  %4931 = vmatprep.mubr.bf16.mxu0 %v13165_v11  ;;  %v13170_v16 = vpack.c.bf16 %v186_v12, %v186_v12  ;;  %v10707_v18 = vcombine.high %v447_v9, %v455_v10  ;;  %4954 = vmatprep.subr.bf16.mxu1 %v10723_v8  ;;  %v10706_v24 = vcombine.low %v447_v9, %v455_v10 }
  0xa0   :  { %v711_v14 = vld [vmem:[#allocation2 + $0xfc0] sm:$0xff]  ;;  %4955 = vmatpush1.bf16.msra.mxu1 %v10722_v17 }
  0xa1   :  { %v10963_v19 = vcombine.high %v703_v13, %v711_v14  ;;  %v431_v20 = vld [vmem:[#allocation2 + $0x700] sm:$0xff]  ;;  %4972 = vmatprep.mubr.bf16.mxu1 %v13170_v16  ;;  %4915 = vmatprep.subr.bf16.mxu0 %v10707_v18  ;;  %v10962_v25 = vcombine.low %v703_v13, %v711_v14 }
  0xa2   :  { %v439_v21 = vld [vmem:[#allocation2 + $0x740] sm:$0xff]  ;;  %4916 = vmatpush2.bf16.msra.mxu0 %v10706_v24 }
  0xa3   :  { %v687_v22 = vld [vmem:[#allocation2 + $0xf00] sm:$0xff]  ;;  %v10691_v26 = vcombine.high %v431_v20, %v439_v21  ;;  %4956 = vmatprep.subr.bf16.mxu1 %v10963_v19  ;;  %v10690_v32 = vcombine.low %v431_v20, %v439_v21  ;;  %v320_v19 = vld [vmem:[#allocation2 + $0x388] sm:$0xff] }
  0xa4   :  { %v695_v23 = vld [vmem:[#allocation2 + $0xf40] sm:$0xff]  ;;  %4957 = vmatpush2.bf16.msra.mxu1 %v10962_v25  ;;  %v328_v20 = vld [vmem:[#allocation2 + $0x3c8] sm:$0xff] }
  0xa5   :  { %v10947_v27 = vcombine.high %v687_v22, %v695_v23  ;;  %v415_v28 = vld [vmem:[#allocation2 + $0x680] sm:$0xff]  ;;  %4917 = vmatprep.subr.bf16.mxu0 %v10691_v26  ;;  %v10946_v33 = vcombine.low %v687_v22, %v695_v23  ;;  %v13176_v21 = vld.sshfl [vmem:[%s13500_s0 + $0x8] sm:$0x33 pattern:$0x76325410]  ;;  %v10581_v25 = vcombine.high %v320_v19, %v328_v20  ;;  %s13055_s0 = smov [#allocation19]  }
  0xa6   :  { %v423_v29 = vld [vmem:[#allocation2 + $0x6c0] sm:$0xff]  ;;  %4918 = vmatpush2.bf16.msra.mxu0 %v10690_v32  ;;  %v13186_v32 = vpack.c.bf16 %v13163_v5, %v13163_v5  ;;  %s10451_s28 = sshll.u32 %s13055_s0, 4  ;;  %s10452_s28 = int_to_ptr.vmem [resolvable:$true] %s10451_s28 }
  0xa7   :  { %v671_v30 = vld [vmem:[#allocation2 + $0xe80] sm:$0xff]  ;;  %v10675_v34 = vcombine.high %v415_v28, %v423_v29  ;;  %4958 = vmatprep.subr.bf16.mxu1 %v10947_v27  ;;  %v10674_v40 = vcombine.low %v415_v28, %v423_v29  ;;  %v194_v28 = vcombine.high %v13176_v21, %v13176_v21  ;;  %v13182_v29 = vpack.c.bf16 %v13159_v63, %v13159_v63  ;;  %s13001_s12 = scalar_lea.vmem %s10452_s28, 32  ;;  %p13006_p9 = scmp.lt.s32.totalorder %s10452_s28, %s10452_s28 }
  0xa8   :  { %v679_v31 = vld [vmem:[#allocation2 + $0xec0] sm:$0xff]  ;;  %4959 = vmatpush2.bf16.msra.mxu1 %v10946_v33  ;;  %p13002_p8 = scmp.ne.s32.totalorder %s10452_s28, %s13001_s12  ;;  %p13007_p10 = scmp.lt.s32.totalorder %s13001_s12, %s13001_s12 }
  0xa9   :  { %v10931_v35 = vcombine.high %v671_v30, %v679_v31  ;;  %v399_v36 = vld [vmem:[#allocation2 + $0x600] sm:$0xff]  ;;  %4919 = vmatprep.subr.bf16.mxu0 %v10675_v34  ;;  %v10930_v41 = vcombine.low %v671_v30, %v679_v31  ;;  %v304_v30 = vld [vmem:[#allocation2 + $0x308] sm:$0xff]  ;;  %v10580_v34 = vcombine.low %v320_v19, %v328_v20  ;;  %v13188_v63 = vpack.c.bf16 %v194_v28, %v194_v28 }
  0xaa   :  { %v407_v37 = vld [vmem:[#allocation2 + $0x640] sm:$0xff]  ;;  %4920 = vmatpush2.bf16.msra.mxu0 %v10674_v40  ;;  %v312_v31 = vld [vmem:[#allocation2 + $0x348] sm:$0xff]  ;;  %p13008_p11 = por %p13007_p10, %p13006_p9 }
  0xab   :  { %v655_v38 = vld [vmem:[#allocation2 + $0xe00] sm:$0xff]  ;;  %v10659_v42 = vcombine.high %v399_v36, %v407_v37  ;;  %4960 = vmatprep.subr.bf16.mxu1 %v10931_v35  ;;  %v10658_v49 = vcombine.low %v399_v36, %v407_v37  ;;  %v296_v40 = vld [vmem:[#allocation2 + $0x2c8] sm:$0xff] }
  0xac   :  { %v663_v39 = vld [vmem:[#allocation2 + $0xe40] sm:$0xff]  ;;  %4961 = vmatpush2.bf16.msra.mxu1 %v10930_v41  ;;  %v10564_v41 = vcombine.low %v304_v30, %v312_v31  ;;  %v216_v20 = vld [vmem:[#allocation2 + $0x48] sm:$0xff]  ;;  %p13009_p12 = pnand %p13008_p11, %p13002_p8 }
  0xad   :  { %v10915_v43 = vcombine.high %v655_v38, %v663_v39  ;;  %v383_v45 = vld [vmem:[#allocation2 + $0x580] sm:$0xff]  ;;  %4921 = vmatprep.subr.bf16.mxu0 %v10659_v42  ;;  %v10914_v50 = vcombine.low %v655_v38, %v663_v39  ;;  %v288_v38 = vld [vmem:[#allocation2 + $0x288] sm:$0xff]  ;;  %v10565_v39 = vcombine.high %v304_v30, %v312_v31 }
  0xae   :  { %v391_v46 = vld [vmem:[#allocation2 + $0x5c0] sm:$0xff]  ;;  %4922 = vmatpush2.bf16.msra.mxu0 %v10658_v49  ;;  %v456_v30 = vld [vmem:[#allocation2 + $0x7c8] sm:$0xff] }
  0xaf   :  { %v639_v47 = vld [vmem:[#allocation2 + $0xd80] sm:$0xff]  ;;  %v10643_v51 = vcombine.high %v383_v45, %v391_v46  ;;  %4962 = vmatprep.subr.bf16.mxu1 %v10915_v43  ;;  %v10642_v57 = vcombine.low %v383_v45, %v391_v46  ;;  %v272_v46 = vld [vmem:[#allocation2 + $0x208] sm:$0xff] }
  0xb0   :  { %v647_v48 = vld [vmem:[#allocation2 + $0xdc0] sm:$0xff]  ;;  %4963 = vmatpush2.bf16.msra.mxu1 %v10914_v50  ;;  %v10548_v50 = vcombine.low %v288_v38, %v296_v40 }
  0xb1   :  { %v10899_v52 = vcombine.high %v639_v47, %v647_v48  ;;  %v367_v53 = vld [vmem:[#allocation2 + $0x500] sm:$0xff]  ;;  %4923 = vmatprep.subr.bf16.mxu0 %v10643_v51  ;;  %v10898_v58 = vcombine.low %v639_v47, %v647_v48  ;;  %v10549_v47 = vcombine.high %v288_v38, %v296_v40  ;;  %v280_v48 = vld [vmem:[#allocation2 + $0x248] sm:$0xff] }
  0xb2   :  { %v375_v54 = vld [vmem:[#allocation2 + $0x540] sm:$0xff]  ;;  %4924 = vmatpush2.bf16.msra.mxu0 %v10642_v57 }
  0xb3   :  { %v623_v55 = vld [vmem:[#allocation2 + $0xd00] sm:$0xff]  ;;  %v10627_v59 = vcombine.high %v367_v53, %v375_v54  ;;  %4964 = vmatprep.subr.bf16.mxu1 %v10899_v52  ;;  %v10626_v2 = vcombine.low %v367_v53, %v375_v54  ;;  %v256_v54 = vld [vmem:[#allocation2 + $0x188] sm:$0xff] }
  0xb4   :  { %v631_v56 = vld [vmem:[#allocation2 + $0xd40] sm:$0xff]  ;;  %4965 = vmatpush2.bf16.msra.mxu1 %v10898_v58  ;;  %v10532_v58 = vcombine.low %v272_v46, %v280_v48 }
  0xb5   :  { %v10883_v60 = vcombine.high %v623_v55, %v631_v56  ;;  %v351_v61 = vld [vmem:[#allocation2 + $0x480] sm:$0xff]  ;;  %4925 = vmatprep.subr.bf16.mxu0 %v10627_v59  ;;  %v10882_v3 = vcombine.low %v623_v55, %v631_v56  ;;  %v10533_v55 = vcombine.high %v272_v46, %v280_v48  ;;  %v264_v56 = vld [vmem:[#allocation2 + $0x1c8] sm:$0xff] }
  0xb6   :  { %v359_v62 = vld [vmem:[#allocation2 + $0x4c0] sm:$0xff]  ;;  %4926 = vmatpush2.bf16.msra.mxu0 %v10626_v2 }
  0xb7   :  { %v607_v0 = vld [vmem:[#allocation2 + $0xc80] sm:$0xff]  ;;  %v10611_v4 = vcombine.high %v351_v61, %v359_v62  ;;  %4966 = vmatprep.subr.bf16.mxu1 %v10883_v60  ;;  %v10610_v12 = vcombine.low %v351_v61, %v359_v62  ;;  %v240_v62 = vld [vmem:[#allocation2 + $0x108] sm:$0xff] }
  0xb8   :  { %v615_v1 = vld [vmem:[#allocation2 + $0xcc0] sm:$0xff]  ;;  %4967 = vmatpush2.bf16.msra.mxu1 %v10882_v3  ;;  %v10516_v3 = vcombine.low %v256_v54, %v264_v56 }
  0xb9   :  { %v10867_v6 = vcombine.high %v607_v0, %v615_v1  ;;  %v335_v7 = vld [vmem:[#allocation2 + $0x400] sm:$0xff]  ;;  %4927 = vmatprep.subr.bf16.mxu0 %v10611_v4  ;;  %v10866_v13 = vcombine.low %v607_v0, %v615_v1  ;;  %v10517_v0 = vcombine.high %v256_v54, %v264_v56  ;;  %v248_v1 = vld [vmem:[#allocation2 + $0x148] sm:$0xff] }
  0xba   :  { %v343_v8 = vld [vmem:[#allocation2 + $0x440] sm:$0xff]  ;;  %4928 = vmatpush2.bf16.msra.mxu0 %v10610_v12 }
  0xbb   :  { %v591_v9 = vld [vmem:[#allocation2 + $0xc00] sm:$0xff]  ;;  %v10595_v14 = vcombine.high %v335_v7, %v343_v8  ;;  %4968 = vmatprep.subr.bf16.mxu1 %v10867_v6  ;;  %v10594_v22 = vcombine.low %v335_v7, %v343_v8  ;;  %v224_v8 = vld [vmem:[#allocation2 + $0x88] sm:$0xff] }
  0xbc   :  { %v599_v10 = vld [vmem:[#allocation2 + $0xc40] sm:$0xff]  ;;  %4969 = vmatpush2.bf16.msra.mxu1 %v10866_v13  ;;  %v10500_v13 = vcombine.low %v240_v62, %v248_v1 }
  0xbd   :  { %v10851_v15 = vcombine.high %v591_v9, %v599_v10  ;;  %v831_v17 = vld [vmem:[#allocation2 + $0x1380] sm:$0xff]  ;;  %4929 = vmatprep.subr.bf16.mxu0 %v10595_v14  ;;  %v10850_v23 = vcombine.low %v591_v9, %v599_v10  ;;  %v10501_v9 = vcombine.high %v240_v62, %v248_v1  ;;  %v232_v10 = vld [vmem:[#allocation2 + $0xc8] sm:$0xff] }
  0xbe   :  { %v839_v18 = vld [vmem:[#allocation2 + $0x13c0] sm:$0xff]  ;;  %4930 = vmatpush2.bf16.msra.mxu0 %v10594_v22  ;;  %v10485_v19 = vcombine.high %v224_v8, %v232_v10 }
  0xbf   :  { %v11091_v24 = vcombine.high %v831_v17, %v839_v18  ;;  %4970 = vmatprep.subr.bf16.mxu1 %v10851_v15  ;;  %v815_v26 = vld [vmem:[#allocation2 + $0x1300] sm:$0xff]  ;;  %v11090_v33 = vcombine.low %v831_v17, %v839_v18  ;;  %v208_v18 = vld [vmem:[#allocation2 + $0x8] sm:$0xff] }
  0xc0   :  { %v823_v27 = vld [vmem:[#allocation2 + $0x1340] sm:$0xff]  ;;  %4971 = vmatpush2.bf16.msra.mxu1 %v10850_v23  ;;  %v10484_v23 = vcombine.low %v224_v8, %v232_v10  ;;  %v10469_v28 = vcombine.high %v208_v18, %v216_v20 }
  0xc1   :  { %4981 = vmatprep.subr.bf16.mxu0 %v11091_v24  ;;  %v11075_v35 = vcombine.high %v815_v26, %v823_v27  ;;  %v799_v36 = vld [vmem:[#allocation2 + $0x1280] sm:$0xff]  ;;  %5022 = vmatprep.subr.bf16.mxu1 %v10581_v25  ;;  %v11074_v5 = vcombine.low %v815_v26, %v823_v27  ;;  %v448_v27 = vld [vmem:[#allocation2 + $0x788] sm:$0xff] }
  0xc2   :  { %v807_v37 = vld [vmem:[#allocation2 + $0x12c0] sm:$0xff]  ;;  %4932 = vmatmul.mubr.bf16.vlgmr.msra.gmra.mxu0 %v13182_v29  ;;  %v10709_v38 = vcombine.high %v448_v27, %v456_v30 }
  0xc3   :  { %4973 = vmatmul.mubr.bf16.vlgmr.msra.gmra.mxu1 %v13186_v32  ;;  %4982 = vmatpush1.bf16.msra.mxu0 %v11090_v33  ;;  %v11059_v42 = vcombine.high %v799_v36, %v807_v37  ;;  %v783_v43 = vld [vmem:[#allocation2 + $0x1200] sm:$0xff]  ;;  %v11058_v49 = vcombine.low %v799_v36, %v807_v37  ;;  %v10468_v33 = vcombine.low %v208_v18, %v216_v20  ;;  %v432_v37 = vld [vmem:[#allocation2 + $0x708] sm:$0xff] }
  0xc4   :  { %5023 = vmatpush1.bf16.msra.mxu1 %v10580_v34  ;;  %4983 = vmatprep.subr.bf16.mxu0 %v11075_v35  ;;  %v791_v45 = vld [vmem:[#allocation2 + $0x1240] sm:$0xff] }
  0xc5   :  { %5024 = vmatprep.subr.bf16.mxu1 %v10565_v39  ;;  %5013 = vmatprep.mubr.bf16.mxu0 %v13188_v63  ;;  %v11043_v51 = vcombine.high %v783_v43, %v791_v45  ;;  %v767_v52 = vld [vmem:[#allocation2 + $0x1180] sm:$0xff]  ;;  %v11042_v57 = vcombine.low %v783_v43, %v791_v45  ;;  %v440_v39 = vld [vmem:[#allocation2 + $0x748] sm:$0xff] }
  0xc6   :  { %5054 = vmatprep.mubr.bf16.mxu1 %v13165_v11  ;;  %v775_v53 = vld [vmem:[#allocation2 + $0x11c0] sm:$0xff]  ;;  %v416_v45 = vld [vmem:[#allocation2 + $0x688] sm:$0xff]  ;;  %v10693_v46 = vcombine.high %v432_v37, %v440_v39 }
  0xc7   :  { %4984 = vmatpush1.bf16.msra.mxu0 %v11074_v5  ;;  %v11027_v59 = vcombine.high %v767_v52, %v775_v53  ;;  %v751_v60 = vld [vmem:[#allocation2 + $0x1100] sm:$0xff]  ;;  %v11026_v2 = vcombine.low %v767_v52, %v775_v53  ;;  %v10708_v5 = vcombine.low %v448_v27, %v456_v30  ;;  %v400_v53 = vld [vmem:[#allocation2 + $0x608] sm:$0xff] }
  0xc8   :  { %5025 = vmatpush1.bf16.msra.mxu1 %v10564_v41  ;;  %4985 = vmatprep.subr.bf16.mxu0 %v11059_v42  ;;  %v759_v61 = vld [vmem:[#allocation2 + $0x1140] sm:$0xff] }
  0xc9   :  { %5026 = vmatprep.subr.bf16.mxu1 %v10549_v47  ;;  %v11011_v4 = vcombine.high %v751_v60, %v759_v61  ;;  %v735_v6 = vld [vmem:[#allocation2 + $0x1080] sm:$0xff]  ;;  %v11010_v12 = vcombine.low %v751_v60, %v759_v61  ;;  %v424_v47 = vld [vmem:[#allocation2 + $0x6c8] sm:$0xff] }
  0xca   :  { %v743_v7 = vld [vmem:[#allocation2 + $0x10c0] sm:$0xff]  ;;  %v10677_v54 = vcombine.high %v416_v45, %v424_v47  ;;  %v384_v61 = vld [vmem:[#allocation2 + $0x588] sm:$0xff] }
  0xcb   :  { %4986 = vmatpush1.bf16.msra.mxu0 %v11058_v49  ;;  %v10995_v14 = vcombine.high %v735_v6, %v743_v7  ;;  %v719_v15 = vld [vmem:[#allocation2 + $0x1000] sm:$0xff]  ;;  %v10994_v22 = vcombine.low %v735_v6, %v743_v7  ;;  %v10692_v49 = vcombine.low %v432_v37, %v440_v39  ;;  %v368_v7 = vld [vmem:[#allocation2 + $0x508] sm:$0xff] }
  0xcc   :  { %5027 = vmatpush1.bf16.msra.mxu1 %v10548_v50  ;;  %4987 = vmatprep.subr.bf16.mxu0 %v11043_v51  ;;  %v727_v17 = vld [vmem:[#allocation2 + $0x1040] sm:$0xff] }
  0xcd   :  { %5028 = vmatprep.subr.bf16.mxu1 %v10533_v55  ;;  %v10979_v24 = vcombine.high %v719_v15, %v727_v17  ;;  %v959_v25 = vld [vmem:[#allocation2 + $0x1780] sm:$0xff]  ;;  %v10978_v31 = vcombine.low %v719_v15, %v727_v17  ;;  %v408_v55 = vld [vmem:[#allocation2 + $0x648] sm:$0xff] }
  0xce   :  { %v967_v26 = vld [vmem:[#allocation2 + $0x17c0] sm:$0xff]  ;;  %v10661_v62 = vcombine.high %v400_v53, %v408_v55  ;;  %v352_v17 = vld [vmem:[#allocation2 + $0x488] sm:$0xff] }
  0xcf   :  { %4988 = vmatpush1.bf16.msra.mxu0 %v11042_v57  ;;  %v11219_v34 = vcombine.high %v959_v25, %v967_v26  ;;  %v943_v35 = vld [vmem:[#allocation2 + $0x1700] sm:$0xff]  ;;  %v11218_v40 = vcombine.low %v959_v25, %v967_v26  ;;  %v10676_v57 = vcombine.low %v416_v45, %v424_v47  ;;  %v336_v26 = vld [vmem:[#allocation2 + $0x408] sm:$0xff]  ;;  %v13196_v47 = vpack.c.bf16 %v13176_v21, %v13176_v21 }
  0xd0   :  { %5029 = vmatpush1.bf16.msra.mxu1 %v10532_v58  ;;  %4989 = vmatprep.subr.bf16.mxu0 %v11027_v59  ;;  %v951_v36 = vld [vmem:[#allocation2 + $0x1740] sm:$0xff] }
  0xd1   :  { %5030 = vmatprep.subr.bf16.mxu1 %v10517_v0  ;;  %v11203_v41 = vcombine.high %v943_v35, %v951_v36  ;;  %v927_v42 = vld [vmem:[#allocation2 + $0x1680] sm:$0xff]  ;;  %v11202_v48 = vcombine.low %v943_v35, %v951_v36  ;;  %v392_v0 = vld [vmem:[#allocation2 + $0x5c8] sm:$0xff] }
  0xd2   :  { %v935_v43 = vld [vmem:[#allocation2 + $0x16c0] sm:$0xff]  ;;  %v10645_v8 = vcombine.high %v384_v61, %v392_v0  ;;  %v584_v35 = vld [vmem:[#allocation2 + $0xbc8] sm:$0xff] }
  0xd3   :  { %4990 = vmatpush1.bf16.msra.mxu0 %v11026_v2  ;;  %v11187_v50 = vcombine.high %v927_v42, %v935_v43  ;;  %v911_v51 = vld [vmem:[#allocation2 + $0x1600] sm:$0xff]  ;;  %v11186_v56 = vcombine.low %v927_v42, %v935_v43  ;;  %v10660_v2 = vcombine.low %v400_v53, %v408_v55  ;;  %v832_v36 = vld [vmem:[#allocation2 + $0x1388] sm:$0xff] }
  0xd4   :  { %5031 = vmatpush1.bf16.msra.mxu1 %v10516_v3  ;;  %4991 = vmatprep.subr.bf16.mxu0 %v11011_v4  ;;  %v919_v52 = vld [vmem:[#allocation2 + $0x1640] sm:$0xff]  ;;  %v568_v42 = vld [vmem:[#allocation2 + $0xb48] sm:$0xff] }
  0xd5   :  { %5032 = vmatprep.subr.bf16.mxu1 %v10501_v9  ;;  %v11171_v58 = vcombine.high %v911_v51, %v919_v52  ;;  %v895_v59 = vld [vmem:[#allocation2 + $0x1580] sm:$0xff]  ;;  %v11170_v1 = vcombine.low %v911_v51, %v919_v52  ;;  %v376_v9 = vld [vmem:[#allocation2 + $0x548] sm:$0xff] }
  0xd6   :  { %v903_v60 = vld [vmem:[#allocation2 + $0x15c0] sm:$0xff]  ;;  %v10629_v18 = vcombine.high %v368_v7, %v376_v9  ;;  %v816_v43 = vld [vmem:[#allocation2 + $0x1308] sm:$0xff] }
  0xd7   :  { %4992 = vmatpush1.bf16.msra.mxu0 %v11010_v12  ;;  %v11155_v3 = vcombine.high %v895_v59, %v903_v60  ;;  %v879_v4 = vld [vmem:[#allocation2 + $0x1500] sm:$0xff]  ;;  %v11154_v10 = vcombine.low %v895_v59, %v903_v60  ;;  %v10644_v12 = vcombine.low %v384_v61, %v392_v0  ;;  %v544_v51 = vld [vmem:[#allocation2 + $0xa88] sm:$0xff] }
  0xd8   :  { %5033 = vmatpush1.bf16.msra.mxu1 %v10500_v13  ;;  %4993 = vmatprep.subr.bf16.mxu0 %v10995_v14  ;;  %v887_v6 = vld [vmem:[#allocation2 + $0x1540] sm:$0xff]  ;;  %v552_v52 = vld [vmem:[#allocation2 + $0xac8] sm:$0xff] }
  0xd9   :  { %5034 = vmatprep.subr.bf16.mxu1 %v10485_v19  ;;  %v11139_v13 = vcombine.high %v879_v4, %v887_v6  ;;  %v863_v14 = vld [vmem:[#allocation2 + $0x1480] sm:$0xff]  ;;  %v360_v19 = vld [vmem:[#allocation2 + $0x4c8] sm:$0xff]  ;;  %v11138_v20 = vcombine.low %v879_v4, %v887_v6  ;;  %v10804_v0 = vcombine.low %v544_v51, %v552_v52 }
  0xda   :  { %v871_v15 = vld [vmem:[#allocation2 + $0x14c0] sm:$0xff]  ;;  %v10613_v27 = vcombine.high %v352_v17, %v360_v19  ;;  %v808_v55 = vld [vmem:[#allocation2 + $0x12c8] sm:$0xff] }
  0xdb   :  { %4994 = vmatpush1.bf16.msra.mxu0 %v10994_v22  ;;  %v10628_v22 = vcombine.low %v368_v7, %v376_v9  ;;  %v855_v25 = vld [vmem:[#allocation2 + $0x1440] sm:$0xff]  ;;  %v11122_v30 = vcombine.low %v863_v14, %v871_v15  ;;  %v536_v59 = vld [vmem:[#allocation2 + $0xa48] sm:$0xff] }
  0xdc   :  { %5035 = vmatpush1.bf16.msra.mxu1 %v10484_v23  ;;  %4995 = vmatprep.subr.bf16.mxu0 %v10979_v24  ;;  %v11123_v23 = vcombine.high %v863_v14, %v871_v15  ;;  %v847_v24 = vld [vmem:[#allocation2 + $0x1400] sm:$0xff]  ;;  %v784_v60 = vld [vmem:[#allocation2 + $0x1208] sm:$0xff] }
  0xdd   :  { %5036 = vmatprep.subr.bf16.mxu1 %v10469_v28  ;;  %v344_v28 = vld [vmem:[#allocation2 + $0x448] sm:$0xff]  ;;  %v11106_v39 = vcombine.low %v847_v24, %v855_v25 }
  0xde   :  { %v10597_v37 = vcombine.high %v336_v26, %v344_v28  ;;  %v520_v4 = vld [vmem:[#allocation2 + $0x9c8] sm:$0xff] }
  0xdf   :  { %4996 = vmatpush1.bf16.msra.mxu0 %v10978_v31  ;;  %v10612_v31 = vcombine.low %v352_v17, %v360_v19  ;;  %v768_v6 = vld [vmem:[#allocation2 + $0x1188] sm:$0xff] }
  0xe0   :  { %5037 = vmatpush1.bf16.msra.mxu1 %v10468_v33  ;;  %4997 = vmatprep.subr.bf16.mxu0 %v11219_v34  ;;  %v11107_v33 = vcombine.high %v847_v24, %v855_v25  ;;  %v576_v34 = vld [vmem:[#allocation2 + $0xb88] sm:$0xff] }
  0xe1   :  { %5038 = vmatprep.subr.bf16.mxu1 %v10709_v38  ;;  %v840_v38 = vld [vmem:[#allocation2 + $0x13c8] sm:$0xff] }
  0xe2   :  { %v11093_v45 = vcombine.high %v832_v36, %v840_v38  ;;  %v504_v14 = vld [vmem:[#allocation2 + $0x948] sm:$0xff] }
  0xe3   :  { %4998 = vmatpush2.bf16.msra.mxu0 %v11218_v40  ;;  %v10596_v40 = vcombine.low %v336_v26, %v344_v28  ;;  %v752_v15 = vld [vmem:[#allocation2 + $0x1108] sm:$0xff] }
  0xe4   :  { %5039 = vmatpush2.bf16.msra.mxu1 %v10708_v5  ;;  %4999 = vmatprep.subr.bf16.mxu0 %v11203_v41  ;;  %v10837_v5 = vcombine.high %v576_v34, %v584_v35  ;;  %v560_v41 = vld [vmem:[#allocation2 + $0xb08] sm:$0xff] }
  0xe5   :  { %5040 = vmatprep.subr.bf16.mxu1 %v10693_v46  ;;  %v824_v46 = vld [vmem:[#allocation2 + $0x1348] sm:$0xff] }
  0xe6   :  { %v11077_v53 = vcombine.high %v816_v43, %v824_v46  ;;  %v11076_v21 = vcombine.low %v816_v43, %v824_v46  ;;  %v488_v24 = vld [vmem:[#allocation2 + $0x8c8] sm:$0xff] }
  0xe7   :  { %5000 = vmatpush2.bf16.msra.mxu0 %v11202_v48  ;;  %v10836_v48 = vcombine.low %v576_v34, %v584_v35  ;;  %v736_v25 = vld [vmem:[#allocation2 + $0x1088] sm:$0xff] }
  0xe8   :  { %5041 = vmatpush2.bf16.msra.mxu1 %v10692_v49  ;;  %5001 = vmatprep.subr.bf16.mxu0 %v11187_v50  ;;  %v11092_v49 = vcombine.low %v832_v36, %v840_v38  ;;  %v10821_v50 = vcombine.high %v560_v41, %v568_v42  ;;  %v472_v34 = vld [vmem:[#allocation2 + $0x848] sm:$0xff] }
  0xe9   :  { %5042 = vmatprep.subr.bf16.mxu1 %v10677_v54  ;;  %v800_v54 = vld [vmem:[#allocation2 + $0x1288] sm:$0xff] }
  0xea   :  { %v11061_v61 = vcombine.high %v800_v54, %v808_v55  ;;  %v720_v35 = vld [vmem:[#allocation2 + $0x1008] sm:$0xff] }
  0xeb   :  { %5002 = vmatpush2.bf16.msra.mxu0 %v11186_v56  ;;  %v10820_v56 = vcombine.low %v560_v41, %v568_v42  ;;  %v712_v41 = vld [vmem:[#allocation2 + $0xfc8] sm:$0xff] }
  0xec   :  { %5043 = vmatpush2.bf16.msra.mxu1 %v10676_v57  ;;  %5003 = vmatprep.subr.bf16.mxu0 %v11171_v58  ;;  %v10805_v57 = vcombine.high %v544_v51, %v552_v52  ;;  %v528_v58 = vld [vmem:[#allocation2 + $0xa08] sm:$0xff] }
  0xed   :  { %5044 = vmatprep.subr.bf16.mxu1 %v10661_v62  ;;  %v792_v62 = vld [vmem:[#allocation2 + $0x1248] sm:$0xff]  ;;  %v10788_v9 = vcombine.low %v528_v58, %v536_v59 }
  0xee   :  { %v11045_v7 = vcombine.high %v784_v60, %v792_v62  ;;  %v960_v42 = vld [vmem:[#allocation2 + $0x1788] sm:$0xff] }
  0xef   :  { %5004 = vmatpush2.bf16.msra.mxu0 %v11170_v1  ;;  %v11060_v1 = vcombine.low %v800_v54, %v808_v55  ;;  %v696_v51 = vld [vmem:[#allocation2 + $0xf48] sm:$0xff] }
  0xf0   :  { %5045 = vmatpush2.bf16.msra.mxu1 %v10660_v2  ;;  %5005 = vmatprep.subr.bf16.mxu0 %v11155_v3  ;;  %v10789_v2 = vcombine.high %v528_v58, %v536_v59  ;;  %v512_v3 = vld [vmem:[#allocation2 + $0x988] sm:$0xff] }
  0xf1   :  { %5046 = vmatprep.subr.bf16.mxu1 %v10645_v8  ;;  %v776_v8 = vld [vmem:[#allocation2 + $0x11c8] sm:$0xff]  ;;  %v10772_v19 = vcombine.low %v512_v3, %v520_v4 }
  0xf2   :  { %v11029_v17 = vcombine.high %v768_v6, %v776_v8  ;;  %v944_v52 = vld [vmem:[#allocation2 + $0x1708] sm:$0xff] }
  0xf3   :  { %5006 = vmatpush2.bf16.msra.mxu0 %v11154_v10  ;;  %v11044_v10 = vcombine.low %v784_v60, %v792_v62  ;;  %v952_v54 = vld [vmem:[#allocation2 + $0x1748] sm:$0xff] }
  0xf4   :  { %5047 = vmatpush2.bf16.msra.mxu1 %v10644_v12  ;;  %5007 = vmatprep.subr.bf16.mxu0 %v11139_v13  ;;  %v10773_v12 = vcombine.high %v512_v3, %v520_v4  ;;  %v496_v13 = vld [vmem:[#allocation2 + $0x908] sm:$0xff]  ;;  %v11205_v60 = vcombine.high %v944_v52, %v952_v54 }
  0xf5   :  { %5048 = vmatprep.subr.bf16.mxu1 %v10629_v18  ;;  %v760_v18 = vld [vmem:[#allocation2 + $0x1148] sm:$0xff]  ;;  %v10756_v28 = vcombine.low %v496_v13, %v504_v14 }
  0xf6   :  { %v11013_v26 = vcombine.high %v752_v15, %v760_v18  ;;  %v680_v58 = vld [vmem:[#allocation2 + $0xec8] sm:$0xff] }
  0xf7   :  { %5008 = vmatpush2.bf16.msra.mxu0 %v11138_v20  ;;  %v11028_v20 = vcombine.low %v768_v6, %v776_v8  ;;  %v928_v59 = vld [vmem:[#allocation2 + $0x1688] sm:$0xff] }
  0xf8   :  { %5049 = vmatpush2.bf16.msra.mxu1 %v10628_v22  ;;  %5009 = vmatprep.subr.bf16.mxu0 %v11123_v23  ;;  %v10757_v22 = vcombine.high %v496_v13, %v504_v14  ;;  %v480_v23 = vld [vmem:[#allocation2 + $0x888] sm:$0xff] }
  0xf9   :  { %5050 = vmatprep.subr.bf16.mxu1 %v10613_v27  ;;  %v744_v27 = vld [vmem:[#allocation2 + $0x10c8] sm:$0xff]  ;;  %v10740_v38 = vcombine.low %v480_v23, %v488_v24 }
  0xfa   :  { %v10997_v36 = vcombine.high %v736_v25, %v744_v27  ;;  %v664_v3 = vld [vmem:[#allocation2 + $0xe48] sm:$0xff] }
  0xfb   :  { %5010 = vmatpush2.bf16.msra.mxu0 %v11122_v30  ;;  %v11012_v30 = vcombine.low %v752_v15, %v760_v18  ;;  %v912_v4 = vld [vmem:[#allocation2 + $0x1608] sm:$0xff] }
  0xfc   :  { %5051 = vmatpush2.bf16.msra.mxu1 %v10612_v31  ;;  %5011 = vmatprep.subr.bf16.mxu0 %v11107_v33  ;;  %v10741_v31 = vcombine.high %v480_v23, %v488_v24  ;;  %v464_v33 = vld [vmem:[#allocation2 + $0x808] sm:$0xff] }
  0xfd   :  { %5052 = vmatprep.subr.bf16.mxu1 %v10597_v37  ;;  %v728_v37 = vld [vmem:[#allocation2 + $0x1048] sm:$0xff]  ;;  %v10724_v46 = vcombine.low %v464_v33, %v472_v34 }
  0xfe   :  { %v10981_v43 = vcombine.high %v720_v35, %v728_v37  ;;  %v648_v13 = vld [vmem:[#allocation2 + $0xdc8] sm:$0xff] }
  0xff   :  { %5012 = vmatpush2.bf16.msra.mxu0 %v11106_v39  ;;  %v10996_v39 = vcombine.low %v736_v25, %v744_v27  ;;  %v896_v14 = vld [vmem:[#allocation2 + $0x1588] sm:$0xff] }
 0x100   :  { %5053 = vmatpush2.bf16.msra.mxu1 %v10596_v40  ;;  %5063 = vmatprep.subr.bf16.mxu0 %v10837_v5  ;;  %v10725_v40 = vcombine.high %v464_v33, %v472_v34  ;;  %v704_v5 = vld [vmem:[#allocation2 + $0xf88] sm:$0xff] }
 0x101   :  { %5104 = vmatprep.subr.bf16.mxu1 %v11093_v45  ;;  %v968_v45 = vld [vmem:[#allocation2 + $0x17c8] sm:$0xff]  ;;  %v10964_v55 = vcombine.low %v704_v5, %v712_v41 }
 0x102   :  { %5014 = vmatmul.mubr.bf16.vlgmr.msra.gmra.mxu0 %v13196_v47  ;;  %v632_v23 = vld [vmem:[#allocation2 + $0xd48] sm:$0xff] }
 0x103   :  { %5055 = vmatmul.mubr.bf16.vlgmr.msra.gmra.mxu1 %v13182_v29  ;;  %5064 = vmatpush1.bf16.msra.mxu0 %v10836_v48  ;;  %v10980_v48 = vcombine.low %v720_v35, %v728_v37  ;;  %v880_v24 = vld [vmem:[#allocation2 + $0x1508] sm:$0xff] }
 0x104   :  { %5105 = vmatpush1.bf16.msra.mxu1 %v11092_v49  ;;  %5065 = vmatprep.subr.bf16.mxu0 %v10821_v50  ;;  %v10965_v49 = vcombine.high %v704_v5, %v712_v41  ;;  %v688_v50 = vld [vmem:[#allocation2 + $0xf08] sm:$0xff] }
 0x105   :  { %5106 = vmatprep.subr.bf16.mxu1 %v11077_v53  ;;  %5095 = vmatprep.mubr.bf16.mxu0 %v13170_v16  ;;  %v11221_v53 = vcombine.high %v960_v42, %v968_v45  ;;  %v10948_v62 = vcombine.low %v688_v50, %v696_v51  ;;  %v616_v33 = vld [vmem:[#allocation2 + $0xcc8] sm:$0xff] }
 0x106   :  { %5136 = vmatprep.mubr.bf16.mxu1 %v13188_v63  ;;  %v864_v34 = vld [vmem:[#allocation2 + $0x1488] sm:$0xff] }
 0x107   :  { %5066 = vmatpush1.bf16.msra.mxu0 %v10820_v56  ;;  %v11220_v56 = vcombine.low %v960_v42, %v968_v45  ;;  %v600_v5 = vld [vmem:[#allocation2 + $0xc48] sm:$0xff] }
 0x108   :  { %5107 = vmatpush1.bf16.msra.mxu1 %v11076_v21  ;;  %5067 = vmatprep.subr.bf16.mxu0 %v10805_v57  ;;  %v10949_v21 = vcombine.high %v688_v50, %v696_v51  ;;  %v672_v57 = vld [vmem:[#allocation2 + $0xe88] sm:$0xff]  ;;  %v329_v50 = vld [vmem:[#allocation2 + $0x3d0] sm:$0xff] }
 0x109   :  { %5108 = vmatprep.subr.bf16.mxu1 %v11061_v61  ;;  %v936_v61 = vld [vmem:[#allocation2 + $0x16c8] sm:$0xff]  ;;  %v10932_v8 = vcombine.low %v672_v57, %v680_v58  ;;  %v577_v51 = vld [vmem:[#allocation2 + $0xb90] sm:$0xff] }
 0x10a   :  { %v11189_v6 = vcombine.high %v928_v59, %v936_v61  ;;  %v848_v41 = vld [vmem:[#allocation2 + $0x1408] sm:$0xff] }
 0x10b   :  { %5068 = vmatpush1.bf16.msra.mxu0 %v10804_v0  ;;  %v11204_v0 = vcombine.low %v944_v52, %v952_v54 }
 0x10c   :  { %5109 = vmatpush1.bf16.msra.mxu1 %v11060_v1  ;;  %5069 = vmatprep.subr.bf16.mxu0 %v10789_v2  ;;  %v10933_v1 = vcombine.high %v672_v57, %v680_v58  ;;  %v656_v2 = vld [vmem:[#allocation2 + $0xe08] sm:$0xff]  ;;  %v313_v57 = vld [vmem:[#allocation2 + $0x350] sm:$0xff] }
 0x10d   :  { %5110 = vmatprep.subr.bf16.mxu1 %v11045_v7  ;;  %v920_v7 = vld [vmem:[#allocation2 + $0x1648] sm:$0xff]  ;;  %v10916_v18 = vcombine.low %v656_v2, %v664_v3  ;;  %v561_v58 = vld [vmem:[#allocation2 + $0xb10] sm:$0xff] }
 0x10e   :  { %v11173_v15 = vcombine.high %v912_v4, %v920_v7 }
 0x10f   :  { %5070 = vmatpush1.bf16.msra.mxu0 %v10788_v9  ;;  %v11188_v9 = vcombine.low %v928_v59, %v936_v61 }
 0x110   :  { %5111 = vmatpush1.bf16.msra.mxu1 %v11044_v10  ;;  %5071 = vmatprep.subr.bf16.mxu0 %v10773_v12  ;;  %v10917_v10 = vcombine.high %v656_v2, %v664_v3  ;;  %v640_v12 = vld [vmem:[#allocation2 + $0xd88] sm:$0xff]  ;;  %v297_v2 = vld [vmem:[#allocation2 + $0x2d0] sm:$0xff] }
 0x111   :  { %5112 = vmatprep.subr.bf16.mxu1 %v11029_v17  ;;  %v904_v17 = vld [vmem:[#allocation2 + $0x15c8] sm:$0xff]  ;;  %v10900_v27 = vcombine.low %v640_v12, %v648_v13  ;;  %v545_v3 = vld [vmem:[#allocation2 + $0xa90] sm:$0xff] }
 0x112   :  { %v11157_v25 = vcombine.high %v896_v14, %v904_v17 }
 0x113   :  { %5072 = vmatpush1.bf16.msra.mxu0 %v10772_v19  ;;  %v11172_v19 = vcombine.low %v912_v4, %v920_v7 }
 0x114   :  { %5113 = vmatpush1.bf16.msra.mxu1 %v11028_v20  ;;  %5073 = vmatprep.subr.bf16.mxu0 %v10757_v22  ;;  %v10901_v20 = vcombine.high %v640_v12, %v648_v13  ;;  %v624_v22 = vld [vmem:[#allocation2 + $0xd08] sm:$0xff]  ;;  %v281_v12 = vld [vmem:[#allocation2 + $0x250] sm:$0xff] }
 0x115   :  { %5114 = vmatprep.subr.bf16.mxu1 %v11013_v26  ;;  %v888_v26 = vld [vmem:[#allocation2 + $0x1548] sm:$0xff]  ;;  %v10884_v37 = vcombine.low %v624_v22, %v632_v23  ;;  %v529_v13 = vld [vmem:[#allocation2 + $0xa10] sm:$0xff] }
 0x116   :  { %v11141_v35 = vcombine.high %v880_v24, %v888_v26 }
 0x117   :  { %5074 = vmatpush1.bf16.msra.mxu0 %v10756_v28  ;;  %v11156_v28 = vcombine.low %v896_v14, %v904_v17 }
 0x118   :  { %5115 = vmatpush1.bf16.msra.mxu1 %v11012_v30  ;;  %5075 = vmatprep.subr.bf16.mxu0 %v10741_v31  ;;  %v10885_v30 = vcombine.high %v624_v22, %v632_v23  ;;  %v608_v31 = vld [vmem:[#allocation2 + $0xc88] sm:$0xff]  ;;  %v265_v22 = vld [vmem:[#allocation2 + $0x1d0] sm:$0xff] }
 0x119   :  { %5116 = vmatprep.subr.bf16.mxu1 %v10997_v36  ;;  %v872_v36 = vld [vmem:[#allocation2 + $0x14c8] sm:$0xff]  ;;  %v10868_v45 = vcombine.low %v608_v31, %v616_v33  ;;  %v513_v23 = vld [vmem:[#allocation2 + $0x990] sm:$0xff] }
 0x11a   :  { %v11125_v42 = vcombine.high %v864_v34, %v872_v36 }
 0x11b   :  { %5076 = vmatpush1.bf16.msra.mxu0 %v10740_v38  ;;  %v11140_v38 = vcombine.low %v880_v24, %v888_v26 }
 0x11c   :  { %5117 = vmatpush1.bf16.msra.mxu1 %v10996_v39  ;;  %5077 = vmatprep.subr.bf16.mxu0 %v10725_v40  ;;  %v10869_v39 = vcombine.high %v608_v31, %v616_v33  ;;  %v592_v40 = vld [vmem:[#allocation2 + $0xc08] sm:$0xff]  ;;  %v249_v31 = vld [vmem:[#allocation2 + $0x150] sm:$0xff] }
 0x11d   :  { %5118 = vmatprep.subr.bf16.mxu1 %v10981_v43  ;;  %v856_v43 = vld [vmem:[#allocation2 + $0x1448] sm:$0xff]  ;;  %v10852_v54 = vcombine.low %v592_v40, %v600_v5  ;;  %v497_v33 = vld [vmem:[#allocation2 + $0x910] sm:$0xff] }
 0x11e   :  { %v11109_v52 = vcombine.high %v848_v41, %v856_v43 }
 0x11f   :  { %5078 = vmatpush1.bf16.msra.mxu0 %v10724_v46  ;;  %v11124_v46 = vcombine.low %v864_v34, %v872_v36 }
 0x120   :  { %5119 = vmatpush1.bf16.msra.mxu1 %v10980_v48  ;;  %5079 = vmatprep.subr.bf16.mxu0 %v10965_v49  ;;  %v10853_v48 = vcombine.high %v592_v40, %v600_v5  ;;  %v321_v49 = vld [vmem:[#allocation2 + $0x390] sm:$0xff] }
 0x121   :  { %5120 = vmatprep.subr.bf16.mxu1 %v11221_v53  ;;  %v585_v53 = vld [vmem:[#allocation2 + $0xbd0] sm:$0xff]  ;;  %v10582_v61 = vcombine.low %v321_v49, %v329_v50 }
 0x122   :  { %v10839_v59 = vcombine.high %v577_v51, %v585_v53  ;;  %v233_v40 = vld [vmem:[#allocation2 + $0xd0] sm:$0xff] }
 0x123   :  { %5080 = vmatpush2.bf16.msra.mxu0 %v10964_v55  ;;  %v11108_v55 = vcombine.low %v848_v41, %v856_v43  ;;  %v481_v5 = vld [vmem:[#allocation2 + $0x890] sm:$0xff] }
 0x124   :  { %5121 = vmatpush2.bf16.msra.mxu1 %v11220_v56  ;;  %5081 = vmatprep.subr.bf16.mxu0 %v10949_v21  ;;  %v10583_v56 = vcombine.high %v321_v49, %v329_v50  ;;  %v305_v21 = vld [vmem:[#allocation2 + $0x310] sm:$0xff] }
 0x125   :  { %5122 = vmatprep.subr.bf16.mxu1 %v11205_v60  ;;  %v569_v60 = vld [vmem:[#allocation2 + $0xb50] sm:$0xff]  ;;  %v10566_v7 = vcombine.low %v305_v21, %v313_v57 }
 0x126   :  { %v10823_v4 = vcombine.high %v561_v58, %v569_v60  ;;  %v217_v49 = vld [vmem:[#allocation2 + $0x50] sm:$0xff] }
 0x127   :  { %5082 = vmatpush2.bf16.msra.mxu0 %v10948_v62  ;;  %v10838_v62 = vcombine.low %v577_v51, %v585_v53  ;;  %v465_v50 = vld [vmem:[#allocation2 + $0x810] sm:$0xff] }
 0x128   :  { %5123 = vmatpush2.bf16.msra.mxu1 %v11204_v0  ;;  %5083 = vmatprep.subr.bf16.mxu0 %v10933_v1  ;;  %v10567_v0 = vcombine.high %v305_v21, %v313_v57  ;;  %v289_v1 = vld [vmem:[#allocation2 + $0x290] sm:$0xff] }
 0x129   :  { %5124 = vmatprep.subr.bf16.mxu1 %v11189_v6  ;;  %v553_v6 = vld [vmem:[#allocation2 + $0xad0] sm:$0xff]  ;;  %v10550_v17 = vcombine.low %v289_v1, %v297_v2 }
 0x12a   :  { %v10807_v14 = vcombine.high %v545_v3, %v553_v6  ;;  %v457_v21 = vld [vmem:[#allocation2 + $0x7d0] sm:$0xff] }
 0x12b   :  { %5084 = vmatpush2.bf16.msra.mxu0 %v10932_v8  ;;  %v10822_v8 = vcombine.low %v561_v58, %v569_v60  ;;  %v705_v57 = vld [vmem:[#allocation2 + $0xf90] sm:$0xff] }
 0x12c   :  { %5125 = vmatpush2.bf16.msra.mxu1 %v11188_v9  ;;  %5085 = vmatprep.subr.bf16.mxu0 %v10917_v10  ;;  %v10551_v9 = vcombine.high %v289_v1, %v297_v2  ;;  %v273_v10 = vld [vmem:[#allocation2 + $0x210] sm:$0xff] }
 0x12d   :  { %5126 = vmatprep.subr.bf16.mxu1 %v11173_v15  ;;  %v537_v15 = vld [vmem:[#allocation2 + $0xa50] sm:$0xff]  ;;  %v10534_v26 = vcombine.low %v273_v10, %v281_v12 }
 0x12e   :  { %v10791_v24 = vcombine.high %v529_v13, %v537_v15  ;;  %v441_v1 = vld [vmem:[#allocation2 + $0x750] sm:$0xff] }
 0x12f   :  { %5086 = vmatpush2.bf16.msra.mxu0 %v10916_v18  ;;  %v10806_v18 = vcombine.low %v545_v3, %v553_v6  ;;  %v689_v2 = vld [vmem:[#allocation2 + $0xf10] sm:$0xff] }
 0x130   :  { %5127 = vmatpush2.bf16.msra.mxu1 %v11172_v19  ;;  %5087 = vmatprep.subr.bf16.mxu0 %v10901_v20  ;;  %v10535_v19 = vcombine.high %v273_v10, %v281_v12  ;;  %v257_v20 = vld [vmem:[#allocation2 + $0x190] sm:$0xff] }
 0x131   :  { %5128 = vmatprep.subr.bf16.mxu1 %v11157_v25  ;;  %v521_v25 = vld [vmem:[#allocation2 + $0x9d0] sm:$0xff]  ;;  %v10518_v36 = vcombine.low %v257_v20, %v265_v22 }
 0x132   :  { %v10775_v34 = vcombine.high %v513_v23, %v521_v25  ;;  %v425_v10 = vld [vmem:[#allocation2 + $0x6d0] sm:$0xff] }
 0x133   :  { %5088 = vmatpush2.bf16.msra.mxu0 %v10900_v27  ;;  %v10790_v27 = vcombine.low %v529_v13, %v537_v15  ;;  %v673_v12 = vld [vmem:[#allocation2 + $0xe90] sm:$0xff] }
 0x134   :  { %5129 = vmatpush2.bf16.msra.mxu1 %v11156_v28  ;;  %5089 = vmatprep.subr.bf16.mxu0 %v10885_v30  ;;  %v10519_v28 = vcombine.high %v257_v20, %v265_v22  ;;  %v241_v30 = vld [vmem:[#allocation2 + $0x110] sm:$0xff] }
 0x135   :  { %5130 = vmatprep.subr.bf16.mxu1 %v11141_v35  ;;  %v505_v35 = vld [vmem:[#allocation2 + $0x950] sm:$0xff]  ;;  %v10502_v43 = vcombine.low %v241_v30, %v249_v31 }
 0x136   :  { %v10759_v41 = vcombine.high %v497_v33, %v505_v35  ;;  %v409_v20 = vld [vmem:[#allocation2 + $0x650] sm:$0xff] }
 0x137   :  { %5090 = vmatpush2.bf16.msra.mxu0 %v10884_v37  ;;  %v10774_v37 = vcombine.low %v513_v23, %v521_v25  ;;  %v657_v22 = vld [vmem:[#allocation2 + $0xe10] sm:$0xff] }
 0x138   :  { %5131 = vmatpush2.bf16.msra.mxu1 %v11140_v38  ;;  %5091 = vmatprep.subr.bf16.mxu0 %v10869_v39  ;;  %v10503_v38 = vcombine.high %v241_v30, %v249_v31  ;;  %v225_v39 = vld [vmem:[#allocation2 + $0x90] sm:$0xff] }
 0x139   :  { %5132 = vmatprep.subr.bf16.mxu1 %v11125_v42  ;;  %v489_v42 = vld [vmem:[#allocation2 + $0x8d0] sm:$0xff]  ;;  %v10486_v53 = vcombine.low %v225_v39, %v233_v40 }
 0x13a   :  { %v10743_v51 = vcombine.high %v481_v5, %v489_v42  ;;  %v393_v30 = vld [vmem:[#allocation2 + $0x5d0] sm:$0xff] }
 0x13b   :  { %5092 = vmatpush2.bf16.msra.mxu0 %v10868_v45  ;;  %v10758_v45 = vcombine.low %v497_v33, %v505_v35  ;;  %v641_v31 = vld [vmem:[#allocation2 + $0xd90] sm:$0xff] }
 0x13c   :  { %5133 = vmatpush2.bf16.msra.mxu1 %v11124_v46  ;;  %5093 = vmatprep.subr.bf16.mxu0 %v10853_v48  ;;  %v10487_v46 = vcombine.high %v225_v39, %v233_v40  ;;  %v209_v48 = vld [vmem:[#allocation2 + $0x10] sm:$0xff] }
 0x13d   :  { %5134 = vmatprep.subr.bf16.mxu1 %v11109_v52  ;;  %v473_v52 = vld [vmem:[#allocation2 + $0x850] sm:$0xff]  ;;  %v10470_v60 = vcombine.low %v209_v48, %v217_v49 }
 0x13e   :  { %v10727_v58 = vcombine.high %v465_v50, %v473_v52  ;;  %v377_v39 = vld [vmem:[#allocation2 + $0x550] sm:$0xff] }
 0x13f   :  { %5094 = vmatpush2.bf16.msra.mxu0 %v10852_v54  ;;  %v10742_v54 = vcombine.low %v481_v5, %v489_v42  ;;  %v625_v40 = vld [vmem:[#allocation2 + $0xd10] sm:$0xff] }
 0x140   :  { %5135 = vmatpush2.bf16.msra.mxu1 %v11108_v55  ;;  %5145 = vmatprep.subr.bf16.mxu0 %v10583_v56  ;;  %v10471_v55 = vcombine.high %v209_v48, %v217_v49  ;;  %v449_v56 = vld [vmem:[#allocation2 + $0x790] sm:$0xff] }
 0x141   :  { %5186 = vmatprep.subr.bf16.mxu1 %v10839_v59  ;;  %v713_v59 = vld [vmem:[#allocation2 + $0xfd0] sm:$0xff]  ;;  %v10710_v6 = vcombine.low %v449_v56, %v457_v21 }
 0x142   :  { %5096 = vmatmul.mubr.bf16.vlgmr.msra.gmra.mxu0 %v13186_v32  ;;  %v10967_v3 = vcombine.high %v705_v57, %v713_v59  ;;  %v361_v48 = vld [vmem:[#allocation2 + $0x4d0] sm:$0xff] }
 0x143   :  { %5137 = vmatmul.mubr.bf16.vlgmr.msra.gmra.mxu1 %v13196_v47  ;;  %5146 = vmatpush1.bf16.msra.mxu0 %v10582_v61  ;;  %v10726_v61 = vcombine.low %v465_v50, %v473_v52  ;;  %v609_v49 = vld [vmem:[#allocation2 + $0xc90] sm:$0xff] }
 0x144   :  { %5187 = vmatpush1.bf16.msra.mxu1 %v10838_v62  ;;  %5147 = vmatprep.subr.bf16.mxu0 %v10567_v0  ;;  %v10711_v62 = vcombine.high %v449_v56, %v457_v21  ;;  %v433_v0 = vld [vmem:[#allocation2 + $0x710] sm:$0xff] }
 0x145   :  { %5188 = vmatprep.subr.bf16.mxu1 %v10823_v4  ;;  %5177 = vmatprep.mubr.bf16.mxu0 %v13165_v11  ;;  %v697_v4 = vld [vmem:[#allocation2 + $0xf50] sm:$0xff]  ;;  %v10694_v15 = vcombine.low %v433_v0, %v441_v1 }
 0x146   :  { %5218 = vmatprep.mubr.bf16.mxu1 %v13170_v16  ;;  %v10951_v13 = vcombine.high %v689_v2, %v697_v4  ;;  %v345_v56 = vld [vmem:[#allocation2 + $0x450] sm:$0xff] }
 0x147   :  { %5148 = vmatpush1.bf16.msra.mxu0 %v10566_v7  ;;  %v10966_v7 = vcombine.low %v705_v57, %v713_v59  ;;  %v593_v21 = vld [vmem:[#allocation2 + $0xc10] sm:$0xff] }
 0x148   :  { %5189 = vmatpush1.bf16.msra.mxu1 %v10822_v8  ;;  %5149 = vmatprep.subr.bf16.mxu0 %v10551_v9  ;;  %v10695_v8 = vcombine.high %v433_v0, %v441_v1  ;;  %v417_v9 = vld [vmem:[#allocation2 + $0x690] sm:$0xff]  ;;  %v322_v1 = vld [vmem:[#allocation2 + $0x398] sm:$0xff] }
 0x149   :  { %5190 = vmatprep.subr.bf16.mxu1 %v10807_v14  ;;  %v681_v14 = vld [vmem:[#allocation2 + $0xed0] sm:$0xff]  ;;  %v10678_v25 = vcombine.low %v417_v9, %v425_v10 }
 0x14a   :  { %v10935_v23 = vcombine.high %v673_v12, %v681_v14  ;;  %v841_v0 = vld [vmem:[#allocation2 + $0x13d0] sm:$0xff] }
 0x14b   :  { %5150 = vmatpush1.bf16.msra.mxu0 %v10550_v17  ;;  %v10950_v17 = vcombine.low %v689_v2, %v697_v4  ;;  %v975_v4 = vld [vmem:[#allocation11] sm:$0xff] }
 0x14c   :  { %5191 = vmatpush1.bf16.msra.mxu1 %v10806_v18  ;;  %5151 = vmatprep.subr.bf16.mxu0 %v10535_v19  ;;  %v10679_v18 = vcombine.high %v417_v9, %v425_v10  ;;  %v401_v19 = vld [vmem:[#allocation2 + $0x610] sm:$0xff] }
 0x14d   :  { %5192 = vmatprep.subr.bf16.mxu1 %v10791_v24  ;;  %v665_v24 = vld [vmem:[#allocation2 + $0xe50] sm:$0xff]  ;;  %v10662_v35 = vcombine.low %v401_v19, %v409_v20 }
 0x14e   :  { %v10919_v33 = vcombine.high %v657_v22, %v665_v24  ;;  %v817_v10 = vld [vmem:[#allocation2 + $0x1310] sm:$0xff] }
 0x14f   :  { %5152 = vmatpush1.bf16.msra.mxu0 %v10534_v26  ;;  %v10934_v26 = vcombine.low %v673_v12, %v681_v14  ;;  %v825_v12 = vld [vmem:[#allocation2 + $0x1350] sm:$0xff] }
 0x150   :  { %5193 = vmatpush1.bf16.msra.mxu1 %v10790_v27  ;;  %5153 = vmatprep.subr.bf16.mxu0 %v10519_v28  ;;  %v10663_v27 = vcombine.high %v401_v19, %v409_v20  ;;  %v385_v28 = vld [vmem:[#allocation2 + $0x590] sm:$0xff] }
 0x151   :  { %5194 = vmatprep.subr.bf16.mxu1 %v10775_v34  ;;  %v649_v34 = vld [vmem:[#allocation2 + $0xdd0] sm:$0xff]  ;;  %v10646_v42 = vcombine.low %v385_v28, %v393_v30 }
 0x152   :  { %v10903_v5 = vcombine.high %v641_v31, %v649_v34 }
 0x153   :  { %5154 = vmatpush1.bf16.msra.mxu0 %v10518_v36  ;;  %v10918_v36 = vcombine.low %v657_v22, %v665_v24  ;;  %v11079_v22 = vcombine.high %v817_v10, %v825_v12  ;;  %v809_v24 = vld [vmem:[#allocation2 + $0x12d0] sm:$0xff] }
 0x154   :  { %5195 = vmatpush1.bf16.msra.mxu1 %v10774_v37  ;;  %5155 = vmatprep.subr.bf16.mxu0 %v10503_v38  ;;  %v10647_v37 = vcombine.high %v385_v28, %v393_v30  ;;  %v369_v38 = vld [vmem:[#allocation2 + $0x510] sm:$0xff]  ;;  %v298_v28 = vld [vmem:[#allocation2 + $0x2d8] sm:$0xff] }
 0x155   :  { %5196 = vmatprep.subr.bf16.mxu1 %v10759_v41  ;;  %v633_v41 = vld [vmem:[#allocation2 + $0xd50] sm:$0xff]  ;;  %v10630_v52 = vcombine.low %v369_v38, %v377_v39 }
 0x156   :  { %v10887_v50 = vcombine.high %v625_v40, %v633_v41 }
 0x157   :  { %5156 = vmatpush1.bf16.msra.mxu0 %v10502_v43  ;;  %v10902_v43 = vcombine.low %v641_v31, %v649_v34  ;;  %v11078_v34 = vcombine.low %v817_v10, %v825_v12  ;;  %v745_v10 = vld [vmem:[#allocation2 + $0x10d0] sm:$0xff]  ;;  %v226_v12 = vld [vmem:[#allocation2 + $0x98] sm:$0xff] }
 0x158   :  { %5197 = vmatpush1.bf16.msra.mxu1 %v10758_v45  ;;  %5157 = vmatprep.subr.bf16.mxu0 %v10487_v46  ;;  %v10631_v45 = vcombine.high %v369_v38, %v377_v39  ;;  %v353_v46 = vld [vmem:[#allocation2 + $0x490] sm:$0xff] }
 0x159   :  { %5198 = vmatprep.subr.bf16.mxu1 %v10743_v51  ;;  %v617_v51 = vld [vmem:[#allocation2 + $0xcd0] sm:$0xff]  ;;  %v10614_v59 = vcombine.low %v353_v46, %v361_v48 }
 0x15a   :  { %v10871_v57 = vcombine.high %v609_v49, %v617_v51  ;;  %v785_v38 = vld [vmem:[#allocation2 + $0x1210] sm:$0xff] }
 0x15b   :  { %5158 = vmatpush1.bf16.msra.mxu0 %v10486_v53  ;;  %v10886_v53 = vcombine.low %v625_v40, %v633_v41  ;;  %v793_v39 = vld [vmem:[#allocation2 + $0x1250] sm:$0xff]  ;;  %v274_v40 = vld [vmem:[#allocation2 + $0x218] sm:$0xff] }
 0x15c   :  { %5199 = vmatpush1.bf16.msra.mxu1 %v10742_v54  ;;  %5159 = vmatprep.subr.bf16.mxu0 %v10471_v55  ;;  %v10615_v54 = vcombine.high %v353_v46, %v361_v48  ;;  %v337_v55 = vld [vmem:[#allocation2 + $0x410] sm:$0xff] }
 0x15d   :  { %5200 = vmatprep.subr.bf16.mxu1 %v10727_v58  ;;  %v601_v58 = vld [vmem:[#allocation2 + $0xc50] sm:$0xff] }
 0x15e   :  { %v10855_v2 = vcombine.high %v593_v21, %v601_v58 }
 0x15f   :  { %5160 = vmatpush1.bf16.msra.mxu0 %v10470_v60  ;;  %v10870_v60 = vcombine.low %v609_v49, %v617_v51 }
 0x160   :  { %5201 = vmatpush1.bf16.msra.mxu1 %v10726_v61  ;;  %5161 = vmatprep.subr.bf16.mxu0 %v10711_v62  ;;  %v10599_v61 = vcombine.high %v337_v55, %v345_v56  ;;  %v833_v62 = vld [vmem:[#allocation2 + $0x1390] sm:$0xff] }
 0x161   :  { %5202 = vmatprep.subr.bf16.mxu1 %v10967_v3  ;;  %v330_v3 = vld [vmem:[#allocation2 + $0x3d8] sm:$0xff]  ;;  %v11095_v9 = vcombine.high %v833_v62, %v841_v0  ;;  %v11094_v19 = vcombine.low %v833_v62, %v841_v0  ;;  %v753_v62 = vld [vmem:[#allocation2 + $0x1110] sm:$0xff] }
 0x162   :  { %v10585_v14 = vcombine.high %v322_v1, %v330_v3  ;;  %v10584_v20 = vcombine.low %v322_v1, %v330_v3  ;;  %v761_v0 = vld [vmem:[#allocation2 + $0x1150] sm:$0xff]  ;;  %v242_v1 = vld [vmem:[#allocation2 + $0x118] sm:$0xff] }
 0x163   :  { %5162 = vmatpush2.bf16.msra.mxu0 %v10710_v6  ;;  %v10598_v6 = vcombine.low %v337_v55, %v345_v56  ;;  %v777_v55 = vld [vmem:[#allocation2 + $0x11d0] sm:$0xff]  ;;  %v258_v56 = vld [vmem:[#allocation2 + $0x198] sm:$0xff] }
 0x164   :  { %5203 = vmatpush2.bf16.msra.mxu1 %v10966_v7  ;;  %5163 = vmatprep.subr.bf16.mxu0 %v10695_v8  ;;  %v13207_v7 = vsub.s32 0, %v13153_v44  ;;  %v10854_v8 = vcombine.low %v593_v21, %v601_v58  ;;  %v266_v58 = vld [vmem:[#allocation2 + $0x1d8] sm:$0xff] }
 0x165   :  { %5204 = vmatprep.subr.bf16.mxu1 %v10951_v13  ;;  %v306_v13 = vld [vmem:[#allocation2 + $0x318] sm:$0xff] }
 0x166   :  { %v250_v3 = vld [vmem:[#allocation2 + $0x158] sm:$0xff] }
 0x167   :  { %5164 = vmatpush2.bf16.msra.mxu0 %v10694_v15  ;;  %v13210_v15 = vsub.s32 1, %v13153_v44 }
 0x168   :  { %5205 = vmatpush2.bf16.msra.mxu1 %v10950_v17  ;;  %5165 = vmatprep.subr.bf16.mxu0 %v10679_v18  ;;  %v314_v17 = vld [vmem:[#allocation2 + $0x358] sm:$0xff]  ;;  %v982_v18 = vrot.slane %v975_v4, %v13207_v7 }
 0x169   :  { %5206 = vmatprep.subr.bf16.mxu1 %v10935_v23  ;;  %v801_v23 = vld [vmem:[#allocation2 + $0x1290] sm:$0xff] }
 0x16b   :  { %5166 = vmatpush2.bf16.msra.mxu0 %v10678_v25  ;;  %v290_v25 = vld [vmem:[#allocation2 + $0x298] sm:$0xff] }
 0x16c   :  { %5207 = vmatpush2.bf16.msra.mxu1 %v10934_v26  ;;  %5167 = vmatprep.subr.bf16.mxu0 %v10663_v27  ;;  %v986_v26 = vrot.slane %v975_v4, %v13210_v15  ;;  %v10569_v27 = vcombine.high %v306_v13, %v314_v17 }
 0x16d   :  { %5208 = vmatprep.subr.bf16.mxu1 %v10919_v33 }
 0x16f   :  { %5168 = vmatpush2.bf16.msra.mxu0 %v10662_v35 }
 0x170   :  { %5209 = vmatpush2.bf16.msra.mxu1 %v10918_v36  ;;  %5169 = vmatprep.subr.bf16.mxu0 %v10647_v37  ;;  %v10568_v36 = vcombine.low %v306_v13, %v314_v17  ;;  %v11063_v37 = vcombine.high %v801_v23, %v809_v24  ;;  %v10505_v13 = vcombine.high %v242_v1, %v250_v3 }
 0x171   :  { %5210 = vmatprep.subr.bf16.mxu1 %v10903_v5  ;;  %v11014_v17 = vcombine.low %v753_v62, %v761_v0 }
 0x173   :  { %5170 = vmatpush2.bf16.msra.mxu0 %v10646_v42 }
 0x174   :  { %5211 = vmatpush2.bf16.msra.mxu1 %v10902_v43  ;;  %5171 = vmatprep.subr.bf16.mxu0 %v10631_v45  ;;  %v10553_v43 = vcombine.high %v290_v25, %v298_v28  ;;  %v282_v45 = vld [vmem:[#allocation2 + $0x258] sm:$0xff] }
 0x175   :  { %5212 = vmatprep.subr.bf16.mxu1 %v10887_v50  ;;  %v11062_v50 = vcombine.low %v801_v23, %v809_v24  ;;  %v210_v23 = vld [vmem:[#allocation2 + $0x18] sm:$0xff] }
 0x177   :  { %5172 = vmatpush2.bf16.msra.mxu0 %v10630_v52  ;;  %v10552_v52 = vcombine.low %v290_v25, %v298_v28  ;;  %v218_v25 = vld [vmem:[#allocation2 + $0x58] sm:$0xff] }
 0x178   :  { %5213 = vmatpush2.bf16.msra.mxu1 %v10886_v53  ;;  %5173 = vmatprep.subr.bf16.mxu0 %v10615_v54  ;;  %v11047_v53 = vcombine.high %v785_v38, %v793_v39  ;;  %v769_v54 = vld [vmem:[#allocation2 + $0x1190] sm:$0xff] }
 0x179   :  { %5214 = vmatprep.subr.bf16.mxu1 %v10871_v57  ;;  %v10537_v57 = vcombine.high %v274_v40, %v282_v45  ;;  %v11030_v4 = vcombine.low %v769_v54, %v777_v55 }
 0x17b   :  { %5174 = vmatpush2.bf16.msra.mxu0 %v10614_v59  ;;  %v11046_v59 = vcombine.low %v785_v38, %v793_v39  ;;  %v945_v39 = vld [vmem:[#allocation2 + $0x1710] sm:$0xff] }
 0x17c   :  { %5215 = vmatpush2.bf16.msra.mxu1 %v10870_v60  ;;  %5175 = vmatprep.subr.bf16.mxu0 %v10599_v61  ;;  %v10536_v60 = vcombine.low %v274_v40, %v282_v45  ;;  %v11031_v61 = vcombine.high %v769_v54, %v777_v55  ;;  %v953_v40 = vld [vmem:[#allocation2 + $0x1750] sm:$0xff]  ;;  %v426_v54 = vld [vmem:[#allocation2 + $0x6d8] sm:$0xff] }
 0x17d   :  { %5216 = vmatprep.subr.bf16.mxu1 %v10855_v2  ;;  %v10521_v2 = vcombine.high %v258_v56, %v266_v58  ;;  %v11206_v55 = vcombine.low %v945_v39, %v953_v40 }
 0x17f   :  { %5176 = vmatpush2.bf16.msra.mxu0 %v10598_v6  ;;  %v10520_v6 = vcombine.low %v258_v56, %v266_v58  ;;  %v921_v58 = vld [vmem:[#allocation2 + $0x1650] sm:$0xff] }
 0x180   :  { %5217 = vmatpush2.bf16.msra.mxu1 %v10854_v8  ;;  %5227 = vmatprep.subr.bf16.mxu0 %v11095_v9  ;;  %v11015_v8 = vcombine.high %v753_v62, %v761_v0  ;;  %v737_v9 = vld [vmem:[#allocation2 + $0x1090] sm:$0xff] }
 0x181   :  { %5268 = vmatprep.subr.bf16.mxu1 %v10585_v14  ;;  %v234_v14 = vld [vmem:[#allocation2 + $0xd8] sm:$0xff] }
 0x182   :  { %v4933_v30 = vpop.f32.mrf.mxu0  ;;  %5178 = vmatmul.mubr.bf16.vlgmr.msra.gmra.mxu0 %v13182_v29  ;;  %v10489_v24 = vcombine.high %v226_v12, %v234_v14 }
 0x183   :  { %v4934_v31 = vadd.f32 %v4933_v30, %v982_v18  ;;  %v4974_v33 = vpop.f32.mrf.mxu1  ;;  %5219 = vmatmul.mubr.bf16.vlgmr.msra.gmra.mxu1 %v13186_v32  ;;  %5228 = vmatpush1.bf16.msra.mxu0 %v11094_v19  ;;  %v10504_v18 = vcombine.low %v242_v1, %v250_v3  ;;  %v10999_v19 = vcombine.high %v737_v9, %v745_v10  ;;  %v961_v30 = vld [vmem:[#allocation2 + $0x1790] sm:$0xff] }
 0x184   :  { %5269 = vmatpush1.bf16.msra.mxu1 %v10584_v20  ;;  %v4935_v35 = vpop.f32.mrf.mxu0  ;;  %5229 = vmatprep.subr.bf16.mxu0 %v11079_v22  ;;  %v721_v20 = vld [vmem:[#allocation2 + $0x1010] sm:$0xff] }
 0x185   :  { %v13216_v5 = vadd.f32 %v4974_v33, %v4934_v31  ;;  %v4936_v41 = vadd.f32 %v4935_v35, %v986_v26  ;;  %v4976_v42 = vpop.f32.mrf.mxu1  ;;  %5270 = vmatprep.subr.bf16.mxu1 %v10569_v27  ;;  %5259 = vmatprep.mubr.bf16.mxu0 %v13188_v63  ;;  %v729_v22 = vld [vmem:[#allocation2 + $0x1050] sm:$0xff]  ;;  %v10998_v26 = vcombine.low %v737_v9, %v745_v10  ;;  %v450_v33 = vld [vmem:[#allocation2 + $0x798] sm:$0xff] }
 0x186   :  { %v4937_v46 = vpop.f32.mrf.mxu0  ;;  %5300 = vmatprep.mubr.bf16.mxu1 %v13165_v11  ;;  %v10488_v27 = vcombine.low %v226_v12, %v234_v14  ;;  %v10983_v28 = vcombine.high %v721_v20, %v729_v22  ;;  %v969_v31 = vld [vmem:[#allocation2 + $0x17d0] sm:$0xff]  ;;  %v458_v35 = vld [vmem:[#allocation2 + $0x7d8] sm:$0xff] }
 0x187   :  { %v13220_v48 = vadd.f32 %v4976_v42, %v4936_v41  ;;  %v4978_v49 = vpop.f32.mrf.mxu1  ;;  %5230 = vmatpush1.bf16.msra.mxu0 %v11078_v34  ;;  %v10473_v34 = vcombine.high %v210_v23, %v218_v25  ;;  %v11223_v38 = vcombine.high %v961_v30, %v969_v31  ;;  %v434_v41 = vld [vmem:[#allocation2 + $0x718] sm:$0xff]  ;;  %v10713_v42 = vcombine.high %v450_v33, %v458_v35  ;;  %v905_v3 = vld [vmem:[#allocation2 + $0x15d0] sm:$0xff] }
 0x188   :  { %5271 = vmatpush1.bf16.msra.mxu1 %v10568_v36  ;;  %v4938_v51 = vpop.f32.mrf.mxu0  ;;  %5231 = vmatprep.subr.bf16.mxu0 %v11063_v37  ;;  %v10982_v36 = vcombine.low %v721_v20, %v729_v22  ;;  %v10472_v37 = vcombine.low %v210_v23, %v218_v25  ;;  %v11222_v45 = vcombine.low %v961_v30, %v969_v31  ;;  %v889_v14 = vld [vmem:[#allocation2 + $0x1550] sm:$0xff] }
 0x189   :  { %v4979_v21 = vpop.f32.mrf.mxu1  ;;  %5272 = vmatprep.subr.bf16.mxu1 %v10553_v43  ;;  %v442_v43 = vld [vmem:[#allocation2 + $0x758] sm:$0xff]  ;;  %v10712_v46 = vcombine.low %v450_v33, %v458_v35  ;;  %v11207_v49 = vcombine.high %v945_v39, %v953_v40  ;;  %v937_v51 = vld [vmem:[#allocation2 + $0x16d0] sm:$0xff] }
 0x18a   :  { %v10696_v56 = vcombine.low %v434_v41, %v442_v43  ;;  %v873_v25 = vld [vmem:[#allocation2 + $0x14d0] sm:$0xff] }
 0x18b   :  { %5232 = vmatpush1.bf16.msra.mxu0 %v11062_v50  ;;  %v929_v50 = vld [vmem:[#allocation2 + $0x1690] sm:$0xff] }
 0x18c   :  { %5273 = vmatpush1.bf16.msra.mxu1 %v10552_v52  ;;  %5233 = vmatprep.subr.bf16.mxu0 %v11047_v53  ;;  %v418_v52 = vld [vmem:[#allocation2 + $0x698] sm:$0xff]  ;;  %v10697_v53 = vcombine.high %v434_v41, %v442_v43  ;;  %v11191_v21 = vcombine.high %v929_v50, %v937_v51  ;;  %v11190_v62 = vcombine.low %v929_v50, %v937_v51  ;;  %v857_v35 = vld [vmem:[#allocation2 + $0x1450] sm:$0xff] }
 0x18d   :  { %5274 = vmatprep.subr.bf16.mxu1 %v10537_v57  ;;  %v913_v57 = vld [vmem:[#allocation2 + $0x1610] sm:$0xff]  ;;  %v10680_v0 = vcombine.low %v418_v52, %v426_v54  ;;  %v586_v43 = vld [vmem:[#allocation2 + $0xbd8] sm:$0xff] }
 0x18e   :  { %v11175_v1 = vcombine.high %v913_v57, %v921_v58  ;;  %v11174_v9 = vcombine.low %v913_v57, %v921_v58 }
 0x18f   :  { %5234 = vmatpush1.bf16.msra.mxu0 %v11046_v59  ;;  %v402_v59 = vld [vmem:[#allocation2 + $0x618] sm:$0xff] }
 0x190   :  { %5275 = vmatpush1.bf16.msra.mxu1 %v10536_v60  ;;  %5235 = vmatprep.subr.bf16.mxu0 %v11031_v61  ;;  %v10681_v60 = vcombine.high %v418_v52, %v426_v54  ;;  %v410_v61 = vld [vmem:[#allocation2 + $0x658] sm:$0xff] }
 0x191   :  { %5276 = vmatprep.subr.bf16.mxu1 %v10521_v2  ;;  %v897_v2 = vld [vmem:[#allocation2 + $0x1590] sm:$0xff]  ;;  %v10664_v10 = vcombine.low %v402_v59, %v410_v61  ;;  %v570_v54 = vld [vmem:[#allocation2 + $0xb58] sm:$0xff] }
 0x192   :  { %v11159_v12 = vcombine.high %v897_v2, %v905_v3  ;;  %v11158_v20 = vcombine.low %v897_v2, %v905_v3 }
 0x193   :  { %5236 = vmatpush1.bf16.msra.mxu0 %v11030_v4  ;;  %v386_v4 = vld [vmem:[#allocation2 + $0x598] sm:$0xff] }
 0x194   :  { %5277 = vmatpush1.bf16.msra.mxu1 %v10520_v6  ;;  %5237 = vmatprep.subr.bf16.mxu0 %v11015_v8  ;;  %v10665_v6 = vcombine.high %v402_v59, %v410_v61  ;;  %v394_v8 = vld [vmem:[#allocation2 + $0x5d8] sm:$0xff] }
 0x195   :  { %5278 = vmatprep.subr.bf16.mxu1 %v10505_v13  ;;  %v881_v13 = vld [vmem:[#allocation2 + $0x1510] sm:$0xff]  ;;  %v10648_v22 = vcombine.low %v386_v4, %v394_v8  ;;  %v554_v61 = vld [vmem:[#allocation2 + $0xad8] sm:$0xff] }
 0x196   :  { %v11143_v23 = vcombine.high %v881_v13, %v889_v14  ;;  %v11142_v30 = vcombine.low %v881_v13, %v889_v14  ;;  %v538_v13 = vld [vmem:[#allocation2 + $0xa58] sm:$0xff] }
 0x197   :  { %5238 = vmatpush1.bf16.msra.mxu0 %v11014_v17  ;;  %v370_v17 = vld [vmem:[#allocation2 + $0x518] sm:$0xff] }
 0x198   :  { %5279 = vmatpush1.bf16.msra.mxu1 %v10504_v18  ;;  %5239 = vmatprep.subr.bf16.mxu0 %v10999_v19  ;;  %v10649_v18 = vcombine.high %v386_v4, %v394_v8  ;;  %v378_v19 = vld [vmem:[#allocation2 + $0x558] sm:$0xff] }
 0x199   :  { %5280 = vmatprep.subr.bf16.mxu1 %v10489_v24  ;;  %v865_v24 = vld [vmem:[#allocation2 + $0x1490] sm:$0xff]  ;;  %v10632_v31 = vcombine.low %v370_v17, %v378_v19  ;;  %v786_v14 = vld [vmem:[#allocation2 + $0x1218] sm:$0xff] }
 0x19a   :  { %v11127_v33 = vcombine.high %v865_v24, %v873_v25  ;;  %v11126_v39 = vcombine.low %v865_v24, %v873_v25 }
 0x19b   :  { %5240 = vmatpush1.bf16.msra.mxu0 %v10998_v26  ;;  %v354_v26 = vld [vmem:[#allocation2 + $0x498] sm:$0xff] }
 0x19c   :  { %5281 = vmatpush1.bf16.msra.mxu1 %v10488_v27  ;;  %5241 = vmatprep.subr.bf16.mxu0 %v10983_v28  ;;  %v10633_v27 = vcombine.high %v370_v17, %v378_v19  ;;  %v362_v28 = vld [vmem:[#allocation2 + $0x4d8] sm:$0xff] }
 0x19d   :  { %5282 = vmatprep.subr.bf16.mxu1 %v10473_v34  ;;  %v849_v34 = vld [vmem:[#allocation2 + $0x1410] sm:$0xff]  ;;  %v10616_v40 = vcombine.low %v354_v26, %v362_v28  ;;  %v794_v19 = vld [vmem:[#allocation2 + $0x1258] sm:$0xff] }
 0x19e   :  { %v11111_v41 = vcombine.high %v849_v34, %v857_v35  ;;  %v11110_v50 = vcombine.low %v849_v34, %v857_v35  ;;  %v11048_v35 = vcombine.low %v786_v14, %v794_v19 }
 0x19f   :  { %5242 = vmatpush1.bf16.msra.mxu0 %v10982_v36  ;;  %v338_v36 = vld [vmem:[#allocation2 + $0x418] sm:$0xff] }
 0x1a0   :  { %5283 = vmatpush1.bf16.msra.mxu1 %v10472_v37  ;;  %5243 = vmatprep.subr.bf16.mxu0 %v11223_v38  ;;  %v10617_v37 = vcombine.high %v354_v26, %v362_v28  ;;  %v346_v38 = vld [vmem:[#allocation2 + $0x458] sm:$0xff] }
 0x1a1   :  { %5284 = vmatprep.subr.bf16.mxu1 %v10713_v42  ;;  %v578_v42 = vld [vmem:[#allocation2 + $0xb98] sm:$0xff]  ;;  %v10600_v51 = vcombine.low %v338_v36, %v346_v38 }
 0x1a2   :  { %v10841_v52 = vcombine.high %v578_v42, %v586_v43  ;;  %v10840_v57 = vcombine.low %v578_v42, %v586_v43  ;;  %v770_v28 = vld [vmem:[#allocation2 + $0x1198] sm:$0xff] }
 0x1a3   :  { %5244 = vmatpush2.bf16.msra.mxu0 %v11222_v45  ;;  %v834_v45 = vld [vmem:[#allocation2 + $0x1398] sm:$0xff] }
 0x1a4   :  { %5285 = vmatpush2.bf16.msra.mxu1 %v10712_v46  ;;  %5245 = vmatprep.subr.bf16.mxu0 %v11207_v49  ;;  %v10601_v46 = vcombine.high %v338_v36, %v346_v38  ;;  %v842_v49 = vld [vmem:[#allocation2 + $0x13d8] sm:$0xff] }
 0x1a5   :  { %5286 = vmatprep.subr.bf16.mxu1 %v10697_v53  ;;  %v562_v53 = vld [vmem:[#allocation2 + $0xb18] sm:$0xff]  ;;  %v11096_v58 = vcombine.low %v834_v45, %v842_v49 }
 0x1a6   :  { %v10825_v59 = vcombine.high %v562_v53, %v570_v54  ;;  %v506_v38 = vld [vmem:[#allocation2 + $0x958] sm:$0xff] }
 0x1a7   :  { %5246 = vmatpush2.bf16.msra.mxu0 %v11206_v55  ;;  %v818_v55 = vld [vmem:[#allocation2 + $0x1318] sm:$0xff] }
 0x1a8   :  { %5287 = vmatpush2.bf16.msra.mxu1 %v10696_v56  ;;  %5247 = vmatprep.subr.bf16.mxu0 %v11191_v21  ;;  %v11097_v56 = vcombine.high %v834_v45, %v842_v49  ;;  %v826_v21 = vld [vmem:[#allocation2 + $0x1358] sm:$0xff] }
 0x1a9   :  { %5288 = vmatprep.subr.bf16.mxu1 %v10681_v60  ;;  %v546_v60 = vld [vmem:[#allocation2 + $0xa98] sm:$0xff] }
 0x1aa   :  { %v490_v49 = vld [vmem:[#allocation2 + $0x8d8] sm:$0xff] }
 0x1ab   :  { %5248 = vmatpush2.bf16.msra.mxu0 %v11190_v62  ;;  %v802_v62 = vld [vmem:[#allocation2 + $0x1298] sm:$0xff] }
 0x1ac   :  { %5289 = vmatpush2.bf16.msra.mxu1 %v10680_v0  ;;  %5249 = vmatprep.subr.bf16.mxu0 %v11175_v1  ;;  %v11081_v0 = vcombine.high %v818_v55, %v826_v21  ;;  %v810_v1 = vld [vmem:[#allocation2 + $0x12d8] sm:$0xff] }
 0x1ad   :  { %5290 = vmatprep.subr.bf16.mxu1 %v10665_v6  ;;  %v10824_v6 = vcombine.low %v562_v53, %v570_v54  ;;  %v11064_v25 = vcombine.low %v802_v62, %v810_v1 }
 0x1af   :  { %5250 = vmatpush2.bf16.msra.mxu0 %v11174_v9  ;;  %v11080_v9 = vcombine.low %v818_v55, %v826_v21  ;;  %v474_v21 = vld [vmem:[#allocation2 + $0x858] sm:$0xff] }
 0x1b0   :  { %5291 = vmatpush2.bf16.msra.mxu1 %v10664_v10  ;;  %5251 = vmatprep.subr.bf16.mxu0 %v11159_v12  ;;  %v10809_v10 = vcombine.high %v546_v60, %v554_v61  ;;  %v530_v12 = vld [vmem:[#allocation2 + $0xa18] sm:$0xff] }
 0x1b1   :  { %5292 = vmatprep.subr.bf16.mxu1 %v10649_v18  ;;  %v10793_v26 = vcombine.high %v530_v12, %v538_v13  ;;  %v10792_v34 = vcombine.low %v530_v12, %v538_v13  ;;  %v690_v13 = vld [vmem:[#allocation2 + $0xf18] sm:$0xff] }
 0x1b3   :  { %5252 = vmatpush2.bf16.msra.mxu0 %v11158_v20 }
 0x1b4   :  { %5293 = vmatpush2.bf16.msra.mxu1 %v10648_v22  ;;  %5253 = vmatprep.subr.bf16.mxu0 %v11143_v23  ;;  %v10808_v23 = vcombine.low %v546_v60, %v554_v61 }
 0x1b5   :  { %5294 = vmatprep.subr.bf16.mxu1 %v10633_v27  ;;  %v522_v27 = vld [vmem:[#allocation2 + $0x9d8] sm:$0xff] }
 0x1b7   :  { %5254 = vmatpush2.bf16.msra.mxu0 %v11142_v30 }
 0x1b8   :  { %5295 = vmatpush2.bf16.msra.mxu1 %v10632_v31  ;;  %5255 = vmatprep.subr.bf16.mxu0 %v11127_v33  ;;  %v11049_v31 = vcombine.high %v786_v14, %v794_v19  ;;  %v778_v33 = vld [vmem:[#allocation2 + $0x11d8] sm:$0xff] }
 0x1b9   :  { %5296 = vmatprep.subr.bf16.mxu1 %v10617_v37  ;;  %v498_v37 = vld [vmem:[#allocation2 + $0x918] sm:$0xff]  ;;  %v11032_v43 = vcombine.low %v770_v28, %v778_v33 }
 0x1ba   :  { %v10761_v45 = vcombine.high %v498_v37, %v506_v38  ;;  %v10760_v53 = vcombine.low %v498_v37, %v506_v38  ;;  %v698_v14 = vld [vmem:[#allocation2 + $0xf58] sm:$0xff] }
 0x1bb   :  { %5256 = vmatpush2.bf16.msra.mxu0 %v11126_v39  ;;  %v754_v39 = vld [vmem:[#allocation2 + $0x1118] sm:$0xff] }
 0x1bc   :  { %5297 = vmatpush2.bf16.msra.mxu1 %v10616_v40  ;;  %5257 = vmatprep.subr.bf16.mxu0 %v11111_v41  ;;  %v11033_v40 = vcombine.high %v770_v28, %v778_v33  ;;  %v762_v41 = vld [vmem:[#allocation2 + $0x1158] sm:$0xff] }
 0x1bd   :  { %5298 = vmatprep.subr.bf16.mxu1 %v10601_v46  ;;  %v482_v46 = vld [vmem:[#allocation2 + $0x898] sm:$0xff]  ;;  %v11016_v54 = vcombine.low %v754_v39, %v762_v41 }
 0x1be   :  { %v10745_v55 = vcombine.high %v482_v46, %v490_v49  ;;  %v10744_v60 = vcombine.low %v482_v46, %v490_v49  ;;  %v938_v28 = vld [vmem:[#allocation2 + $0x16d8] sm:$0xff] }
 0x1bf   :  { %5258 = vmatpush2.bf16.msra.mxu0 %v11110_v50  ;;  %v738_v50 = vld [vmem:[#allocation2 + $0x1098] sm:$0xff] }
 0x1c0   :  { %5299 = vmatpush2.bf16.msra.mxu1 %v10600_v51  ;;  %5309 = vmatprep.subr.bf16.mxu0 %v10841_v52  ;;  %v11017_v51 = vcombine.high %v754_v39, %v762_v41  ;;  %v746_v52 = vld [vmem:[#allocation2 + $0x10d8] sm:$0xff] }
 0x1c1   :  { %5350 = vmatprep.subr.bf16.mxu1 %v11097_v56  ;;  %v466_v56 = vld [vmem:[#allocation2 + $0x818] sm:$0xff]  ;;  %v11000_v61 = vcombine.low %v738_v50, %v746_v52 }
 0x1c2   :  { %v5015_v2 = vpop.f32.mrf.mxu0  ;;  %5260 = vmatmul.mubr.bf16.vlgmr.msra.gmra.mxu0 %v13196_v47  ;;  %v922_v38 = vld [vmem:[#allocation2 + $0x1658] sm:$0xff] }
 0x1c3   :  { %v13224_v3 = vadd.f32 %v5015_v2, %v13216_v5  ;;  %v13226_v4 = vpop.f32.mrf.mxu1  ;;  %5301 = vmatmul.mubr.bf16.vlgmr.msra.gmra.mxu1 %v13182_v29  ;;  %5310 = vmatpush1.bf16.msra.mxu0 %v10840_v57  ;;  %v11065_v5 = vcombine.high %v802_v62, %v810_v1  ;;  %v722_v57 = vld [vmem:[#allocation2 + $0x1018] sm:$0xff]  ;;  %v10729_v62 = vcombine.high %v466_v56, %v474_v21 }
 0x1c4   :  { %5351 = vmatpush1.bf16.msra.mxu1 %v11096_v58  ;;  %v5017_v8 = vpop.f32.mrf.mxu0  ;;  %5311 = vmatprep.subr.bf16.mxu0 %v10825_v59  ;;  %v11001_v58 = vcombine.high %v738_v50, %v746_v52  ;;  %v730_v59 = vld [vmem:[#allocation2 + $0x1058] sm:$0xff] }
 0x1c5   :  { %v13230_v17 = vadd.f32 %v5017_v8, %v13220_v48  ;;  %v13232_v18 = vpop.f32.mrf.mxu1  ;;  %5352 = vmatprep.subr.bf16.mxu1 %v11081_v0  ;;  %5341 = vmatprep.mubr.bf16.mxu0 %v13170_v16  ;;  %v514_v48 = vld [vmem:[#allocation2 + $0x998] sm:$0xff] }
 0x1c6   :  { %v5019_v20 = vpop.f32.mrf.mxu0  ;;  %5382 = vmatprep.mubr.bf16.mxu1 %v13188_v63  ;;  %v10777_v36 = vcombine.high %v514_v48, %v522_v27  ;;  %v10776_v42 = vcombine.low %v514_v48, %v522_v27  ;;  %v706_v0 = vld [vmem:[#allocation2 + $0xf98] sm:$0xff] }
 0x1c7   :  { %v5060_v22 = vpop.f32.mrf.mxu1  ;;  %5312 = vmatpush1.bf16.msra.mxu0 %v10824_v6  ;;  %v714_v1 = vld [vmem:[#allocation2 + $0xfd8] sm:$0xff]  ;;  %v10985_v6 = vcombine.high %v722_v57, %v730_v59 }
 0x1c8   :  { %5353 = vmatpush1.bf16.msra.mxu1 %v11080_v9  ;;  %v5020_v24 = vpop.f32.mrf.mxu0  ;;  %5313 = vmatprep.subr.bf16.mxu0 %v10809_v10  ;;  %v962_v2 = vld [vmem:[#allocation2 + $0x1798] sm:$0xff]  ;;  %v10728_v9 = vcombine.low %v466_v56, %v474_v21  ;;  %v10984_v10 = vcombine.low %v722_v57, %v730_v59  ;;  %v10969_v12 = vcombine.high %v706_v0, %v714_v1 }
 0x1c9   :  { %v5061_v30 = vpop.f32.mrf.mxu1  ;;  %5354 = vmatprep.subr.bf16.mxu1 %v11065_v5  ;;  %v970_v8 = vld [vmem:[#allocation2 + $0x17d8] sm:$0xff]  ;;  %v10968_v22 = vcombine.low %v706_v0, %v714_v1  ;;  %v10953_v24 = vcombine.high %v690_v13, %v698_v14 }
 0x1ca   :  { %v946_v5 = vld [vmem:[#allocation2 + $0x1718] sm:$0xff]  ;;  %v11225_v19 = vcombine.high %v962_v2, %v970_v8  ;;  %v10952_v30 = vcombine.low %v690_v13, %v698_v14 }
 0x1cb   :  { %5314 = vmatpush1.bf16.msra.mxu0 %v10808_v23  ;;  %v954_v20 = vld [vmem:[#allocation2 + $0x1758] sm:$0xff]  ;;  %v11224_v23 = vcombine.low %v962_v2, %v970_v8 }
 0x1cc   :  { %5355 = vmatpush1.bf16.msra.mxu1 %v11064_v25  ;;  %5315 = vmatprep.subr.bf16.mxu0 %v10793_v26  ;;  %v674_v25 = vld [vmem:[#allocation2 + $0xe98] sm:$0xff]  ;;  %v11209_v27 = vcombine.high %v946_v5, %v954_v20 }
 0x1cd   :  { %5356 = vmatprep.subr.bf16.mxu1 %v11049_v31  ;;  %v682_v26 = vld [vmem:[#allocation2 + $0xed8] sm:$0xff]  ;;  %v11208_v31 = vcombine.low %v946_v5, %v954_v20 }
 0x1ce   :  { %v930_v48 = vld [vmem:[#allocation2 + $0x1698] sm:$0xff]  ;;  %v10937_v33 = vcombine.high %v674_v25, %v682_v26  ;;  %v10936_v39 = vcombine.low %v674_v25, %v682_v26  ;;  %v331_v25 = vld [vmem:[#allocation2 + $0x3e0] sm:$0xff] }
 0x1cf   :  { %5316 = vmatpush1.bf16.msra.mxu0 %v10792_v34  ;;  %v658_v34 = vld [vmem:[#allocation2 + $0xe18] sm:$0xff]  ;;  %v11193_v37 = vcombine.high %v930_v48, %v938_v28  ;;  %v579_v26 = vld [vmem:[#allocation2 + $0xba0] sm:$0xff] }
 0x1d0   :  { %5357 = vmatpush1.bf16.msra.mxu1 %v11048_v35  ;;  %5317 = vmatprep.subr.bf16.mxu0 %v10777_v36  ;;  %v666_v35 = vld [vmem:[#allocation2 + $0xe58] sm:$0xff] }
 0x1d1   :  { %5358 = vmatprep.subr.bf16.mxu1 %v11033_v40  ;;  %v914_v36 = vld [vmem:[#allocation2 + $0x1618] sm:$0xff]  ;;  %v11192_v40 = vcombine.low %v930_v48, %v938_v28  ;;  %v10921_v41 = vcombine.high %v658_v34, %v666_v35  ;;  %v10920_v50 = vcombine.low %v658_v34, %v666_v35  ;;  %v587_v48 = vld [vmem:[#allocation2 + $0xbe0] sm:$0xff] }
 0x1d2   :  { %v11177_v46 = vcombine.high %v914_v36, %v922_v38  ;;  %v906_v49 = vld [vmem:[#allocation2 + $0x15d8] sm:$0xff]  ;;  %v10843_v35 = vcombine.high %v579_v26, %v587_v48 }
 0x1d3   :  { %5318 = vmatpush1.bf16.msra.mxu0 %v10776_v42  ;;  %v642_v42 = vld [vmem:[#allocation2 + $0xd98] sm:$0xff] }
 0x1d4   :  { %5359 = vmatpush1.bf16.msra.mxu1 %v11032_v43  ;;  %5319 = vmatprep.subr.bf16.mxu0 %v10761_v45  ;;  %v650_v43 = vld [vmem:[#allocation2 + $0xdd8] sm:$0xff] }
 0x1d5   :  { %5360 = vmatprep.subr.bf16.mxu1 %v11017_v51  ;;  %v898_v45 = vld [vmem:[#allocation2 + $0x1598] sm:$0xff]  ;;  %v11176_v51 = vcombine.low %v914_v36, %v922_v38  ;;  %v10905_v52 = vcombine.high %v642_v42, %v650_v43  ;;  %v10904_v57 = vcombine.low %v642_v42, %v650_v43  ;;  %v307_v36 = vld [vmem:[#allocation2 + $0x320] sm:$0xff]  ;;  %v10842_v42 = vcombine.low %v579_v26, %v587_v48 }
 0x1d6   :  { %v11161_v56 = vcombine.high %v898_v45, %v906_v49  ;;  %v890_v21 = vld [vmem:[#allocation2 + $0x1558] sm:$0xff]  ;;  %v563_v38 = vld [vmem:[#allocation2 + $0xb20] sm:$0xff] }
 0x1d7   :  { %5320 = vmatpush1.bf16.msra.mxu0 %v10760_v53  ;;  %v626_v53 = vld [vmem:[#allocation2 + $0xd18] sm:$0xff] }
 0x1d8   :  { %5361 = vmatpush1.bf16.msra.mxu1 %v11016_v54  ;;  %5321 = vmatprep.subr.bf16.mxu0 %v10745_v55  ;;  %v634_v54 = vld [vmem:[#allocation2 + $0xd58] sm:$0xff] }
 0x1d9   :  { %5362 = vmatprep.subr.bf16.mxu1 %v11001_v58  ;;  %v882_v55 = vld [vmem:[#allocation2 + $0x1518] sm:$0xff]  ;;  %v11160_v58 = vcombine.low %v898_v45, %v906_v49  ;;  %v10889_v59 = vcombine.high %v626_v53, %v634_v54  ;;  %v10888_v2 = vcombine.low %v626_v53, %v634_v54  ;;  %v291_v49 = vld [vmem:[#allocation2 + $0x2a0] sm:$0xff] }
 0x1da   :  { %v11145_v0 = vcombine.high %v882_v55, %v890_v21  ;;  %v874_v1 = vld [vmem:[#allocation2 + $0x14d8] sm:$0xff]  ;;  %v555_v53 = vld [vmem:[#allocation2 + $0xae0] sm:$0xff] }
 0x1db   :  { %5322 = vmatpush1.bf16.msra.mxu0 %v10744_v60  ;;  %v610_v60 = vld [vmem:[#allocation2 + $0xc98] sm:$0xff] }
 0x1dc   :  { %5363 = vmatpush1.bf16.msra.mxu1 %v11000_v61  ;;  %5323 = vmatprep.subr.bf16.mxu0 %v10729_v62  ;;  %v618_v61 = vld [vmem:[#allocation2 + $0xcd8] sm:$0xff] }
 0x1dd   :  { %5364 = vmatprep.subr.bf16.mxu1 %v10985_v6  ;;  %v866_v62 = vld [vmem:[#allocation2 + $0x1498] sm:$0xff]  ;;  %v11144_v6 = vcombine.low %v882_v55, %v890_v21  ;;  %v10873_v8 = vcombine.high %v610_v60, %v618_v61  ;;  %v10872_v5 = vcombine.low %v610_v60, %v618_v61 }
 0x1de   :  { %v11129_v13 = vcombine.high %v866_v62, %v874_v1  ;;  %v858_v14 = vld [vmem:[#allocation2 + $0x1458] sm:$0xff] }
 0x1df   :  { %5324 = vmatpush1.bf16.msra.mxu0 %v10728_v9  ;;  %v594_v9 = vld [vmem:[#allocation2 + $0xc18] sm:$0xff] }
 0x1e0   :  { %5365 = vmatpush1.bf16.msra.mxu1 %v10984_v10  ;;  %5325 = vmatprep.subr.bf16.mxu0 %v10969_v12  ;;  %v602_v10 = vld [vmem:[#allocation2 + $0xc58] sm:$0xff] }
 0x1e1   :  { %5366 = vmatprep.subr.bf16.mxu1 %v11225_v19  ;;  %v850_v12 = vld [vmem:[#allocation2 + $0x1418] sm:$0xff]  ;;  %v11128_v19 = vcombine.low %v866_v62, %v874_v1  ;;  %v10857_v20 = vcombine.high %v594_v9, %v602_v10  ;;  %v10856_v28 = vcombine.low %v594_v9, %v602_v10  ;;  %v283_v1 = vld [vmem:[#allocation2 + $0x260] sm:$0xff] }
 0x1e3   :  { %5326 = vmatpush2.bf16.msra.mxu0 %v10968_v22  ;;  %v13237_v22 = vsub.s32 2, %v13153_v44 }
 0x1e4   :  { %5367 = vmatpush2.bf16.msra.mxu1 %v11224_v23  ;;  %5327 = vmatprep.subr.bf16.mxu0 %v10953_v24  ;;  %v11113_v23 = vcombine.high %v850_v12, %v858_v14  ;;  %v323_v24 = vld [vmem:[#allocation2 + $0x3a0] sm:$0xff] }
 0x1e5   :  { %5368 = vmatprep.subr.bf16.mxu1 %v11209_v27  ;;  %v13240_v27 = vsub.s32 3, %v13153_v44 }
 0x1e7   :  { %5328 = vmatpush2.bf16.msra.mxu0 %v10952_v30  ;;  %v11112_v30 = vcombine.low %v850_v12, %v858_v14 }
 0x1e8   :  { %5369 = vmatpush2.bf16.msra.mxu1 %v11208_v31  ;;  %5329 = vmatprep.subr.bf16.mxu0 %v10937_v33  ;;  %v10587_v31 = vcombine.high %v323_v24, %v331_v25  ;;  %v13242_v33 = vld [vmem:[#allocation11] sm:$0xff] }
 0x1e9   :  { %5370 = vmatprep.subr.bf16.mxu1 %v11193_v37  ;;  %v990_v34 = vrot.slane %v13242_v33, %v13237_v22  ;;  %v315_v37 = vld [vmem:[#allocation2 + $0x360] sm:$0xff] }
 0x1ea   :  { %v10571_v43 = vcombine.high %v307_v36, %v315_v37  ;;  %v10570_v21 = vcombine.low %v307_v36, %v315_v37  ;;  %v507_v36 = vld [vmem:[#allocation2 + $0x960] sm:$0xff] }
 0x1eb   :  { %5330 = vmatpush2.bf16.msra.mxu0 %v10936_v39  ;;  %v571_v39 = vld [vmem:[#allocation2 + $0xb60] sm:$0xff]  ;;  %v5057_v45 = vadd.f32 %v13226_v4, %v990_v34 }
 0x1ec   :  { %5371 = vmatpush2.bf16.msra.mxu1 %v11192_v40  ;;  %5331 = vmatprep.subr.bf16.mxu0 %v10921_v41  ;;  %v994_v40 = vrot.slane %v13242_v33, %v13240_v27  ;;  %v10586_v41 = vcombine.low %v323_v24, %v331_v25  ;;  %v10826_v4 = vcombine.low %v563_v38, %v571_v39  ;;  %v515_v24 = vld [vmem:[#allocation2 + $0x9a0] sm:$0xff] }
 0x1ed   :  { %5372 = vmatprep.subr.bf16.mxu1 %v11177_v46  ;;  %v10827_v46 = vcombine.high %v563_v38, %v571_v39  ;;  %v523_v25 = vld [vmem:[#allocation2 + $0x9e0] sm:$0xff] }
 0x1ee   :  { %v5059_v54 = vadd.f32 %v13232_v18, %v994_v40  ;;  %v251_v34 = vld [vmem:[#allocation2 + $0x160] sm:$0xff]  ;;  %v10778_v38 = vcombine.low %v515_v24, %v523_v25 }
 0x1ef   :  { %5332 = vmatpush2.bf16.msra.mxu0 %v10920_v50  ;;  %v299_v50 = vld [vmem:[#allocation2 + $0x2e0] sm:$0xff] }
 0x1f0   :  { %5373 = vmatpush2.bf16.msra.mxu1 %v11176_v51  ;;  %5333 = vmatprep.subr.bf16.mxu0 %v10905_v52  ;;  %v547_v52 = vld [vmem:[#allocation2 + $0xaa0] sm:$0xff]  ;;  %v10554_v10 = vcombine.low %v291_v49, %v299_v50 }
 0x1f1   :  { %5374 = vmatprep.subr.bf16.mxu1 %v11161_v56  ;;  %v10811_v62 = vcombine.high %v547_v52, %v555_v53 }
 0x1f3   :  { %5334 = vmatpush2.bf16.msra.mxu0 %v10904_v57 }
 0x1f4   :  { %5375 = vmatpush2.bf16.msra.mxu1 %v11160_v58  ;;  %5335 = vmatprep.subr.bf16.mxu0 %v10889_v59  ;;  %v10555_v58 = vcombine.high %v291_v49, %v299_v50 }
 0x1f5   :  { %5376 = vmatprep.subr.bf16.mxu1 %v11145_v0  ;;  %v275_v0 = vld [vmem:[#allocation2 + $0x220] sm:$0xff] }
 0x1f6   :  { %v10539_v14 = vcombine.high %v275_v0, %v283_v1  ;;  %v10538_v26 = vcombine.low %v275_v0, %v283_v1 }
 0x1f7   :  { %5336 = vmatpush2.bf16.msra.mxu0 %v10888_v2  ;;  %v531_v2 = vld [vmem:[#allocation2 + $0xa20] sm:$0xff] }
 0x1f8   :  { %5377 = vmatpush2.bf16.msra.mxu1 %v11144_v6  ;;  %5337 = vmatprep.subr.bf16.mxu0 %v10873_v8  ;;  %v539_v6 = vld [vmem:[#allocation2 + $0xa60] sm:$0xff] }
 0x1f9   :  { %5378 = vmatprep.subr.bf16.mxu1 %v11129_v13  ;;  %v10810_v13 = vcombine.low %v547_v52, %v555_v53  ;;  %v10794_v48 = vcombine.low %v531_v2, %v539_v6  ;;  %v211_v52 = vld [vmem:[#allocation2 + $0x20] sm:$0xff] }
 0x1fa   :  { %v219_v53 = vld [vmem:[#allocation2 + $0x60] sm:$0xff] }
 0x1fb   :  { %5338 = vmatpush2.bf16.msra.mxu0 %v10872_v5  ;;  %v10474_v0 = vcombine.low %v211_v52, %v219_v53 }
 0x1fc   :  { %5379 = vmatpush2.bf16.msra.mxu1 %v11128_v19  ;;  %5339 = vmatprep.subr.bf16.mxu0 %v10857_v20  ;;  %v10795_v19 = vcombine.high %v531_v2, %v539_v6  ;;  %v259_v20 = vld [vmem:[#allocation2 + $0x1a0] sm:$0xff] }
 0x1fd   :  { %5380 = vmatprep.subr.bf16.mxu1 %v11113_v23  ;;  %v267_v23 = vld [vmem:[#allocation2 + $0x1e0] sm:$0xff] }
 0x1fe   :  { %v10522_v37 = vcombine.low %v259_v20, %v267_v23  ;;  %v435_v6 = vld [vmem:[#allocation2 + $0x720] sm:$0xff] }
 0x1ff   :  { %5340 = vmatpush2.bf16.msra.mxu0 %v10856_v28  ;;  %v10523_v28 = vcombine.high %v259_v20, %v267_v23  ;;  %v419_v20 = vld [vmem:[#allocation2 + $0x6a0] sm:$0xff] }
 0x200   :  { %5381 = vmatpush2.bf16.msra.mxu1 %v11112_v30  ;;  %5391 = vmatprep.subr.bf16.mxu0 %v10587_v31  ;;  %v10779_v30 = vcombine.high %v515_v24, %v523_v25  ;;  %v243_v31 = vld [vmem:[#allocation2 + $0x120] sm:$0xff] }
 0x201   :  { %5432 = vmatprep.subr.bf16.mxu1 %v10843_v35  ;;  %v499_v35 = vld [vmem:[#allocation2 + $0x920] sm:$0xff]  ;;  %v10507_v39 = vcombine.high %v243_v31, %v251_v34 }
 0x202   :  { %v5097_v51 = vpop.f32.mrf.mxu0  ;;  %5342 = vmatmul.mubr.bf16.vlgmr.msra.gmra.mxu0 %v13186_v32  ;;  %v10763_v40 = vcombine.high %v499_v35, %v507_v36  ;;  %v10762_v49 = vcombine.low %v499_v35, %v507_v36  ;;  %v427_v23 = vld [vmem:[#allocation2 + $0x6e0] sm:$0xff] }
 0x203   :  { %v5098_v55 = vadd.f32 %v5097_v51, %v5057_v45  ;;  %v5138_v56 = vpop.f32.mrf.mxu1  ;;  %5383 = vmatmul.mubr.bf16.vlgmr.msra.gmra.mxu1 %v13196_v47  ;;  %5392 = vmatpush1.bf16.msra.mxu0 %v10586_v41  ;;  %v227_v41 = vld [vmem:[#allocation2 + $0xa0] sm:$0xff] }
 0x204   :  { %5433 = vmatpush1.bf16.msra.mxu1 %v10842_v42  ;;  %v5099_v57 = vpop.f32.mrf.mxu0  ;;  %5393 = vmatprep.subr.bf16.mxu0 %v10571_v43  ;;  %v235_v42 = vld [vmem:[#allocation2 + $0xe0] sm:$0xff] }
 0x205   :  { %v13252_v59 = vadd.f32 %v5138_v56, %v5098_v55  ;;  %v5100_v60 = vadd.f32 %v5099_v57, %v5059_v54  ;;  %v5140_v61 = vpop.f32.mrf.mxu1  ;;  %5434 = vmatprep.subr.bf16.mxu1 %v10827_v46  ;;  %5423 = vmatprep.mubr.bf16.mxu0 %v13165_v11  ;;  %v483_v43 = vld [vmem:[#allocation2 + $0x8a0] sm:$0xff]  ;;  %v10506_v46 = vcombine.low %v243_v31, %v251_v34 }
 0x206   :  { %v5101_v18 = vpop.f32.mrf.mxu0  ;;  %5464 = vmatprep.mubr.bf16.mxu1 %v13170_v16  ;;  %v491_v45 = vld [vmem:[#allocation2 + $0x8e0] sm:$0xff]  ;;  %v10491_v50 = vcombine.high %v227_v41, %v235_v42  ;;  %v10490_v56 = vcombine.low %v227_v41, %v235_v42  ;;  %v10475_v57 = vcombine.high %v211_v52, %v219_v53 }
 0x207   :  { %v13256_v8 = vadd.f32 %v5140_v61, %v5100_v60  ;;  %v5142_v9 = vpop.f32.mrf.mxu1  ;;  %5394 = vmatpush1.bf16.msra.mxu0 %v10570_v21  ;;  %v10747_v51 = vcombine.high %v483_v43, %v491_v45  ;;  %v467_v54 = vld [vmem:[#allocation2 + $0x820] sm:$0xff]  ;;  %v10746_v21 = vcombine.low %v483_v43, %v491_v45 }
 0x208   :  { %5435 = vmatpush1.bf16.msra.mxu1 %v10826_v4  ;;  %v5102_v12 = vpop.f32.mrf.mxu0  ;;  %5395 = vmatprep.subr.bf16.mxu0 %v10555_v58  ;;  %v475_v55 = vld [vmem:[#allocation2 + $0x860] sm:$0xff] }
 0x209   :  { %v5143_v5 = vpop.f32.mrf.mxu1  ;;  %5436 = vmatprep.subr.bf16.mxu1 %v10811_v62  ;;  %v10731_v4 = vcombine.high %v467_v54, %v475_v55  ;;  %v451_v58 = vld [vmem:[#allocation2 + $0x7a0] sm:$0xff]  ;;  %v10730_v1 = vcombine.low %v467_v54, %v475_v55 }
 0x20a   :  { %v459_v60 = vld [vmem:[#allocation2 + $0x7e0] sm:$0xff] }
 0x20b   :  { %5396 = vmatpush1.bf16.msra.mxu0 %v10554_v10  ;;  %v707_v61 = vld [vmem:[#allocation2 + $0xfa0] sm:$0xff]  ;;  %v10715_v18 = vcombine.high %v451_v58, %v459_v60 }
 0x20c   :  { %5437 = vmatpush1.bf16.msra.mxu1 %v10810_v13  ;;  %5397 = vmatprep.subr.bf16.mxu0 %v10539_v14  ;;  %v715_v62 = vld [vmem:[#allocation2 + $0xfe0] sm:$0xff]  ;;  %v10714_v13 = vcombine.low %v451_v58, %v459_v60 }
 0x20d   :  { %5438 = vmatprep.subr.bf16.mxu1 %v10795_v19  ;;  %v10971_v2 = vcombine.high %v707_v61, %v715_v62  ;;  %v443_v9 = vld [vmem:[#allocation2 + $0x760] sm:$0xff]  ;;  %v10970_v14 = vcombine.low %v707_v61, %v715_v62 }
 0x20e   :  { %v691_v10 = vld [vmem:[#allocation2 + $0xf20] sm:$0xff]  ;;  %v10699_v5 = vcombine.high %v435_v6, %v443_v9 }
 0x20f   :  { %5398 = vmatpush1.bf16.msra.mxu0 %v10538_v26  ;;  %v699_v12 = vld [vmem:[#allocation2 + $0xf60] sm:$0xff]  ;;  %v10698_v26 = vcombine.low %v435_v6, %v443_v9 }
 0x210   :  { %5439 = vmatpush1.bf16.msra.mxu1 %v10794_v48  ;;  %5399 = vmatprep.subr.bf16.mxu0 %v10523_v28  ;;  %v10955_v19 = vcombine.high %v691_v10, %v699_v12  ;;  %v675_v24 = vld [vmem:[#allocation2 + $0xea0] sm:$0xff]  ;;  %v10954_v48 = vcombine.low %v691_v10, %v699_v12  ;;  %v10683_v28 = vcombine.high %v419_v20, %v427_v23 }
 0x211   :  { %5440 = vmatprep.subr.bf16.mxu1 %v10779_v30  ;;  %v683_v25 = vld [vmem:[#allocation2 + $0xee0] sm:$0xff] }
 0x212   :  { %v10939_v30 = vcombine.high %v675_v24, %v683_v25  ;;  %v403_v31 = vld [vmem:[#allocation2 + $0x620] sm:$0xff] }
 0x213   :  { %5400 = vmatpush1.bf16.msra.mxu0 %v10522_v37  ;;  %v411_v34 = vld [vmem:[#allocation2 + $0x660] sm:$0xff]  ;;  %v10682_v37 = vcombine.low %v419_v20, %v427_v23 }
 0x214   :  { %5441 = vmatpush1.bf16.msra.mxu1 %v10778_v38  ;;  %5401 = vmatprep.subr.bf16.mxu0 %v10507_v39  ;;  %v659_v35 = vld [vmem:[#allocation2 + $0xe20] sm:$0xff]  ;;  %v10938_v38 = vcombine.low %v675_v24, %v683_v25  ;;  %v10667_v39 = vcombine.high %v403_v31, %v411_v34  ;;  %v324_v24 = vld [vmem:[#allocation2 + $0x3a8] sm:$0xff] }
 0x215   :  { %5442 = vmatprep.subr.bf16.mxu1 %v10763_v40  ;;  %v667_v36 = vld [vmem:[#allocation2 + $0xe60] sm:$0xff]  ;;  %v332_v25 = vld [vmem:[#allocation2 + $0x3e8] sm:$0xff] }
 0x216   :  { %v10923_v40 = vcombine.high %v659_v35, %v667_v36  ;;  %v387_v41 = vld [vmem:[#allocation2 + $0x5a0] sm:$0xff] }
 0x217   :  { %5402 = vmatpush1.bf16.msra.mxu0 %v10506_v46  ;;  %v395_v42 = vld [vmem:[#allocation2 + $0x5e0] sm:$0xff]  ;;  %v10666_v46 = vcombine.low %v403_v31, %v411_v34  ;;  %v10589_v31 = vcombine.high %v324_v24, %v332_v25  ;;  %v1001_v34 = vsub.s32 5, %v13153_v44 }
 0x218   :  { %5443 = vmatpush1.bf16.msra.mxu1 %v10762_v49  ;;  %5403 = vmatprep.subr.bf16.mxu0 %v10491_v50  ;;  %v643_v43 = vld [vmem:[#allocation2 + $0xda0] sm:$0xff]  ;;  %v10922_v49 = vcombine.low %v659_v35, %v667_v36  ;;  %v10651_v50 = vcombine.high %v387_v41, %v395_v42 }
 0x219   :  { %5444 = vmatprep.subr.bf16.mxu1 %v10747_v51  ;;  %v651_v45 = vld [vmem:[#allocation2 + $0xde0] sm:$0xff] }
 0x21a   :  { %v10907_v51 = vcombine.high %v643_v43, %v651_v45  ;;  %v371_v52 = vld [vmem:[#allocation2 + $0x520] sm:$0xff] }
 0x21b   :  { %5404 = vmatpush1.bf16.msra.mxu0 %v10490_v56  ;;  %v379_v53 = vld [vmem:[#allocation2 + $0x560] sm:$0xff]  ;;  %v10650_v56 = vcombine.low %v387_v41, %v395_v42  ;;  %v10588_v41 = vcombine.low %v324_v24, %v332_v25  ;;  %v268_v24 = vld [vmem:[#allocation2 + $0x1e8] sm:$0xff] }
 0x21c   :  { %5445 = vmatpush1.bf16.msra.mxu1 %v10746_v21  ;;  %5405 = vmatprep.subr.bf16.mxu0 %v10475_v57  ;;  %v627_v54 = vld [vmem:[#allocation2 + $0xd20] sm:$0xff]  ;;  %v10906_v21 = vcombine.low %v643_v43, %v651_v45  ;;  %v10635_v57 = vcombine.high %v371_v52, %v379_v53  ;;  %v1002_v43 = vrot.slane %v13242_v33, %v1001_v34 }
 0x21d   :  { %5446 = vmatprep.subr.bf16.mxu1 %v10731_v4  ;;  %v635_v55 = vld [vmem:[#allocation2 + $0xd60] sm:$0xff] }
 0x21e   :  { %v10891_v4 = vcombine.high %v627_v54, %v635_v55  ;;  %v355_v58 = vld [vmem:[#allocation2 + $0x4a0] sm:$0xff] }
 0x21f   :  { %5406 = vmatpush1.bf16.msra.mxu0 %v10474_v0  ;;  %v363_v60 = vld [vmem:[#allocation2 + $0x4e0] sm:$0xff]  ;;  %v10634_v0 = vcombine.low %v371_v52, %v379_v53  ;;  %v300_v52 = vld [vmem:[#allocation2 + $0x2e8] sm:$0xff] }
 0x220   :  { %5447 = vmatpush1.bf16.msra.mxu1 %v10730_v1  ;;  %5407 = vmatprep.subr.bf16.mxu0 %v10715_v18  ;;  %v611_v61 = vld [vmem:[#allocation2 + $0xca0] sm:$0xff]  ;;  %v10890_v1 = vcombine.low %v627_v54, %v635_v55  ;;  %v10619_v18 = vcombine.high %v355_v58, %v363_v60 }
 0x221   :  { %5448 = vmatprep.subr.bf16.mxu1 %v10971_v2  ;;  %v619_v62 = vld [vmem:[#allocation2 + $0xce0] sm:$0xff] }
 0x222   :  { %v10875_v2 = vcombine.high %v611_v61, %v619_v62  ;;  %v339_v6 = vld [vmem:[#allocation2 + $0x420] sm:$0xff] }
 0x223   :  { %5408 = vmatpush2.bf16.msra.mxu0 %v10714_v13  ;;  %v347_v9 = vld [vmem:[#allocation2 + $0x460] sm:$0xff]  ;;  %v10618_v13 = vcombine.low %v355_v58, %v363_v60 }
 0x224   :  { %5449 = vmatpush2.bf16.msra.mxu1 %v10970_v14  ;;  %5409 = vmatprep.subr.bf16.mxu0 %v10699_v5  ;;  %v595_v10 = vld [vmem:[#allocation2 + $0xc20] sm:$0xff]  ;;  %v10874_v14 = vcombine.low %v611_v61, %v619_v62  ;;  %v10603_v5 = vcombine.high %v339_v6, %v347_v9 }
 0x225   :  { %5450 = vmatprep.subr.bf16.mxu1 %v10955_v19  ;;  %v603_v12 = vld [vmem:[#allocation2 + $0xc60] sm:$0xff] }
 0x226   :  { %v10859_v19 = vcombine.high %v595_v10, %v603_v12  ;;  %v835_v20 = vld [vmem:[#allocation2 + $0x13a0] sm:$0xff] }
 0x227   :  { %5410 = vmatpush2.bf16.msra.mxu0 %v10698_v26  ;;  %v843_v23 = vld [vmem:[#allocation2 + $0x13e0] sm:$0xff]  ;;  %v10602_v26 = vcombine.low %v339_v6, %v347_v9 }
 0x228   :  { %5451 = vmatpush2.bf16.msra.mxu1 %v10954_v48  ;;  %5411 = vmatprep.subr.bf16.mxu0 %v10683_v28  ;;  %v997_v48 = vsub.s32 4, %v13153_v44  ;;  %v10858_v28 = vcombine.low %v595_v10, %v603_v12  ;;  %v819_v35 = vld [vmem:[#allocation2 + $0x1320] sm:$0xff] }
 0x229   :  { %5452 = vmatprep.subr.bf16.mxu1 %v10939_v30  ;;  %v11099_v30 = vcombine.high %v835_v20, %v843_v23  ;;  %v827_v36 = vld [vmem:[#allocation2 + $0x1360] sm:$0xff] }
 0x22a   :  { %v11083_v42 = vcombine.high %v819_v35, %v827_v36  ;;  %v11082_v55 = vcombine.low %v819_v35, %v827_v36  ;;  %v787_v61 = vld [vmem:[#allocation2 + $0x1220] sm:$0xff]  ;;  %v244_v36 = vld [vmem:[#allocation2 + $0x128] sm:$0xff] }
 0x22b   :  { %5412 = vmatpush2.bf16.msra.mxu0 %v10682_v37  ;;  %v308_v37 = vld [vmem:[#allocation2 + $0x328] sm:$0xff]  ;;  %v795_v62 = vld [vmem:[#allocation2 + $0x1260] sm:$0xff] }
 0x22c   :  { %5453 = vmatpush2.bf16.msra.mxu1 %v10938_v38  ;;  %5413 = vmatprep.subr.bf16.mxu0 %v10667_v39  ;;  %v316_v38 = vld [vmem:[#allocation2 + $0x368] sm:$0xff]  ;;  %v998_v39 = vrot.slane %v13242_v33, %v997_v48  ;;  %v11050_v25 = vcombine.low %v787_v61, %v795_v62  ;;  %v763_v35 = vld [vmem:[#allocation2 + $0x1160] sm:$0xff] }
 0x22d   :  { %5454 = vmatprep.subr.bf16.mxu1 %v10923_v40  ;;  %v11098_v40 = vcombine.low %v835_v20, %v843_v23  ;;  %v10573_v45 = vcombine.high %v308_v37, %v316_v38  ;;  %v779_v20 = vld [vmem:[#allocation2 + $0x11e0] sm:$0xff]  ;;  %v260_v23 = vld [vmem:[#allocation2 + $0x1a8] sm:$0xff] }
 0x22f   :  { %5414 = vmatpush2.bf16.msra.mxu0 %v10666_v46  ;;  %v803_v46 = vld [vmem:[#allocation2 + $0x12a0] sm:$0xff] }
 0x230   :  { %5455 = vmatpush2.bf16.msra.mxu1 %v10922_v49  ;;  %5415 = vmatprep.subr.bf16.mxu0 %v10651_v50  ;;  %v811_v49 = vld [vmem:[#allocation2 + $0x12e0] sm:$0xff] }
 0x231   :  { %5456 = vmatprep.subr.bf16.mxu1 %v10907_v51  ;;  %v292_v51 = vld [vmem:[#allocation2 + $0x2a8] sm:$0xff]  ;;  %v11066_v9 = vcombine.low %v803_v46, %v811_v49 }
 0x232   :  { %v10557_v60 = vcombine.high %v292_v51, %v300_v52  ;;  %v10556_v12 = vcombine.low %v292_v51, %v300_v52 }
 0x233   :  { %5416 = vmatpush2.bf16.msra.mxu0 %v10650_v56 }
 0x234   :  { %5457 = vmatpush2.bf16.msra.mxu1 %v10906_v21  ;;  %5417 = vmatprep.subr.bf16.mxu0 %v10635_v57  ;;  %v10572_v21 = vcombine.low %v308_v37, %v316_v38  ;;  %v11067_v57 = vcombine.high %v803_v46, %v811_v49  ;;  %v252_v37 = vld [vmem:[#allocation2 + $0x168] sm:$0xff] }
 0x235   :  { %5458 = vmatprep.subr.bf16.mxu1 %v10891_v4  ;;  %v236_v46 = vld [vmem:[#allocation2 + $0xe8] sm:$0xff] }
 0x237   :  { %5418 = vmatpush2.bf16.msra.mxu0 %v10634_v0 }
 0x238   :  { %5459 = vmatpush2.bf16.msra.mxu1 %v10890_v1  ;;  %5419 = vmatprep.subr.bf16.mxu0 %v10619_v18  ;;  %v276_v1 = vld [vmem:[#allocation2 + $0x228] sm:$0xff] }
 0x239   :  { %5460 = vmatprep.subr.bf16.mxu1 %v10875_v2  ;;  %v284_v18 = vld [vmem:[#allocation2 + $0x268] sm:$0xff] }
 0x23b   :  { %5420 = vmatpush2.bf16.msra.mxu0 %v10618_v13  ;;  %v11051_v13 = vcombine.high %v787_v61, %v795_v62  ;;  %v971_v61 = vld [vmem:[#allocation2 + $0x17e0] sm:$0xff]  ;;  %v452_v62 = vld [vmem:[#allocation2 + $0x7a8] sm:$0xff] }
 0x23c   :  { %5461 = vmatpush2.bf16.msra.mxu1 %v10874_v14  ;;  %5421 = vmatprep.subr.bf16.mxu0 %v10603_v5  ;;  %v10541_v5 = vcombine.high %v276_v1, %v284_v18 }
 0x23d   :  { %5462 = vmatprep.subr.bf16.mxu1 %v10859_v19  ;;  %v771_v19 = vld [vmem:[#allocation2 + $0x11a0] sm:$0xff] }
 0x23e   :  { %v11034_v38 = vcombine.low %v771_v19, %v779_v20 }
 0x23f   :  { %5422 = vmatpush2.bf16.msra.mxu0 %v10602_v26  ;;  %v10540_v26 = vcombine.low %v276_v1, %v284_v18 }
 0x240   :  { %5463 = vmatpush2.bf16.msra.mxu1 %v10858_v28  ;;  %5473 = vmatprep.subr.bf16.mxu0 %v11099_v30  ;;  %v11035_v28 = vcombine.high %v771_v19, %v779_v20  ;;  %v10525_v30 = vcombine.high %v260_v23, %v268_v24 }
 0x241   :  { %5514 = vmatprep.subr.bf16.mxu1 %v10589_v31  ;;  %v755_v31 = vld [vmem:[#allocation2 + $0x1120] sm:$0xff] }
 0x242   :  { %v5179_v50 = vpop.f32.mrf.mxu0  ;;  %5424 = vmatmul.mubr.bf16.vlgmr.msra.gmra.mxu0 %v13182_v29  ;;  %v11018_v49 = vcombine.low %v755_v31, %v763_v35 }
 0x243   :  { %v5180_v53 = vadd.f32 %v5179_v50, %v998_v39  ;;  %v5220_v54 = vpop.f32.mrf.mxu1  ;;  %5465 = vmatmul.mubr.bf16.vlgmr.msra.gmra.mxu1 %v13186_v32  ;;  %5474 = vmatpush1.bf16.msra.mxu0 %v11098_v40  ;;  %v10524_v39 = vcombine.low %v260_v23, %v268_v24  ;;  %v11019_v40 = vcombine.high %v755_v31, %v763_v35  ;;  %v931_v24 = vld [vmem:[#allocation2 + $0x16a0] sm:$0xff] }
 0x244   :  { %5515 = vmatpush1.bf16.msra.mxu1 %v10588_v41  ;;  %v5181_v56 = vpop.f32.mrf.mxu0  ;;  %5475 = vmatprep.subr.bf16.mxu0 %v11083_v42  ;;  %v10509_v41 = vcombine.high %v244_v36, %v252_v37  ;;  %v739_v42 = vld [vmem:[#allocation2 + $0x10a0] sm:$0xff]  ;;  %v10508_v50 = vcombine.low %v244_v36, %v252_v37 }
 0x245   :  { %v13268_v33 = vadd.f32 %v5220_v54, %v5180_v53  ;;  %v5182_v4 = vadd.f32 %v5181_v56, %v1002_v43  ;;  %v5222_v58 = vpop.f32.mrf.mxu1  ;;  %5516 = vmatprep.subr.bf16.mxu1 %v10573_v45  ;;  %5505 = vmatprep.mubr.bf16.mxu0 %v13188_v63  ;;  %v747_v43 = vld [vmem:[#allocation2 + $0x10e0] sm:$0xff]  ;;  %v228_v45 = vld [vmem:[#allocation2 + $0xa8] sm:$0xff] }
 0x246   :  { %v5183_v0 = vpop.f32.mrf.mxu0  ;;  %5546 = vmatprep.mubr.bf16.mxu1 %v13165_v11  ;;  %v11003_v51 = vcombine.high %v739_v42, %v747_v43  ;;  %v10493_v52 = vcombine.high %v228_v45, %v236_v46  ;;  %v723_v53 = vld [vmem:[#allocation2 + $0x1020] sm:$0xff]  ;;  %v220_v56 = vld [vmem:[#allocation2 + $0x68] sm:$0xff] }
 0x247   :  { %v13272_v2 = vadd.f32 %v5222_v58, %v5182_v4  ;;  %v5224_v6 = vpop.f32.mrf.mxu1  ;;  %5476 = vmatpush1.bf16.msra.mxu0 %v11082_v55  ;;  %v731_v54 = vld [vmem:[#allocation2 + $0x1060] sm:$0xff]  ;;  %v212_v55 = vld [vmem:[#allocation2 + $0x28] sm:$0xff] }
 0x248   :  { %5517 = vmatpush1.bf16.msra.mxu1 %v10572_v21  ;;  %v5184_v10 = vpop.f32.mrf.mxu0  ;;  %5477 = vmatprep.subr.bf16.mxu0 %v11067_v57  ;;  %v11002_v21 = vcombine.low %v739_v42, %v747_v43  ;;  %v10492_v57 = vcombine.low %v228_v45, %v236_v46  ;;  %v10987_v4 = vcombine.high %v723_v53, %v731_v54  ;;  %v460_v0 = vld [vmem:[#allocation2 + $0x7e8] sm:$0xff]  ;;  %v915_v37 = vld [vmem:[#allocation2 + $0x1620] sm:$0xff] }
 0x249   :  { %v5225_v14 = vpop.f32.mrf.mxu1  ;;  %5518 = vmatprep.subr.bf16.mxu1 %v10557_v60  ;;  %v10477_v58 = vcombine.high %v212_v55, %v220_v56  ;;  %v963_v60 = vld [vmem:[#allocation2 + $0x17a0] sm:$0xff]  ;;  %v10986_v1 = vcombine.low %v723_v53, %v731_v54  ;;  %v10476_v18 = vcombine.low %v212_v55, %v220_v56  ;;  %v10716_v19 = vcombine.low %v452_v62, %v460_v0 }
 0x24a   :  { %v11227_v6 = vcombine.high %v963_v60, %v971_v61  ;;  %v947_v10 = vld [vmem:[#allocation2 + $0x1720] sm:$0xff]  ;;  %v444_v14 = vld [vmem:[#allocation2 + $0x768] sm:$0xff] }
 0x24b   :  { %5478 = vmatpush1.bf16.msra.mxu0 %v11066_v9  ;;  %v10717_v9 = vcombine.high %v452_v62, %v460_v0  ;;  %v899_v46 = vld [vmem:[#allocation2 + $0x15a0] sm:$0xff] }
 0x24c   :  { %5519 = vmatpush1.bf16.msra.mxu1 %v10556_v12  ;;  %5479 = vmatprep.subr.bf16.mxu0 %v11051_v13  ;;  %v955_v12 = vld [vmem:[#allocation2 + $0x1760] sm:$0xff]  ;;  %v436_v13 = vld [vmem:[#allocation2 + $0x728] sm:$0xff] }
 0x24d   :  { %5520 = vmatprep.subr.bf16.mxu1 %v10541_v5  ;;  %v11226_v5 = vcombine.low %v963_v60, %v971_v61  ;;  %v11211_v20 = vcombine.high %v947_v10, %v955_v12  ;;  %v10701_v23 = vcombine.high %v436_v13, %v444_v14  ;;  %v10700_v31 = vcombine.low %v436_v13, %v444_v14  ;;  %v883_v56 = vld [vmem:[#allocation2 + $0x1520] sm:$0xff] }
 0x24e   :  { %v867_v0 = vld [vmem:[#allocation2 + $0x14a0] sm:$0xff] }
 0x24f   :  { %5480 = vmatpush1.bf16.msra.mxu0 %v11050_v25  ;;  %v939_v25 = vld [vmem:[#allocation2 + $0x16e0] sm:$0xff] }
 0x250   :  { %5521 = vmatpush1.bf16.msra.mxu1 %v10540_v26  ;;  %5481 = vmatprep.subr.bf16.mxu0 %v11035_v28  ;;  %v420_v26 = vld [vmem:[#allocation2 + $0x6a8] sm:$0xff]  ;;  %v11195_v35 = vcombine.high %v931_v24, %v939_v25  ;;  %v851_v14 = vld [vmem:[#allocation2 + $0x1420] sm:$0xff] }
 0x251   :  { %5522 = vmatprep.subr.bf16.mxu1 %v10525_v30  ;;  %v428_v28 = vld [vmem:[#allocation2 + $0x6e8] sm:$0xff]  ;;  %v11210_v30 = vcombine.low %v947_v10, %v955_v12 }
 0x252   :  { %v10685_v36 = vcombine.high %v420_v26, %v428_v28  ;;  %v10684_v42 = vcombine.low %v420_v26, %v428_v28  ;;  %v580_v28 = vld [vmem:[#allocation2 + $0xba8] sm:$0xff] }
 0x253   :  { %5482 = vmatpush1.bf16.msra.mxu0 %v11034_v38  ;;  %v923_v38 = vld [vmem:[#allocation2 + $0x1660] sm:$0xff] }
 0x254   :  { %5523 = vmatpush1.bf16.msra.mxu1 %v10524_v39  ;;  %5483 = vmatprep.subr.bf16.mxu0 %v11019_v40  ;;  %v404_v39 = vld [vmem:[#allocation2 + $0x628] sm:$0xff]  ;;  %v11179_v43 = vcombine.high %v915_v37, %v923_v38 }
 0x255   :  { %5524 = vmatprep.subr.bf16.mxu1 %v10509_v41  ;;  %v412_v40 = vld [vmem:[#allocation2 + $0x668] sm:$0xff]  ;;  %v11194_v41 = vcombine.low %v931_v24, %v939_v25 }
 0x256   :  { %v10669_v45 = vcombine.high %v404_v39, %v412_v40  ;;  %v10668_v53 = vcombine.low %v404_v39, %v412_v40  ;;  %v564_v40 = vld [vmem:[#allocation2 + $0xb28] sm:$0xff] }
 0x257   :  { %5484 = vmatpush1.bf16.msra.mxu0 %v11018_v49  ;;  %v907_v49 = vld [vmem:[#allocation2 + $0x15e0] sm:$0xff] }
 0x258   :  { %5525 = vmatpush1.bf16.msra.mxu1 %v10508_v50  ;;  %5485 = vmatprep.subr.bf16.mxu0 %v11003_v51  ;;  %v388_v50 = vld [vmem:[#allocation2 + $0x5a8] sm:$0xff]  ;;  %v11163_v54 = vcombine.high %v899_v46, %v907_v49 }
 0x259   :  { %5526 = vmatprep.subr.bf16.mxu1 %v10493_v52  ;;  %v396_v51 = vld [vmem:[#allocation2 + $0x5e8] sm:$0xff]  ;;  %v11178_v52 = vcombine.low %v915_v37, %v923_v38 }
 0x25a   :  { %v10653_v55 = vcombine.high %v388_v50, %v396_v51  ;;  %v10652_v60 = vcombine.low %v388_v50, %v396_v51  ;;  %v548_v51 = vld [vmem:[#allocation2 + $0xaa8] sm:$0xff] }
 0x25b   :  { %5486 = vmatpush1.bf16.msra.mxu0 %v11002_v21  ;;  %v891_v21 = vld [vmem:[#allocation2 + $0x1560] sm:$0xff] }
 0x25c   :  { %5527 = vmatpush1.bf16.msra.mxu1 %v10492_v57  ;;  %5487 = vmatprep.subr.bf16.mxu0 %v10987_v4  ;;  %v372_v57 = vld [vmem:[#allocation2 + $0x528] sm:$0xff]  ;;  %v11147_v61 = vcombine.high %v883_v56, %v891_v21 }
 0x25d   :  { %5528 = vmatprep.subr.bf16.mxu1 %v10477_v58  ;;  %v380_v4 = vld [vmem:[#allocation2 + $0x568] sm:$0xff]  ;;  %v11162_v58 = vcombine.low %v899_v46, %v907_v49 }
 0x25e   :  { %v10637_v62 = vcombine.high %v372_v57, %v380_v4  ;;  %v10636_v10 = vcombine.low %v372_v57, %v380_v4 }
 0x25f   :  { %5488 = vmatpush1.bf16.msra.mxu0 %v10986_v1  ;;  %v875_v1 = vld [vmem:[#allocation2 + $0x14e0] sm:$0xff] }
 0x260   :  { %5529 = vmatpush1.bf16.msra.mxu1 %v10476_v18  ;;  %5489 = vmatprep.subr.bf16.mxu0 %v11227_v6  ;;  %v356_v18 = vld [vmem:[#allocation2 + $0x4a8] sm:$0xff]  ;;  %v11131_v12 = vcombine.high %v867_v0, %v875_v1 }
 0x261   :  { %5530 = vmatprep.subr.bf16.mxu1 %v10717_v9  ;;  %v364_v6 = vld [vmem:[#allocation2 + $0x4e8] sm:$0xff]  ;;  %v11146_v9 = vcombine.low %v883_v56, %v891_v21 }
 0x262   :  { %v10621_v13 = vcombine.high %v356_v18, %v364_v6  ;;  %v10620_v24 = vcombine.low %v356_v18, %v364_v6  ;;  %v788_v6 = vld [vmem:[#allocation2 + $0x1228] sm:$0xff] }
 0x263   :  { %5490 = vmatpush2.bf16.msra.mxu0 %v11226_v5  ;;  %v859_v5 = vld [vmem:[#allocation2 + $0x1460] sm:$0xff] }
 0x264   :  { %5531 = vmatpush2.bf16.msra.mxu1 %v10716_v19  ;;  %5491 = vmatprep.subr.bf16.mxu0 %v11211_v20  ;;  %v340_v19 = vld [vmem:[#allocation2 + $0x428] sm:$0xff]  ;;  %v11115_v25 = vcombine.high %v851_v14, %v859_v5 }
 0x265   :  { %5532 = vmatprep.subr.bf16.mxu1 %v10701_v23  ;;  %v348_v20 = vld [vmem:[#allocation2 + $0x468] sm:$0xff]  ;;  %v11130_v23 = vcombine.low %v867_v0, %v875_v1 }
 0x266   :  { %v10605_v26 = vcombine.high %v340_v19, %v348_v20  ;;  %v10604_v37 = vcombine.low %v340_v19, %v348_v20  ;;  %v540_v1 = vld [vmem:[#allocation2 + $0xa68] sm:$0xff] }
 0x267   :  { %5492 = vmatpush2.bf16.msra.mxu0 %v11210_v30  ;;  %v588_v30 = vld [vmem:[#allocation2 + $0xbe8] sm:$0xff] }
 0x268   :  { %5533 = vmatpush2.bf16.msra.mxu1 %v10700_v31  ;;  %5493 = vmatprep.subr.bf16.mxu0 %v11195_v35  ;;  %v836_v31 = vld [vmem:[#allocation2 + $0x13a8] sm:$0xff]  ;;  %v10845_v38 = vcombine.high %v580_v28, %v588_v30 }
 0x269   :  { %5534 = vmatprep.subr.bf16.mxu1 %v10685_v36  ;;  %v844_v35 = vld [vmem:[#allocation2 + $0x13e8] sm:$0xff]  ;;  %v11114_v36 = vcombine.low %v851_v14, %v859_v5 }
 0x26a   :  { %v11101_v39 = vcombine.high %v836_v31, %v844_v35  ;;  %v11100_v46 = vcombine.low %v836_v31, %v844_v35  ;;  %v516_v20 = vld [vmem:[#allocation2 + $0x9a8] sm:$0xff] }
 0x26b   :  { %5494 = vmatpush2.bf16.msra.mxu0 %v11194_v41  ;;  %v572_v41 = vld [vmem:[#allocation2 + $0xb68] sm:$0xff] }
 0x26c   :  { %5535 = vmatpush2.bf16.msra.mxu1 %v10684_v42  ;;  %5495 = vmatprep.subr.bf16.mxu0 %v11179_v43  ;;  %v820_v42 = vld [vmem:[#allocation2 + $0x1328] sm:$0xff]  ;;  %v10829_v49 = vcombine.high %v564_v40, %v572_v41  ;;  %v10828_v57 = vcombine.low %v564_v40, %v572_v41 }
 0x26d   :  { %5536 = vmatprep.subr.bf16.mxu1 %v10669_v45  ;;  %v828_v43 = vld [vmem:[#allocation2 + $0x1368] sm:$0xff]  ;;  %v10844_v45 = vcombine.low %v580_v28, %v588_v30 }
 0x26e   :  { %v11085_v50 = vcombine.high %v820_v42, %v828_v43  ;;  %v500_v35 = vld [vmem:[#allocation2 + $0x928] sm:$0xff] }
 0x26f   :  { %5496 = vmatpush2.bf16.msra.mxu0 %v11178_v52  ;;  %v556_v52 = vld [vmem:[#allocation2 + $0xae8] sm:$0xff] }
 0x270   :  { %5537 = vmatpush2.bf16.msra.mxu1 %v10668_v53  ;;  %5497 = vmatprep.subr.bf16.mxu0 %v11163_v54  ;;  %v804_v54 = vld [vmem:[#allocation2 + $0x12a8] sm:$0xff] }
 0x271   :  { %5538 = vmatprep.subr.bf16.mxu1 %v10653_v55  ;;  %v812_v55 = vld [vmem:[#allocation2 + $0x12e8] sm:$0xff] }
 0x272   :  { %v11069_v0 = vcombine.high %v804_v54, %v812_v55 }
 0x273   :  { %5498 = vmatpush2.bf16.msra.mxu0 %v11162_v58  ;;  %v11084_v58 = vcombine.low %v820_v42, %v828_v43  ;;  %v484_v43 = vld [vmem:[#allocation2 + $0x8a8] sm:$0xff] }
 0x274   :  { %5539 = vmatpush2.bf16.msra.mxu1 %v10652_v60  ;;  %5499 = vmatprep.subr.bf16.mxu0 %v11147_v61  ;;  %v10813_v60 = vcombine.high %v548_v51, %v556_v52 }
 0x275   :  { %5540 = vmatprep.subr.bf16.mxu1 %v10637_v62 }
 0x277   :  { %5500 = vmatpush2.bf16.msra.mxu0 %v11146_v9  ;;  %v796_v9 = vld [vmem:[#allocation2 + $0x1268] sm:$0xff] }
 0x278   :  { %5541 = vmatpush2.bf16.msra.mxu1 %v10636_v10  ;;  %5501 = vmatprep.subr.bf16.mxu0 %v11131_v12  ;;  %v10812_v12 = vcombine.low %v548_v51, %v556_v52  ;;  %v11053_v19 = vcombine.high %v788_v6, %v796_v9  ;;  %v11052_v28 = vcombine.low %v788_v6, %v796_v9  ;;  %v964_v6 = vld [vmem:[#allocation2 + $0x17a8] sm:$0xff] }
 0x279   :  { %5542 = vmatprep.subr.bf16.mxu1 %v10621_v13  ;;  %v972_v9 = vld [vmem:[#allocation2 + $0x17e8] sm:$0xff] }
 0x27b   :  { %5502 = vmatpush2.bf16.msra.mxu0 %v11130_v23  ;;  %v524_v23 = vld [vmem:[#allocation2 + $0x9e8] sm:$0xff] }
 0x27c   :  { %5543 = vmatpush2.bf16.msra.mxu1 %v10620_v24  ;;  %5503 = vmatprep.subr.bf16.mxu0 %v11115_v25  ;;  %v772_v24 = vld [vmem:[#allocation2 + $0x11a8] sm:$0xff]  ;;  %v10781_v30 = vcombine.high %v516_v20, %v524_v23 }
 0x27d   :  { %5544 = vmatprep.subr.bf16.mxu1 %v10605_v26  ;;  %v780_v25 = vld [vmem:[#allocation2 + $0x11e8] sm:$0xff] }
 0x27e   :  { %v11037_v31 = vcombine.high %v772_v24, %v780_v25  ;;  %v11036_v40 = vcombine.low %v772_v24, %v780_v25  ;;  %v11228_v24 = vcombine.low %v964_v6, %v972_v9 }
 0x27f   :  { %5504 = vmatpush2.bf16.msra.mxu0 %v11114_v36  ;;  %v508_v36 = vld [vmem:[#allocation2 + $0x968] sm:$0xff] }
 0x280   :  { %5545 = vmatpush2.bf16.msra.mxu1 %v10604_v37  ;;  %5555 = vmatprep.subr.bf16.mxu0 %v10845_v38  ;;  %v756_v37 = vld [vmem:[#allocation2 + $0x1128] sm:$0xff]  ;;  %v10765_v41 = vcombine.high %v500_v35, %v508_v36 }
 0x281   :  { %5596 = vmatprep.subr.bf16.mxu1 %v11101_v39  ;;  %v764_v38 = vld [vmem:[#allocation2 + $0x1168] sm:$0xff]  ;;  %v10780_v39 = vcombine.low %v516_v20, %v524_v23 }
 0x282   :  { %v5261_v53 = vpop.f32.mrf.mxu0  ;;  %5506 = vmatmul.mubr.bf16.vlgmr.msra.gmra.mxu0 %v13196_v47  ;;  %v11021_v42 = vcombine.high %v756_v37, %v764_v38  ;;  %v11020_v51 = vcombine.low %v756_v37, %v764_v38  ;;  %v956_v20 = vld [vmem:[#allocation2 + $0x1768] sm:$0xff] }
 0x283   :  { %v13276_v56 = vadd.f32 %v5261_v53, %v13268_v33  ;;  %v13278_v21 = vpop.f32.mrf.mxu1  ;;  %5547 = vmatmul.mubr.bf16.vlgmr.msra.gmra.mxu1 %v13182_v29  ;;  %5556 = vmatpush1.bf16.msra.mxu0 %v10844_v45  ;;  %v532_v33 = vld [vmem:[#allocation2 + $0xa28] sm:$0xff] }
 0x284   :  { %5597 = vmatpush1.bf16.msra.mxu1 %v11100_v46  ;;  %v5263_v4 = vpop.f32.mrf.mxu0  ;;  %5557 = vmatprep.subr.bf16.mxu0 %v10829_v49  ;;  %v10797_v14 = vcombine.high %v532_v33, %v540_v1  ;;  %v10796_v26 = vcombine.low %v532_v33, %v540_v1  ;;  %v492_v45 = vld [vmem:[#allocation2 + $0x8e8] sm:$0xff] }
 0x285   :  { %v13282_v61 = vadd.f32 %v5263_v4, %v13272_v2  ;;  %v13284_v62 = vpop.f32.mrf.mxu1  ;;  %5598 = vmatprep.subr.bf16.mxu1 %v11085_v50  ;;  %5587 = vmatprep.mubr.bf16.mxu0 %v13170_v16  ;;  %v11068_v2 = vcombine.low %v804_v54, %v812_v55  ;;  %v740_v46 = vld [vmem:[#allocation2 + $0x10a8] sm:$0xff]  ;;  %v10764_v50 = vcombine.low %v500_v35, %v508_v36 }
 0x286   :  { %v5265_v18 = vpop.f32.mrf.mxu0  ;;  %5628 = vmatprep.mubr.bf16.mxu1 %v13188_v63  ;;  %v748_v49 = vld [vmem:[#allocation2 + $0x10e8] sm:$0xff]  ;;  %v10749_v52 = vcombine.high %v484_v43, %v492_v45 }
 0x287   :  { %v5306_v10 = vpop.f32.mrf.mxu1  ;;  %5558 = vmatpush1.bf16.msra.mxu0 %v10828_v57  ;;  %v11005_v53 = vcombine.high %v740_v46, %v748_v49  ;;  %v468_v54 = vld [vmem:[#allocation2 + $0x828] sm:$0xff] }
 0x288   :  { %5599 = vmatpush1.bf16.msra.mxu1 %v11084_v58  ;;  %v5266_v13 = vpop.f32.mrf.mxu0  ;;  %5559 = vmatprep.subr.bf16.mxu0 %v10813_v60  ;;  %v476_v55 = vld [vmem:[#allocation2 + $0x868] sm:$0xff]  ;;  %v10748_v58 = vcombine.low %v484_v43, %v492_v45  ;;  %v11004_v60 = vcombine.low %v740_v46, %v748_v49 }
 0x289   :  { %v5307_v5 = vpop.f32.mrf.mxu1  ;;  %5600 = vmatprep.subr.bf16.mxu1 %v11069_v0  ;;  %v724_v57 = vld [vmem:[#allocation2 + $0x1028] sm:$0xff]  ;;  %v10733_v0 = vcombine.high %v468_v54, %v476_v55  ;;  %v10732_v10 = vcombine.low %v468_v54, %v476_v55 }
 0x28a   :  { %v732_v4 = vld [vmem:[#allocation2 + $0x1068] sm:$0xff] }
 0x28b   :  { %5560 = vmatpush1.bf16.msra.mxu0 %v10812_v12  ;;  %v10989_v33 = vcombine.high %v724_v57, %v732_v4  ;;  %v708_v1 = vld [vmem:[#allocation2 + $0xfa8] sm:$0xff]  ;;  %v10988_v12 = vcombine.low %v724_v57, %v732_v4 }
 0x28c   :  { %5601 = vmatpush1.bf16.msra.mxu1 %v11068_v2  ;;  %5561 = vmatprep.subr.bf16.mxu0 %v10797_v14  ;;  %v716_v18 = vld [vmem:[#allocation2 + $0xfe8] sm:$0xff]  ;;  %v11229_v2 = vcombine.high %v964_v6, %v972_v9 }
 0x28d   :  { %5602 = vmatprep.subr.bf16.mxu1 %v11053_v19  ;;  %v10973_v13 = vcombine.high %v708_v1, %v716_v18  ;;  %v692_v14 = vld [vmem:[#allocation2 + $0xf28] sm:$0xff]  ;;  %v10972_v23 = vcombine.low %v708_v1, %v716_v18 }
 0x28e   :  { %v700_v5 = vld [vmem:[#allocation2 + $0xf68] sm:$0xff] }
 0x28f   :  { %5562 = vmatpush1.bf16.msra.mxu0 %v10796_v26  ;;  %v948_v19 = vld [vmem:[#allocation2 + $0x1728] sm:$0xff]  ;;  %v10957_v25 = vcombine.high %v692_v14, %v700_v5  ;;  %v10956_v36 = vcombine.low %v692_v14, %v700_v5 }
 0x290   :  { %5603 = vmatpush1.bf16.msra.mxu1 %v11052_v28  ;;  %5563 = vmatprep.subr.bf16.mxu0 %v10781_v30  ;;  %v11213_v26 = vcombine.high %v948_v19, %v956_v20  ;;  %v676_v28 = vld [vmem:[#allocation2 + $0xea8] sm:$0xff]  ;;  %v11212_v37 = vcombine.low %v948_v19, %v956_v20 }
 0x291   :  { %5604 = vmatprep.subr.bf16.mxu1 %v11037_v31  ;;  %v684_v30 = vld [vmem:[#allocation2 + $0xee8] sm:$0xff] }
 0x292   :  { %v932_v31 = vld [vmem:[#allocation2 + $0x16a8] sm:$0xff]  ;;  %v10941_v38 = vcombine.high %v676_v28, %v684_v30  ;;  %v10940_v45 = vcombine.low %v676_v28, %v684_v30 }
 0x293   :  { %5564 = vmatpush1.bf16.msra.mxu0 %v10780_v39  ;;  %v940_v35 = vld [vmem:[#allocation2 + $0x16e8] sm:$0xff] }
 0x294   :  { %5605 = vmatpush1.bf16.msra.mxu1 %v11036_v40  ;;  %5565 = vmatprep.subr.bf16.mxu0 %v10765_v41  ;;  %v11197_v39 = vcombine.high %v932_v31, %v940_v35  ;;  %v660_v40 = vld [vmem:[#allocation2 + $0xe28] sm:$0xff]  ;;  %v11196_v46 = vcombine.low %v932_v31, %v940_v35 }
 0x295   :  { %5606 = vmatprep.subr.bf16.mxu1 %v11021_v42  ;;  %v668_v41 = vld [vmem:[#allocation2 + $0xe68] sm:$0xff] }
 0x296   :  { %v916_v42 = vld [vmem:[#allocation2 + $0x1628] sm:$0xff]  ;;  %v10925_v49 = vcombine.high %v660_v40, %v668_v41  ;;  %v10924_v55 = vcombine.low %v660_v40, %v668_v41  ;;  %v581_v40 = vld [vmem:[#allocation2 + $0xbb0] sm:$0xff] }
 0x297   :  { %5566 = vmatpush1.bf16.msra.mxu0 %v10764_v50  ;;  %v924_v43 = vld [vmem:[#allocation2 + $0x1668] sm:$0xff]  ;;  %v589_v41 = vld [vmem:[#allocation2 + $0xbf0] sm:$0xff] }
 0x298   :  { %5607 = vmatpush1.bf16.msra.mxu1 %v11020_v51  ;;  %5567 = vmatprep.subr.bf16.mxu0 %v10749_v52  ;;  %v11181_v50 = vcombine.high %v916_v42, %v924_v43  ;;  %v644_v51 = vld [vmem:[#allocation2 + $0xda8] sm:$0xff]  ;;  %v11180_v57 = vcombine.low %v916_v42, %v924_v43  ;;  %v1009_v42 = vsub.s32 7, %v13153_v44 }
 0x299   :  { %5608 = vmatprep.subr.bf16.mxu1 %v11005_v53  ;;  %v652_v52 = vld [vmem:[#allocation2 + $0xde8] sm:$0xff] }
 0x29a   :  { %v900_v53 = vld [vmem:[#allocation2 + $0x15a8] sm:$0xff]  ;;  %v10909_v4 = vcombine.high %v644_v51, %v652_v52  ;;  %v10908_v18 = vcombine.low %v644_v51, %v652_v52  ;;  %v10847_v51 = vcombine.high %v581_v40, %v589_v41  ;;  %v309_v52 = vld [vmem:[#allocation2 + $0x330] sm:$0xff] }
 0x29b   :  { %5568 = vmatpush1.bf16.msra.mxu0 %v10748_v58  ;;  %v908_v54 = vld [vmem:[#allocation2 + $0x15e8] sm:$0xff] }
 0x29c   :  { %5609 = vmatpush1.bf16.msra.mxu1 %v11004_v60  ;;  %5569 = vmatprep.subr.bf16.mxu0 %v10733_v0  ;;  %v11165_v58 = vcombine.high %v900_v53, %v908_v54  ;;  %v628_v60 = vld [vmem:[#allocation2 + $0xd28] sm:$0xff]  ;;  %v11164_v6 = vcombine.low %v900_v53, %v908_v54  ;;  %v317_v53 = vld [vmem:[#allocation2 + $0x370] sm:$0xff] }
 0x29d   :  { %5610 = vmatprep.subr.bf16.mxu1 %v10989_v33  ;;  %v636_v0 = vld [vmem:[#allocation2 + $0xd68] sm:$0xff]  ;;  %v565_v54 = vld [vmem:[#allocation2 + $0xb30] sm:$0xff] }
 0x29e   :  { %v884_v33 = vld [vmem:[#allocation2 + $0x1528] sm:$0xff]  ;;  %v10893_v9 = vcombine.high %v628_v60, %v636_v0  ;;  %v10892_v5 = vcombine.low %v628_v60, %v636_v0  ;;  %v10575_v60 = vcombine.high %v309_v52, %v317_v53 }
 0x29f   :  { %5570 = vmatpush1.bf16.msra.mxu0 %v10732_v10  ;;  %v892_v1 = vld [vmem:[#allocation2 + $0x1568] sm:$0xff] }
 0x2a0   :  { %5611 = vmatpush1.bf16.msra.mxu1 %v10988_v12  ;;  %5571 = vmatprep.subr.bf16.mxu0 %v10973_v13  ;;  %v11149_v10 = vcombine.high %v884_v33, %v892_v1  ;;  %v612_v12 = vld [vmem:[#allocation2 + $0xca8] sm:$0xff]  ;;  %v11148_v19 = vcombine.low %v884_v33, %v892_v1  ;;  %v293_v1 = vld [vmem:[#allocation2 + $0x2b0] sm:$0xff] }
 0x2a1   :  { %5612 = vmatprep.subr.bf16.mxu1 %v11229_v2  ;;  %v620_v13 = vld [vmem:[#allocation2 + $0xce8] sm:$0xff] }
 0x2a2   :  { %v868_v2 = vld [vmem:[#allocation2 + $0x14a8] sm:$0xff]  ;;  %v10877_v20 = vcombine.high %v612_v12, %v620_v13  ;;  %v10876_v30 = vcombine.low %v612_v12, %v620_v13 }
 0x2a3   :  { %5572 = vmatpush2.bf16.msra.mxu0 %v10972_v23  ;;  %v876_v14 = vld [vmem:[#allocation2 + $0x14e8] sm:$0xff] }
 0x2a4   :  { %5613 = vmatpush2.bf16.msra.mxu1 %v11228_v24  ;;  %5573 = vmatprep.subr.bf16.mxu0 %v10957_v25  ;;  %v11133_v23 = vcombine.high %v868_v2, %v876_v14  ;;  %v596_v24 = vld [vmem:[#allocation2 + $0xc28] sm:$0xff]  ;;  %v11132_v31 = vcombine.low %v868_v2, %v876_v14  ;;  %v10574_v14 = vcombine.low %v309_v52, %v317_v53 }
 0x2a5   :  { %5614 = vmatprep.subr.bf16.mxu1 %v11213_v26  ;;  %v604_v25 = vld [vmem:[#allocation2 + $0xc68] sm:$0xff] }
 0x2a6   :  { %v852_v26 = vld [vmem:[#allocation2 + $0x1428] sm:$0xff]  ;;  %v10861_v35 = vcombine.high %v596_v24, %v604_v25  ;;  %v10860_v43 = vcombine.low %v596_v24, %v604_v25 }
 0x2a7   :  { %5574 = vmatpush2.bf16.msra.mxu0 %v10956_v36  ;;  %v860_v28 = vld [vmem:[#allocation2 + $0x1468] sm:$0xff]  ;;  %v1005_v36 = vsub.s32 6, %v13153_v44 }
 0x2a8   :  { %5615 = vmatpush2.bf16.msra.mxu1 %v11212_v37  ;;  %5575 = vmatprep.subr.bf16.mxu0 %v10941_v38  ;;  %v11117_v37 = vcombine.high %v852_v26, %v860_v28  ;;  %v325_v38 = vld [vmem:[#allocation2 + $0x3b0] sm:$0xff] }
 0x2a9   :  { %5616 = vmatprep.subr.bf16.mxu1 %v11197_v39  ;;  %v333_v39 = vld [vmem:[#allocation2 + $0x3f0] sm:$0xff] }
 0x2ab   :  { %5576 = vmatpush2.bf16.msra.mxu0 %v10940_v45  ;;  %v11116_v45 = vcombine.low %v852_v26, %v860_v28  ;;  %v277_v26 = vld [vmem:[#allocation2 + $0x230] sm:$0xff] }
 0x2ac   :  { %5617 = vmatpush2.bf16.msra.mxu1 %v11196_v46  ;;  %5577 = vmatprep.subr.bf16.mxu0 %v10925_v49  ;;  %v10591_v46 = vcombine.high %v325_v38, %v333_v39  ;;  %v12798_v49 = vld [vmem:[#allocation11] sm:$0xff]  ;;  %v285_v28 = vld [vmem:[#allocation2 + $0x270] sm:$0xff] }
 0x2ad   :  { %5618 = vmatprep.subr.bf16.mxu1 %v11181_v50  ;;  %v1006_v50 = vrot.slane %v12798_v49, %v1005_v36  ;;  %v10542_v52 = vcombine.low %v277_v26, %v285_v28 }
 0x2af   :  { %5578 = vmatpush2.bf16.msra.mxu0 %v10924_v55  ;;  %v573_v55 = vld [vmem:[#allocation2 + $0xb70] sm:$0xff]  ;;  %v5303_v0 = vadd.f32 %v13278_v21, %v1006_v50 }
 0x2b0   :  { %5619 = vmatpush2.bf16.msra.mxu1 %v11180_v57  ;;  %5579 = vmatprep.subr.bf16.mxu0 %v10909_v4  ;;  %v1010_v57 = vrot.slane %v12798_v49, %v1009_v42  ;;  %v10590_v4 = vcombine.low %v325_v38, %v333_v39  ;;  %v10831_v33 = vcombine.high %v565_v54, %v573_v55  ;;  %v269_v49 = vld [vmem:[#allocation2 + $0x1f0] sm:$0xff] }
 0x2b1   :  { %5620 = vmatprep.subr.bf16.mxu1 %v11165_v58  ;;  %v10846_v58 = vcombine.low %v581_v40, %v589_v41  ;;  %v10830_v21 = vcombine.low %v565_v54, %v573_v55  ;;  %v10543_v41 = vcombine.high %v277_v26, %v285_v28  ;;  %v517_v50 = vld [vmem:[#allocation2 + $0x9b0] sm:$0xff] }
 0x2b2   :  { %v5305_v12 = vadd.f32 %v13284_v62, %v1010_v57  ;;  %v245_v57 = vld [vmem:[#allocation2 + $0x130] sm:$0xff] }
 0x2b3   :  { %5580 = vmatpush2.bf16.msra.mxu0 %v10908_v18  ;;  %v301_v18 = vld [vmem:[#allocation2 + $0x2f0] sm:$0xff] }
 0x2b4   :  { %5621 = vmatpush2.bf16.msra.mxu1 %v11164_v6  ;;  %5581 = vmatprep.subr.bf16.mxu0 %v10893_v9  ;;  %v549_v9 = vld [vmem:[#allocation2 + $0xab0] sm:$0xff]  ;;  %v10558_v38 = vcombine.low %v293_v1, %v301_v18 }
 0x2b5   :  { %5622 = vmatprep.subr.bf16.mxu1 %v11149_v10  ;;  %v557_v10 = vld [vmem:[#allocation2 + $0xaf0] sm:$0xff] }
 0x2b6   :  { %v10815_v25 = vcombine.high %v549_v9, %v557_v10  ;;  %v10814_v40 = vcombine.low %v549_v9, %v557_v10  ;;  %v237_v9 = vld [vmem:[#allocation2 + $0xf0] sm:$0xff] }
 0x2b7   :  { %5582 = vmatpush2.bf16.msra.mxu0 %v10892_v5  ;;  %v485_v10 = vld [vmem:[#allocation2 + $0x8b0] sm:$0xff] }
 0x2b8   :  { %5623 = vmatpush2.bf16.msra.mxu1 %v11148_v19  ;;  %5583 = vmatprep.subr.bf16.mxu0 %v10877_v20  ;;  %v10559_v19 = vcombine.high %v293_v1, %v301_v18 }
 0x2b9   :  { %5624 = vmatprep.subr.bf16.mxu1 %v11133_v23 }
 0x2bb   :  { %5584 = vmatpush2.bf16.msra.mxu0 %v10876_v30  ;;  %v533_v30 = vld [vmem:[#allocation2 + $0xa30] sm:$0xff] }
 0x2bc   :  { %5625 = vmatpush2.bf16.msra.mxu1 %v11132_v31  ;;  %5585 = vmatprep.subr.bf16.mxu0 %v10861_v35  ;;  %v541_v31 = vld [vmem:[#allocation2 + $0xa70] sm:$0xff] }
 0x2bd   :  { %5626 = vmatprep.subr.bf16.mxu1 %v11117_v37  ;;  %v10798_v53 = vcombine.low %v533_v30, %v541_v31 }
 0x2bf   :  { %5586 = vmatpush2.bf16.msra.mxu0 %v10860_v43 }
 0x2c0   :  { %5627 = vmatpush2.bf16.msra.mxu1 %v11116_v45  ;;  %5637 = vmatprep.subr.bf16.mxu0 %v10591_v46  ;;  %v10799_v45 = vcombine.high %v533_v30, %v541_v31  ;;  %v261_v46 = vld [vmem:[#allocation2 + $0x1b0] sm:$0xff] }
 0x2c1   :  { %5678 = vmatprep.subr.bf16.mxu1 %v10847_v51  ;;  %v525_v51 = vld [vmem:[#allocation2 + $0x9f0] sm:$0xff]  ;;  %v10527_v54 = vcombine.high %v261_v46, %v269_v49 }
 0x2c2   :  { %v5343_v6 = vpop.f32.mrf.mxu0  ;;  %5588 = vmatmul.mubr.bf16.vlgmr.msra.gmra.mxu0 %v13186_v32  ;;  %v10783_v55 = vcombine.high %v517_v50, %v525_v51  ;;  %v453_v30 = vld [vmem:[#allocation2 + $0x7b0] sm:$0xff] }
 0x2c3   :  { %v5344_v13 = vadd.f32 %v5343_v6, %v5303_v0  ;;  %v5384_v2 = vpop.f32.mrf.mxu1  ;;  %5629 = vmatmul.mubr.bf16.vlgmr.msra.gmra.mxu1 %v13196_v47  ;;  %5638 = vmatpush1.bf16.msra.mxu0 %v10590_v4  ;;  %v253_v4 = vld [vmem:[#allocation2 + $0x170] sm:$0xff]  ;;  %v10526_v0 = vcombine.low %v261_v46, %v269_v49 }
 0x2c4   :  { %5679 = vmatpush1.bf16.msra.mxu1 %v10846_v58  ;;  %v5345_v5 = vpop.f32.mrf.mxu0  ;;  %5639 = vmatprep.subr.bf16.mxu0 %v10575_v60  ;;  %v501_v58 = vld [vmem:[#allocation2 + $0x930] sm:$0xff]  ;;  %v10511_v1 = vcombine.high %v245_v57, %v253_v4 }
 0x2c5   :  { %v13298_v20 = vadd.f32 %v5384_v2, %v5344_v13  ;;  %v5346_v23 = vadd.f32 %v5345_v5, %v5305_v12  ;;  %v5386_v24 = vpop.f32.mrf.mxu1  ;;  %5680 = vmatprep.subr.bf16.mxu1 %v10831_v33  ;;  %5669 = vmatprep.mubr.bf16.mxu0 %v13165_v11  ;;  %v509_v60 = vld [vmem:[#allocation2 + $0x970] sm:$0xff]  ;;  %v10782_v33 = vcombine.low %v517_v50, %v525_v51 }
 0x2c6   :  { %v5347_v62 = vpop.f32.mrf.mxu0  ;;  %5710 = vmatprep.mubr.bf16.mxu1 %v13170_v16  ;;  %v10767_v18 = vcombine.high %v501_v58, %v509_v60  ;;  %v229_v6 = vld [vmem:[#allocation2 + $0xb0] sm:$0xff]  ;;  %v10510_v13 = vcombine.low %v245_v57, %v253_v4  ;;  %v10766_v2 = vcombine.low %v501_v58, %v509_v60 }
 0x2c7   :  { %v13302_v35 = vadd.f32 %v5386_v24, %v5346_v23  ;;  %v5388_v37 = vpop.f32.mrf.mxu1  ;;  %5640 = vmatpush1.bf16.msra.mxu0 %v10574_v14  ;;  %v493_v12 = vld [vmem:[#allocation2 + $0x8f0] sm:$0xff]  ;;  %v10495_v14 = vcombine.high %v229_v6, %v237_v9 }
 0x2c8   :  { %5681 = vmatpush1.bf16.msra.mxu1 %v10830_v21  ;;  %v5348_v39 = vpop.f32.mrf.mxu0  ;;  %5641 = vmatprep.subr.bf16.mxu0 %v10559_v19  ;;  %v10751_v5 = vcombine.high %v485_v10, %v493_v12  ;;  %v213_v21 = vld [vmem:[#allocation2 + $0x30] sm:$0xff]  ;;  %v10750_v26 = vcombine.low %v485_v10, %v493_v12 }
 0x2c9   :  { %v5389_v43 = vpop.f32.mrf.mxu1  ;;  %5682 = vmatprep.subr.bf16.mxu1 %v10815_v25  ;;  %v221_v19 = vld [vmem:[#allocation2 + $0x70] sm:$0xff]  ;;  %v10494_v25 = vcombine.low %v229_v6, %v237_v9 }
 0x2ca   :  { %v469_v23 = vld [vmem:[#allocation2 + $0x830] sm:$0xff]  ;;  %v10479_v28 = vcombine.high %v213_v21, %v221_v19  ;;  %v10478_v39 = vcombine.low %v213_v21, %v221_v19 }
 0x2cb   :  { %5642 = vmatpush1.bf16.msra.mxu0 %v10558_v38  ;;  %v477_v24 = vld [vmem:[#allocation2 + $0x870] sm:$0xff] }
 0x2cc   :  { %5683 = vmatpush1.bf16.msra.mxu1 %v10814_v40  ;;  %5643 = vmatprep.subr.bf16.mxu0 %v10543_v41  ;;  %v10735_v62 = vcombine.high %v469_v23, %v477_v24  ;;  %v461_v31 = vld [vmem:[#allocation2 + $0x7f0] sm:$0xff]  ;;  %v10734_v40 = vcombine.low %v469_v23, %v477_v24 }
 0x2cd   :  { %5684 = vmatprep.subr.bf16.mxu1 %v10799_v45  ;;  %v709_v37 = vld [vmem:[#allocation2 + $0xfb0] sm:$0xff]  ;;  %v10719_v41 = vcombine.high %v453_v30, %v461_v31  ;;  %v10718_v51 = vcombine.low %v453_v30, %v461_v31 }
 0x2ce   :  { %v717_v38 = vld [vmem:[#allocation2 + $0xff0] sm:$0xff] }
 0x2cf   :  { %5644 = vmatpush1.bf16.msra.mxu0 %v10542_v52  ;;  %v10975_v43 = vcombine.high %v709_v37, %v717_v38  ;;  %v437_v45 = vld [vmem:[#allocation2 + $0x730] sm:$0xff]  ;;  %v10974_v52 = vcombine.low %v709_v37, %v717_v38 }
 0x2d0   :  { %5685 = vmatpush1.bf16.msra.mxu1 %v10798_v53  ;;  %5645 = vmatprep.subr.bf16.mxu0 %v10527_v54  ;;  %v445_v46 = vld [vmem:[#allocation2 + $0x770] sm:$0xff] }
 0x2d1   :  { %5686 = vmatprep.subr.bf16.mxu1 %v10783_v55  ;;  %v693_v49 = vld [vmem:[#allocation2 + $0xf30] sm:$0xff]  ;;  %v10703_v53 = vcombine.high %v437_v45, %v445_v46  ;;  %v10702_v60 = vcombine.low %v437_v45, %v445_v46 }
 0x2d2   :  { %v701_v50 = vld [vmem:[#allocation2 + $0xf70] sm:$0xff] }
 0x2d3   :  { %5646 = vmatpush1.bf16.msra.mxu0 %v10526_v0  ;;  %v10959_v54 = vcombine.high %v693_v49, %v701_v50  ;;  %v421_v55 = vld [vmem:[#allocation2 + $0x6b0] sm:$0xff]  ;;  %v10958_v0 = vcombine.low %v693_v49, %v701_v50 }
 0x2d4   :  { %5687 = vmatpush1.bf16.msra.mxu1 %v10782_v33  ;;  %5647 = vmatprep.subr.bf16.mxu0 %v10511_v1  ;;  %v429_v57 = vld [vmem:[#allocation2 + $0x6f0] sm:$0xff] }
 0x2d5   :  { %5688 = vmatprep.subr.bf16.mxu1 %v10767_v18  ;;  %v677_v4 = vld [vmem:[#allocation2 + $0xeb0] sm:$0xff]  ;;  %v10687_v33 = vcombine.high %v421_v55, %v429_v57  ;;  %v10686_v12 = vcombine.low %v421_v55, %v429_v57 }
 0x2d6   :  { %v685_v58 = vld [vmem:[#allocation2 + $0xef0] sm:$0xff] }
 0x2d7   :  { %5648 = vmatpush1.bf16.msra.mxu0 %v10510_v13  ;;  %v10943_v1 = vcombine.high %v677_v4, %v685_v58  ;;  %v405_v18 = vld [vmem:[#allocation2 + $0x630] sm:$0xff]  ;;  %v10942_v13 = vcombine.low %v677_v4, %v685_v58 }
 0x2d8   :  { %5689 = vmatpush1.bf16.msra.mxu1 %v10766_v2  ;;  %5649 = vmatprep.subr.bf16.mxu0 %v10495_v14  ;;  %v413_v6 = vld [vmem:[#allocation2 + $0x670] sm:$0xff] }
 0x2d9   :  { %5690 = vmatprep.subr.bf16.mxu1 %v10751_v5  ;;  %v661_v9 = vld [vmem:[#allocation2 + $0xe30] sm:$0xff]  ;;  %v10671_v2 = vcombine.high %v405_v18, %v413_v6  ;;  %v10670_v24 = vcombine.low %v405_v18, %v413_v6  ;;  %v326_v6 = vld [vmem:[#allocation2 + $0x3b8] sm:$0xff] }
 0x2da   :  { %v669_v10 = vld [vmem:[#allocation2 + $0xe70] sm:$0xff] }
 0x2db   :  { %5650 = vmatpush1.bf16.msra.mxu0 %v10494_v25  ;;  %v10927_v14 = vcombine.high %v661_v9, %v669_v10  ;;  %v389_v5 = vld [vmem:[#allocation2 + $0x5b0] sm:$0xff]  ;;  %v10926_v25 = vcombine.low %v661_v9, %v669_v10  ;;  %v334_v9 = vld [vmem:[#allocation2 + $0x3f8] sm:$0xff] }
 0x2dc   :  { %5691 = vmatpush1.bf16.msra.mxu1 %v10750_v26  ;;  %5651 = vmatprep.subr.bf16.mxu0 %v10479_v28  ;;  %v397_v21 = vld [vmem:[#allocation2 + $0x5f0] sm:$0xff] }
 0x2dd   :  { %5692 = vmatprep.subr.bf16.mxu1 %v10735_v62  ;;  %v645_v19 = vld [vmem:[#allocation2 + $0xdb0] sm:$0xff]  ;;  %v10655_v26 = vcombine.high %v389_v5, %v397_v21  ;;  %v10654_v38 = vcombine.low %v389_v5, %v397_v21 }
 0x2de   :  { %v653_v23 = vld [vmem:[#allocation2 + $0xdf0] sm:$0xff] }
 0x2df   :  { %5652 = vmatpush1.bf16.msra.mxu0 %v10478_v39  ;;  %v10911_v28 = vcombine.high %v645_v19, %v653_v23  ;;  %v373_v62 = vld [vmem:[#allocation2 + $0x530] sm:$0xff]  ;;  %v10910_v39 = vcombine.low %v645_v19, %v653_v23  ;;  %v310_v19 = vld [vmem:[#allocation2 + $0x338] sm:$0xff] }
 0x2e0   :  { %5693 = vmatpush1.bf16.msra.mxu1 %v10734_v40  ;;  %5653 = vmatprep.subr.bf16.mxu0 %v10719_v41  ;;  %v381_v30 = vld [vmem:[#allocation2 + $0x570] sm:$0xff]  ;;  %v318_v23 = vld [vmem:[#allocation2 + $0x378] sm:$0xff] }
 0x2e1   :  { %5694 = vmatprep.subr.bf16.mxu1 %v10975_v43  ;;  %v629_v31 = vld [vmem:[#allocation2 + $0xd30] sm:$0xff]  ;;  %v10639_v40 = vcombine.high %v373_v62, %v381_v30  ;;  %v10638_v50 = vcombine.low %v373_v62, %v381_v30  ;;  %v10577_v30 = vcombine.high %v310_v19, %v318_v23 }
 0x2e2   :  { %v637_v37 = vld [vmem:[#allocation2 + $0xd70] sm:$0xff] }
 0x2e3   :  { %5654 = vmatpush2.bf16.msra.mxu0 %v10718_v51  ;;  %v10895_v41 = vcombine.high %v629_v31, %v637_v37  ;;  %v357_v43 = vld [vmem:[#allocation2 + $0x4b0] sm:$0xff]  ;;  %v10894_v51 = vcombine.low %v629_v31, %v637_v37 }
 0x2e4   :  { %5695 = vmatpush2.bf16.msra.mxu1 %v10974_v52  ;;  %5655 = vmatprep.subr.bf16.mxu0 %v10703_v53  ;;  %v365_v45 = vld [vmem:[#allocation2 + $0x4f0] sm:$0xff] }
 0x2e5   :  { %5696 = vmatprep.subr.bf16.mxu1 %v10959_v54  ;;  %v613_v46 = vld [vmem:[#allocation2 + $0xcb0] sm:$0xff]  ;;  %v10623_v52 = vcombine.high %v357_v43, %v365_v45  ;;  %v10622_v58 = vcombine.low %v357_v43, %v365_v45 }
 0x2e6   :  { %v621_v49 = vld [vmem:[#allocation2 + $0xcf0] sm:$0xff] }
 0x2e7   :  { %5656 = vmatpush2.bf16.msra.mxu0 %v10702_v60  ;;  %v10879_v53 = vcombine.high %v613_v46, %v621_v49  ;;  %v341_v54 = vld [vmem:[#allocation2 + $0x430] sm:$0xff]  ;;  %v10878_v60 = vcombine.low %v613_v46, %v621_v49  ;;  %v10576_v49 = vcombine.low %v310_v19, %v318_v23 }
 0x2e8   :  { %5697 = vmatpush2.bf16.msra.mxu1 %v10958_v0  ;;  %5657 = vmatprep.subr.bf16.mxu0 %v10687_v33  ;;  %v349_v55 = vld [vmem:[#allocation2 + $0x470] sm:$0xff] }
 0x2e9   :  { %5698 = vmatprep.subr.bf16.mxu1 %v10943_v1  ;;  %v597_v57 = vld [vmem:[#allocation2 + $0xc30] sm:$0xff]  ;;  %v10607_v0 = vcombine.high %v341_v54, %v349_v55  ;;  %v10606_v10 = vcombine.low %v341_v54, %v349_v55 }
 0x2ea   :  { %v605_v4 = vld [vmem:[#allocation2 + $0xc70] sm:$0xff] }
 0x2eb   :  { %5658 = vmatpush2.bf16.msra.mxu0 %v10686_v12  ;;  %v10863_v33 = vcombine.high %v597_v57, %v605_v4  ;;  %v837_v1 = vld [vmem:[#allocation2 + $0x13b0] sm:$0xff]  ;;  %v10862_v12 = vcombine.low %v597_v57, %v605_v4 }
 0x2ec   :  { %5699 = vmatpush2.bf16.msra.mxu1 %v10942_v13  ;;  %5659 = vmatprep.subr.bf16.mxu0 %v10671_v2  ;;  %v845_v18 = vld [vmem:[#allocation2 + $0x13f0] sm:$0xff]  ;;  %v13304_v13 = vld [vmem:[#allocation11 + $0x8] sm:$0xff] }
 0x2ed   :  { %5700 = vmatprep.subr.bf16.mxu1 %v10927_v14  ;;  %v11103_v2 = vcombine.high %v837_v1, %v845_v18  ;;  %v10593_v14 = vcombine.high %v326_v6, %v334_v9  ;;  %v821_v5 = vld [vmem:[#allocation2 + $0x1330] sm:$0xff]  ;;  %v1018_v62 = vrot.slane %v13304_v13, %v13210_v15 }
 0x2ee   :  { %v829_v21 = vld [vmem:[#allocation2 + $0x1370] sm:$0xff] }
 0x2ef   :  { %5660 = vmatpush2.bf16.msra.mxu0 %v10670_v24  ;;  %v1014_v24 = vrot.slane %v13304_v13, %v13207_v7  ;;  %v805_v31 = vld [vmem:[#allocation2 + $0x12b0] sm:$0xff]  ;;  %v11086_v45 = vcombine.low %v821_v5, %v829_v21 }
 0x2f0   :  { %5701 = vmatpush2.bf16.msra.mxu1 %v10926_v25  ;;  %5661 = vmatprep.subr.bf16.mxu0 %v10655_v26  ;;  %v11102_v25 = vcombine.low %v837_v1, %v845_v18  ;;  %v10592_v26 = vcombine.low %v326_v6, %v334_v9  ;;  %v813_v37 = vld [vmem:[#allocation2 + $0x12f0] sm:$0xff] }
 0x2f1   :  { %5702 = vmatprep.subr.bf16.mxu1 %v10911_v28  ;;  %v11087_v28 = vcombine.high %v821_v5, %v829_v21  ;;  %v789_v55 = vld [vmem:[#allocation2 + $0x1230] sm:$0xff]  ;;  %v11070_v1 = vcombine.low %v805_v31, %v813_v37  ;;  %v262_v5 = vld [vmem:[#allocation2 + $0x1b8] sm:$0xff] }
 0x2f2   :  { %v797_v57 = vld [vmem:[#allocation2 + $0x1270] sm:$0xff]  ;;  %v270_v21 = vld [vmem:[#allocation2 + $0x1f8] sm:$0xff] }
 0x2f3   :  { %5662 = vmatpush2.bf16.msra.mxu0 %v10654_v38  ;;  %v11055_v9 = vcombine.high %v789_v55, %v797_v57  ;;  %v11054_v19 = vcombine.low %v789_v55, %v797_v57  ;;  %v222_v55 = vld [vmem:[#allocation2 + $0x78] sm:$0xff] }
 0x2f4   :  { %5703 = vmatpush2.bf16.msra.mxu1 %v10910_v39  ;;  %5663 = vmatprep.subr.bf16.mxu0 %v10639_v40  ;;  %v294_v39 = vld [vmem:[#allocation2 + $0x2b8] sm:$0xff] }
 0x2f5   :  { %5704 = vmatprep.subr.bf16.mxu1 %v10895_v41  ;;  %v302_v40 = vld [vmem:[#allocation2 + $0x2f8] sm:$0xff] }
 0x2f6   :  { %v10561_v54 = vcombine.high %v294_v39, %v302_v40  ;;  %v10560_v6 = vcombine.low %v294_v39, %v302_v40  ;;  %v741_v39 = vld [vmem:[#allocation2 + $0x10b0] sm:$0xff] }
 0x2f7   :  { %5664 = vmatpush2.bf16.msra.mxu0 %v10638_v50  ;;  %v11071_v50 = vcombine.high %v805_v31, %v813_v37  ;;  %v10528_v31 = vcombine.low %v262_v5, %v270_v21  ;;  %v749_v40 = vld [vmem:[#allocation2 + $0x10f0] sm:$0xff] }
 0x2f8   :  { %5705 = vmatpush2.bf16.msra.mxu1 %v10894_v51  ;;  %5665 = vmatprep.subr.bf16.mxu0 %v10623_v52  ;;  %v11006_v57 = vcombine.low %v741_v39, %v749_v40 }
 0x2f9   :  { %5706 = vmatprep.subr.bf16.mxu1 %v10879_v53 }
 0x2fb   :  { %5666 = vmatpush2.bf16.msra.mxu0 %v10622_v58  ;;  %v278_v58 = vld [vmem:[#allocation2 + $0x238] sm:$0xff] }
 0x2fc   :  { %5707 = vmatpush2.bf16.msra.mxu1 %v10878_v60  ;;  %5667 = vmatprep.subr.bf16.mxu0 %v10607_v0  ;;  %v286_v60 = vld [vmem:[#allocation2 + $0x278] sm:$0xff] }
 0x2fd   :  { %5708 = vmatprep.subr.bf16.mxu1 %v10863_v33 }
 0x2ff   :  { %5668 = vmatpush2.bf16.msra.mxu0 %v10606_v10 }
 0x300   :  { %5709 = vmatpush2.bf16.msra.mxu1 %v10862_v12  ;;  %5719 = vmatprep.subr.bf16.mxu0 %v11103_v2  ;;  %v10545_v12 = vcombine.high %v278_v58, %v286_v60  ;;  %v773_v2 = vld [vmem:[#allocation2 + $0x11b0] sm:$0xff] }
 0x301   :  { %5760 = vmatprep.subr.bf16.mxu1 %v10593_v14  ;;  %v781_v14 = vld [vmem:[#allocation2 + $0x11f0] sm:$0xff] }
 0x302   :  { %v5425_v38 = vpop.f32.mrf.mxu0  ;;  %5670 = vmatmul.mubr.bf16.vlgmr.msra.gmra.mxu0 %v13182_v29  ;;  %v11039_v23 = vcombine.high %v773_v2, %v781_v14 }
 0x303   :  { %v5426_v41 = vadd.f32 %v5425_v38, %v1014_v24  ;;  %v5466_v43 = vpop.f32.mrf.mxu1  ;;  %5711 = vmatmul.mubr.bf16.vlgmr.msra.gmra.mxu1 %v13186_v32  ;;  %5720 = vmatpush1.bf16.msra.mxu0 %v11102_v25  ;;  %v10529_v24 = vcombine.high %v262_v5, %v270_v21  ;;  %v757_v25 = vld [vmem:[#allocation2 + $0x1130] sm:$0xff]  ;;  %v438_v21 = vld [vmem:[#allocation2 + $0x738] sm:$0xff] }
 0x304   :  { %5761 = vmatpush1.bf16.msra.mxu1 %v10592_v26  ;;  %v5427_v46 = vpop.f32.mrf.mxu0  ;;  %5721 = vmatprep.subr.bf16.mxu0 %v11087_v28  ;;  %v765_v26 = vld [vmem:[#allocation2 + $0x1170] sm:$0xff]  ;;  %v246_v28 = vld [vmem:[#allocation2 + $0x138] sm:$0xff] }
 0x305   :  { %v13312_v51 = vadd.f32 %v5466_v43, %v5426_v41  ;;  %v5428_v52 = vadd.f32 %v5427_v46, %v1018_v62  ;;  %v5468_v53 = vpop.f32.mrf.mxu1  ;;  %5762 = vmatprep.subr.bf16.mxu1 %v10577_v30  ;;  %5751 = vmatprep.mubr.bf16.mxu0 %v13188_v63  ;;  %v254_v62 = vld [vmem:[#allocation2 + $0x178] sm:$0xff]  ;;  %v11038_v30 = vcombine.low %v773_v2, %v781_v14  ;;  %v949_v14 = vld [vmem:[#allocation2 + $0x1730] sm:$0xff] }
 0x306   :  { %v5429_v4 = vpop.f32.mrf.mxu0  ;;  %5792 = vmatprep.mubr.bf16.mxu1 %v13165_v11  ;;  %v10544_v11 = vcombine.low %v278_v58, %v286_v60  ;;  %v11023_v37 = vcombine.high %v757_v25, %v765_v26  ;;  %v10513_v38 = vcombine.high %v246_v28, %v254_v62  ;;  %v230_v41 = vld [vmem:[#allocation2 + $0xb8] sm:$0xff]  ;;  %v10512_v46 = vcombine.low %v246_v28, %v254_v62  ;;  %v957_v5 = vld [vmem:[#allocation2 + $0x1770] sm:$0xff] }
 0x307   :  { %v13316_v0 = vadd.f32 %v5468_v53, %v5428_v52  ;;  %v5470_v33 = vpop.f32.mrf.mxu1  ;;  %5722 = vmatpush1.bf16.msra.mxu0 %v11086_v45  ;;  %v238_v43 = vld [vmem:[#allocation2 + $0xf8] sm:$0xff]  ;;  %v11022_v45 = vcombine.low %v757_v25, %v765_v26  ;;  %v725_v52 = vld [vmem:[#allocation2 + $0x1030] sm:$0xff] }
 0x308   :  { %5763 = vmatpush1.bf16.msra.mxu1 %v10576_v49  ;;  %v5430_v18 = vpop.f32.mrf.mxu0  ;;  %5723 = vmatprep.subr.bf16.mxu0 %v11071_v50  ;;  %v11007_v49 = vcombine.high %v741_v39, %v749_v40  ;;  %v10497_v50 = vcombine.high %v230_v41, %v238_v43  ;;  %v733_v53 = vld [vmem:[#allocation2 + $0x1070] sm:$0xff]  ;;  %v10496_v4 = vcombine.low %v230_v41, %v238_v43  ;;  %v422_v62 = vld [vmem:[#allocation2 + $0x6b8] sm:$0xff] }
 0x309   :  { %v5471_v10 = vpop.f32.mrf.mxu1  ;;  %5764 = vmatprep.subr.bf16.mxu1 %v10561_v54  ;;  %v214_v54 = vld [vmem:[#allocation2 + $0x38] sm:$0xff]  ;;  %v10991_v58 = vcombine.high %v725_v52, %v733_v53  ;;  %v965_v33 = vld [vmem:[#allocation2 + $0x17b0] sm:$0xff] }
 0x30a   :  { %v10481_v60 = vcombine.high %v214_v54, %v222_v55  ;;  %v454_v18 = vld [vmem:[#allocation2 + $0x7b8] sm:$0xff]  ;;  %v10480_v10 = vcombine.low %v214_v54, %v222_v55  ;;  %v933_v26 = vld [vmem:[#allocation2 + $0x16b0] sm:$0xff] }
 0x30b   :  { %5724 = vmatpush1.bf16.msra.mxu0 %v11070_v1  ;;  %v973_v1 = vld [vmem:[#allocation2 + $0x17f0] sm:$0xff]  ;;  %v406_v43 = vld [vmem:[#allocation2 + $0x638] sm:$0xff] }
 0x30c   :  { %5765 = vmatpush1.bf16.msra.mxu1 %v10560_v6  ;;  %5725 = vmatprep.subr.bf16.mxu0 %v11055_v9  ;;  %v462_v6 = vld [vmem:[#allocation2 + $0x7f8] sm:$0xff]  ;;  %v10990_v9 = vcombine.low %v725_v52, %v733_v53  ;;  %v941_v28 = vld [vmem:[#allocation2 + $0x16f0] sm:$0xff] }
 0x30d   :  { %5766 = vmatprep.subr.bf16.mxu1 %v10545_v12  ;;  %v11231_v12 = vcombine.high %v965_v33, %v973_v1  ;;  %v10721_v2 = vcombine.high %v454_v18, %v462_v6  ;;  %v917_v40 = vld [vmem:[#allocation2 + $0x1630] sm:$0xff]  ;;  %v390_v55 = vld [vmem:[#allocation2 + $0x5b8] sm:$0xff] }
 0x30e   :  { %v925_v41 = vld [vmem:[#allocation2 + $0x1670] sm:$0xff] }
 0x30f   :  { %5726 = vmatpush1.bf16.msra.mxu0 %v11054_v19  ;;  %v446_v19 = vld [vmem:[#allocation2 + $0x778] sm:$0xff]  ;;  %v901_v53 = vld [vmem:[#allocation2 + $0x15b0] sm:$0xff] }
 0x310   :  { %5767 = vmatpush1.bf16.msra.mxu1 %v10544_v11  ;;  %5727 = vmatprep.subr.bf16.mxu0 %v11039_v23  ;;  %v11230_v11 = vcombine.low %v965_v33, %v973_v1  ;;  %v10720_v23 = vcombine.low %v454_v18, %v462_v6  ;;  %v10705_v25 = vcombine.high %v438_v21, %v446_v19  ;;  %v909_v54 = vld [vmem:[#allocation2 + $0x15f0] sm:$0xff]  ;;  %v374_v6 = vld [vmem:[#allocation2 + $0x538] sm:$0xff] }
 0x311   :  { %5768 = vmatprep.subr.bf16.mxu1 %v10529_v24  ;;  %v11215_v24 = vcombine.high %v949_v14, %v957_v5  ;;  %v885_v1 = vld [vmem:[#allocation2 + $0x1530] sm:$0xff] }
 0x312   :  { %v893_v18 = vld [vmem:[#allocation2 + $0x1570] sm:$0xff] }
 0x313   :  { %5728 = vmatpush1.bf16.msra.mxu0 %v11038_v30  ;;  %v430_v30 = vld [vmem:[#allocation2 + $0x6f8] sm:$0xff] }
 0x314   :  { %5769 = vmatpush1.bf16.msra.mxu1 %v10528_v31  ;;  %5729 = vmatprep.subr.bf16.mxu0 %v11023_v37  ;;  %v11214_v31 = vcombine.low %v949_v14, %v957_v5  ;;  %v10704_v37 = vcombine.low %v438_v21, %v446_v19  ;;  %v10689_v39 = vcombine.high %v422_v62, %v430_v30  ;;  %v869_v5 = vld [vmem:[#allocation2 + $0x14b0] sm:$0xff]  ;;  %v358_v19 = vld [vmem:[#allocation2 + $0x4b8] sm:$0xff] }
 0x315   :  { %5770 = vmatprep.subr.bf16.mxu1 %v10513_v38  ;;  %v11199_v38 = vcombine.high %v933_v26, %v941_v28  ;;  %v877_v21 = vld [vmem:[#allocation2 + $0x14f0] sm:$0xff] }
 0x317   :  { %5730 = vmatpush1.bf16.msra.mxu0 %v11022_v45  ;;  %v414_v45 = vld [vmem:[#allocation2 + $0x678] sm:$0xff] }
 0x318   :  { %5771 = vmatpush1.bf16.msra.mxu1 %v10512_v46  ;;  %5731 = vmatprep.subr.bf16.mxu0 %v11007_v49  ;;  %v11198_v46 = vcombine.low %v933_v26, %v941_v28  ;;  %v10688_v49 = vcombine.low %v422_v62, %v430_v30  ;;  %v10673_v52 = vcombine.high %v406_v43, %v414_v45  ;;  %v853_v28 = vld [vmem:[#allocation2 + $0x1430] sm:$0xff]  ;;  %v342_v30 = vld [vmem:[#allocation2 + $0x438] sm:$0xff] }
 0x319   :  { %5772 = vmatprep.subr.bf16.mxu1 %v10497_v50  ;;  %v11183_v50 = vcombine.high %v917_v40, %v925_v41  ;;  %v861_v62 = vld [vmem:[#allocation2 + $0x1470] sm:$0xff] }
 0x31b   :  { %5732 = vmatpush1.bf16.msra.mxu0 %v11006_v57  ;;  %v398_v57 = vld [vmem:[#allocation2 + $0x5f8] sm:$0xff] }
 0x31c   :  { %5773 = vmatpush1.bf16.msra.mxu1 %v10496_v4  ;;  %5733 = vmatprep.subr.bf16.mxu0 %v10991_v58  ;;  %v11182_v4 = vcombine.low %v917_v40, %v925_v41  ;;  %v10672_v58 = vcombine.low %v406_v43, %v414_v45  ;;  %v10657_v33 = vcombine.high %v390_v55, %v398_v57  ;;  %v582_v41 = vld [vmem:[#allocation2 + $0xbb8] sm:$0xff] }
 0x31d   :  { %5774 = vmatprep.subr.bf16.mxu1 %v10481_v60  ;;  %v11167_v60 = vcombine.high %v901_v53, %v909_v54  ;;  %v590_v43 = vld [vmem:[#allocation2 + $0xbf8] sm:$0xff] }
 0x31e   :  { %v838_v45 = vld [vmem:[#allocation2 + $0x13b8] sm:$0xff] }
 0x31f   :  { %5734 = vmatpush1.bf16.msra.mxu0 %v10990_v9  ;;  %v382_v9 = vld [vmem:[#allocation2 + $0x578] sm:$0xff] }
 0x320   :  { %5775 = vmatpush1.bf16.msra.mxu1 %v10480_v10  ;;  %5735 = vmatprep.subr.bf16.mxu0 %v11231_v12  ;;  %v11166_v10 = vcombine.low %v901_v53, %v909_v54  ;;  %v10656_v12 = vcombine.low %v390_v55, %v398_v57  ;;  %v10641_v14 = vcombine.high %v374_v6, %v382_v9  ;;  %v566_v54 = vld [vmem:[#allocation2 + $0xb38] sm:$0xff] }
 0x321   :  { %5776 = vmatprep.subr.bf16.mxu1 %v10721_v2  ;;  %v11151_v2 = vcombine.high %v885_v1, %v893_v18  ;;  %v574_v55 = vld [vmem:[#allocation2 + $0xb78] sm:$0xff] }
 0x322   :  { %v822_v57 = vld [vmem:[#allocation2 + $0x1338] sm:$0xff] }
 0x323   :  { %5736 = vmatpush2.bf16.msra.mxu0 %v11230_v11  ;;  %v366_v11 = vld [vmem:[#allocation2 + $0x4f8] sm:$0xff] }
 0x324   :  { %5777 = vmatpush2.bf16.msra.mxu1 %v10720_v23  ;;  %5737 = vmatprep.subr.bf16.mxu0 %v11215_v24  ;;  %v11150_v23 = vcombine.low %v885_v1, %v893_v18  ;;  %v10640_v24 = vcombine.low %v374_v6, %v382_v9  ;;  %v10625_v26 = vcombine.high %v358_v19, %v366_v11  ;;  %v550_v18 = vld [vmem:[#allocation2 + $0xab8] sm:$0xff] }
 0x325   :  { %5778 = vmatprep.subr.bf16.mxu1 %v10705_v25  ;;  %v11135_v25 = vcombine.high %v869_v5, %v877_v21  ;;  %v558_v6 = vld [vmem:[#allocation2 + $0xaf8] sm:$0xff] }
 0x327   :  { %5738 = vmatpush2.bf16.msra.mxu0 %v11214_v31  ;;  %v350_v31 = vld [vmem:[#allocation2 + $0x478] sm:$0xff] }
 0x328   :  { %5779 = vmatpush2.bf16.msra.mxu1 %v10704_v37  ;;  %5739 = vmatprep.subr.bf16.mxu0 %v11199_v38  ;;  %v11134_v37 = vcombine.low %v869_v5, %v877_v21  ;;  %v10624_v38 = vcombine.low %v358_v19, %v366_v11  ;;  %v10609_v40 = vcombine.high %v342_v30, %v350_v31 }
 0x329   :  { %5780 = vmatprep.subr.bf16.mxu1 %v10689_v39  ;;  %v11119_v39 = vcombine.high %v853_v28, %v861_v62  ;;  %v10832_v5 = vcombine.low %v566_v54, %v574_v55  ;;  %v10817_v11 = vcombine.high %v550_v18, %v558_v6 }
 0x32b   :  { %5740 = vmatpush2.bf16.msra.mxu0 %v11198_v46  ;;  %v846_v46 = vld [vmem:[#allocation2 + $0x13f8] sm:$0xff] }
 0x32c   :  { %5781 = vmatpush2.bf16.msra.mxu1 %v10688_v49  ;;  %5741 = vmatprep.subr.bf16.mxu0 %v11183_v50  ;;  %v11118_v49 = vcombine.low %v853_v28, %v861_v62  ;;  %v10608_v50 = vcombine.low %v342_v30, %v350_v31  ;;  %v11105_v53 = vcombine.high %v838_v45, %v846_v46  ;;  %v798_v62 = vld [vmem:[#allocation2 + $0x1278] sm:$0xff] }
 0x32d   :  { %5782 = vmatprep.subr.bf16.mxu1 %v10673_v52  ;;  %v10849_v52 = vcombine.high %v582_v41, %v590_v43  ;;  %v10816_v31 = vcombine.low %v550_v18, %v558_v6  ;;  %v742_v18 = vld [vmem:[#allocation2 + $0x10b8] sm:$0xff] }
 0x32e   :  { %v750_v6 = vld [vmem:[#allocation2 + $0x10f8] sm:$0xff] }
 0x32f   :  { %5742 = vmatpush2.bf16.msra.mxu0 %v11182_v4  ;;  %v830_v4 = vld [vmem:[#allocation2 + $0x1378] sm:$0xff] }
 0x330   :  { %5783 = vmatpush2.bf16.msra.mxu1 %v10672_v58  ;;  %5743 = vmatprep.subr.bf16.mxu0 %v11167_v60  ;;  %v10848_v58 = vcombine.low %v582_v41, %v590_v43  ;;  %v11104_v60 = vcombine.low %v838_v45, %v846_v46  ;;  %v11089_v1 = vcombine.high %v822_v57, %v830_v4  ;;  %v518_v41 = vld [vmem:[#allocation2 + $0x9b8] sm:$0xff] }
 0x331   :  { %5784 = vmatprep.subr.bf16.mxu1 %v10657_v33  ;;  %v10833_v33 = vcombine.high %v566_v54, %v574_v55  ;;  %v11088_v19 = vcombine.low %v822_v57, %v830_v4  ;;  %v526_v43 = vld [vmem:[#allocation2 + $0x9f8] sm:$0xff] }
 0x332   :  { %v774_v45 = vld [vmem:[#allocation2 + $0x11b8] sm:$0xff]  ;;  %v10784_v57 = vcombine.low %v518_v41, %v526_v43 }
 0x333   :  { %5744 = vmatpush2.bf16.msra.mxu0 %v11166_v10  ;;  %v806_v10 = vld [vmem:[#allocation2 + $0x12b8] sm:$0xff] }
 0x334   :  { %5785 = vmatpush2.bf16.msra.mxu1 %v10656_v12  ;;  %5745 = vmatprep.subr.bf16.mxu0 %v11151_v2  ;;  %v814_v12 = vld [vmem:[#allocation2 + $0x12f8] sm:$0xff] }
 0x335   :  { %5786 = vmatprep.subr.bf16.mxu1 %v10641_v14  ;;  %v758_v54 = vld [vmem:[#allocation2 + $0x1138] sm:$0xff] }
 0x336   :  { %v766_v55 = vld [vmem:[#allocation2 + $0x1178] sm:$0xff] }
 0x337   :  { %5746 = vmatpush2.bf16.msra.mxu0 %v11150_v23 }
 0x338   :  { %5787 = vmatpush2.bf16.msra.mxu1 %v10640_v24  ;;  %5747 = vmatprep.subr.bf16.mxu0 %v11135_v25  ;;  %v11073_v25 = vcombine.high %v806_v10, %v814_v12 }
 0x339   :  { %5788 = vmatprep.subr.bf16.mxu1 %v10625_v26  ;;  %v542_v26 = vld [vmem:[#allocation2 + $0xa78] sm:$0xff] }
 0x33b   :  { %5748 = vmatpush2.bf16.msra.mxu0 %v11134_v37 }
 0x33c   :  { %5789 = vmatpush2.bf16.msra.mxu1 %v10624_v38  ;;  %5749 = vmatprep.subr.bf16.mxu0 %v11119_v39 }
 0x33d   :  { %5790 = vmatprep.subr.bf16.mxu1 %v10609_v40 }
 0x33f   :  { %5750 = vmatpush2.bf16.msra.mxu0 %v11118_v49  ;;  %v10785_v49 = vcombine.high %v518_v41, %v526_v43  ;;  %v694_v41 = vld [vmem:[#allocation2 + $0xf38] sm:$0xff] }
 0x340   :  { %5791 = vmatpush2.bf16.msra.mxu1 %v10608_v50  ;;  %5801 = vmatprep.subr.bf16.mxu0 %v10849_v52  ;;  %v502_v52 = vld [vmem:[#allocation2 + $0x938] sm:$0xff] }
 0x341   :  { %5842 = vmatprep.subr.bf16.mxu1 %v11105_v53  ;;  %v510_v53 = vld [vmem:[#allocation2 + $0x978] sm:$0xff] }
 0x342   :  { %v5507_v9 = vpop.f32.mrf.mxu0  ;;  %5752 = vmatmul.mubr.bf16.vlgmr.msra.gmra.mxu0 %v13196_v47  ;;  %v702_v43 = vld [vmem:[#allocation2 + $0xf78] sm:$0xff] }
 0x343   :  { %v13320_v2 = vadd.f32 %v5507_v9, %v13312_v51  ;;  %v13322_v14 = vpop.f32.mrf.mxu1  ;;  %5793 = vmatmul.mubr.bf16.vlgmr.msra.gmra.mxu1 %v13182_v29  ;;  %5802 = vmatpush1.bf16.msra.mxu0 %v10848_v58  ;;  %v534_v51 = vld [vmem:[#allocation2 + $0xa38] sm:$0xff]  ;;  %v10769_v58 = vcombine.high %v502_v52, %v510_v53  ;;  %v10768_v9 = vcombine.low %v502_v52, %v510_v53 }
 0x344   :  { %5843 = vmatpush1.bf16.msra.mxu1 %v11104_v60  ;;  %v5509_v21 = vpop.f32.mrf.mxu0  ;;  %5803 = vmatprep.subr.bf16.mxu0 %v10833_v33  ;;  %v790_v29 = vld [vmem:[#allocation2 + $0x1238] sm:$0xff]  ;;  %v10801_v38 = vcombine.high %v534_v51, %v542_v26  ;;  %v10800_v46 = vcombine.low %v534_v51, %v542_v26  ;;  %v11025_v60 = vcombine.high %v758_v54, %v766_v55 }
 0x345   :  { %v13326_v23 = vadd.f32 %v5509_v21, %v13316_v0  ;;  %v13328_v24 = vpop.f32.mrf.mxu1  ;;  %5844 = vmatprep.subr.bf16.mxu1 %v11089_v1  ;;  %5833 = vmatprep.mubr.bf16.mxu0 %v13170_v16  ;;  %v11072_v0 = vcombine.low %v806_v10, %v814_v12  ;;  %v11057_v40 = vcombine.high %v790_v29, %v798_v62  ;;  %v782_v16 = vld [vmem:[#allocation2 + $0x11f8] sm:$0xff] }
 0x346   :  { %v5511_v28 = vpop.f32.mrf.mxu0  ;;  %5874 = vmatprep.mubr.bf16.mxu1 %v13188_v63  ;;  %v11056_v63 = vcombine.low %v790_v29, %v798_v62  ;;  %v11041_v50 = vcombine.high %v774_v45, %v782_v16  ;;  %v11040_v4 = vcombine.low %v774_v45, %v782_v16  ;;  %v486_v33 = vld [vmem:[#allocation2 + $0x8b8] sm:$0xff]  ;;  %v11024_v10 = vcombine.low %v758_v54, %v766_v55 }
 0x347   :  { %v5552_v30 = vpop.f32.mrf.mxu1  ;;  %5804 = vmatpush1.bf16.msra.mxu0 %v10832_v5  ;;  %v494_v1 = vld [vmem:[#allocation2 + $0x8f8] sm:$0xff]  ;;  %v11009_v5 = vcombine.high %v742_v18, %v750_v6  ;;  %v11008_v26 = vcombine.low %v742_v18, %v750_v6 }
 0x348   :  { %5845 = vmatpush1.bf16.msra.mxu1 %v11088_v19  ;;  %v5512_v37 = vpop.f32.mrf.mxu0  ;;  %5805 = vmatprep.subr.bf16.mxu0 %v10817_v11  ;;  %v10753_v12 = vcombine.high %v486_v33, %v494_v1  ;;  %v470_v21 = vld [vmem:[#allocation2 + $0x838] sm:$0xff]  ;;  %v10752_v51 = vcombine.low %v486_v33, %v494_v1 }
 0x349   :  { %v5553_v39 = vpop.f32.mrf.mxu1  ;;  %5846 = vmatprep.subr.bf16.mxu1 %v11073_v25  ;;  %v478_v19 = vld [vmem:[#allocation2 + $0x878] sm:$0xff] }
 0x34a   :  { %v726_v11 = vld [vmem:[#allocation2 + $0x1038] sm:$0xff]  ;;  %v10737_v28 = vcombine.high %v470_v21, %v478_v19 }
 0x34b   :  { %5806 = vmatpush1.bf16.msra.mxu0 %v10816_v31  ;;  %v734_v25 = vld [vmem:[#allocation2 + $0x1078] sm:$0xff] }
 0x34c   :  { %5847 = vmatpush1.bf16.msra.mxu1 %v11072_v0  ;;  %5807 = vmatprep.subr.bf16.mxu0 %v10801_v38  ;;  %v10993_v29 = vcombine.high %v726_v11, %v734_v25  ;;  %v710_v62 = vld [vmem:[#allocation2 + $0xfb8] sm:$0xff]  ;;  %v10736_v0 = vcombine.low %v470_v21, %v478_v19  ;;  %v10992_v38 = vcombine.low %v726_v11, %v734_v25 }
 0x34d   :  { %5848 = vmatprep.subr.bf16.mxu1 %v11057_v40  ;;  %v718_v30 = vld [vmem:[#allocation2 + $0xff8] sm:$0xff] }
 0x34e   :  { %v966_v31 = vld [vmem:[#allocation2 + $0x17b8] sm:$0xff]  ;;  %v10977_v39 = vcombine.high %v710_v62, %v718_v30 }
 0x34f   :  { %5808 = vmatpush1.bf16.msra.mxu0 %v10800_v46  ;;  %v974_v37 = vld [vmem:[#allocation2 + $0x17f8] sm:$0xff]  ;;  %v10976_v46 = vcombine.low %v710_v62, %v718_v30 }
 0x350   :  { %5849 = vmatpush1.bf16.msra.mxu1 %v11056_v63  ;;  %5809 = vmatprep.subr.bf16.mxu0 %v10785_v49  ;;  %v11233_v40 = vcombine.high %v966_v31, %v974_v37  ;;  %v950_v45 = vld [vmem:[#allocation2 + $0x1738] sm:$0xff]  ;;  %v11232_v63 = vcombine.low %v966_v31, %v974_v37  ;;  %v10961_v49 = vcombine.high %v694_v41, %v702_v43 }
 0x351   :  { %5850 = vmatprep.subr.bf16.mxu1 %v11041_v50  ;;  %v958_v16 = vld [vmem:[#allocation2 + $0x1778] sm:$0xff] }
 0x352   :  { %v11217_v50 = vcombine.high %v950_v45, %v958_v16  ;;  %v678_v52 = vld [vmem:[#allocation2 + $0xeb8] sm:$0xff] }
 0x353   :  { %5810 = vmatpush1.bf16.msra.mxu0 %v10784_v57  ;;  %v686_v53 = vld [vmem:[#allocation2 + $0xef8] sm:$0xff]  ;;  %v10960_v57 = vcombine.low %v694_v41, %v702_v43 }
 0x354   :  { %5851 = vmatpush1.bf16.msra.mxu1 %v11040_v4  ;;  %5811 = vmatprep.subr.bf16.mxu0 %v10769_v58  ;;  %v934_v54 = vld [vmem:[#allocation2 + $0x16b8] sm:$0xff]  ;;  %v11216_v4 = vcombine.low %v950_v45, %v958_v16  ;;  %v10945_v58 = vcombine.high %v678_v52, %v686_v53 }
 0x355   :  { %5852 = vmatprep.subr.bf16.mxu1 %v11025_v60  ;;  %v942_v55 = vld [vmem:[#allocation2 + $0x16f8] sm:$0xff] }
 0x356   :  { %v11201_v60 = vcombine.high %v934_v54, %v942_v55  ;;  %v662_v33 = vld [vmem:[#allocation2 + $0xe38] sm:$0xff] }
 0x357   :  { %5812 = vmatpush1.bf16.msra.mxu0 %v10768_v9  ;;  %v670_v1 = vld [vmem:[#allocation2 + $0xe78] sm:$0xff]  ;;  %v10944_v9 = vcombine.low %v678_v52, %v686_v53 }
 0x358   :  { %5853 = vmatpush1.bf16.msra.mxu1 %v11024_v10  ;;  %5813 = vmatprep.subr.bf16.mxu0 %v10753_v12  ;;  %v918_v18 = vld [vmem:[#allocation2 + $0x1638] sm:$0xff]  ;;  %v11200_v10 = vcombine.low %v934_v54, %v942_v55  ;;  %v10929_v12 = vcombine.high %v662_v33, %v670_v1 }
 0x359   :  { %5854 = vmatprep.subr.bf16.mxu1 %v11009_v5  ;;  %v926_v6 = vld [vmem:[#allocation2 + $0x1678] sm:$0xff] }
 0x35a   :  { %v11185_v5 = vcombine.high %v918_v18, %v926_v6  ;;  %v646_v21 = vld [vmem:[#allocation2 + $0xdb8] sm:$0xff] }
 0x35b   :  { %5814 = vmatpush1.bf16.msra.mxu0 %v10752_v51  ;;  %v654_v19 = vld [vmem:[#allocation2 + $0xdf8] sm:$0xff]  ;;  %v10928_v51 = vcombine.low %v662_v33, %v670_v1 }
 0x35c   :  { %5855 = vmatpush1.bf16.msra.mxu1 %v11008_v26  ;;  %5815 = vmatprep.subr.bf16.mxu0 %v10737_v28  ;;  %v902_v11 = vld [vmem:[#allocation2 + $0x15b8] sm:$0xff]  ;;  %v11184_v26 = vcombine.low %v918_v18, %v926_v6  ;;  %v10913_v28 = vcombine.high %v646_v21, %v654_v19  ;;  %v11911_v18 = vld [vmem:[#allocation5 + $0xe4] ss:$16 sps:$4 sm:$0xff]   ;;  %v1022_v6 = vrot.slane %v13304_v13, %v13237_v22 }
 0x35d   :  { %5856 = vmatprep.subr.bf16.mxu1 %v10993_v29  ;;  %v910_v25 = vld [vmem:[#allocation2 + $0x15f8] sm:$0xff] }
 0x35e   :  { %v11169_v29 = vcombine.high %v902_v11, %v910_v25  ;;  %v630_v62 = vld [vmem:[#allocation2 + $0xd38] sm:$0xff] }
 0x35f   :  { %5816 = vmatpush1.bf16.msra.mxu0 %v10736_v0  ;;  %v638_v30 = vld [vmem:[#allocation2 + $0xd78] sm:$0xff]  ;;  %v10912_v0 = vcombine.low %v646_v21, %v654_v19  ;;  %v11909_v21 = vld [vmem:[#allocation5 + $0xe0] ss:$16 sps:$4 sm:$0xff]  }
 0x360   :  { %5857 = vmatpush1.bf16.msra.mxu1 %v10992_v38  ;;  %5817 = vmatprep.subr.bf16.mxu0 %v10977_v39  ;;  %v886_v31 = vld [vmem:[#allocation2 + $0x1538] sm:$0xff]  ;;  %v11168_v38 = vcombine.low %v902_v11, %v910_v25  ;;  %v10897_v39 = vcombine.high %v630_v62, %v638_v30  ;;  %v11912_v19 = vld [vmem:[#allocation5 + $0x2e0] ss:$16 sps:$4 sm:$0xff]   ;;  %v5549_v11 = vadd.f32 %v13322_v14, %v1022_v6  ;;  %v11917_v25 = vld [vmem:[#allocation5 + $0xc4] ss:$16 sps:$4 sm:$0xff]  }
 0x361   :  { %5858 = vmatprep.subr.bf16.mxu1 %v11233_v40  ;;  %v894_v37 = vld [vmem:[#allocation2 + $0x1578] sm:$0xff]  ;;  %v11953_v6 = vld [vmem:[#allocation5 + $0x4] ss:$16 sps:$4 sm:$0xff]  }
 0x362   :  { %v11153_v40 = vcombine.high %v886_v31, %v894_v37  ;;  %v614_v41 = vld [vmem:[#allocation2 + $0xcb8] sm:$0xff] }
 0x363   :  { %5818 = vmatpush2.bf16.msra.mxu0 %v10976_v46  ;;  %v622_v43 = vld [vmem:[#allocation2 + $0xcf8] sm:$0xff]  ;;  %v10896_v46 = vcombine.low %v630_v62, %v638_v30  ;;  %v11915_v62 = vld [vmem:[#allocation5 + $0xc0] ss:$16 sps:$4 sm:$0xff]  }
 0x364   :  { %5859 = vmatpush2.bf16.msra.mxu1 %v11232_v63  ;;  %5819 = vmatprep.subr.bf16.mxu0 %v10961_v49  ;;  %v870_v45 = vld [vmem:[#allocation2 + $0x14b8] sm:$0xff]  ;;  %v11152_v63 = vcombine.low %v886_v31, %v894_v37  ;;  %v10881_v49 = vcombine.high %v614_v41, %v622_v43  ;;  %v11918_v30 = vld [vmem:[#allocation5 + $0x2c0] ss:$16 sps:$4 sm:$0xff]   ;;  %v11923_v31 = vld [vmem:[#allocation5 + $0xa4] ss:$16 sps:$4 sm:$0xff]  }
 0x365   :  { %5860 = vmatprep.subr.bf16.mxu1 %v11217_v50  ;;  %v878_v16 = vld [vmem:[#allocation2 + $0x14f8] sm:$0xff] }
 0x366   :  { %v11137_v50 = vcombine.high %v870_v45, %v878_v16  ;;  %v598_v52 = vld [vmem:[#allocation2 + $0xc38] sm:$0xff] }
 0x367   :  { %5820 = vmatpush2.bf16.msra.mxu0 %v10960_v57  ;;  %v606_v53 = vld [vmem:[#allocation2 + $0xc78] sm:$0xff]  ;;  %v10880_v57 = vcombine.low %v614_v41, %v622_v43  ;;  %v11924_v43 = vld [vmem:[#allocation5 + $0x2a0] ss:$16 sps:$4 sm:$0xff]  }
 0x368   :  { %5861 = vmatpush2.bf16.msra.mxu1 %v11216_v4  ;;  %5821 = vmatprep.subr.bf16.mxu0 %v10945_v58  ;;  %v854_v54 = vld [vmem:[#allocation2 + $0x1438] sm:$0xff]  ;;  %v11136_v4 = vcombine.low %v870_v45, %v878_v16  ;;  %v10865_v58 = vcombine.high %v598_v52, %v606_v53  ;;  %v10864_v33 = vcombine.low %v598_v52, %v606_v53  ;;  %v11929_v45 = vld [vmem:[#allocation5 + $0x84] ss:$16 sps:$4 sm:$0xff]   ;;  %v11933_v53 = vld [vmem:[#allocation5 + $0x60] ss:$16 sps:$4 sm:$0xff]  }
 0x369   :  { %5862 = vmatprep.subr.bf16.mxu1 %v11201_v60  ;;  %v862_v55 = vld [vmem:[#allocation2 + $0x1478] sm:$0xff]  ;;  %v11938_v52 = vld [vmem:[#allocation5 + $0x264] ss:$16 sps:$4 sm:$0xff]  }
 0x36a   :  { %v11121_v60 = vcombine.high %v854_v54, %v862_v55  ;;  %v11120_v1 = vcombine.low %v854_v54, %v862_v55  ;;  %v11936_v54 = vld [vmem:[#allocation5 + $0x260] ss:$16 sps:$4 sm:$0xff]   ;;  %v11941_v55 = vld [vmem:[#allocation5 + $0x44] ss:$16 sps:$4 sm:$0xff]  }
 0x36b   :  { %5822 = vmatpush2.bf16.msra.mxu0 %v10944_v9  ;;  %v11914_v9 = vld [vmem:[#allocation5 + $0x2e4] ss:$16 sps:$4 sm:$0xff]  }
 0x36c   :  { %5863 = vmatpush2.bf16.msra.mxu1 %v11200_v10  ;;  %5823 = vmatprep.subr.bf16.mxu0 %v10929_v12  ;;  %v5884_v10 = vmax.f32 %v13230_v17, 0.0  ;;  %v5886_v12 = vmax.f32 %v13256_v8, 0.0  ;;  %v11920_v17 = vld [vmem:[#allocation5 + $0x2c4] ss:$16 sps:$4 sm:$0xff]  }
 0x36d   :  { %5864 = vmatprep.subr.bf16.mxu1 %v11185_v5  ;;  %v1026_v5 = vrot.slane %v13304_v13, %v13240_v27 }
 0x36f   :  { %5824 = vmatpush2.bf16.msra.mxu0 %v10928_v51  ;;  %v13339_v51 = vpack.c.bf16 %v5884_v10, %v5884_v10  ;;  %v5551_v8 = vadd.f32 %v13328_v24, %v1026_v5  ;;  %v11926_v24 = vld [vmem:[#allocation5 + $0x2a4] ss:$16 sps:$4 sm:$0xff]   ;;  %v11951_v10 = vld [vmem:[#allocation5] ss:$16 sps:$4 sm:$0xff]  }
 0x370   :  { %5865 = vmatpush2.bf16.msra.mxu1 %v11184_v26  ;;  %5825 = vmatprep.subr.bf16.mxu0 %v10913_v28  ;;  %v13342_v28 = vpack.c.bf16 %v5886_v12, %v5886_v12  ;;  %v11954_v12 = vld [vmem:[#allocation5 + $0x200] ss:$16 sps:$4 sm:$0xff]   ;;  %v11959_v5 = vld [vmem:[#allocation5 + $0x1e4] ss:$16 sps:$4 sm:$0xff]  }
 0x371   :  { %5866 = vmatprep.subr.bf16.mxu1 %v11169_v29 }
 0x373   :  { %5826 = vmatpush2.bf16.msra.mxu0 %v10912_v0 }
 0x374   :  { %5867 = vmatpush2.bf16.msra.mxu1 %v11168_v38  ;;  %5827 = vmatprep.subr.bf16.mxu0 %v10897_v39 }
 0x375   :  { %5868 = vmatprep.subr.bf16.mxu1 %v11153_v40  ;;  %v11921_v40 = vld [vmem:[#allocation5 + $0xa0] ss:$16 sps:$4 sm:$0xff]  }
 0x377   :  { %5828 = vmatpush2.bf16.msra.mxu0 %v10896_v46  ;;  %v11932_v46 = vld [vmem:[#allocation5 + $0x284] ss:$16 sps:$4 sm:$0xff]  }
 0x378   :  { %5869 = vmatpush2.bf16.msra.mxu1 %v11152_v63  ;;  %5829 = vmatprep.subr.bf16.mxu0 %v10881_v49  ;;  %v11927_v63 = vld [vmem:[#allocation5 + $0x80] ss:$16 sps:$4 sm:$0xff]  }
 0x379   :  { %5870 = vmatprep.subr.bf16.mxu1 %v11137_v50  ;;  %v11930_v49 = vld [vmem:[#allocation5 + $0x280] ss:$16 sps:$4 sm:$0xff]   ;;  %v11935_v50 = vld [vmem:[#allocation5 + $0x64] ss:$16 sps:$4 sm:$0xff]  }
 0x37b   :  { %5830 = vmatpush2.bf16.msra.mxu0 %v10880_v57  ;;  %v11944_v57 = vld [vmem:[#allocation5 + $0x244] ss:$16 sps:$4 sm:$0xff]  }
 0x37c   :  { %5871 = vmatpush2.bf16.msra.mxu1 %v11136_v4  ;;  %5831 = vmatprep.subr.bf16.mxu0 %v10865_v58  ;;  %v11939_v4 = vld [vmem:[#allocation5 + $0x40] ss:$16 sps:$4 sm:$0xff]  }
 0x37d   :  { %5872 = vmatprep.subr.bf16.mxu1 %v11121_v60  ;;  %v11942_v58 = vld [vmem:[#allocation5 + $0x240] ss:$16 sps:$4 sm:$0xff]   ;;  %v11947_v60 = vld [vmem:[#allocation5 + $0x24] ss:$16 sps:$4 sm:$0xff]  }
 0x37f   :  { %5832 = vmatpush2.bf16.msra.mxu0 %v10864_v33  ;;  %v11950_v33 = vld [vmem:[#allocation5 + $0x224] ss:$16 sps:$4 sm:$0xff]  }
 0x380   :  { %5873 = vmatpush2.bf16.msra.mxu1 %v11120_v1  ;;  %9009 = vmatprep.subr.bf16.mxu0 %v11911_v18  ;;  %v11945_v1 = vld [vmem:[#allocation5 + $0x20] ss:$16 sps:$4 sm:$0xff]  }
 0x381   :  { %9050 = vmatprep.subr.bf16.mxu1 %v11914_v9  ;;  %v11948_v18 = vld [vmem:[#allocation5 + $0x220] ss:$16 sps:$4 sm:$0xff]   ;;  %v11956_v9 = vld [vmem:[#allocation5 + $0x204] ss:$16 sps:$4 sm:$0xff]  }
 0x382   :  { %v5589_v26 = vpop.f32.mrf.mxu0  ;;  %5834 = vmatmul.mubr.bf16.vlgmr.msra.gmra.mxu0 %v13186_v32 }
 0x383   :  { %v5590_v13 = vadd.f32 %v5589_v26, %v5549_v11  ;;  %v5630_v29 = vpop.f32.mrf.mxu1  ;;  %5875 = vmatmul.mubr.bf16.vlgmr.msra.gmra.mxu1 %v13196_v47  ;;  %9010 = vmatpush1.bf16.msra.mxu0 %v11909_v21  ;;  %v11962_v21 = vld [vmem:[#allocation5 + $0x3e4] ss:$16 sps:$4 sm:$0xff]   ;;  %v11960_v11 = vld [vmem:[#allocation5 + $0x3e0] ss:$16 sps:$4 sm:$0xff]  }
 0x384   :  { %9041 = vmatprep.mubr.bf16.mxu0 %v13339_v51  ;;  %9051 = vmatpush1.bf16.msra.mxu1 %v11912_v19  ;;  %v5591_v14 = vpop.f32.mrf.mxu0  ;;  %v11957_v19 = vld [vmem:[#allocation5 + $0x1e0] ss:$16 sps:$4 sm:$0xff]   ;;  %v11968_v26 = vld [vmem:[#allocation5 + $0x3c4] ss:$16 sps:$4 sm:$0xff]  }
 0x385   :  { %v13347_v37 = vadd.f32 %v5630_v29, %v5590_v13  ;;  %9082 = vmatprep.mubr.bf16.mxu1 %v13342_v28  ;;  %v5592_v32 = vadd.f32 %v5591_v14, %v5551_v8  ;;  %v5632_v0 = vpop.f32.mrf.mxu1  ;;  %9011 = vmatprep.subr.bf16.mxu0 %v11917_v25  ;;  %v11965_v25 = vld [vmem:[#allocation5 + $0x1c4] ss:$16 sps:$4 sm:$0xff]   ;;  %v11966_v8 = vld [vmem:[#allocation5 + $0x3c0] ss:$16 sps:$4 sm:$0xff]  }
 0x386   :  { %v5593_v38 = vpop.f32.mrf.mxu0  ;;  %9052 = vmatprep.subr.bf16.mxu1 %v11920_v17  ;;  %v11963_v17 = vld [vmem:[#allocation5 + $0x1c0] ss:$16 sps:$4 sm:$0xff]   ;;  %v11971_v13 = vld [vmem:[#allocation5 + $0x1a4] ss:$16 sps:$4 sm:$0xff]  }
 0x387   :  { %v13350_v39 = vadd.f32 %v5632_v0, %v5592_v32  ;;  %v5634_v47 = vpop.f32.mrf.mxu1  ;;  %9012 = vmatpush1.bf16.msra.mxu0 %v11915_v62  ;;  %v11974_v29 = vld [vmem:[#allocation5 + $0x3a4] ss:$16 sps:$4 sm:$0xff]   ;;  %v11969_v62 = vld [vmem:[#allocation5 + $0x1a0] ss:$16 sps:$4 sm:$0xff]  }
 0x388   :  { %9053 = vmatpush1.bf16.msra.mxu1 %v11918_v30  ;;  %v5594_v41 = vpop.f32.mrf.mxu0  ;;  %9013 = vmatprep.subr.bf16.mxu0 %v11923_v31  ;;  %v11972_v14 = vld [vmem:[#allocation5 + $0x3a0] ss:$16 sps:$4 sm:$0xff]   ;;  %v11977_v30 = vld [vmem:[#allocation5 + $0x184] ss:$16 sps:$4 sm:$0xff]  }
 0x389   :  { %v5635_v16 = vpop.f32.mrf.mxu1  ;;  %9054 = vmatprep.subr.bf16.mxu1 %v11926_v24  ;;  %v11980_v31 = vld [vmem:[#allocation5 + $0x384] ss:$16 sps:$4 sm:$0xff]   ;;  %v11975_v32 = vld [vmem:[#allocation5 + $0x180] ss:$16 sps:$4 sm:$0xff]  }
 0x38a   :  { %v11978_v0 = vld [vmem:[#allocation5 + $0x380] ss:$16 sps:$4 sm:$0xff]   ;;  %v11983_v24 = vld [vmem:[#allocation5 + $0x164] ss:$16 sps:$4 sm:$0xff]  }
 0x38b   :  { %9014 = vmatpush1.bf16.msra.mxu0 %v11921_v40  ;;  %v11986_v38 = vld [vmem:[#allocation5 + $0x364] ss:$16 sps:$4 sm:$0xff]   ;;  %v11981_v47 = vld [vmem:[#allocation5 + $0x160] ss:$16 sps:$4 sm:$0xff]  }
 0x38c   :  { %9055 = vmatpush1.bf16.msra.mxu1 %v11924_v43  ;;  %9015 = vmatprep.subr.bf16.mxu0 %v11929_v45  ;;  %v11984_v40 = vld [vmem:[#allocation5 + $0x360] ss:$16 sps:$4 sm:$0xff]   ;;  %v11989_v41 = vld [vmem:[#allocation5 + $0x144] ss:$16 sps:$4 sm:$0xff]  }
 0x38d   :  { %9056 = vmatprep.subr.bf16.mxu1 %v11932_v46  ;;  %v11992_v43 = vld [vmem:[#allocation5 + $0x344] ss:$16 sps:$4 sm:$0xff]   ;;  %v11987_v45 = vld [vmem:[#allocation5 + $0x140] ss:$16 sps:$4 sm:$0xff]  }
 0x38e   :  { %v11990_v16 = vld [vmem:[#allocation5 + $0x340] ss:$16 sps:$4 sm:$0xff]   ;;  %v11995_v46 = vld [vmem:[#allocation5 + $0x124] ss:$16 sps:$4 sm:$0xff]  }
 0x38f   :  { %9016 = vmatpush1.bf16.msra.mxu0 %v11927_v63  ;;  %v11998_v63 = vld [vmem:[#allocation5 + $0x324] ss:$16 sps:$4 sm:$0xff]  }
 0x390   :  { %9057 = vmatpush1.bf16.msra.mxu1 %v11930_v49  ;;  %9017 = vmatprep.subr.bf16.mxu0 %v11935_v50  ;;  %v11993_v49 = vld [vmem:[#allocation5 + $0x120] ss:$16 sps:$4 sm:$0xff]  }
 0x391   :  { %9058 = vmatprep.subr.bf16.mxu1 %v11938_v52  ;;  %v11996_v50 = vld [vmem:[#allocation5 + $0x320] ss:$16 sps:$4 sm:$0xff]   ;;  %v12001_v52 = vld [vmem:[#allocation5 + $0x104] ss:$16 sps:$4 sm:$0xff]  }
 0x393   :  { %9018 = vmatpush1.bf16.msra.mxu0 %v11933_v53  ;;  %v12004_v53 = vld [vmem:[#allocation5 + $0x304] ss:$16 sps:$4 sm:$0xff]  }
 0x394   :  { %9059 = vmatpush1.bf16.msra.mxu1 %v11936_v54  ;;  %9019 = vmatprep.subr.bf16.mxu0 %v11941_v55  ;;  %v11999_v54 = vld [vmem:[#allocation5 + $0x100] ss:$16 sps:$4 sm:$0xff]   ;;  %v5883_v55 = vmax.f32 %v13224_v3, 0.0 }
 0x395   :  { %9060 = vmatprep.subr.bf16.mxu1 %v11944_v57  ;;  %v12002_v57 = vld [vmem:[#allocation5 + $0x300] ss:$16 sps:$4 sm:$0xff]  }
 0x396   :  { %v12005_v3 = vld [vmem:[#allocation5 + $0x4e0] ss:$16 sps:$4 sm:$0xff]  }
 0x397   :  { %9020 = vmatpush1.bf16.msra.mxu0 %v11939_v4  ;;  %v12007_v4 = vld [vmem:[#allocation5 + $0x4e4] ss:$16 sps:$4 sm:$0xff]  }
 0x398   :  { %9061 = vmatpush1.bf16.msra.mxu1 %v11942_v58  ;;  %9021 = vmatprep.subr.bf16.mxu0 %v11947_v60  ;;  %v5885_v58 = vmax.f32 %v13252_v59, 0.0  ;;  %v12010_v60 = vld [vmem:[#allocation5 + $0x6e4] ss:$16 sps:$4 sm:$0xff]  }
 0x399   :  { %9062 = vmatprep.subr.bf16.mxu1 %v11950_v33  ;;  %v5888_v33 = vmax.f32 %v13282_v61, 0.0 }
 0x39a   :  { %v13363_v59 = vpack.c.bf16 %v5885_v58, %v5885_v58  ;;  %v12049_v58 = vld [vmem:[#allocation5 + $0x404] ss:$16 sps:$4 sm:$0xff]  }
 0x39b   :  { %9022 = vmatpush1.bf16.msra.mxu0 %v11945_v1  ;;  %v5890_v1 = vmax.f32 %v13302_v35, 0.0  ;;  %v12013_v35 = vld [vmem:[#allocation5 + $0x4c4] ss:$16 sps:$4 sm:$0xff]  }
 0x39c   :  { %9063 = vmatpush1.bf16.msra.mxu1 %v11948_v18  ;;  %9023 = vmatprep.subr.bf16.mxu0 %v11953_v6  ;;  %v13356_v18 = vld [vmem:[#allocation11 + $0x8] sm:$0xff] }
 0x39d   :  { %9064 = vmatprep.subr.bf16.mxu1 %v11956_v9  ;;  %v1030_v6 = vrot.slane %v13356_v18, %v997_v48  ;;  %v13361_v9 = vpack.c.bf16 %v5883_v55, %v5883_v55  ;;  %v1034_v61 = vrot.slane %v13356_v18, %v1001_v34  ;;  %v12016_v48 = vld [vmem:[#allocation5 + $0x6c4] ss:$16 sps:$4 sm:$0xff]   ;;  %v12014_v34 = vld [vmem:[#allocation5 + $0x6c0] ss:$16 sps:$4 sm:$0xff]  }
 0x39e   :  { %v12046_v55 = vld [vmem:[#allocation5 + $0x624] ss:$16 sps:$4 sm:$0xff]  }
 0x39f   :  { %9024 = vmatpush1.bf16.msra.mxu0 %v11951_v10  ;;  %v12008_v10 = vld [vmem:[#allocation5 + $0x6e0] ss:$16 sps:$4 sm:$0xff]  }
 0x3a0   :  { %9065 = vmatpush1.bf16.msra.mxu1 %v11954_v12  ;;  %9025 = vmatprep.subr.bf16.mxu0 %v11959_v5  ;;  %v13368_v12 = vpack.c.bf16 %v5888_v33, %v5888_v33  ;;  %v12047_v33 = vld [vmem:[#allocation5 + $0x400] ss:$16 sps:$4 sm:$0xff]  }
 0x3a1   :  { %9066 = vmatprep.subr.bf16.mxu1 %v11962_v21  ;;  %v13371_v21 = vpack.c.bf16 %v5890_v1, %v5890_v1  ;;  %v12050_v1 = vld [vmem:[#allocation5 + $0x600] ss:$16 sps:$4 sm:$0xff]  }
 0x3a3   :  { %9026 = vmatpush2.bf16.msra.mxu0 %v11957_v19 }
 0x3a4   :  { %9067 = vmatpush2.bf16.msra.mxu1 %v11960_v11  ;;  %9027 = vmatprep.subr.bf16.mxu0 %v11965_v25  ;;  %v12011_v25 = vld [vmem:[#allocation5 + $0x4c0] ss:$16 sps:$4 sm:$0xff]  }
 0x3a5   :  { %9068 = vmatprep.subr.bf16.mxu1 %v11968_v26 }
 0x3a7   :  { %9028 = vmatpush2.bf16.msra.mxu0 %v11963_v17  ;;  %v12019_v17 = vld [vmem:[#allocation5 + $0x4a4] ss:$16 sps:$4 sm:$0xff]  }
 0x3a8   :  { %9069 = vmatpush2.bf16.msra.mxu1 %v11966_v8  ;;  %9029 = vmatprep.subr.bf16.mxu0 %v11971_v13 }
 0x3a9   :  { %9070 = vmatprep.subr.bf16.mxu1 %v11974_v29 }
 0x3ab   :  { %9030 = vmatpush2.bf16.msra.mxu0 %v11969_v62  ;;  %v12022_v62 = vld [vmem:[#allocation5 + $0x6a4] ss:$16 sps:$4 sm:$0xff]  }
 0x3ac   :  { %9071 = vmatpush2.bf16.msra.mxu1 %v11972_v14  ;;  %9031 = vmatprep.subr.bf16.mxu0 %v11977_v30 }
 0x3ad   :  { %9072 = vmatprep.subr.bf16.mxu1 %v11980_v31 }
 0x3af   :  { %9032 = vmatpush2.bf16.msra.mxu0 %v11975_v32  ;;  %v12017_v32 = vld [vmem:[#allocation5 + $0x4a0] ss:$16 sps:$4 sm:$0xff]  }
 0x3b0   :  { %9073 = vmatpush2.bf16.msra.mxu1 %v11978_v0  ;;  %9033 = vmatprep.subr.bf16.mxu0 %v11983_v24  ;;  %v12020_v24 = vld [vmem:[#allocation5 + $0x6a0] ss:$16 sps:$4 sm:$0xff]  }
 0x3b1   :  { %9074 = vmatprep.subr.bf16.mxu1 %v11986_v38  ;;  %v12025_v38 = vld [vmem:[#allocation5 + $0x484] ss:$16 sps:$4 sm:$0xff]  }
 0x3b3   :  { %9034 = vmatpush2.bf16.msra.mxu0 %v11981_v47 }
 0x3b4   :  { %9075 = vmatpush2.bf16.msra.mxu1 %v11984_v40  ;;  %9035 = vmatprep.subr.bf16.mxu0 %v11989_v41  ;;  %v12028_v40 = vld [vmem:[#allocation5 + $0x684] ss:$16 sps:$4 sm:$0xff]   ;;  %v12023_v41 = vld [vmem:[#allocation5 + $0x480] ss:$16 sps:$4 sm:$0xff]  }
 0x3b5   :  { %9076 = vmatprep.subr.bf16.mxu1 %v11992_v43  ;;  %v12026_v43 = vld [vmem:[#allocation5 + $0x680] ss:$16 sps:$4 sm:$0xff]  }
 0x3b7   :  { %9036 = vmatpush2.bf16.msra.mxu0 %v11987_v45  ;;  %v12031_v45 = vld [vmem:[#allocation5 + $0x464] ss:$16 sps:$4 sm:$0xff]  }
 0x3b8   :  { %9077 = vmatpush2.bf16.msra.mxu1 %v11990_v16  ;;  %9037 = vmatprep.subr.bf16.mxu0 %v11995_v46  ;;  %v12034_v16 = vld [vmem:[#allocation5 + $0x664] ss:$16 sps:$4 sm:$0xff]   ;;  %v12029_v46 = vld [vmem:[#allocation5 + $0x460] ss:$16 sps:$4 sm:$0xff]  }
 0x3b9   :  { %9078 = vmatprep.subr.bf16.mxu1 %v11998_v63  ;;  %v12032_v63 = vld [vmem:[#allocation5 + $0x660] ss:$16 sps:$4 sm:$0xff]  }
 0x3bb   :  { %9038 = vmatpush2.bf16.msra.mxu0 %v11993_v49  ;;  %v12037_v49 = vld [vmem:[#allocation5 + $0x444] ss:$16 sps:$4 sm:$0xff]  }
 0x3bc   :  { %9079 = vmatpush2.bf16.msra.mxu1 %v11996_v50  ;;  %9039 = vmatprep.subr.bf16.mxu0 %v12001_v52  ;;  %v12040_v50 = vld [vmem:[#allocation5 + $0x644] ss:$16 sps:$4 sm:$0xff]   ;;  %v12035_v52 = vld [vmem:[#allocation5 + $0x440] ss:$16 sps:$4 sm:$0xff]  }
 0x3bd   :  { %9080 = vmatprep.subr.bf16.mxu1 %v12004_v53  ;;  %v12038_v53 = vld [vmem:[#allocation5 + $0x640] ss:$16 sps:$4 sm:$0xff]  }
 0x3bf   :  { %9040 = vmatpush2.bf16.msra.mxu0 %v11999_v54  ;;  %v12043_v54 = vld [vmem:[#allocation5 + $0x424] ss:$16 sps:$4 sm:$0xff]  }
 0x3c0   :  { %9081 = vmatpush2.bf16.msra.mxu1 %v12002_v57  ;;  %9091 = vmatprep.subr.bf16.mxu0 %v12007_v4  ;;  %v12041_v57 = vld [vmem:[#allocation5 + $0x420] ss:$16 sps:$4 sm:$0xff]  }
 0x3c1   :  { %9132 = vmatprep.subr.bf16.mxu1 %v12010_v60  ;;  %v12044_v4 = vld [vmem:[#allocation5 + $0x620] ss:$16 sps:$4 sm:$0xff]   ;;  %v12052_v60 = vld [vmem:[#allocation5 + $0x604] ss:$16 sps:$4 sm:$0xff]  }
 0x3c2   :  { %v5671_v5 = vpop.f32.mrf.mxu0  ;;  %9042 = vmatmul.mubr.bf16.vlgmr.msra.gmra.mxu0 %v13361_v9 }
 0x3c3   :  { %v5672_v19 = vadd.f32 %v5671_v5, %v1030_v6  ;;  %v5712_v11 = vpop.f32.mrf.mxu1  ;;  %9083 = vmatmul.mubr.bf16.vlgmr.msra.gmra.mxu1 %v13363_v59  ;;  %9092 = vmatpush1.bf16.msra.mxu0 %v12005_v3  ;;  %v12055_v6 = vld [vmem:[#allocation5 + $0x5e4] ss:$16 sps:$4 sm:$0xff]  }
 0x3c4   :  { %9123 = vmatprep.mubr.bf16.mxu0 %v13368_v12  ;;  %9133 = vmatpush1.bf16.msra.mxu1 %v12008_v10  ;;  %v5673_v26 = vpop.f32.mrf.mxu0  ;;  %v12058_v3 = vld [vmem:[#allocation5 + $0x7e4] ss:$16 sps:$4 sm:$0xff]   ;;  %v12053_v10 = vld [vmem:[#allocation5 + $0x5e0] ss:$16 sps:$4 sm:$0xff]  }
 0x3c5   :  { %v13375_v8 = vadd.f32 %v5712_v11, %v5672_v19  ;;  %9164 = vmatprep.mubr.bf16.mxu1 %v13371_v21  ;;  %v5674_v13 = vadd.f32 %v5673_v26, %v1034_v61  ;;  %v5714_v29 = vpop.f32.mrf.mxu1  ;;  %9093 = vmatprep.subr.bf16.mxu0 %v12013_v35  ;;  %v12056_v61 = vld [vmem:[#allocation5 + $0x7e0] ss:$16 sps:$4 sm:$0xff]   ;;  %v12061_v35 = vld [vmem:[#allocation5 + $0x5c4] ss:$16 sps:$4 sm:$0xff]  }
 0x3c6   :  { %v5675_v14 = vpop.f32.mrf.mxu0  ;;  %9134 = vmatprep.subr.bf16.mxu1 %v12016_v48  ;;  %v12064_v5 = vld [vmem:[#allocation5 + $0x7c4] ss:$16 sps:$4 sm:$0xff]   ;;  %v12059_v48 = vld [vmem:[#allocation5 + $0x5c0] ss:$16 sps:$4 sm:$0xff]  }
 0x3c7   :  { %v13378_v30 = vadd.f32 %v5714_v29, %v5674_v13  ;;  %v5716_v31 = vpop.f32.mrf.mxu1  ;;  %9094 = vmatpush1.bf16.msra.mxu0 %v12011_v25  ;;  %v12062_v19 = vld [vmem:[#allocation5 + $0x7c0] ss:$16 sps:$4 sm:$0xff]   ;;  %v12067_v11 = vld [vmem:[#allocation5 + $0x5a4] ss:$16 sps:$4 sm:$0xff]  }
 0x3c8   :  { %9135 = vmatpush1.bf16.msra.mxu1 %v12014_v34  ;;  %v5676_v0 = vpop.f32.mrf.mxu0  ;;  %9095 = vmatprep.subr.bf16.mxu0 %v12019_v17  ;;  %v12070_v25 = vld [vmem:[#allocation5 + $0x7a4] ss:$16 sps:$4 sm:$0xff]   ;;  %v12065_v26 = vld [vmem:[#allocation5 + $0x5a0] ss:$16 sps:$4 sm:$0xff]  }
 0x3c9   :  { %v5717_v47 = vpop.f32.mrf.mxu1  ;;  %9136 = vmatprep.subr.bf16.mxu1 %v12022_v62  ;;  %v12068_v34 = vld [vmem:[#allocation5 + $0x7a0] ss:$16 sps:$4 sm:$0xff]   ;;  %v12073_v17 = vld [vmem:[#allocation5 + $0x584] ss:$16 sps:$4 sm:$0xff]  }
 0x3ca   :  { %v12076_v13 = vld [vmem:[#allocation5 + $0x784] ss:$16 sps:$4 sm:$0xff]   ;;  %v12071_v29 = vld [vmem:[#allocation5 + $0x580] ss:$16 sps:$4 sm:$0xff]  }
 0x3cb   :  { %9096 = vmatpush1.bf16.msra.mxu0 %v12017_v32  ;;  %v12074_v62 = vld [vmem:[#allocation5 + $0x780] ss:$16 sps:$4 sm:$0xff]   ;;  %v12079_v14 = vld [vmem:[#allocation5 + $0x564] ss:$16 sps:$4 sm:$0xff]  }
 0x3cc   :  { %9137 = vmatpush1.bf16.msra.mxu1 %v12020_v24  ;;  %9097 = vmatprep.subr.bf16.mxu0 %v12025_v38  ;;  %v12082_v31 = vld [vmem:[#allocation5 + $0x764] ss:$16 sps:$4 sm:$0xff]   ;;  %v12077_v32 = vld [vmem:[#allocation5 + $0x560] ss:$16 sps:$4 sm:$0xff]  }
 0x3cd   :  { %9138 = vmatprep.subr.bf16.mxu1 %v12028_v40  ;;  %v12080_v0 = vld [vmem:[#allocation5 + $0x760] ss:$16 sps:$4 sm:$0xff]   ;;  %v12085_v24 = vld [vmem:[#allocation5 + $0x544] ss:$16 sps:$4 sm:$0xff]  }
 0x3ce   :  { %v12088_v38 = vld [vmem:[#allocation5 + $0x744] ss:$16 sps:$4 sm:$0xff]   ;;  %v12083_v47 = vld [vmem:[#allocation5 + $0x540] ss:$16 sps:$4 sm:$0xff]  }
 0x3cf   :  { %9098 = vmatpush1.bf16.msra.mxu0 %v12023_v41  ;;  %v12086_v40 = vld [vmem:[#allocation5 + $0x740] ss:$16 sps:$4 sm:$0xff]   ;;  %v12091_v41 = vld [vmem:[#allocation5 + $0x524] ss:$16 sps:$4 sm:$0xff]  }
 0x3d0   :  { %9139 = vmatpush1.bf16.msra.mxu1 %v12026_v43  ;;  %9099 = vmatprep.subr.bf16.mxu0 %v12031_v45  ;;  %v12094_v43 = vld [vmem:[#allocation5 + $0x724] ss:$16 sps:$4 sm:$0xff]   ;;  %v12089_v45 = vld [vmem:[#allocation5 + $0x520] ss:$16 sps:$4 sm:$0xff]  }
 0x3d1   :  { %9140 = vmatprep.subr.bf16.mxu1 %v12034_v16  ;;  %v12092_v16 = vld [vmem:[#allocation5 + $0x720] ss:$16 sps:$4 sm:$0xff]  }
 0x3d3   :  { %9100 = vmatpush1.bf16.msra.mxu0 %v12029_v46  ;;  %v12097_v46 = vld [vmem:[#allocation5 + $0x504] ss:$16 sps:$4 sm:$0xff]  }
 0x3d4   :  { %9141 = vmatpush1.bf16.msra.mxu1 %v12032_v63  ;;  %9101 = vmatprep.subr.bf16.mxu0 %v12037_v49  ;;  %v12100_v63 = vld [vmem:[#allocation5 + $0x704] ss:$16 sps:$4 sm:$0xff]   ;;  %v12095_v49 = vld [vmem:[#allocation5 + $0x500] ss:$16 sps:$4 sm:$0xff]  }
 0x3d5   :  { %9142 = vmatprep.subr.bf16.mxu1 %v12040_v50  ;;  %v5887_v50 = vmax.f32 %v13276_v56, 0.0 }
 0x3d7   :  { %9102 = vmatpush1.bf16.msra.mxu0 %v12035_v52  ;;  %v12098_v52 = vld [vmem:[#allocation5 + $0x700] ss:$16 sps:$4 sm:$0xff]  }
 0x3d8   :  { %9143 = vmatpush1.bf16.msra.mxu1 %v12038_v53  ;;  %9103 = vmatprep.subr.bf16.mxu0 %v12043_v54  ;;  %v12103_v53 = vld [vmem:[#allocation5 + $0x8e4] ss:$16 sps:$4 sm:$0xff]   ;;  %v5889_v54 = vmax.f32 %v13298_v20, 0.0 }
 0x3d9   :  { %9144 = vmatprep.subr.bf16.mxu1 %v12046_v55  ;;  %v12106_v55 = vld [vmem:[#allocation5 + $0xae4] ss:$16 sps:$4 sm:$0xff]  }
 0x3da   :  { %v13386_v56 = vpack.c.bf16 %v5889_v54, %v5889_v54  ;;  %v12151_v54 = vld [vmem:[#allocation5 + $0x9e4] ss:$16 sps:$4 sm:$0xff]  }
 0x3db   :  { %9104 = vmatpush1.bf16.msra.mxu0 %v12041_v57  ;;  %v5892_v57 = vmax.f32 %v13326_v23, 0.0 }
 0x3dc   :  { %9145 = vmatpush1.bf16.msra.mxu1 %v12044_v4  ;;  %9105 = vmatprep.subr.bf16.mxu0 %v12049_v58  ;;  %v5894_v4 = vmax.f32 %v13350_v39, 0.0  ;;  %v12101_v58 = vld [vmem:[#allocation5 + $0x8e0] ss:$16 sps:$4 sm:$0xff]  }
 0x3dd   :  { %9146 = vmatprep.subr.bf16.mxu1 %v12052_v60  ;;  %v13384_v60 = vpack.c.bf16 %v5887_v50, %v5887_v50  ;;  %v12148_v50 = vld [vmem:[#allocation5 + $0xa04] ss:$16 sps:$4 sm:$0xff]  }
 0x3de   :  { %v13391_v23 = vpack.c.bf16 %v5894_v4, %v5894_v4  ;;  %v12152_v4 = vld [vmem:[#allocation5 + $0xbe0] ss:$16 sps:$4 sm:$0xff]  }
 0x3df   :  { %9106 = vmatpush1.bf16.msra.mxu0 %v12047_v33  ;;  %v12104_v33 = vld [vmem:[#allocation5 + $0xae0] ss:$16 sps:$4 sm:$0xff]  }
 0x3e0   :  { %9147 = vmatpush1.bf16.msra.mxu1 %v12050_v1  ;;  %9107 = vmatprep.subr.bf16.mxu0 %v12055_v6  ;;  %v12109_v1 = vld [vmem:[#allocation5 + $0x8c4] ss:$16 sps:$4 sm:$0xff]   ;;  %v13388_v6 = vpack.c.bf16 %v5892_v57, %v5892_v57  ;;  %v12149_v57 = vld [vmem:[#allocation5 + $0x9e0] ss:$16 sps:$4 sm:$0xff]  }
 0x3e1   :  { %9148 = vmatprep.subr.bf16.mxu1 %v12058_v3  ;;  %v12112_v3 = vld [vmem:[#allocation5 + $0xac4] ss:$16 sps:$4 sm:$0xff]  }
 0x3e3   :  { %9108 = vmatpush2.bf16.msra.mxu0 %v12053_v10 }
 0x3e4   :  { %9149 = vmatpush2.bf16.msra.mxu1 %v12056_v61  ;;  %9109 = vmatprep.subr.bf16.mxu0 %v12061_v35  ;;  %v12107_v61 = vld [vmem:[#allocation5 + $0x8c0] ss:$16 sps:$4 sm:$0xff]  }
 0x3e5   :  { %9150 = vmatprep.subr.bf16.mxu1 %v12064_v5  ;;  %v12110_v5 = vld [vmem:[#allocation5 + $0xac0] ss:$16 sps:$4 sm:$0xff]  }
 0x3e7   :  { %9110 = vmatpush2.bf16.msra.mxu0 %v12059_v48  ;;  %v12115_v48 = vld [vmem:[#allocation5 + $0x8a4] ss:$16 sps:$4 sm:$0xff]  }
 0x3e8   :  { %9151 = vmatpush2.bf16.msra.mxu1 %v12062_v19  ;;  %9111 = vmatprep.subr.bf16.mxu0 %v12067_v11 }
 0x3e9   :  { %9152 = vmatprep.subr.bf16.mxu1 %v12070_v25 }
 0x3eb   :  { %9112 = vmatpush2.bf16.msra.mxu0 %v12065_v26  ;;  %v12113_v26 = vld [vmem:[#allocation5 + $0x8a0] ss:$16 sps:$4 sm:$0xff]  }
 0x3ec   :  { %9153 = vmatpush2.bf16.msra.mxu1 %v12068_v34  ;;  %9113 = vmatprep.subr.bf16.mxu0 %v12073_v17  ;;  %v12116_v17 = vld [vmem:[#allocation5 + $0xaa0] ss:$16 sps:$4 sm:$0xff]  }
 0x3ed   :  { %9154 = vmatprep.subr.bf16.mxu1 %v12076_v13  ;;  %v12121_v13 = vld [vmem:[#allocation5 + $0x884] ss:$16 sps:$4 sm:$0xff]  }
 0x3ef   :  { %9114 = vmatpush2.bf16.msra.mxu0 %v12071_v29 }
 0x3f0   :  { %9155 = vmatpush2.bf16.msra.mxu1 %v12074_v62  ;;  %9115 = vmatprep.subr.bf16.mxu0 %v12079_v14  ;;  %v12124_v62 = vld [vmem:[#allocation5 + $0xa84] ss:$16 sps:$4 sm:$0xff]   ;;  %v12119_v14 = vld [vmem:[#allocation5 + $0x880] ss:$16 sps:$4 sm:$0xff]  }
 0x3f1   :  { %9156 = vmatprep.subr.bf16.mxu1 %v12082_v31  ;;  %v12122_v31 = vld [vmem:[#allocation5 + $0xa80] ss:$16 sps:$4 sm:$0xff]  }
 0x3f3   :  { %9116 = vmatpush2.bf16.msra.mxu0 %v12077_v32  ;;  %v12127_v32 = vld [vmem:[#allocation5 + $0x864] ss:$16 sps:$4 sm:$0xff]  }
 0x3f4   :  { %9157 = vmatpush2.bf16.msra.mxu1 %v12080_v0  ;;  %9117 = vmatprep.subr.bf16.mxu0 %v12085_v24  ;;  %v12130_v0 = vld [vmem:[#allocation5 + $0xa64] ss:$16 sps:$4 sm:$0xff]   ;;  %v12125_v24 = vld [vmem:[#allocation5 + $0x860] ss:$16 sps:$4 sm:$0xff]  }
 0x3f5   :  { %9158 = vmatprep.subr.bf16.mxu1 %v12088_v38  ;;  %v12128_v38 = vld [vmem:[#allocation5 + $0xa60] ss:$16 sps:$4 sm:$0xff]  }
 0x3f7   :  { %9118 = vmatpush2.bf16.msra.mxu0 %v12083_v47  ;;  %v12133_v47 = vld [vmem:[#allocation5 + $0x844] ss:$16 sps:$4 sm:$0xff]  }
 0x3f8   :  { %9159 = vmatpush2.bf16.msra.mxu1 %v12086_v40  ;;  %9119 = vmatprep.subr.bf16.mxu0 %v12091_v41  ;;  %v12136_v40 = vld [vmem:[#allocation5 + $0xa44] ss:$16 sps:$4 sm:$0xff]   ;;  %v12131_v41 = vld [vmem:[#allocation5 + $0x840] ss:$16 sps:$4 sm:$0xff]  }
 0x3f9   :  { %9160 = vmatprep.subr.bf16.mxu1 %v12094_v43  ;;  %v12134_v43 = vld [vmem:[#allocation5 + $0xa40] ss:$16 sps:$4 sm:$0xff]  }
 0x3fb   :  { %9120 = vmatpush2.bf16.msra.mxu0 %v12089_v45  ;;  %v12139_v45 = vld [vmem:[#allocation5 + $0x824] ss:$16 sps:$4 sm:$0xff]  }
 0x3fc   :  { %9161 = vmatpush2.bf16.msra.mxu1 %v12092_v16  ;;  %9121 = vmatprep.subr.bf16.mxu0 %v12097_v46  ;;  %v12142_v16 = vld [vmem:[#allocation5 + $0xa24] ss:$16 sps:$4 sm:$0xff]   ;;  %v12137_v46 = vld [vmem:[#allocation5 + $0x820] ss:$16 sps:$4 sm:$0xff]  }
 0x3fd   :  { %9162 = vmatprep.subr.bf16.mxu1 %v12100_v63  ;;  %v12140_v63 = vld [vmem:[#allocation5 + $0xa20] ss:$16 sps:$4 sm:$0xff]  }
 0x3ff   :  { %9122 = vmatpush2.bf16.msra.mxu0 %v12095_v49  ;;  %v12145_v49 = vld [vmem:[#allocation5 + $0x804] ss:$16 sps:$4 sm:$0xff]  }
 0x400   :  { %9163 = vmatpush2.bf16.msra.mxu1 %v12098_v52  ;;  %9173 = vmatprep.subr.bf16.mxu0 %v12103_v53  ;;  %v12143_v52 = vld [vmem:[#allocation5 + $0x800] ss:$16 sps:$4 sm:$0xff]  }
 0x401   :  { %9214 = vmatprep.subr.bf16.mxu1 %v12106_v55  ;;  %v12146_v53 = vld [vmem:[#allocation5 + $0xa00] ss:$16 sps:$4 sm:$0xff]   ;;  %v12154_v55 = vld [vmem:[#allocation5 + $0xbe4] ss:$16 sps:$4 sm:$0xff]  }
 0x402   :  { %v5753_v20 = vpop.f32.mrf.mxu0  ;;  %9124 = vmatmul.mubr.bf16.vlgmr.msra.gmra.mxu0 %v13384_v60 }
 0x403   :  { %v13394_v39 = vadd.f32 %v5753_v20, %v13375_v8  ;;  %v13396_v10 = vpop.f32.mrf.mxu1  ;;  %9165 = vmatmul.mubr.bf16.vlgmr.msra.gmra.mxu1 %v13386_v56  ;;  %9174 = vmatpush1.bf16.msra.mxu0 %v12101_v58  ;;  %v12118_v8 = vld [vmem:[#allocation5 + $0xaa4] ss:$16 sps:$4 sm:$0xff]   ;;  %v12158_v20 = vld [vmem:[#allocation5 + $0xbc0] ss:$16 sps:$4 sm:$0xff]  }
 0x404   :  { %9205 = vmatprep.mubr.bf16.mxu0 %v13388_v6  ;;  %9215 = vmatpush1.bf16.msra.mxu1 %v12104_v33  ;;  %v13400_v35 = vpop.f32.mrf.mxu0  ;;  %v12157_v58 = vld [vmem:[#allocation5 + $0x9c4] ss:$16 sps:$4 sm:$0xff]  }
 0x405   :  { %9246 = vmatprep.mubr.bf16.mxu1 %v13391_v23  ;;  %v13403_v19 = vpop.f32.mrf.mxu1  ;;  %9175 = vmatprep.subr.bf16.mxu0 %v12109_v1  ;;  %v12160_v33 = vld [vmem:[#allocation5 + $0xbc4] ss:$16 sps:$4 sm:$0xff]   ;;  %v12155_v1 = vld [vmem:[#allocation5 + $0x9c0] ss:$16 sps:$4 sm:$0xff]  }
 0x406   :  { %v5757_v11 = vpop.f32.mrf.mxu0  ;;  %9216 = vmatprep.subr.bf16.mxu1 %v12112_v3  ;;  %v12163_v3 = vld [vmem:[#allocation5 + $0x9a4] ss:$16 sps:$4 sm:$0xff]  }
 0x407   :  { %v5798_v25 = vpop.f32.mrf.mxu1  ;;  %9176 = vmatpush1.bf16.msra.mxu0 %v12107_v61  ;;  %v12166_v61 = vld [vmem:[#allocation5 + $0xba4] ss:$16 sps:$4 sm:$0xff]  }
 0x408   :  { %9217 = vmatpush1.bf16.msra.mxu1 %v12110_v5  ;;  %v5758_v34 = vpop.f32.mrf.mxu0  ;;  %9177 = vmatprep.subr.bf16.mxu0 %v12115_v48  ;;  %v12161_v5 = vld [vmem:[#allocation5 + $0x9a0] ss:$16 sps:$4 sm:$0xff]   ;;  %v12172_v11 = vld [vmem:[#allocation5 + $0xb84] ss:$16 sps:$4 sm:$0xff]  }
 0x409   :  { %v5799_v29 = vpop.f32.mrf.mxu1  ;;  %9218 = vmatprep.subr.bf16.mxu1 %v12118_v8  ;;  %v12164_v48 = vld [vmem:[#allocation5 + $0xba0] ss:$16 sps:$4 sm:$0xff]   ;;  %v12169_v8 = vld [vmem:[#allocation5 + $0x984] ss:$16 sps:$4 sm:$0xff]  }
 0x40a   :  { %v12167_v25 = vld [vmem:[#allocation5 + $0x980] ss:$16 sps:$4 sm:$0xff]   ;;  %v12175_v34 = vld [vmem:[#allocation5 + $0x964] ss:$16 sps:$4 sm:$0xff]  }
 0x40b   :  { %9178 = vmatpush1.bf16.msra.mxu0 %v12113_v26  ;;  %v12170_v26 = vld [vmem:[#allocation5 + $0xb80] ss:$16 sps:$4 sm:$0xff]  }
 0x40c   :  { %9219 = vmatpush1.bf16.msra.mxu1 %v12116_v17  ;;  %9179 = vmatprep.subr.bf16.mxu0 %v12121_v13  ;;  %v12178_v17 = vld [vmem:[#allocation5 + $0xb64] ss:$16 sps:$4 sm:$0xff]   ;;  %v12173_v13 = vld [vmem:[#allocation5 + $0x960] ss:$16 sps:$4 sm:$0xff]  }
 0x40d   :  { %9220 = vmatprep.subr.bf16.mxu1 %v12124_v62  ;;  %v12176_v29 = vld [vmem:[#allocation5 + $0xb60] ss:$16 sps:$4 sm:$0xff]   ;;  %v12181_v62 = vld [vmem:[#allocation5 + $0x944] ss:$16 sps:$4 sm:$0xff]  }
 0x40f   :  { %9180 = vmatpush1.bf16.msra.mxu0 %v12119_v14  ;;  %v12184_v14 = vld [vmem:[#allocation5 + $0xb44] ss:$16 sps:$4 sm:$0xff]  }
 0x410   :  { %9221 = vmatpush1.bf16.msra.mxu1 %v12122_v31  ;;  %9181 = vmatprep.subr.bf16.mxu0 %v12127_v32  ;;  %v12179_v31 = vld [vmem:[#allocation5 + $0x940] ss:$16 sps:$4 sm:$0xff]  }
 0x411   :  { %9222 = vmatprep.subr.bf16.mxu1 %v12130_v0  ;;  %v12182_v32 = vld [vmem:[#allocation5 + $0xb40] ss:$16 sps:$4 sm:$0xff]   ;;  %v12187_v0 = vld [vmem:[#allocation5 + $0x924] ss:$16 sps:$4 sm:$0xff]  }
 0x413   :  { %9182 = vmatpush1.bf16.msra.mxu0 %v12125_v24  ;;  %v12190_v24 = vld [vmem:[#allocation5 + $0xb24] ss:$16 sps:$4 sm:$0xff]  }
 0x414   :  { %9223 = vmatpush1.bf16.msra.mxu1 %v12128_v38  ;;  %9183 = vmatprep.subr.bf16.mxu0 %v12133_v47  ;;  %v12185_v38 = vld [vmem:[#allocation5 + $0x920] ss:$16 sps:$4 sm:$0xff]  }
 0x415   :  { %9224 = vmatprep.subr.bf16.mxu1 %v12136_v40  ;;  %v12188_v47 = vld [vmem:[#allocation5 + $0xb20] ss:$16 sps:$4 sm:$0xff]   ;;  %v12193_v40 = vld [vmem:[#allocation5 + $0x904] ss:$16 sps:$4 sm:$0xff]  }
 0x417   :  { %9184 = vmatpush1.bf16.msra.mxu0 %v12131_v41  ;;  %v12196_v41 = vld [vmem:[#allocation5 + $0xb04] ss:$16 sps:$4 sm:$0xff]  }
 0x418   :  { %9225 = vmatpush1.bf16.msra.mxu1 %v12134_v43  ;;  %9185 = vmatprep.subr.bf16.mxu0 %v12139_v45  ;;  %v5756_v43 = vadd.f32 %v13400_v35, %v13378_v30  ;;  %v12191_v45 = vld [vmem:[#allocation5 + $0x900] ss:$16 sps:$4 sm:$0xff]  }
 0x419   :  { %9226 = vmatprep.subr.bf16.mxu1 %v12142_v16  ;;  %v5891_v16 = vmax.f32 %v13320_v2, 0.0  ;;  %v12200_v2 = vld [vmem:[#allocation5 + $0xee0] ss:$16 sps:$4 sm:$0xff]  }
 0x41b   :  { %9186 = vmatpush1.bf16.msra.mxu0 %v12137_v46  ;;  %v12194_v46 = vld [vmem:[#allocation5 + $0xb00] ss:$16 sps:$4 sm:$0xff]   ;;  %v13412_v30 = vpack.c.bf16 %v5891_v16, %v5891_v16  ;;  %v12235_v16 = vld [vmem:[#allocation5 + $0xc24] ss:$16 sps:$4 sm:$0xff]  }
 0x41c   :  { %9227 = vmatpush1.bf16.msra.mxu1 %v12140_v63  ;;  %9187 = vmatprep.subr.bf16.mxu0 %v12145_v49  ;;  %v12199_v63 = vld [vmem:[#allocation5 + $0xce4] ss:$16 sps:$4 sm:$0xff]   ;;  %v5893_v49 = vmax.f32 %v13347_v37, 0.0 }
 0x41d   :  { %9228 = vmatprep.subr.bf16.mxu1 %v12148_v50  ;;  %v12202_v50 = vld [vmem:[#allocation5 + $0xee4] ss:$16 sps:$4 sm:$0xff]  }
 0x41e   :  { %v13414_v35 = vpack.c.bf16 %v5893_v49, %v5893_v49  ;;  %v12236_v49 = vld [vmem:[#allocation5 + $0xe20] ss:$16 sps:$4 sm:$0xff]  }
 0x41f   :  { %9188 = vmatpush1.bf16.msra.mxu0 %v12143_v52  ;;  %v5896_v52 = vmax.f32 %v5756_v43, 0.0  ;;  %v12227_v43 = vld [vmem:[#allocation5 + $0xc40] ss:$16 sps:$4 sm:$0xff]  }
 0x420   :  { %9229 = vmatpush1.bf16.msra.mxu1 %v12146_v53  ;;  %9189 = vmatprep.subr.bf16.mxu0 %v12151_v54  ;;  %v1042_v53 = vrot.slane %v13356_v18, %v1009_v42  ;;  %v12197_v54 = vld [vmem:[#allocation5 + $0xce0] ss:$16 sps:$4 sm:$0xff]  }
 0x421   :  { %9230 = vmatprep.subr.bf16.mxu1 %v12154_v55  ;;  %v12205_v55 = vld [vmem:[#allocation5 + $0xcc4] ss:$16 sps:$4 sm:$0xff]   ;;  %v13416_v37 = vpack.c.bf16 %v5896_v52, %v5896_v52 }
 0x422   :  { %v5797_v42 = vadd.f32 %v13403_v19, %v1042_v53  ;;  %v12244_v52 = vld [vmem:[#allocation5 + $0xe04] ss:$16 sps:$4 sm:$0xff]   ;;  %v12239_v53 = vld [vmem:[#allocation5 + $0xc00] ss:$16 sps:$4 sm:$0xff]  }
 0x423   :  { %9190 = vmatpush2.bf16.msra.mxu0 %v12149_v57  ;;  %v12208_v57 = vld [vmem:[#allocation5 + $0xec4] ss:$16 sps:$4 sm:$0xff]  }
 0x424   :  { %9231 = vmatpush2.bf16.msra.mxu1 %v12152_v4  ;;  %9191 = vmatprep.subr.bf16.mxu0 %v12157_v58 }
 0x425   :  { %9232 = vmatprep.subr.bf16.mxu1 %v12160_v33  ;;  %v12203_v33 = vld [vmem:[#allocation5 + $0xcc0] ss:$16 sps:$4 sm:$0xff]  }
 0x427   :  { %9192 = vmatpush2.bf16.msra.mxu0 %v12155_v1 }
 0x428   :  { %9233 = vmatpush2.bf16.msra.mxu1 %v12158_v20  ;;  %9193 = vmatprep.subr.bf16.mxu0 %v12163_v3  ;;  %v12206_v20 = vld [vmem:[#allocation5 + $0xec0] ss:$16 sps:$4 sm:$0xff]   ;;  %v12211_v3 = vld [vmem:[#allocation5 + $0xca4] ss:$16 sps:$4 sm:$0xff]  }
 0x429   :  { %9234 = vmatprep.subr.bf16.mxu1 %v12166_v61 }
 0x42b   :  { %9194 = vmatpush2.bf16.msra.mxu0 %v12161_v5 }
 0x42c   :  { %9235 = vmatpush2.bf16.msra.mxu1 %v12164_v48  ;;  %9195 = vmatprep.subr.bf16.mxu0 %v12169_v8  ;;  %v12214_v48 = vld [vmem:[#allocation5 + $0xea4] ss:$16 sps:$4 sm:$0xff]  }
 0x42d   :  { %9236 = vmatprep.subr.bf16.mxu1 %v12172_v11 }
 0x42f   :  { %9196 = vmatpush2.bf16.msra.mxu0 %v12167_v25  ;;  %v12209_v25 = vld [vmem:[#allocation5 + $0xca0] ss:$16 sps:$4 sm:$0xff]  }
 0x430   :  { %9237 = vmatpush2.bf16.msra.mxu1 %v12170_v26  ;;  %9197 = vmatprep.subr.bf16.mxu0 %v12175_v34  ;;  %v12212_v34 = vld [vmem:[#allocation5 + $0xea0] ss:$16 sps:$4 sm:$0xff]  }
 0x431   :  { %9238 = vmatprep.subr.bf16.mxu1 %v12178_v17  ;;  %v12217_v17 = vld [vmem:[#allocation5 + $0xc84] ss:$16 sps:$4 sm:$0xff]  }
 0x433   :  { %9198 = vmatpush2.bf16.msra.mxu0 %v12173_v13 }
 0x434   :  { %9239 = vmatpush2.bf16.msra.mxu1 %v12176_v29  ;;  %9199 = vmatprep.subr.bf16.mxu0 %v12181_v62  ;;  %v12220_v62 = vld [vmem:[#allocation5 + $0xe84] ss:$16 sps:$4 sm:$0xff]  }
 0x435   :  { %9240 = vmatprep.subr.bf16.mxu1 %v12184_v14 }
 0x437   :  { %9200 = vmatpush2.bf16.msra.mxu0 %v12179_v31  ;;  %v12215_v31 = vld [vmem:[#allocation5 + $0xc80] ss:$16 sps:$4 sm:$0xff]  }
 0x438   :  { %9241 = vmatpush2.bf16.msra.mxu1 %v12182_v32  ;;  %9201 = vmatprep.subr.bf16.mxu0 %v12187_v0  ;;  %v12218_v32 = vld [vmem:[#allocation5 + $0xe80] ss:$16 sps:$4 sm:$0xff]   ;;  %v12223_v0 = vld [vmem:[#allocation5 + $0xc64] ss:$16 sps:$4 sm:$0xff]  }
 0x439   :  { %9242 = vmatprep.subr.bf16.mxu1 %v12190_v24  ;;  %v12226_v24 = vld [vmem:[#allocation5 + $0xe64] ss:$16 sps:$4 sm:$0xff]  }
 0x43b   :  { %9202 = vmatpush2.bf16.msra.mxu0 %v12185_v38  ;;  %v12221_v38 = vld [vmem:[#allocation5 + $0xc60] ss:$16 sps:$4 sm:$0xff]  }
 0x43c   :  { %9243 = vmatpush2.bf16.msra.mxu1 %v12188_v47  ;;  %9203 = vmatprep.subr.bf16.mxu0 %v12193_v40  ;;  %v12224_v47 = vld [vmem:[#allocation5 + $0xe60] ss:$16 sps:$4 sm:$0xff]   ;;  %v12229_v40 = vld [vmem:[#allocation5 + $0xc44] ss:$16 sps:$4 sm:$0xff]  }
 0x43d   :  { %9244 = vmatprep.subr.bf16.mxu1 %v12196_v41  ;;  %v12232_v41 = vld [vmem:[#allocation5 + $0xe44] ss:$16 sps:$4 sm:$0xff]  }
 0x43f   :  { %9204 = vmatpush2.bf16.msra.mxu0 %v12191_v45  ;;  %v12230_v45 = vld [vmem:[#allocation5 + $0xe40] ss:$16 sps:$4 sm:$0xff]  }
 0x440   :  { %9245 = vmatpush2.bf16.msra.mxu1 %v12194_v46  ;;  %9255 = vmatprep.subr.bf16.mxu0 %v12199_v63  ;;  %v12238_v46 = vld [vmem:[#allocation5 + $0xe24] ss:$16 sps:$4 sm:$0xff]   ;;  %v12233_v63 = vld [vmem:[#allocation5 + $0xc20] ss:$16 sps:$4 sm:$0xff]  }
 0x441   :  { %9296 = vmatprep.subr.bf16.mxu1 %v12202_v50  ;;  %v12241_v50 = vld [vmem:[#allocation5 + $0xc04] ss:$16 sps:$4 sm:$0xff]  }
 0x442   :  { %v13418_v4 = vpop.f32.mrf.mxu0  ;;  %9206 = vmatmul.mubr.bf16.vlgmr.msra.gmra.mxu0 %v13412_v30 }
 0x443   :  { %v13422_v58 = vpop.f32.mrf.mxu1  ;;  %9247 = vmatmul.mubr.bf16.vlgmr.msra.gmra.mxu1 %v13414_v35  ;;  %9256 = vmatpush1.bf16.msra.mxu0 %v12197_v54  ;;  %v12242_v54 = vld [vmem:[#allocation5 + $0xe00] ss:$16 sps:$4 sm:$0xff]  }
 0x444   :  { %9287 = vmatprep.mubr.bf16.mxu0 %v13416_v37  ;;  %9297 = vmatpush1.bf16.msra.mxu1 %v12200_v2  ;;  %v5837_v1 = vpop.f32.mrf.mxu0  ;;  %v12247_v2 = vld [vmem:[#allocation5 + $0xde4] ss:$16 sps:$4 sm:$0xff]  }
 0x445   :  { %v5838_v61 = vadd.f32 %v5837_v1, %v5797_v42  ;;  %v5878_v5 = vpop.f32.mrf.mxu1  ;;  %9257 = vmatprep.subr.bf16.mxu0 %v12205_v55  ;;  %9298 = vmatprep.subr.bf16.mxu1 %v12208_v57  ;;  %v12250_v55 = vld [vmem:[#allocation5 + $0xfe4] ss:$16 sps:$4 sm:$0xff]   ;;  %v12245_v57 = vld [vmem:[#allocation5 + $0xde0] ss:$16 sps:$4 sm:$0xff]  }
 0x446   :  { %v5839_v8 = vpop.f32.mrf.mxu0  ;;  %v12248_v42 = vld [vmem:[#allocation5 + $0xfe0] ss:$16 sps:$4 sm:$0xff]   ;;  %v12256_v1 = vld [vmem:[#allocation5 + $0xfc4] ss:$16 sps:$4 sm:$0xff]  }
 0x447   :  { %v5879_v11 = vadd.f32 %v5878_v5, %v5838_v61  ;;  %v5880_v19 = vpop.f32.mrf.mxu1  ;;  %9258 = vmatpush1.bf16.msra.mxu0 %v12203_v33  ;;  %v12253_v33 = vld [vmem:[#allocation5 + $0xdc4] ss:$16 sps:$4 sm:$0xff]   ;;  %v12260_v8 = vld [vmem:[#allocation5 + $0xfa0] ss:$16 sps:$4 sm:$0xff]  }
 0x448   :  { %9299 = vmatpush1.bf16.msra.mxu1 %v12206_v20  ;;  %v5840_v26 = vpop.f32.mrf.mxu0  ;;  %9259 = vmatprep.subr.bf16.mxu0 %v12211_v3  ;;  %v12251_v20 = vld [vmem:[#allocation5 + $0xdc0] ss:$16 sps:$4 sm:$0xff]   ;;  %v12259_v61 = vld [vmem:[#allocation5 + $0xda4] ss:$16 sps:$4 sm:$0xff]  }
 0x449   :  { %v5898_v13 = vmax.f32 %v5879_v11, 0.0  ;;  %v5881_v29 = vpop.f32.mrf.mxu1  ;;  %9300 = vmatprep.subr.bf16.mxu1 %v12214_v48  ;;  %v12254_v3 = vld [vmem:[#allocation5 + $0xfc0] ss:$16 sps:$4 sm:$0xff]   ;;  %v12262_v5 = vld [vmem:[#allocation5 + $0xfa4] ss:$16 sps:$4 sm:$0xff]  }
 0x44a   :  { %v12257_v48 = vld [vmem:[#allocation5 + $0xda0] ss:$16 sps:$4 sm:$0xff]   ;;  %v12265_v11 = vld [vmem:[#allocation5 + $0xd84] ss:$16 sps:$4 sm:$0xff]  }
 0x44b   :  { %v13426_v14 = vpack.c.bf16 %v5898_v13, %v5898_v13  ;;  %9260 = vmatpush1.bf16.msra.mxu0 %v12209_v25  ;;  %v12268_v19 = vld [vmem:[#allocation5 + $0xf84] ss:$16 sps:$4 sm:$0xff]   ;;  %v12263_v25 = vld [vmem:[#allocation5 + $0xd80] ss:$16 sps:$4 sm:$0xff]   ;;  %v1038_v13 = vrot.slane %v13356_v18, %v1005_v36 }
 0x44c   :  { %9301 = vmatpush1.bf16.msra.mxu1 %v12212_v34  ;;  %9261 = vmatprep.subr.bf16.mxu0 %v12217_v17  ;;  %v12266_v26 = vld [vmem:[#allocation5 + $0xf80] ss:$16 sps:$4 sm:$0xff]   ;;  %v12271_v34 = vld [vmem:[#allocation5 + $0xd64] ss:$16 sps:$4 sm:$0xff]  }
 0x44d   :  { %9328 = vmatprep.mubr.bf16.mxu1 %v13426_v14  ;;  %9302 = vmatprep.subr.bf16.mxu1 %v12220_v62  ;;  %v12274_v17 = vld [vmem:[#allocation5 + $0xf64] ss:$16 sps:$4 sm:$0xff]   ;;  %v12269_v29 = vld [vmem:[#allocation5 + $0xd60] ss:$16 sps:$4 sm:$0xff]  }
 0x44e   :  { %v12272_v62 = vld [vmem:[#allocation5 + $0xf60] ss:$16 sps:$4 sm:$0xff]   ;;  %v12286_v36 = vld [vmem:[#allocation5 + $0xf24] ss:$16 sps:$4 sm:$0xff]  }
 0x44f   :  { %9262 = vmatpush1.bf16.msra.mxu0 %v12215_v31  ;;  %v12277_v31 = vld [vmem:[#allocation5 + $0xd44] ss:$16 sps:$4 sm:$0xff]   ;;  %v12281_v18 = vld [vmem:[#allocation5 + $0xd20] ss:$16 sps:$4 sm:$0xff]  }
 0x450   :  { %9303 = vmatpush1.bf16.msra.mxu1 %v12218_v32  ;;  %9263 = vmatprep.subr.bf16.mxu0 %v12223_v0  ;;  %v12280_v32 = vld [vmem:[#allocation5 + $0xf44] ss:$16 sps:$4 sm:$0xff]   ;;  %v5795_v0 = vadd.f32 %v13396_v10, %v1038_v13  ;;  %v12308_v13 = vld [vmem:[#allocation5 + $0x2a8] ss:$16 sps:$4 sm:$0xff]  }
 0x451   :  { %9304 = vmatprep.subr.bf16.mxu1 %v12226_v24  ;;  %v12275_v24 = vld [vmem:[#allocation5 + $0xd40] ss:$16 sps:$4 sm:$0xff]   ;;  %v12292_v10 = vld [vmem:[#allocation5 + $0xf04] ss:$16 sps:$4 sm:$0xff]  }
 0x452   :  { %v5836_v44 = vadd.f32 %v13418_v4, %v5795_v0  ;;  %v6427_v4 = vld [vmem:[#allocation13] sm:$0xf]  ;;  %v12319_v0 = vld [vmem:[#allocation5 + $0x6c] ss:$16 sps:$4 sm:$0xff]  }
 0x453   :  { %9264 = vmatpush1.bf16.msra.mxu0 %v12221_v38  ;;  %v12278_v38 = vld [vmem:[#allocation5 + $0xf40] ss:$16 sps:$4 sm:$0xff]  }
 0x454   :  { %9305 = vmatpush1.bf16.msra.mxu1 %v12224_v47  ;;  %9265 = vmatprep.subr.bf16.mxu0 %v12229_v40  ;;  %v12283_v47 = vld [vmem:[#allocation5 + $0xd24] ss:$16 sps:$4 sm:$0xff]   ;;  %v12284_v40 = vld [vmem:[#allocation5 + $0xf20] ss:$16 sps:$4 sm:$0xff]  }
 0x455   :  { %9306 = vmatprep.subr.bf16.mxu1 %v12232_v41  ;;  %v12289_v41 = vld [vmem:[#allocation5 + $0xd04] ss:$16 sps:$4 sm:$0xff]  }
 0x457   :  { %9266 = vmatpush1.bf16.msra.mxu0 %v12227_v43  ;;  %v5877_v43 = vadd.f32 %v13422_v58, %v5836_v44  ;;  %v12296_v58 = vld [vmem:[#allocation5 + $0x2e8] ss:$16 sps:$4 sm:$0xff]   ;;  %v12325_v44 = vld [vmem:[#allocation5 + $0x4c] ss:$16 sps:$4 sm:$0xff]  }
 0x458   :  { %9307 = vmatpush1.bf16.msra.mxu1 %v12230_v45  ;;  %9267 = vmatprep.subr.bf16.mxu0 %v12235_v16  ;;  %v12287_v45 = vld [vmem:[#allocation5 + $0xd00] ss:$16 sps:$4 sm:$0xff]  }
 0x459   :  { %9308 = vmatprep.subr.bf16.mxu1 %v12238_v46  ;;  %v12290_v16 = vld [vmem:[#allocation5 + $0xf00] ss:$16 sps:$4 sm:$0xff]   ;;  %v5895_v46 = vmax.f32 %v13394_v39, 0.0  ;;  %v6436_v39 = vrot.slane %v6427_v4, %v13210_v15 }
 0x45b   :  { %9268 = vmatpush1.bf16.msra.mxu0 %v12233_v63  ;;  %v12295_v63 = vld [vmem:[#allocation5 + $0xec] ss:$16 sps:$4 sm:$0xff]  }
 0x45c   :  { %9309 = vmatpush1.bf16.msra.mxu1 %v12236_v49  ;;  %9269 = vmatprep.subr.bf16.mxu0 %v12241_v50  ;;  %v5897_v49 = vmax.f32 %v5877_v43, 0.0  ;;  %v12298_v50 = vld [vmem:[#allocation5 + $0x2ec] ss:$16 sps:$4 sm:$0xff]  }
 0x45d   :  { %9310 = vmatprep.subr.bf16.mxu1 %v12244_v52  ;;  %v6432_v52 = vrot.slane %v6427_v4, %v13207_v7  ;;  %v12334_v43 = vld [vmem:[#allocation5 + $0x22c] ss:$16 sps:$4 sm:$0xff]   ;;  %v12335_v4 = vld [vmem:[#allocation5 + $0x8] ss:$16 sps:$4 sm:$0xff]  }
 0x45f   :  { %9270 = vmatpush1.bf16.msra.mxu0 %v12239_v53  ;;  %v12293_v53 = vld [vmem:[#allocation5 + $0xe8] ss:$16 sps:$4 sm:$0xff]  }
 0x460   :  { %9311 = vmatpush1.bf16.msra.mxu1 %v12242_v54  ;;  %9271 = vmatprep.subr.bf16.mxu0 %v12247_v2  ;;  %v13437_v54 = vpack.c.bf16 %v5895_v46, %v5895_v46  ;;  %v13439_v2 = vpack.c.bf16 %v5897_v49, %v5897_v49  ;;  %v12340_v46 = vld [vmem:[#allocation5 + $0x20c] ss:$16 sps:$4 sm:$0xff]  }
 0x461   :  { %9312 = vmatprep.subr.bf16.mxu1 %v12250_v55  ;;  %v12301_v55 = vld [vmem:[#allocation5 + $0xcc] ss:$16 sps:$4 sm:$0xff]  }
 0x462   :  { %v12343_v49 = vld [vmem:[#allocation5 + $0x1ec] ss:$16 sps:$4 sm:$0xff]  }
 0x463   :  { %9272 = vmatpush2.bf16.msra.mxu0 %v12245_v57 }
 0x464   :  { %9313 = vmatpush2.bf16.msra.mxu1 %v12248_v42  ;;  %9273 = vmatprep.subr.bf16.mxu0 %v12253_v33  ;;  %v12304_v42 = vld [vmem:[#allocation5 + $0x2cc] ss:$16 sps:$4 sm:$0xff]  }
 0x465   :  { %9314 = vmatprep.subr.bf16.mxu1 %v12256_v1 }
 0x467   :  { %9274 = vmatpush2.bf16.msra.mxu0 %v12251_v20  ;;  %v12299_v20 = vld [vmem:[#allocation5 + $0xc8] ss:$16 sps:$4 sm:$0xff]  }
 0x468   :  { %9315 = vmatpush2.bf16.msra.mxu1 %v12254_v3  ;;  %9275 = vmatprep.subr.bf16.mxu0 %v12259_v61  ;;  %v12302_v61 = vld [vmem:[#allocation5 + $0x2c8] ss:$16 sps:$4 sm:$0xff]  }
 0x469   :  { %9316 = vmatprep.subr.bf16.mxu1 %v12262_v5  ;;  %v12307_v5 = vld [vmem:[#allocation5 + $0xac] ss:$16 sps:$4 sm:$0xff]  }
 0x46b   :  { %9276 = vmatpush2.bf16.msra.mxu0 %v12257_v48 }
 0x46c   :  { %9317 = vmatpush2.bf16.msra.mxu1 %v12260_v8  ;;  %9277 = vmatprep.subr.bf16.mxu0 %v12265_v11 }
 0x46d   :  { %9318 = vmatprep.subr.bf16.mxu1 %v12268_v19  ;;  %v12310_v19 = vld [vmem:[#allocation5 + $0x2ac] ss:$16 sps:$4 sm:$0xff]  }
 0x46f   :  { %9278 = vmatpush2.bf16.msra.mxu0 %v12263_v25 }
 0x470   :  { %9319 = vmatpush2.bf16.msra.mxu1 %v12266_v26  ;;  %9279 = vmatprep.subr.bf16.mxu0 %v12271_v34 }
 0x471   :  { %9320 = vmatprep.subr.bf16.mxu1 %v12274_v17  ;;  %v12305_v17 = vld [vmem:[#allocation5 + $0xa8] ss:$16 sps:$4 sm:$0xff]  }
 0x473   :  { %9280 = vmatpush2.bf16.msra.mxu0 %v12269_v29  ;;  %v12313_v29 = vld [vmem:[#allocation5 + $0x8c] ss:$16 sps:$4 sm:$0xff]  }
 0x474   :  { %9321 = vmatpush2.bf16.msra.mxu1 %v12272_v62  ;;  %9281 = vmatprep.subr.bf16.mxu0 %v12277_v31  ;;  %v12316_v31 = vld [vmem:[#allocation5 + $0x28c] ss:$16 sps:$4 sm:$0xff]  }
 0x475   :  { %9322 = vmatprep.subr.bf16.mxu1 %v12280_v32  ;;  %v12314_v32 = vld [vmem:[#allocation5 + $0x288] ss:$16 sps:$4 sm:$0xff]  }
 0x477   :  { %9282 = vmatpush2.bf16.msra.mxu0 %v12275_v24  ;;  %v12322_v24 = vld [vmem:[#allocation5 + $0x26c] ss:$16 sps:$4 sm:$0xff]  }
 0x478   :  { %9323 = vmatpush2.bf16.msra.mxu1 %v12278_v38  ;;  %9283 = vmatprep.subr.bf16.mxu0 %v12283_v47  ;;  %v12317_v38 = vld [vmem:[#allocation5 + $0x68] ss:$16 sps:$4 sm:$0xff]  }
 0x479   :  { %9324 = vmatprep.subr.bf16.mxu1 %v12286_v36  ;;  %v12320_v47 = vld [vmem:[#allocation5 + $0x268] ss:$16 sps:$4 sm:$0xff]   ;;  %v12328_v36 = vld [vmem:[#allocation5 + $0x24c] ss:$16 sps:$4 sm:$0xff]  }
 0x47b   :  { %9284 = vmatpush2.bf16.msra.mxu0 %v12281_v18  ;;  %v12323_v18 = vld [vmem:[#allocation5 + $0x48] ss:$16 sps:$4 sm:$0xff]  }
 0x47c   :  { %9325 = vmatpush2.bf16.msra.mxu1 %v12284_v40  ;;  %9285 = vmatprep.subr.bf16.mxu0 %v12289_v41  ;;  %v12326_v40 = vld [vmem:[#allocation5 + $0x248] ss:$16 sps:$4 sm:$0xff]   ;;  %v12331_v41 = vld [vmem:[#allocation5 + $0x2c] ss:$16 sps:$4 sm:$0xff]  }
 0x47d   :  { %9326 = vmatprep.subr.bf16.mxu1 %v12292_v10  ;;  %v12329_v10 = vld [vmem:[#allocation5 + $0x28] ss:$16 sps:$4 sm:$0xff]  }
 0x47f   :  { %9286 = vmatpush2.bf16.msra.mxu0 %v12287_v45  ;;  %v12332_v45 = vld [vmem:[#allocation5 + $0x228] ss:$16 sps:$4 sm:$0xff]  }
 0x480   :  { %9327 = vmatpush2.bf16.msra.mxu1 %v12290_v16  ;;  %9337 = vmatprep.subr.bf16.mxu0 %v12295_v63  ;;  %v12337_v16 = vld [vmem:[#allocation5 + $0xc] ss:$16 sps:$4 sm:$0xff]   ;;  %v12338_v63 = vld [vmem:[#allocation5 + $0x208] ss:$16 sps:$4 sm:$0xff]  }
 0x481   :  { %9378 = vmatprep.subr.bf16.mxu1 %v12298_v50  ;;  %v12346_v50 = vld [vmem:[#allocation5 + $0x3ec] ss:$16 sps:$4 sm:$0xff]  }
 0x482   :  { %v9043_v57 = vpop.f32.mrf.mxu0  ;;  %9288 = vmatmul.mubr.bf16.vlgmr.msra.gmra.mxu0 %v13437_v54 }
 0x483   :  { %v9044_v33 = vadd.f32 %v9043_v57, %v6432_v52  ;;  %v9084_v1 = vpop.f32.mrf.mxu1  ;;  %9329 = vmatmul.mubr.bf16.vlgmr.msra.gmra.mxu1 %v13439_v2  ;;  %9338 = vmatpush1.bf16.msra.mxu0 %v12293_v53  ;;  %v12341_v52 = vld [vmem:[#allocation5 + $0x1e8] ss:$16 sps:$4 sm:$0xff]  }
 0x484   :  { %9369 = vmatprep.mubr.bf16.mxu0 %v13339_v51  ;;  %9379 = vmatpush1.bf16.msra.mxu1 %v12296_v58  ;;  %v9045_v3 = vpop.f32.mrf.mxu0  ;;  %v12344_v53 = vld [vmem:[#allocation5 + $0x3e8] ss:$16 sps:$4 sm:$0xff]   ;;  %v12349_v58 = vld [vmem:[#allocation5 + $0x1cc] ss:$16 sps:$4 sm:$0xff]  }
 0x485   :  { %v13445_v48 = vadd.f32 %v9084_v1, %v9044_v33  ;;  %9410 = vmatprep.mubr.bf16.mxu1 %v13342_v28  ;;  %v9046_v8 = vadd.f32 %v9045_v3, %v6436_v39  ;;  %v9086_v11 = vpop.f32.mrf.mxu1  ;;  %9339 = vmatprep.subr.bf16.mxu0 %v12301_v55  ;;  %v12311_v28 = vld [vmem:[#allocation5 + $0x88] ss:$16 sps:$4 sm:$0xff]   ;;  %v12352_v39 = vld [vmem:[#allocation5 + $0x3cc] ss:$16 sps:$4 sm:$0xff]  }
 0x486   :  { %v9047_v25 = vpop.f32.mrf.mxu0  ;;  %9380 = vmatprep.subr.bf16.mxu1 %v12304_v42  ;;  %v12347_v55 = vld [vmem:[#allocation5 + $0x1c8] ss:$16 sps:$4 sm:$0xff]   ;;  %v12355_v42 = vld [vmem:[#allocation5 + $0x1ac] ss:$16 sps:$4 sm:$0xff]  }
 0x487   :  { %v13448_v26 = vadd.f32 %v9086_v11, %v9046_v8  ;;  %v9088_v34 = vpop.f32.mrf.mxu1  ;;  %9340 = vmatpush1.bf16.msra.mxu0 %v12299_v20  ;;  %v12350_v57 = vld [vmem:[#allocation5 + $0x3c8] ss:$16 sps:$4 sm:$0xff]   ;;  %v12358_v33 = vld [vmem:[#allocation5 + $0x3ac] ss:$16 sps:$4 sm:$0xff]  }
 0x488   :  { %9381 = vmatpush1.bf16.msra.mxu1 %v12302_v61  ;;  %v9048_v51 = vpop.f32.mrf.mxu0  ;;  %9341 = vmatprep.subr.bf16.mxu0 %v12307_v5  ;;  %v12353_v1 = vld [vmem:[#allocation5 + $0x1a8] ss:$16 sps:$4 sm:$0xff]   ;;  %v12361_v3 = vld [vmem:[#allocation5 + $0x18c] ss:$16 sps:$4 sm:$0xff]  }
 0x489   :  { %v9089_v62 = vpop.f32.mrf.mxu1  ;;  %9382 = vmatprep.subr.bf16.mxu1 %v12310_v19  ;;  %v12356_v20 = vld [vmem:[#allocation5 + $0x3a8] ss:$16 sps:$4 sm:$0xff]   ;;  %v12364_v61 = vld [vmem:[#allocation5 + $0x38c] ss:$16 sps:$4 sm:$0xff]  }
 0x48a   :  { %v12359_v5 = vld [vmem:[#allocation5 + $0x188] ss:$16 sps:$4 sm:$0xff]   ;;  %v12367_v11 = vld [vmem:[#allocation5 + $0x16c] ss:$16 sps:$4 sm:$0xff]  }
 0x48b   :  { %9342 = vmatpush1.bf16.msra.mxu0 %v12305_v17  ;;  %v12362_v8 = vld [vmem:[#allocation5 + $0x388] ss:$16 sps:$4 sm:$0xff]   ;;  %v12370_v19 = vld [vmem:[#allocation5 + $0x36c] ss:$16 sps:$4 sm:$0xff]  }
 0x48c   :  { %9383 = vmatpush1.bf16.msra.mxu1 %v12308_v13  ;;  %9343 = vmatprep.subr.bf16.mxu0 %v12313_v29  ;;  %v12365_v25 = vld [vmem:[#allocation5 + $0x168] ss:$16 sps:$4 sm:$0xff]   ;;  %v12373_v17 = vld [vmem:[#allocation5 + $0x14c] ss:$16 sps:$4 sm:$0xff]  }
 0x48d   :  { %9384 = vmatprep.subr.bf16.mxu1 %v12316_v31  ;;  %v12368_v34 = vld [vmem:[#allocation5 + $0x368] ss:$16 sps:$4 sm:$0xff]   ;;  %v12376_v51 = vld [vmem:[#allocation5 + $0x34c] ss:$16 sps:$4 sm:$0xff]  }
 0x48e   :  { %v12371_v13 = vld [vmem:[#allocation5 + $0x148] ss:$16 sps:$4 sm:$0xff]   ;;  %v12379_v62 = vld [vmem:[#allocation5 + $0x12c] ss:$16 sps:$4 sm:$0xff]  }
 0x48f   :  { %9344 = vmatpush1.bf16.msra.mxu0 %v12311_v28  ;;  %v12374_v29 = vld [vmem:[#allocation5 + $0x348] ss:$16 sps:$4 sm:$0xff]   ;;  %v12382_v31 = vld [vmem:[#allocation5 + $0x32c] ss:$16 sps:$4 sm:$0xff]  }
 0x490   :  { %9385 = vmatpush1.bf16.msra.mxu1 %v12314_v32  ;;  %9345 = vmatprep.subr.bf16.mxu0 %v12319_v0  ;;  %v12377_v28 = vld [vmem:[#allocation5 + $0x128] ss:$16 sps:$4 sm:$0xff]   ;;  %v12385_v0 = vld [vmem:[#allocation5 + $0x10c] ss:$16 sps:$4 sm:$0xff]  }
 0x491   :  { %9386 = vmatprep.subr.bf16.mxu1 %v12322_v24  ;;  %v12380_v32 = vld [vmem:[#allocation5 + $0x328] ss:$16 sps:$4 sm:$0xff]   ;;  %v12388_v24 = vld [vmem:[#allocation5 + $0x30c] ss:$16 sps:$4 sm:$0xff]  }
 0x493   :  { %9346 = vmatpush1.bf16.msra.mxu0 %v12317_v38  ;;  %v12383_v38 = vld [vmem:[#allocation5 + $0x108] ss:$16 sps:$4 sm:$0xff]  }
 0x494   :  { %9387 = vmatpush1.bf16.msra.mxu1 %v12320_v47  ;;  %9347 = vmatprep.subr.bf16.mxu0 %v12325_v44  ;;  %v12386_v47 = vld [vmem:[#allocation5 + $0x308] ss:$16 sps:$4 sm:$0xff]   ;;  %v12391_v44 = vld [vmem:[#allocation5 + $0x4ec] ss:$16 sps:$4 sm:$0xff]  }
 0x495   :  { %9388 = vmatprep.subr.bf16.mxu1 %v12328_v36  ;;  %v12394_v36 = vld [vmem:[#allocation5 + $0x6ec] ss:$16 sps:$4 sm:$0xff]  }
 0x497   :  { %9348 = vmatpush1.bf16.msra.mxu0 %v12323_v18  ;;  %v12389_v18 = vld [vmem:[#allocation5 + $0x4e8] ss:$16 sps:$4 sm:$0xff]  }
 0x498   :  { %9389 = vmatpush1.bf16.msra.mxu1 %v12326_v40  ;;  %9349 = vmatprep.subr.bf16.mxu0 %v12331_v41  ;;  %v12392_v40 = vld [vmem:[#allocation5 + $0x6e8] ss:$16 sps:$4 sm:$0xff]   ;;  %v12397_v41 = vld [vmem:[#allocation5 + $0x4cc] ss:$16 sps:$4 sm:$0xff]  }
 0x499   :  { %9390 = vmatprep.subr.bf16.mxu1 %v12334_v43 }
 0x49b   :  { %9350 = vmatpush1.bf16.msra.mxu0 %v12329_v10  ;;  %v12400_v10 = vld [vmem:[#allocation5 + $0x6cc] ss:$16 sps:$4 sm:$0xff]  }
 0x49c   :  { %9391 = vmatpush1.bf16.msra.mxu1 %v12332_v45  ;;  %9351 = vmatprep.subr.bf16.mxu0 %v12337_v16 }
 0x49d   :  { %9392 = vmatprep.subr.bf16.mxu1 %v12340_v46  ;;  %v12395_v46 = vld [vmem:[#allocation5 + $0x4c8] ss:$16 sps:$4 sm:$0xff]  }
 0x49f   :  { %9352 = vmatpush1.bf16.msra.mxu0 %v12335_v4 }
 0x4a0   :  { %9393 = vmatpush1.bf16.msra.mxu1 %v12338_v63  ;;  %9353 = vmatprep.subr.bf16.mxu0 %v12343_v49  ;;  %v12398_v63 = vld [vmem:[#allocation5 + $0x6c8] ss:$16 sps:$4 sm:$0xff]   ;;  %v12403_v49 = vld [vmem:[#allocation5 + $0x4ac] ss:$16 sps:$4 sm:$0xff]  }
 0x4a1   :  { %9394 = vmatprep.subr.bf16.mxu1 %v12346_v50 }
 0x4a3   :  { %9354 = vmatpush2.bf16.msra.mxu0 %v12341_v52 }
 0x4a4   :  { %9395 = vmatpush2.bf16.msra.mxu1 %v12344_v53  ;;  %9355 = vmatprep.subr.bf16.mxu0 %v12349_v58 }
 0x4a5   :  { %9396 = vmatprep.subr.bf16.mxu1 %v12352_v39 }
 0x4a7   :  { %9356 = vmatpush2.bf16.msra.mxu0 %v12347_v55  ;;  %v12404_v55 = vld [vmem:[#allocation5 + $0x6a8] ss:$16 sps:$4 sm:$0xff]  }
 0x4a8   :  { %9397 = vmatpush2.bf16.msra.mxu1 %v12350_v57  ;;  %9357 = vmatprep.subr.bf16.mxu0 %v12355_v42  ;;  %v12409_v57 = vld [vmem:[#allocation5 + $0x48c] ss:$16 sps:$4 sm:$0xff]  }
 0x4a9   :  { %9398 = vmatprep.subr.bf16.mxu1 %v12358_v33  ;;  %v12410_v33 = vld [vmem:[#allocation5 + $0x688] ss:$16 sps:$4 sm:$0xff]  }
 0x4ab   :  { %9358 = vmatpush2.bf16.msra.mxu0 %v12353_v1  ;;  %v12415_v1 = vld [vmem:[#allocation5 + $0x46c] ss:$16 sps:$4 sm:$0xff]  }
 0x4ac   :  { %9399 = vmatpush2.bf16.msra.mxu1 %v12356_v20  ;;  %9359 = vmatprep.subr.bf16.mxu0 %v12361_v3  ;;  %v12418_v20 = vld [vmem:[#allocation5 + $0x66c] ss:$16 sps:$4 sm:$0xff]   ;;  %v12413_v3 = vld [vmem:[#allocation5 + $0x468] ss:$16 sps:$4 sm:$0xff]  }
 0x4ad   :  { %9400 = vmatprep.subr.bf16.mxu1 %v12364_v61  ;;  %v12416_v61 = vld [vmem:[#allocation5 + $0x668] ss:$16 sps:$4 sm:$0xff]  }
 0x4af   :  { %9360 = vmatpush2.bf16.msra.mxu0 %v12359_v5  ;;  %v12421_v5 = vld [vmem:[#allocation5 + $0x44c] ss:$16 sps:$4 sm:$0xff]  }
 0x4b0   :  { %9401 = vmatpush2.bf16.msra.mxu1 %v12362_v8  ;;  %9361 = vmatprep.subr.bf16.mxu0 %v12367_v11  ;;  %v12424_v8 = vld [vmem:[#allocation5 + $0x64c] ss:$16 sps:$4 sm:$0xff]   ;;  %v12419_v11 = vld [vmem:[#allocation5 + $0x448] ss:$16 sps:$4 sm:$0xff]  }
 0x4b1   :  { %9402 = vmatprep.subr.bf16.mxu1 %v12370_v19  ;;  %v12422_v19 = vld [vmem:[#allocation5 + $0x648] ss:$16 sps:$4 sm:$0xff]  }
 0x4b3   :  { %9362 = vmatpush2.bf16.msra.mxu0 %v12365_v25  ;;  %v12427_v25 = vld [vmem:[#allocation5 + $0x42c] ss:$16 sps:$4 sm:$0xff]  }
 0x4b4   :  { %9403 = vmatpush2.bf16.msra.mxu1 %v12368_v34  ;;  %9363 = vmatprep.subr.bf16.mxu0 %v12373_v17  ;;  %v12430_v34 = vld [vmem:[#allocation5 + $0x62c] ss:$16 sps:$4 sm:$0xff]   ;;  %v12425_v17 = vld [vmem:[#allocation5 + $0x428] ss:$16 sps:$4 sm:$0xff]  }
 0x4b5   :  { %9404 = vmatprep.subr.bf16.mxu1 %v12376_v51  ;;  %v12428_v51 = vld [vmem:[#allocation5 + $0x628] ss:$16 sps:$4 sm:$0xff]  }
 0x4b7   :  { %9364 = vmatpush2.bf16.msra.mxu0 %v12371_v13  ;;  %v12433_v13 = vld [vmem:[#allocation5 + $0x40c] ss:$16 sps:$4 sm:$0xff]  }
 0x4b8   :  { %9405 = vmatpush2.bf16.msra.mxu1 %v12374_v29  ;;  %9365 = vmatprep.subr.bf16.mxu0 %v12379_v62  ;;  %v12436_v29 = vld [vmem:[#allocation5 + $0x60c] ss:$16 sps:$4 sm:$0xff]   ;;  %v12431_v62 = vld [vmem:[#allocation5 + $0x408] ss:$16 sps:$4 sm:$0xff]  }
 0x4b9   :  { %9406 = vmatprep.subr.bf16.mxu1 %v12382_v31  ;;  %v12434_v31 = vld [vmem:[#allocation5 + $0x608] ss:$16 sps:$4 sm:$0xff]  }
 0x4bb   :  { %9366 = vmatpush2.bf16.msra.mxu0 %v12377_v28  ;;  %v12439_v28 = vld [vmem:[#allocation5 + $0x5ec] ss:$16 sps:$4 sm:$0xff]  }
 0x4bc   :  { %9407 = vmatpush2.bf16.msra.mxu1 %v12380_v32  ;;  %9367 = vmatprep.subr.bf16.mxu0 %v12385_v0  ;;  %v12442_v32 = vld [vmem:[#allocation5 + $0x7ec] ss:$16 sps:$4 sm:$0xff]   ;;  %v12437_v0 = vld [vmem:[#allocation5 + $0x5e8] ss:$16 sps:$4 sm:$0xff]  }
 0x4bd   :  { %9408 = vmatprep.subr.bf16.mxu1 %v12388_v24  ;;  %v12440_v24 = vld [vmem:[#allocation5 + $0x7e8] ss:$16 sps:$4 sm:$0xff]  }
 0x4bf   :  { %9368 = vmatpush2.bf16.msra.mxu0 %v12383_v38  ;;  %v12445_v38 = vld [vmem:[#allocation5 + $0x5cc] ss:$16 sps:$4 sm:$0xff]  }
 0x4c0   :  { %9409 = vmatpush2.bf16.msra.mxu1 %v12386_v47  ;;  %9419 = vmatprep.subr.bf16.mxu0 %v12391_v44  ;;  %v12448_v47 = vld [vmem:[#allocation5 + $0x7cc] ss:$16 sps:$4 sm:$0xff]   ;;  %v12443_v44 = vld [vmem:[#allocation5 + $0x5c8] ss:$16 sps:$4 sm:$0xff]  }
 0x4c1   :  { %9460 = vmatprep.subr.bf16.mxu1 %v12394_v36  ;;  %v12446_v36 = vld [vmem:[#allocation5 + $0x7c8] ss:$16 sps:$4 sm:$0xff]  }
 0x4c2   :  { %v9125_v43 = vpop.f32.mrf.mxu0  ;;  %9370 = vmatmul.mubr.bf16.vlgmr.msra.gmra.mxu0 %v13361_v9 }
 0x4c3   :  { %v9126_v45 = vadd.f32 %v9125_v43, %v13445_v48  ;;  %v9166_v16 = vpop.f32.mrf.mxu1  ;;  %9411 = vmatmul.mubr.bf16.vlgmr.msra.gmra.mxu1 %v13363_v59  ;;  %9420 = vmatpush1.bf16.msra.mxu0 %v12389_v18  ;;  %v12406_v48 = vld [vmem:[#allocation5 + $0x6ac] ss:$16 sps:$4 sm:$0xff]   ;;  %v12452_v43 = vld [vmem:[#allocation5 + $0x7a8] ss:$16 sps:$4 sm:$0xff]  }
 0x4c4   :  { %9451 = vmatprep.mubr.bf16.mxu0 %v13368_v12  ;;  %9461 = vmatpush1.bf16.msra.mxu1 %v12392_v40  ;;  %v9127_v4 = vpop.f32.mrf.mxu0  ;;  %v12401_v12 = vld [vmem:[#allocation5 + $0x4a8] ss:$16 sps:$4 sm:$0xff]   ;;  %v12451_v18 = vld [vmem:[#allocation5 + $0x5ac] ss:$16 sps:$4 sm:$0xff]  }
 0x4c5   :  { %v13454_v50 = vadd.f32 %v9166_v16, %v9126_v45  ;;  %9492 = vmatprep.mubr.bf16.mxu1 %v13371_v21  ;;  %v9128_v9 = vadd.f32 %v9127_v4, %v13448_v26  ;;  %v9168_v52 = vpop.f32.mrf.mxu1  ;;  %9421 = vmatprep.subr.bf16.mxu0 %v12397_v41  ;;  %v12412_v21 = vld [vmem:[#allocation5 + $0x68c] ss:$16 sps:$4 sm:$0xff]   ;;  %v12407_v26 = vld [vmem:[#allocation5 + $0x488] ss:$16 sps:$4 sm:$0xff]  }
 0x4c6   :  { %v9129_v53 = vpop.f32.mrf.mxu0  ;;  %9462 = vmatprep.subr.bf16.mxu1 %v12400_v10  ;;  %v12454_v40 = vld [vmem:[#allocation5 + $0x7ac] ss:$16 sps:$4 sm:$0xff]   ;;  %v12449_v41 = vld [vmem:[#allocation5 + $0x5a8] ss:$16 sps:$4 sm:$0xff]  }
 0x4c7   :  { %v13458_v59 = vadd.f32 %v9168_v52, %v9128_v9  ;;  %v9170_v58 = vpop.f32.mrf.mxu1  ;;  %9422 = vmatpush1.bf16.msra.mxu0 %v12395_v46  ;;  %v12457_v10 = vld [vmem:[#allocation5 + $0x58c] ss:$16 sps:$4 sm:$0xff]   ;;  %v12455_v16 = vld [vmem:[#allocation5 + $0x588] ss:$16 sps:$4 sm:$0xff]  }
 0x4c8   :  { %9463 = vmatpush1.bf16.msra.mxu1 %v12398_v63  ;;  %v9130_v39 = vpop.f32.mrf.mxu0  ;;  %9423 = vmatprep.subr.bf16.mxu0 %v12403_v49  ;;  %v12460_v45 = vld [vmem:[#allocation5 + $0x78c] ss:$16 sps:$4 sm:$0xff]   ;;  %v12458_v46 = vld [vmem:[#allocation5 + $0x788] ss:$16 sps:$4 sm:$0xff]  }
 0x4c9   :  { %v9171_v42 = vpop.f32.mrf.mxu1  ;;  %9464 = vmatprep.subr.bf16.mxu1 %v12406_v48  ;;  %v12463_v4 = vld [vmem:[#allocation5 + $0x56c] ss:$16 sps:$4 sm:$0xff]   ;;  %v12461_v49 = vld [vmem:[#allocation5 + $0x568] ss:$16 sps:$4 sm:$0xff]  }
 0x4ca   :  { %v12466_v63 = vld [vmem:[#allocation5 + $0x76c] ss:$16 sps:$4 sm:$0xff]   ;;  %v12464_v9 = vld [vmem:[#allocation5 + $0x768] ss:$16 sps:$4 sm:$0xff]  }
 0x4cb   :  { %9424 = vmatpush1.bf16.msra.mxu0 %v12401_v12  ;;  %v12469_v52 = vld [vmem:[#allocation5 + $0x54c] ss:$16 sps:$4 sm:$0xff]   ;;  %v12467_v53 = vld [vmem:[#allocation5 + $0x548] ss:$16 sps:$4 sm:$0xff]  }
 0x4cc   :  { %9465 = vmatpush1.bf16.msra.mxu1 %v12404_v55  ;;  %9425 = vmatprep.subr.bf16.mxu0 %v12409_v57  ;;  %v12472_v48 = vld [vmem:[#allocation5 + $0x74c] ss:$16 sps:$4 sm:$0xff]   ;;  %v12470_v58 = vld [vmem:[#allocation5 + $0x748] ss:$16 sps:$4 sm:$0xff]  }
 0x4cd   :  { %9466 = vmatprep.subr.bf16.mxu1 %v12412_v21  ;;  %v12475_v12 = vld [vmem:[#allocation5 + $0x52c] ss:$16 sps:$4 sm:$0xff]   ;;  %v12473_v55 = vld [vmem:[#allocation5 + $0x528] ss:$16 sps:$4 sm:$0xff]  }
 0x4ce   :  { %v12478_v39 = vld [vmem:[#allocation5 + $0x72c] ss:$16 sps:$4 sm:$0xff]   ;;  %v12476_v57 = vld [vmem:[#allocation5 + $0x728] ss:$16 sps:$4 sm:$0xff]  }
 0x4cf   :  { %9426 = vmatpush1.bf16.msra.mxu0 %v12407_v26  ;;  %v12481_v42 = vld [vmem:[#allocation5 + $0x50c] ss:$16 sps:$4 sm:$0xff]   ;;  %v12479_v26 = vld [vmem:[#allocation5 + $0x508] ss:$16 sps:$4 sm:$0xff]  }
 0x4d0   :  { %9467 = vmatpush1.bf16.msra.mxu1 %v12410_v33  ;;  %9427 = vmatprep.subr.bf16.mxu0 %v12415_v1  ;;  %v12484_v21 = vld [vmem:[#allocation5 + $0x70c] ss:$16 sps:$4 sm:$0xff]   ;;  %v12482_v33 = vld [vmem:[#allocation5 + $0x708] ss:$16 sps:$4 sm:$0xff]  }
 0x4d1   :  { %9468 = vmatprep.subr.bf16.mxu1 %v12418_v20  ;;  %v12487_v1 = vld [vmem:[#allocation5 + $0x8ec] ss:$16 sps:$4 sm:$0xff]  }
 0x4d2   :  { %v12490_v20 = vld [vmem:[#allocation5 + $0xaec] ss:$16 sps:$4 sm:$0xff]  }
 0x4d3   :  { %9428 = vmatpush1.bf16.msra.mxu0 %v12413_v3  ;;  %v12485_v3 = vld [vmem:[#allocation5 + $0x8e8] ss:$16 sps:$4 sm:$0xff]  }
 0x4d4   :  { %9469 = vmatpush1.bf16.msra.mxu1 %v12416_v61  ;;  %9429 = vmatprep.subr.bf16.mxu0 %v12421_v5  ;;  %v12488_v61 = vld [vmem:[#allocation5 + $0xae8] ss:$16 sps:$4 sm:$0xff]   ;;  %v12493_v5 = vld [vmem:[#allocation5 + $0x8cc] ss:$16 sps:$4 sm:$0xff]  }
 0x4d5   :  { %9470 = vmatprep.subr.bf16.mxu1 %v12424_v8 }
 0x4d7   :  { %9430 = vmatpush1.bf16.msra.mxu0 %v12419_v11  ;;  %v12496_v11 = vld [vmem:[#allocation5 + $0xacc] ss:$16 sps:$4 sm:$0xff]  }
 0x4d8   :  { %9471 = vmatpush1.bf16.msra.mxu1 %v12422_v19  ;;  %9431 = vmatprep.subr.bf16.mxu0 %v12427_v25 }
 0x4d9   :  { %9472 = vmatprep.subr.bf16.mxu1 %v12430_v34  ;;  %v12491_v34 = vld [vmem:[#allocation5 + $0x8c8] ss:$16 sps:$4 sm:$0xff]  }
 0x4db   :  { %9432 = vmatpush1.bf16.msra.mxu0 %v12425_v17 }
 0x4dc   :  { %9473 = vmatpush1.bf16.msra.mxu1 %v12428_v51  ;;  %9433 = vmatprep.subr.bf16.mxu0 %v12433_v13  ;;  %v12494_v51 = vld [vmem:[#allocation5 + $0xac8] ss:$16 sps:$4 sm:$0xff]   ;;  %v12499_v13 = vld [vmem:[#allocation5 + $0x8ac] ss:$16 sps:$4 sm:$0xff]  }
 0x4dd   :  { %9474 = vmatprep.subr.bf16.mxu1 %v12436_v29 }
 0x4df   :  { %9434 = vmatpush1.bf16.msra.mxu0 %v12431_v62 }
 0x4e0   :  { %9475 = vmatpush1.bf16.msra.mxu1 %v12434_v31  ;;  %9435 = vmatprep.subr.bf16.mxu0 %v12439_v28 }
 0x4e1   :  { %9476 = vmatprep.subr.bf16.mxu1 %v12442_v32 }
 0x4e3   :  { %9436 = vmatpush2.bf16.msra.mxu0 %v12437_v0  ;;  %v12500_v0 = vld [vmem:[#allocation5 + $0xaa8] ss:$16 sps:$4 sm:$0xff]  }
 0x4e4   :  { %9477 = vmatpush2.bf16.msra.mxu1 %v12440_v24  ;;  %9437 = vmatprep.subr.bf16.mxu0 %v12445_v38  ;;  %v12505_v24 = vld [vmem:[#allocation5 + $0x88c] ss:$16 sps:$4 sm:$0xff]  }
 0x4e5   :  { %9478 = vmatprep.subr.bf16.mxu1 %v12448_v47  ;;  %v12506_v47 = vld [vmem:[#allocation5 + $0xa88] ss:$16 sps:$4 sm:$0xff]  }
 0x4e7   :  { %9438 = vmatpush2.bf16.msra.mxu0 %v12443_v44  ;;  %v12511_v44 = vld [vmem:[#allocation5 + $0x86c] ss:$16 sps:$4 sm:$0xff]  }
 0x4e8   :  { %9479 = vmatpush2.bf16.msra.mxu1 %v12446_v36  ;;  %9439 = vmatprep.subr.bf16.mxu0 %v12451_v18  ;;  %v12514_v36 = vld [vmem:[#allocation5 + $0xa6c] ss:$16 sps:$4 sm:$0xff]   ;;  %v12509_v18 = vld [vmem:[#allocation5 + $0x868] ss:$16 sps:$4 sm:$0xff]  }
 0x4e9   :  { %9480 = vmatprep.subr.bf16.mxu1 %v12454_v40  ;;  %v12512_v40 = vld [vmem:[#allocation5 + $0xa68] ss:$16 sps:$4 sm:$0xff]  }
 0x4eb   :  { %9440 = vmatpush2.bf16.msra.mxu0 %v12449_v41  ;;  %v12517_v41 = vld [vmem:[#allocation5 + $0x84c] ss:$16 sps:$4 sm:$0xff]  }
 0x4ec   :  { %9481 = vmatpush2.bf16.msra.mxu1 %v12452_v43  ;;  %9441 = vmatprep.subr.bf16.mxu0 %v12457_v10  ;;  %v12520_v43 = vld [vmem:[#allocation5 + $0xa4c] ss:$16 sps:$4 sm:$0xff]   ;;  %v12515_v10 = vld [vmem:[#allocation5 + $0x848] ss:$16 sps:$4 sm:$0xff]  }
 0x4ed   :  { %9482 = vmatprep.subr.bf16.mxu1 %v12460_v45  ;;  %v12518_v45 = vld [vmem:[#allocation5 + $0xa48] ss:$16 sps:$4 sm:$0xff]  }
 0x4ef   :  { %9442 = vmatpush2.bf16.msra.mxu0 %v12455_v16  ;;  %v12523_v16 = vld [vmem:[#allocation5 + $0x82c] ss:$16 sps:$4 sm:$0xff]  }
 0x4f0   :  { %9483 = vmatpush2.bf16.msra.mxu1 %v12458_v46  ;;  %9443 = vmatprep.subr.bf16.mxu0 %v12463_v4  ;;  %v12526_v46 = vld [vmem:[#allocation5 + $0xa2c] ss:$16 sps:$4 sm:$0xff]   ;;  %v12521_v4 = vld [vmem:[#allocation5 + $0x828] ss:$16 sps:$4 sm:$0xff]  }
 0x4f1   :  { %9484 = vmatprep.subr.bf16.mxu1 %v12466_v63  ;;  %v12524_v63 = vld [vmem:[#allocation5 + $0xa28] ss:$16 sps:$4 sm:$0xff]  }
 0x4f3   :  { %9444 = vmatpush2.bf16.msra.mxu0 %v12461_v49  ;;  %v12529_v49 = vld [vmem:[#allocation5 + $0x80c] ss:$16 sps:$4 sm:$0xff]  }
 0x4f4   :  { %9485 = vmatpush2.bf16.msra.mxu1 %v12464_v9  ;;  %9445 = vmatprep.subr.bf16.mxu0 %v12469_v52  ;;  %v12532_v9 = vld [vmem:[#allocation5 + $0xa0c] ss:$16 sps:$4 sm:$0xff]   ;;  %v12527_v52 = vld [vmem:[#allocation5 + $0x808] ss:$16 sps:$4 sm:$0xff]  }
 0x4f5   :  { %9486 = vmatprep.subr.bf16.mxu1 %v12472_v48  ;;  %v12530_v48 = vld [vmem:[#allocation5 + $0xa08] ss:$16 sps:$4 sm:$0xff]  }
 0x4f7   :  { %9446 = vmatpush2.bf16.msra.mxu0 %v12467_v53  ;;  %v12535_v53 = vld [vmem:[#allocation5 + $0x9ec] ss:$16 sps:$4 sm:$0xff]  }
 0x4f8   :  { %9487 = vmatpush2.bf16.msra.mxu1 %v12470_v58  ;;  %9447 = vmatprep.subr.bf16.mxu0 %v12475_v12  ;;  %v12538_v58 = vld [vmem:[#allocation5 + $0xbec] ss:$16 sps:$4 sm:$0xff]   ;;  %v12533_v12 = vld [vmem:[#allocation5 + $0x9e8] ss:$16 sps:$4 sm:$0xff]  }
 0x4f9   :  { %9488 = vmatprep.subr.bf16.mxu1 %v12478_v39  ;;  %v12536_v39 = vld [vmem:[#allocation5 + $0xbe8] ss:$16 sps:$4 sm:$0xff]  }
 0x4fb   :  { %9448 = vmatpush2.bf16.msra.mxu0 %v12473_v55  ;;  %v12541_v55 = vld [vmem:[#allocation5 + $0x9cc] ss:$16 sps:$4 sm:$0xff]  }
 0x4fc   :  { %9489 = vmatpush2.bf16.msra.mxu1 %v12476_v57  ;;  %9449 = vmatprep.subr.bf16.mxu0 %v12481_v42  ;;  %v12544_v57 = vld [vmem:[#allocation5 + $0xbcc] ss:$16 sps:$4 sm:$0xff]   ;;  %v12539_v42 = vld [vmem:[#allocation5 + $0x9c8] ss:$16 sps:$4 sm:$0xff]  }
 0x4fd   :  { %9490 = vmatprep.subr.bf16.mxu1 %v12484_v21  ;;  %v12542_v21 = vld [vmem:[#allocation5 + $0xbc8] ss:$16 sps:$4 sm:$0xff]  }
 0x4ff   :  { %9450 = vmatpush2.bf16.msra.mxu0 %v12479_v26  ;;  %v12547_v26 = vld [vmem:[#allocation5 + $0x9ac] ss:$16 sps:$4 sm:$0xff]  }
 0x500   :  { %9491 = vmatpush2.bf16.msra.mxu1 %v12482_v33  ;;  %9501 = vmatprep.subr.bf16.mxu0 %v12487_v1  ;;  %v12550_v33 = vld [vmem:[#allocation5 + $0xbac] ss:$16 sps:$4 sm:$0xff]   ;;  %v12545_v1 = vld [vmem:[#allocation5 + $0x9a8] ss:$16 sps:$4 sm:$0xff]  }
 0x501   :  { %9542 = vmatprep.subr.bf16.mxu1 %v12490_v20  ;;  %v12548_v20 = vld [vmem:[#allocation5 + $0xba8] ss:$16 sps:$4 sm:$0xff]  }
 0x502   :  { %v9207_v8 = vpop.f32.mrf.mxu0  ;;  %9452 = vmatmul.mubr.bf16.vlgmr.msra.gmra.mxu0 %v13384_v60 }
 0x503   :  { %v9208_v19 = vadd.f32 %v9207_v8, %v13454_v50  ;;  %v9248_v25 = vpop.f32.mrf.mxu1  ;;  %9493 = vmatmul.mubr.bf16.vlgmr.msra.gmra.mxu1 %v13386_v56  ;;  %9502 = vmatpush1.bf16.msra.mxu0 %v12485_v3  ;;  %v12502_v50 = vld [vmem:[#allocation5 + $0xaac] ss:$16 sps:$4 sm:$0xff]   ;;  %v12554_v8 = vld [vmem:[#allocation5 + $0xb88] ss:$16 sps:$4 sm:$0xff]  }
 0x504   :  { %9533 = vmatprep.mubr.bf16.mxu0 %v13388_v6  ;;  %9543 = vmatpush1.bf16.msra.mxu1 %v12488_v61  ;;  %v9209_v17 = vpop.f32.mrf.mxu0  ;;  %v12497_v6 = vld [vmem:[#allocation5 + $0x8a8] ss:$16 sps:$4 sm:$0xff]   ;;  %v12553_v3 = vld [vmem:[#allocation5 + $0x98c] ss:$16 sps:$4 sm:$0xff]  }
 0x505   :  { %v13464_v29 = vadd.f32 %v9248_v25, %v9208_v19  ;;  %9574 = vmatprep.mubr.bf16.mxu1 %v13391_v23  ;;  %v9210_v60 = vadd.f32 %v9209_v17, %v13458_v59  ;;  %v9250_v62 = vpop.f32.mrf.mxu1  ;;  %9503 = vmatprep.subr.bf16.mxu0 %v12493_v5  ;;  %v12508_v23 = vld [vmem:[#allocation5 + $0xa8c] ss:$16 sps:$4 sm:$0xff]   ;;  %v12503_v59 = vld [vmem:[#allocation5 + $0x888] ss:$16 sps:$4 sm:$0xff]  }
 0x506   :  { %v9211_v31 = vpop.f32.mrf.mxu0  ;;  %9544 = vmatprep.subr.bf16.mxu1 %v12496_v11  ;;  %v12556_v61 = vld [vmem:[#allocation5 + $0xb8c] ss:$16 sps:$4 sm:$0xff]   ;;  %v12551_v5 = vld [vmem:[#allocation5 + $0x988] ss:$16 sps:$4 sm:$0xff]  }
 0x507   :  { %v13468_v56 = vadd.f32 %v9250_v62, %v9210_v60  ;;  %v9252_v28 = vpop.f32.mrf.mxu1  ;;  %9504 = vmatpush1.bf16.msra.mxu0 %v12491_v34  ;;  %v12559_v11 = vld [vmem:[#allocation5 + $0x96c] ss:$16 sps:$4 sm:$0xff]   ;;  %v12557_v25 = vld [vmem:[#allocation5 + $0x968] ss:$16 sps:$4 sm:$0xff]  }
 0x508   :  { %9545 = vmatpush1.bf16.msra.mxu1 %v12494_v51  ;;  %v9212_v32 = vpop.f32.mrf.mxu0  ;;  %9505 = vmatprep.subr.bf16.mxu0 %v12499_v13  ;;  %v12562_v19 = vld [vmem:[#allocation5 + $0xb6c] ss:$16 sps:$4 sm:$0xff]   ;;  %v12560_v34 = vld [vmem:[#allocation5 + $0xb68] ss:$16 sps:$4 sm:$0xff]  }
 0x509   :  { %v9253_v38 = vpop.f32.mrf.mxu1  ;;  %9546 = vmatprep.subr.bf16.mxu1 %v12502_v50  ;;  %v12565_v17 = vld [vmem:[#allocation5 + $0x94c] ss:$16 sps:$4 sm:$0xff]   ;;  %v12563_v13 = vld [vmem:[#allocation5 + $0x948] ss:$16 sps:$4 sm:$0xff]  }
 0x50a   :  { %v12568_v51 = vld [vmem:[#allocation5 + $0xb4c] ss:$16 sps:$4 sm:$0xff]   ;;  %v12566_v60 = vld [vmem:[#allocation5 + $0xb48] ss:$16 sps:$4 sm:$0xff]  }
 0x50b   :  { %9506 = vmatpush1.bf16.msra.mxu0 %v12497_v6  ;;  %v12571_v62 = vld [vmem:[#allocation5 + $0x92c] ss:$16 sps:$4 sm:$0xff]   ;;  %v12569_v31 = vld [vmem:[#allocation5 + $0x928] ss:$16 sps:$4 sm:$0xff]  }
 0x50c   :  { %9547 = vmatpush1.bf16.msra.mxu1 %v12500_v0  ;;  %9507 = vmatprep.subr.bf16.mxu0 %v12505_v24  ;;  %v12574_v50 = vld [vmem:[#allocation5 + $0xb2c] ss:$16 sps:$4 sm:$0xff]   ;;  %v12572_v28 = vld [vmem:[#allocation5 + $0xb28] ss:$16 sps:$4 sm:$0xff]  }
 0x50d   :  { %9548 = vmatprep.subr.bf16.mxu1 %v12508_v23  ;;  %v12577_v6 = vld [vmem:[#allocation5 + $0x90c] ss:$16 sps:$4 sm:$0xff]   ;;  %v12575_v0 = vld [vmem:[#allocation5 + $0x908] ss:$16 sps:$4 sm:$0xff]  }
 0x50e   :  { %v12580_v32 = vld [vmem:[#allocation5 + $0xb0c] ss:$16 sps:$4 sm:$0xff]   ;;  %v12578_v24 = vld [vmem:[#allocation5 + $0xb08] ss:$16 sps:$4 sm:$0xff]  }
 0x50f   :  { %9508 = vmatpush1.bf16.msra.mxu0 %v12503_v59  ;;  %v12583_v38 = vld [vmem:[#allocation5 + $0xcec] ss:$16 sps:$4 sm:$0xff]   ;;  %v12581_v59 = vld [vmem:[#allocation5 + $0xce8] ss:$16 sps:$4 sm:$0xff]  }
 0x510   :  { %9549 = vmatpush1.bf16.msra.mxu1 %v12506_v47  ;;  %9509 = vmatprep.subr.bf16.mxu0 %v12511_v44  ;;  %v12586_v23 = vld [vmem:[#allocation5 + $0xeec] ss:$16 sps:$4 sm:$0xff]   ;;  %v12584_v47 = vld [vmem:[#allocation5 + $0xee8] ss:$16 sps:$4 sm:$0xff]  }
 0x511   :  { %9550 = vmatprep.subr.bf16.mxu1 %v12514_v36  ;;  %v12589_v44 = vld [vmem:[#allocation5 + $0xccc] ss:$16 sps:$4 sm:$0xff]  }
 0x513   :  { %9510 = vmatpush1.bf16.msra.mxu0 %v12509_v18  ;;  %v12592_v18 = vld [vmem:[#allocation5 + $0xecc] ss:$16 sps:$4 sm:$0xff]  }
 0x514   :  { %9551 = vmatpush1.bf16.msra.mxu1 %v12512_v40  ;;  %9511 = vmatprep.subr.bf16.mxu0 %v12517_v41 }
 0x515   :  { %9552 = vmatprep.subr.bf16.mxu1 %v12520_v43  ;;  %v12587_v43 = vld [vmem:[#allocation5 + $0xcc8] ss:$16 sps:$4 sm:$0xff]  }
 0x517   :  { %9512 = vmatpush1.bf16.msra.mxu0 %v12515_v10 }
 0x518   :  { %9553 = vmatpush1.bf16.msra.mxu1 %v12518_v45  ;;  %9513 = vmatprep.subr.bf16.mxu0 %v12523_v16  ;;  %v12590_v45 = vld [vmem:[#allocation5 + $0xec8] ss:$16 sps:$4 sm:$0xff]   ;;  %v12595_v16 = vld [vmem:[#allocation5 + $0xcac] ss:$16 sps:$4 sm:$0xff]  }
 0x519   :  { %9554 = vmatprep.subr.bf16.mxu1 %v12526_v46 }
 0x51b   :  { %9514 = vmatpush1.bf16.msra.mxu0 %v12521_v4 }
 0x51c   :  { %9555 = vmatpush1.bf16.msra.mxu1 %v12524_v63  ;;  %9515 = vmatprep.subr.bf16.mxu0 %v12529_v49  ;;  %v12593_v63 = vld [vmem:[#allocation5 + $0xca8] ss:$16 sps:$4 sm:$0xff]  }
 0x51d   :  { %9556 = vmatprep.subr.bf16.mxu1 %v12532_v9  ;;  %v12596_v49 = vld [vmem:[#allocation5 + $0xea8] ss:$16 sps:$4 sm:$0xff]   ;;  %v12601_v9 = vld [vmem:[#allocation5 + $0xc8c] ss:$16 sps:$4 sm:$0xff]  }
 0x51f   :  { %9516 = vmatpush1.bf16.msra.mxu0 %v12527_v52 }
 0x520   :  { %9557 = vmatpush1.bf16.msra.mxu1 %v12530_v48  ;;  %9517 = vmatprep.subr.bf16.mxu0 %v12535_v53  ;;  %v12604_v48 = vld [vmem:[#allocation5 + $0xe8c] ss:$16 sps:$4 sm:$0xff]   ;;  %v12599_v53 = vld [vmem:[#allocation5 + $0xc88] ss:$16 sps:$4 sm:$0xff]  }
 0x521   :  { %9558 = vmatprep.subr.bf16.mxu1 %v12538_v58  ;;  %v12607_v58 = vld [vmem:[#allocation5 + $0xc6c] ss:$16 sps:$4 sm:$0xff]  }
 0x523   :  { %9518 = vmatpush2.bf16.msra.mxu0 %v12533_v12  ;;  %v12610_v12 = vld [vmem:[#allocation5 + $0xe6c] ss:$16 sps:$4 sm:$0xff]  }
 0x524   :  { %9559 = vmatpush2.bf16.msra.mxu1 %v12536_v39  ;;  %9519 = vmatprep.subr.bf16.mxu0 %v12541_v55  ;;  %v12605_v39 = vld [vmem:[#allocation5 + $0xc68] ss:$16 sps:$4 sm:$0xff]  }
 0x525   :  { %9560 = vmatprep.subr.bf16.mxu1 %v12544_v57  ;;  %v12608_v55 = vld [vmem:[#allocation5 + $0xe68] ss:$16 sps:$4 sm:$0xff]   ;;  %v12613_v57 = vld [vmem:[#allocation5 + $0xc4c] ss:$16 sps:$4 sm:$0xff]  }
 0x527   :  { %9520 = vmatpush2.bf16.msra.mxu0 %v12539_v42  ;;  %v12616_v42 = vld [vmem:[#allocation5 + $0xe4c] ss:$16 sps:$4 sm:$0xff]  }
 0x528   :  { %9561 = vmatpush2.bf16.msra.mxu1 %v12542_v21  ;;  %9521 = vmatprep.subr.bf16.mxu0 %v12547_v26  ;;  %v12611_v21 = vld [vmem:[#allocation5 + $0xc48] ss:$16 sps:$4 sm:$0xff]  }
 0x529   :  { %9562 = vmatprep.subr.bf16.mxu1 %v12550_v33  ;;  %v12614_v26 = vld [vmem:[#allocation5 + $0xe48] ss:$16 sps:$4 sm:$0xff]   ;;  %v12619_v33 = vld [vmem:[#allocation5 + $0xc2c] ss:$16 sps:$4 sm:$0xff]  }
 0x52b   :  { %9522 = vmatpush2.bf16.msra.mxu0 %v12545_v1  ;;  %v12622_v1 = vld [vmem:[#allocation5 + $0xe2c] ss:$16 sps:$4 sm:$0xff]  }
 0x52c   :  { %9563 = vmatpush2.bf16.msra.mxu1 %v12548_v20  ;;  %9523 = vmatprep.subr.bf16.mxu0 %v12553_v3  ;;  %v12617_v20 = vld [vmem:[#allocation5 + $0xc28] ss:$16 sps:$4 sm:$0xff]  }
 0x52d   :  { %9564 = vmatprep.subr.bf16.mxu1 %v12556_v61  ;;  %v12620_v3 = vld [vmem:[#allocation5 + $0xe28] ss:$16 sps:$4 sm:$0xff]   ;;  %v12625_v61 = vld [vmem:[#allocation5 + $0xc0c] ss:$16 sps:$4 sm:$0xff]  }
 0x52f   :  { %9524 = vmatpush2.bf16.msra.mxu0 %v12551_v5  ;;  %v12628_v5 = vld [vmem:[#allocation5 + $0xe0c] ss:$16 sps:$4 sm:$0xff]  }
 0x530   :  { %9565 = vmatpush2.bf16.msra.mxu1 %v12554_v8  ;;  %9525 = vmatprep.subr.bf16.mxu0 %v12559_v11  ;;  %v12623_v8 = vld [vmem:[#allocation5 + $0xc08] ss:$16 sps:$4 sm:$0xff]  }
 0x531   :  { %9566 = vmatprep.subr.bf16.mxu1 %v12562_v19  ;;  %v12626_v11 = vld [vmem:[#allocation5 + $0xe08] ss:$16 sps:$4 sm:$0xff]   ;;  %v12631_v19 = vld [vmem:[#allocation5 + $0xdec] ss:$16 sps:$4 sm:$0xff]  }
 0x533   :  { %9526 = vmatpush2.bf16.msra.mxu0 %v12557_v25  ;;  %v12634_v25 = vld [vmem:[#allocation5 + $0xfec] ss:$16 sps:$4 sm:$0xff]  }
 0x534   :  { %9567 = vmatpush2.bf16.msra.mxu1 %v12560_v34  ;;  %9527 = vmatprep.subr.bf16.mxu0 %v12565_v17  ;;  %v12629_v34 = vld [vmem:[#allocation5 + $0xde8] ss:$16 sps:$4 sm:$0xff]  }
 0x535   :  { %9568 = vmatprep.subr.bf16.mxu1 %v12568_v51  ;;  %v12632_v17 = vld [vmem:[#allocation5 + $0xfe8] ss:$16 sps:$4 sm:$0xff]   ;;  %v12637_v51 = vld [vmem:[#allocation5 + $0xdcc] ss:$16 sps:$4 sm:$0xff]  }
 0x537   :  { %9528 = vmatpush2.bf16.msra.mxu0 %v12563_v13  ;;  %v12640_v13 = vld [vmem:[#allocation5 + $0xfcc] ss:$16 sps:$4 sm:$0xff]  }
 0x538   :  { %9569 = vmatpush2.bf16.msra.mxu1 %v12566_v60  ;;  %9529 = vmatprep.subr.bf16.mxu0 %v12571_v62  ;;  %v12635_v60 = vld [vmem:[#allocation5 + $0xdc8] ss:$16 sps:$4 sm:$0xff]  }
 0x539   :  { %9570 = vmatprep.subr.bf16.mxu1 %v12574_v50  ;;  %v12638_v62 = vld [vmem:[#allocation5 + $0xfc8] ss:$16 sps:$4 sm:$0xff]   ;;  %v12643_v50 = vld [vmem:[#allocation5 + $0xdac] ss:$16 sps:$4 sm:$0xff]  }
 0x53b   :  { %9530 = vmatpush2.bf16.msra.mxu0 %v12569_v31  ;;  %v12646_v31 = vld [vmem:[#allocation5 + $0xfac] ss:$16 sps:$4 sm:$0xff]  }
 0x53c   :  { %9571 = vmatpush2.bf16.msra.mxu1 %v12572_v28  ;;  %9531 = vmatprep.subr.bf16.mxu0 %v12577_v6  ;;  %v12641_v28 = vld [vmem:[#allocation5 + $0xda8] ss:$16 sps:$4 sm:$0xff]  }
 0x53d   :  { %9572 = vmatprep.subr.bf16.mxu1 %v12580_v32  ;;  %v12644_v6 = vld [vmem:[#allocation5 + $0xfa8] ss:$16 sps:$4 sm:$0xff]   ;;  %v12649_v32 = vld [vmem:[#allocation5 + $0xd8c] ss:$16 sps:$4 sm:$0xff]  }
 0x53f   :  { %9532 = vmatpush2.bf16.msra.mxu0 %v12575_v0  ;;  %v12652_v0 = vld [vmem:[#allocation5 + $0xf8c] ss:$16 sps:$4 sm:$0xff]  }
 0x540   :  { %9573 = vmatpush2.bf16.msra.mxu1 %v12578_v24  ;;  %9583 = vmatprep.subr.bf16.mxu0 %v12583_v38  ;;  %v12647_v24 = vld [vmem:[#allocation5 + $0xd88] ss:$16 sps:$4 sm:$0xff]  }
 0x541   :  { %9624 = vmatprep.subr.bf16.mxu1 %v12586_v23  ;;  %v12650_v38 = vld [vmem:[#allocation5 + $0xf88] ss:$16 sps:$4 sm:$0xff]   ;;  %v12655_v23 = vld [vmem:[#allocation5 + $0xd6c] ss:$16 sps:$4 sm:$0xff]  }
 0x542   :  { %v9289_v36 = vpop.f32.mrf.mxu0  ;;  %9534 = vmatmul.mubr.bf16.vlgmr.msra.gmra.mxu0 %v13412_v30 }
 0x543   :  { %v9290_v40 = vadd.f32 %v9289_v36, %v13464_v29  ;;  %v9330_v41 = vpop.f32.mrf.mxu1  ;;  %9575 = vmatmul.mubr.bf16.vlgmr.msra.gmra.mxu1 %v13414_v35  ;;  %9584 = vmatpush1.bf16.msra.mxu0 %v12581_v59  ;;  %v12598_v29 = vld [vmem:[#allocation5 + $0xeac] ss:$16 sps:$4 sm:$0xff]  }
 0x544   :  { %9615 = vmatprep.mubr.bf16.mxu0 %v13416_v37  ;;  %9625 = vmatpush1.bf16.msra.mxu1 %v12584_v47  ;;  %v13474_v10 = vpop.f32.mrf.mxu0  ;;  %v12658_v59 = vld [vmem:[#allocation5 + $0xf6c] ss:$16 sps:$4 sm:$0xff]   ;;  %v12653_v47 = vld [vmem:[#allocation5 + $0xd68] ss:$16 sps:$4 sm:$0xff]  }
 0x545   :  { %v13476_v46 = vadd.f32 %v9330_v41, %v9290_v40  ;;  %9656 = vmatprep.mubr.bf16.mxu1 %v13426_v14  ;;  %v13479_v30 = vpop.f32.mrf.mxu1  ;;  %9585 = vmatprep.subr.bf16.mxu0 %v12589_v44  ;;  %v12602_v14 = vld [vmem:[#allocation5 + $0xe88] ss:$16 sps:$4 sm:$0xff]   ;;  %v12661_v36 = vld [vmem:[#allocation5 + $0xd4c] ss:$16 sps:$4 sm:$0xff]  }
 0x546   :  { %v9293_v4 = vpop.f32.mrf.mxu0  ;;  %9626 = vmatprep.subr.bf16.mxu1 %v12592_v18  ;;  %v12656_v44 = vld [vmem:[#allocation5 + $0xf68] ss:$16 sps:$4 sm:$0xff]   ;;  %v12664_v18 = vld [vmem:[#allocation5 + $0xf4c] ss:$16 sps:$4 sm:$0xff]  }
 0x547   :  { %v9334_v35 = vpop.f32.mrf.mxu1  ;;  %9586 = vmatpush1.bf16.msra.mxu0 %v12587_v43  ;;  %v12659_v40 = vld [vmem:[#allocation5 + $0xd48] ss:$16 sps:$4 sm:$0xff]   ;;  %v12667_v43 = vld [vmem:[#allocation5 + $0xd2c] ss:$16 sps:$4 sm:$0xff]  }
 0x548   :  { %9627 = vmatpush1.bf16.msra.mxu1 %v12590_v45  ;;  %v9294_v37 = vpop.f32.mrf.mxu0  ;;  %9587 = vmatprep.subr.bf16.mxu0 %v12595_v16  ;;  %v12662_v41 = vld [vmem:[#allocation5 + $0xf48] ss:$16 sps:$4 sm:$0xff]   ;;  %v12670_v45 = vld [vmem:[#allocation5 + $0xf2c] ss:$16 sps:$4 sm:$0xff]   ;;  %v9292_v16 = vadd.f32 %v13474_v10, %v13468_v56  ;;  %v12800_v56 = vld [vmem:[#allocation13] sm:$0xf] }
 0x549   :  { %v9335_v52 = vpop.f32.mrf.mxu1  ;;  %9628 = vmatprep.subr.bf16.mxu1 %v12598_v29  ;;  %v12665_v29 = vld [vmem:[#allocation5 + $0xd28] ss:$16 sps:$4 sm:$0xff]   ;;  %v12673_v35 = vld [vmem:[#allocation5 + $0xd0c] ss:$16 sps:$4 sm:$0xff]   ;;  %v6440_v10 = vrot.slane %v12800_v56, %v13237_v22 }
 0x54a   :  { %v12668_v4 = vld [vmem:[#allocation5 + $0xf28] ss:$16 sps:$4 sm:$0xff]   ;;  %v9333_v37 = vadd.f32 %v13479_v30, %v9292_v16  ;;  %v12679_v52 = vld [vmem:[#allocation7 + $0x74] ss:$8 sps:$4 sm:$0xff]  }
 0x54b   :  { %9588 = vmatpush1.bf16.msra.mxu0 %v12593_v63  ;;  %v12676_v63 = vld [vmem:[#allocation5 + $0xf0c] ss:$16 sps:$4 sm:$0xff]   ;;  %v12746_v16 = vld [vmem:[#allocation7 + $0x100] ss:$8 sps:$4 sm:$0xff]  }
 0x54c   :  { %9629 = vmatpush1.bf16.msra.mxu1 %v12596_v49  ;;  %9589 = vmatprep.subr.bf16.mxu0 %v12601_v9  ;;  %v12671_v49 = vld [vmem:[#allocation5 + $0xd08] ss:$16 sps:$4 sm:$0xff]   ;;  %v12685_v22 = vld [vmem:[#allocation7 + $0x54] ss:$8 sps:$4 sm:$0xff]  }
 0x54d   :  { %9630 = vmatprep.subr.bf16.mxu1 %v12604_v48  ;;  %v12674_v9 = vld [vmem:[#allocation5 + $0xf08] ss:$16 sps:$4 sm:$0xff]   ;;  %v9666_v48 = vmax.f32 %v9333_v37, 0.0  ;;  %v12754_v37 = vld [vmem:[#allocation7 + $0x1e4] ss:$8 sps:$4 sm:$0xff]  }
 0x54f   :  { %9590 = vmatpush1.bf16.msra.mxu0 %v12599_v53  ;;  %v12677_v53 = vld [vmem:[#allocation7 + $0x70] ss:$8 sps:$4 sm:$0xff]  }
 0x550   :  { %9631 = vmatpush1.bf16.msra.mxu1 %v12602_v14  ;;  %9591 = vmatprep.subr.bf16.mxu0 %v12607_v58  ;;  %v12682_v14 = vld [vmem:[#allocation7 + $0x64] ss:$8 sps:$4 sm:$0xff]   ;;  %v6444_v58 = vrot.slane %v12800_v56, %v13240_v27  ;;  %v12713_v56 = vld [vmem:[#allocation7 + $0xb0] ss:$8 sps:$4 sm:$0xff]  }
 0x551   :  { %9632 = vmatprep.subr.bf16.mxu1 %v12610_v12  ;;  %v9670_v12 = vpack.c.bf16 %v9666_v48, %v9666_v48  ;;  %v12757_v48 = vld [vmem:[#allocation7 + $0x1d4] ss:$8 sps:$4 sm:$0xff]  }
 0x553   :  { %9592 = vmatpush1.bf16.msra.mxu0 %v12605_v39 }
 0x554   :  { %9633 = vmatpush1.bf16.msra.mxu1 %v12608_v55  ;;  %9593 = vmatprep.subr.bf16.mxu0 %v12613_v57  ;;  %v12680_v57 = vld [vmem:[#allocation7 + $0x60] ss:$8 sps:$4 sm:$0xff]  }
 0x555   :  { %9634 = vmatprep.subr.bf16.mxu1 %v12616_v42 }
 0x557   :  { %9594 = vmatpush1.bf16.msra.mxu0 %v12611_v21 }
 0x558   :  { %9635 = vmatpush1.bf16.msra.mxu1 %v12614_v26  ;;  %9595 = vmatprep.subr.bf16.mxu0 %v12619_v33 }
 0x559   :  { %9636 = vmatprep.subr.bf16.mxu1 %v12622_v1 }
 0x55b   :  { %9596 = vmatpush1.bf16.msra.mxu0 %v12617_v20 }
 0x55c   :  { %9637 = vmatpush1.bf16.msra.mxu1 %v12620_v3  ;;  %9597 = vmatprep.subr.bf16.mxu0 %v12625_v61  ;;  %v12688_v61 = vld [vmem:[#allocation7 + $0x44] ss:$8 sps:$4 sm:$0xff]  }
 0x55d   :  { %9638 = vmatprep.subr.bf16.mxu1 %v12628_v5  ;;  %v12725_v5 = vld [vmem:[#allocation7 + $0x170] ss:$8 sps:$4 sm:$0xff]  }
 0x55f   :  { %9598 = vmatpush1.bf16.msra.mxu0 %v12623_v8  ;;  %v12727_v8 = vld [vmem:[#allocation7 + $0x174] ss:$8 sps:$4 sm:$0xff]  }
 0x560   :  { %9639 = vmatpush1.bf16.msra.mxu1 %v12626_v11  ;;  %9599 = vmatprep.subr.bf16.mxu0 %v12631_v19  ;;  %v12730_v11 = vld [vmem:[#allocation7 + $0x164] ss:$8 sps:$4 sm:$0xff]   ;;  %v12686_v19 = vld [vmem:[#allocation7 + $0x40] ss:$8 sps:$4 sm:$0xff]  }
 0x561   :  { %9640 = vmatprep.subr.bf16.mxu1 %v12634_v25  ;;  %v12691_v25 = vld [vmem:[#allocation7 + $0x34] ss:$8 sps:$4 sm:$0xff]  }
 0x563   :  { %9600 = vmatpush2.bf16.msra.mxu0 %v12629_v34  ;;  %v12728_v34 = vld [vmem:[#allocation7 + $0x160] ss:$8 sps:$4 sm:$0xff]  }
 0x564   :  { %9641 = vmatpush2.bf16.msra.mxu1 %v12632_v17  ;;  %9601 = vmatprep.subr.bf16.mxu0 %v12637_v51  ;;  %v12733_v17 = vld [vmem:[#allocation7 + $0x154] ss:$8 sps:$4 sm:$0xff]   ;;  %v12689_v51 = vld [vmem:[#allocation7 + $0x30] ss:$8 sps:$4 sm:$0xff]  }
 0x565   :  { %9642 = vmatprep.subr.bf16.mxu1 %v12640_v13  ;;  %v12694_v13 = vld [vmem:[#allocation7 + $0x24] ss:$8 sps:$4 sm:$0xff]  }
 0x567   :  { %9602 = vmatpush2.bf16.msra.mxu0 %v12635_v60  ;;  %v12731_v60 = vld [vmem:[#allocation7 + $0x150] ss:$8 sps:$4 sm:$0xff]  }
 0x568   :  { %9643 = vmatpush2.bf16.msra.mxu1 %v12638_v62  ;;  %9603 = vmatprep.subr.bf16.mxu0 %v12643_v50  ;;  %v12736_v62 = vld [vmem:[#allocation7 + $0x144] ss:$8 sps:$4 sm:$0xff]   ;;  %v12692_v50 = vld [vmem:[#allocation7 + $0x20] ss:$8 sps:$4 sm:$0xff]  }
 0x569   :  { %9644 = vmatprep.subr.bf16.mxu1 %v12646_v31  ;;  %v12697_v31 = vld [vmem:[#allocation7 + $0x14] ss:$8 sps:$4 sm:$0xff]  }
 0x56b   :  { %9604 = vmatpush2.bf16.msra.mxu0 %v12641_v28  ;;  %v12734_v28 = vld [vmem:[#allocation7 + $0x140] ss:$8 sps:$4 sm:$0xff]  }
 0x56c   :  { %9645 = vmatpush2.bf16.msra.mxu1 %v12644_v6  ;;  %9605 = vmatprep.subr.bf16.mxu0 %v12649_v32  ;;  %v12739_v6 = vld [vmem:[#allocation7 + $0x134] ss:$8 sps:$4 sm:$0xff]   ;;  %v12695_v32 = vld [vmem:[#allocation7 + $0x10] ss:$8 sps:$4 sm:$0xff]  }
 0x56d   :  { %9646 = vmatprep.subr.bf16.mxu1 %v12652_v0  ;;  %v12700_v0 = vld [vmem:[#allocation7 + $0x4] ss:$8 sps:$4 sm:$0xff]  }
 0x56f   :  { %9606 = vmatpush2.bf16.msra.mxu0 %v12647_v24  ;;  %v12737_v24 = vld [vmem:[#allocation7 + $0x130] ss:$8 sps:$4 sm:$0xff]  }
 0x570   :  { %9647 = vmatpush2.bf16.msra.mxu1 %v12650_v38  ;;  %9607 = vmatprep.subr.bf16.mxu0 %v12655_v23  ;;  %v12742_v38 = vld [vmem:[#allocation7 + $0x124] ss:$8 sps:$4 sm:$0xff]   ;;  %v12698_v23 = vld [vmem:[#allocation7] ss:$8 sps:$4 sm:$0xff]  }
 0x571   :  { %9648 = vmatprep.subr.bf16.mxu1 %v12658_v59  ;;  %v12703_v59 = vld [vmem:[#allocation7 + $0xf4] ss:$8 sps:$4 sm:$0xff]  }
 0x573   :  { %9608 = vmatpush2.bf16.msra.mxu0 %v12653_v47  ;;  %v12740_v47 = vld [vmem:[#allocation7 + $0x120] ss:$8 sps:$4 sm:$0xff]  }
 0x574   :  { %9649 = vmatpush2.bf16.msra.mxu1 %v12656_v44  ;;  %9609 = vmatprep.subr.bf16.mxu0 %v12661_v36  ;;  %v12745_v44 = vld [vmem:[#allocation7 + $0x114] ss:$8 sps:$4 sm:$0xff]   ;;  %v12701_v36 = vld [vmem:[#allocation7 + $0xf0] ss:$8 sps:$4 sm:$0xff]  }
 0x575   :  { %9650 = vmatprep.subr.bf16.mxu1 %v12664_v18  ;;  %v12706_v18 = vld [vmem:[#allocation7 + $0xe4] ss:$8 sps:$4 sm:$0xff]  }
 0x577   :  { %9610 = vmatpush2.bf16.msra.mxu0 %v12659_v40  ;;  %v12743_v40 = vld [vmem:[#allocation7 + $0x110] ss:$8 sps:$4 sm:$0xff]  }
 0x578   :  { %9651 = vmatpush2.bf16.msra.mxu1 %v12662_v41  ;;  %9611 = vmatprep.subr.bf16.mxu0 %v12667_v43  ;;  %v12748_v41 = vld [vmem:[#allocation7 + $0x104] ss:$8 sps:$4 sm:$0xff]   ;;  %v12704_v43 = vld [vmem:[#allocation7 + $0xe0] ss:$8 sps:$4 sm:$0xff]  }
 0x579   :  { %9652 = vmatprep.subr.bf16.mxu1 %v12670_v45  ;;  %v12709_v45 = vld [vmem:[#allocation7 + $0xd4] ss:$8 sps:$4 sm:$0xff]  }
 0x57b   :  { %9612 = vmatpush2.bf16.msra.mxu0 %v12665_v29  ;;  %v12751_v29 = vld [vmem:[#allocation7 + $0x1f4] ss:$8 sps:$4 sm:$0xff]  }
 0x57c   :  { %9653 = vmatpush2.bf16.msra.mxu1 %v12668_v4  ;;  %9613 = vmatprep.subr.bf16.mxu0 %v12673_v35  ;;  %v12707_v4 = vld [vmem:[#allocation7 + $0xd0] ss:$8 sps:$4 sm:$0xff]   ;;  %v12712_v35 = vld [vmem:[#allocation7 + $0xc4] ss:$8 sps:$4 sm:$0xff]  }
 0x57d   :  { %9654 = vmatprep.subr.bf16.mxu1 %v12676_v63  ;;  %v12749_v63 = vld [vmem:[#allocation7 + $0x1f0] ss:$8 sps:$4 sm:$0xff]  }
 0x57f   :  { %9614 = vmatpush2.bf16.msra.mxu0 %v12671_v49  ;;  %v12710_v49 = vld [vmem:[#allocation7 + $0xc0] ss:$8 sps:$4 sm:$0xff]  }
 0x580   :  { %9655 = vmatpush2.bf16.msra.mxu1 %v12674_v9  ;;  %10069 = vmatprep.subr.bf16.mxu0 %v12679_v52  ;;  %v12715_v9 = vld [vmem:[#allocation7 + $0xb4] ss:$8 sps:$4 sm:$0xff]   ;;  %v12752_v52 = vld [vmem:[#allocation7 + $0x1e0] ss:$8 sps:$4 sm:$0xff]  }
 0x581   :  { %10110 = vmatprep.subr.bf16.mxu1 %v12727_v8 }
 0x582   :  { %v9371_v30 = vpop.f32.mrf.mxu0  ;;  %9616 = vmatmul.mubr.bf16.vlgmr.msra.gmra.mxu0 %v13437_v54  ;;  %v12683_v54 = vld [vmem:[#allocation7 + $0x50] ss:$8 sps:$4 sm:$0xff]  }
 0x583   :  { %v9372_v39 = vadd.f32 %v9371_v30, %v6440_v10  ;;  %v9412_v55 = vpop.f32.mrf.mxu1  ;;  %9657 = vmatmul.mubr.bf16.vlgmr.msra.gmra.mxu1 %v13439_v2  ;;  %10070 = vmatpush1.bf16.msra.mxu0 %v12677_v53  ;;  %v12718_v10 = vld [vmem:[#allocation7 + $0xa4] ss:$8 sps:$4 sm:$0xff]   ;;  %v12755_v53 = vld [vmem:[#allocation7 + $0x1d0] ss:$8 sps:$4 sm:$0xff]   ;;  %v12758_v30 = vld [vmem:[#allocation7 + $0x1c0] ss:$8 sps:$4 sm:$0xff]  }
 0x584   :  { %10101 = vmatprep.mubr.bf16.mxu0 %v9670_v12  ;;  %v9373_v42 = vpop.f32.mrf.mxu0  ;;  %10071 = vmatprep.subr.bf16.mxu0 %v12682_v14  ;;  %v12760_v14 = vld [vmem:[#allocation7 + $0x1c4] ss:$8 sps:$4 sm:$0xff]   ;;  %v12721_v12 = vld [vmem:[#allocation7 + $0x94] ss:$8 sps:$4 sm:$0xff]  }
 0x585   :  { %v13488_v21 = vadd.f32 %v9412_v55, %v9372_v39  ;;  %v9374_v26 = vadd.f32 %v9373_v42, %v6444_v58  ;;  %v9414_v33 = vpop.f32.mrf.mxu1  ;;  %10111 = vmatpush1.bf16.msra.mxu1 %v12725_v5  ;;  %v12716_v58 = vld [vmem:[#allocation7 + $0xa0] ss:$8 sps:$4 sm:$0xff]   ;;  %v12763_v39 = vld [vmem:[#allocation7 + $0x1b4] ss:$8 sps:$4 sm:$0xff]   ;;  %v12719_v55 = vld [vmem:[#allocation7 + $0x90] ss:$8 sps:$4 sm:$0xff]  }
 0x586   :  { %v9375_v1 = vpop.f32.mrf.mxu0  ;;  %10112 = vmatprep.subr.bf16.mxu1 %v12730_v11  ;;  %v12761_v42 = vld [vmem:[#allocation7 + $0x1b0] ss:$8 sps:$4 sm:$0xff]  }
 0x587   :  { %v13490_v27 = vadd.f32 %v9414_v33, %v9374_v26  ;;  %v9416_v20 = vpop.f32.mrf.mxu1  ;;  %10072 = vmatpush1.bf16.msra.mxu0 %v12680_v57  ;;  %v12724_v57 = vld [vmem:[#allocation7 + $0x84] ss:$8 sps:$4 sm:$0xff]   ;;  %v9665_v26 = vmax.f32 %v13476_v46, 0.0  ;;  %v12769_v46 = vld [vmem:[#allocation7 + $0x194] ss:$8 sps:$4 sm:$0xff]  }
 0x588   :  { %v9376_v3 = vpop.f32.mrf.mxu0  ;;  %10073 = vmatprep.subr.bf16.mxu0 %v12685_v22  ;;  %v12722_v22 = vld [vmem:[#allocation7 + $0x80] ss:$8 sps:$4 sm:$0xff]   ;;  %v12766_v20 = vld [vmem:[#allocation7 + $0x1a4] ss:$8 sps:$4 sm:$0xff]  }
 0x589   :  { %v9417_v2 = vpop.f32.mrf.mxu1  ;;  %10113 = vmatpush1.bf16.msra.mxu1 %v12728_v34  ;;  %v9669_v33 = vpack.c.bf16 %v9665_v26, %v9665_v26 }
 0x58a   :  { %10114 = vmatprep.subr.bf16.mxu1 %v12733_v17  ;;  %v12767_v17 = vld [vmem:[#allocation7 + $0x190] ss:$8 sps:$4 sm:$0xff]  }
 0x58b   :  { %10074 = vmatpush1.bf16.msra.mxu0 %v12683_v54 }
 0x58c   :  { %10075 = vmatprep.subr.bf16.mxu0 %v12688_v61  ;;  %v12764_v61 = vld [vmem:[#allocation7 + $0x1a0] ss:$8 sps:$4 sm:$0xff]  }
 0x58d   :  { %10115 = vmatpush1.bf16.msra.mxu1 %v12731_v60  ;;  %v12772_v60 = vld [vmem:[#allocation7 + $0x184] ss:$8 sps:$4 sm:$0xff]  }
 0x58e   :  { %10116 = vmatprep.subr.bf16.mxu1 %v12736_v62 }
 0x58f   :  { %10076 = vmatpush1.bf16.msra.mxu0 %v12686_v19 }
 0x590   :  { %10077 = vmatprep.subr.bf16.mxu0 %v12691_v25 }
 0x591   :  { %10117 = vmatpush1.bf16.msra.mxu1 %v12734_v28 }
 0x592   :  { %10118 = vmatprep.subr.bf16.mxu1 %v12739_v6 }
 0x593   :  { %10078 = vmatpush1.bf16.msra.mxu0 %v12689_v51 }
 0x594   :  { %10079 = vmatprep.subr.bf16.mxu0 %v12694_v13 }
 0x595   :  { %10119 = vmatpush1.bf16.msra.mxu1 %v12737_v24 }
 0x596   :  { %10120 = vmatprep.subr.bf16.mxu1 %v12742_v38  ;;  %v12773_v38 = vld [vmem:[#allocation8 + $0x78] sm:$0xff]  }
 0x597   :  { %10080 = vmatpush1.bf16.msra.mxu0 %v12692_v50 }
 0x598   :  { %10081 = vmatprep.subr.bf16.mxu0 %v12697_v31 }
 0x599   :  { %10121 = vmatpush1.bf16.msra.mxu1 %v12740_v47 }
 0x59a   :  { %10122 = vmatprep.subr.bf16.mxu1 %v12745_v44  ;;  %v12776_v44 = vld [vmem:[#allocation8 + $0x30] sm:$0xff]  }
 0x59b   :  { %10082 = vmatpush1.bf16.msra.mxu0 %v12695_v32 }
 0x59c   :  { %10083 = vmatprep.subr.bf16.mxu0 %v12700_v0 }
 0x59d   :  { %10123 = vmatpush1.bf16.msra.mxu1 %v12743_v40  ;;  %v12779_v40 = vld [vmem:[#allocation8 + $0x60] sm:$0xff]  }
 0x59e   :  { %10124 = vmatprep.subr.bf16.mxu1 %v12748_v41  ;;  %v12780_v41 = vld [vmem:[#allocation8 + $0x20] sm:$0xff]  }
 0x59f   :  { %10084 = vmatpush1.bf16.msra.mxu0 %v12698_v23  ;;  %v12774_v23 = vld [vmem:[#allocation8 + $0x38] sm:$0xff]  }
 0x5a0   :  { %10085 = vmatprep.subr.bf16.mxu0 %v12703_v59  ;;  %v12775_v59 = vld [vmem:[#allocation8 + $0x70] sm:$0xff]  }
 0x5a1   :  { %10125 = vmatpush1.bf16.msra.mxu1 %v12746_v16  ;;  %v12783_v16 = vld [vmem:[#allocation8 + $0x50] sm:$0xff]  }
 0x5a2   :  { %10126 = vmatprep.subr.bf16.mxu1 %v12751_v29  ;;  %v12784_v29 = vld [vmem:[#allocation8 + $0x10] sm:$0xff]  }
 0x5a3   :  { %10086 = vmatpush2.bf16.msra.mxu0 %v12701_v36  ;;  %v12777_v36 = vld [vmem:[#allocation8 + $0x68] sm:$0xff]  }
 0x5a4   :  { %10087 = vmatprep.subr.bf16.mxu0 %v12706_v18  ;;  %v12778_v18 = vld [vmem:[#allocation8 + $0x28] sm:$0xff]  }
 0x5a5   :  { %10127 = vmatpush2.bf16.msra.mxu1 %v12749_v63 }
 0x5a6   :  { %10128 = vmatprep.subr.bf16.mxu1 %v12754_v37 }
 0x5a7   :  { %10088 = vmatpush2.bf16.msra.mxu0 %v12704_v43  ;;  %v12781_v43 = vld [vmem:[#allocation8 + $0x58] sm:$0xff]  }
 0x5a8   :  { %10089 = vmatprep.subr.bf16.mxu0 %v12709_v45  ;;  %v12782_v45 = vld [vmem:[#allocation8 + $0x18] sm:$0xff]  }
 0x5a9   :  { %10129 = vmatpush2.bf16.msra.mxu1 %v12752_v52 }
 0x5aa   :  { %10130 = vmatprep.subr.bf16.mxu1 %v12757_v48 }
 0x5ab   :  { %10090 = vmatpush2.bf16.msra.mxu0 %v12707_v4 }
 0x5ac   :  { %10091 = vmatprep.subr.bf16.mxu0 %v12712_v35 }
 0x5ad   :  { %10131 = vmatpush2.bf16.msra.mxu1 %v12755_v53 }
 0x5ae   :  { %10132 = vmatprep.subr.bf16.mxu1 %v12760_v14 }
 0x5af   :  { %10092 = vmatpush2.bf16.msra.mxu0 %v12710_v49 }
 0x5b0   :  { %10093 = vmatprep.subr.bf16.mxu0 %v12715_v9 }
 0x5b1   :  { %10133 = vmatpush2.bf16.msra.mxu1 %v12758_v30 }
 0x5b2   :  { %10134 = vmatprep.subr.bf16.mxu1 %v12763_v39 }
 0x5b3   :  { %10094 = vmatpush2.bf16.msra.mxu0 %v12713_v56 }
 0x5b4   :  { %10095 = vmatprep.subr.bf16.mxu0 %v12718_v10 }
 0x5b5   :  { %10135 = vmatpush2.bf16.msra.mxu1 %v12761_v42 }
 0x5b6   :  { %10136 = vmatprep.subr.bf16.mxu1 %v12766_v20  ;;  %v12786_v20 = vld [vmem:[#allocation8 + $0x8] sm:$0xff]  }
 0x5b7   :  { %10096 = vmatpush2.bf16.msra.mxu0 %v12716_v58 }
 0x5b8   :  { %10097 = vmatprep.subr.bf16.mxu0 %v12721_v12 }
 0x5b9   :  { %10137 = vmatpush2.bf16.msra.mxu1 %v12764_v61  ;;  %v12789_v61 = vld [vmem:[#allocation10 + $0x38] sm:$0xff]  }
 0x5ba   :  { %10138 = vmatprep.subr.bf16.mxu1 %v12769_v46  ;;  %v9737_v46 = vld [vmem:[#allocation14] sm:$0x3] }
 0x5bb   :  { %10098 = vmatpush2.bf16.msra.mxu0 %v12719_v55 }
 0x5bc   :  { %10099 = vmatprep.subr.bf16.mxu0 %v12724_v57 }
 0x5bd   :  { %10139 = vmatpush2.bf16.msra.mxu1 %v12767_v17 }
 0x5be   :  { %10140 = vmatprep.subr.bf16.mxu1 %v12772_v60 }
 0x5bf   :  { %10100 = vmatpush2.bf16.msra.mxu0 %v12722_v22 }
 0x5c0   :  { %11836 = vmatprep.subr.bf16.mxu0 %v12773_v38  ;;  %v11810_v38 = vld [vmem:[#allocation16] ss:$0 sm:$0xff] }
 0x5c2   :  { %v9453_v1 = vpop.f32.mrf.mxu0  ;;  %10102 = vmatmul.mubr.bf16.vlgmr.msra.gmra.mxu0 %v9669_v33 }
 0x5c3   :  { %v9454_v54 = vadd.f32 %v9453_v1, %v13488_v21  ;;  %v9494_v3 = vpop.f32.mrf.mxu1  ;;  %v12770_v21 = vld [vmem:[#allocation7 + $0x180] ss:$8 sps:$4 sm:$0xff]   ;;  %11837 = vmatpush3.bf16.msra.mxu0 %v12774_v23 }
 0x5c4   :  { %v9455_v2 = vpop.f32.mrf.mxu0  ;;  %10141 = vmatpush2.bf16.msra.mxu1 %v12770_v21  ;;  %11838 = vmatprep.subr.bf16.mxu0 %v12775_v59  ;;  %v12785_v1 = vld [vmem:[#allocation8 + $0x48] sm:$0xff]  }
 0x5c5   :  { %v9495_v5 = vadd.f32 %v9494_v3, %v9454_v54  ;;  %v9456_v8 = vadd.f32 %v9455_v2, %v13490_v27  ;;  %v9496_v11 = vpop.f32.mrf.mxu1  ;;  %v12787_v54 = vld [vmem:[#allocation8 + $0x40] sm:$0xff]   ;;  %v13053_v2 = vmov 0.0  }
 0x5c6   :  { %v9457_v19 = vpop.f32.mrf.mxu0  ;;  %v12788_v3 = vld [vmem:[#allocation8] sm:$0xff]   ;;  %11867 = vmatprep.subr.bf16.mxu1 %v13053_v2 }
 0x5c7   :  { %v9497_v25 = vadd.f32 %v9496_v11, %v9456_v8  ;;  %v9498_v34 = vpop.f32.mrf.mxu1  ;;  %11839 = vmatpush3.bf16.msra.mxu0 %v12776_v44  ;;  %v12791_v8 = vld [vmem:[#allocation10 + $0x28] sm:$0xff]   ;;  %v12792_v11 = vld [vmem:[#allocation10 + $0x20] sm:$0xff]   ;;  %v12793_v19 = vld [vmem:[#allocation10 + $0x18] sm:$0xff]  }
 0x5c8   :  { %v9458_v51 = vpop.f32.mrf.mxu0  ;;  %11840 = vmatprep.subr.bf16.mxu0 %v12777_v36  ;;  %v9746_v34 = vrot.slane %v9737_v46, %v13210_v15  ;;  %v12796_v15 = vld [vmem:[#allocation10] sm:$0xff]  }
 0x5c9   :  { %v9499_v13 = vpop.f32.mrf.mxu1 }
 0x5cb   :  { %11841 = vmatpush3.bf16.msra.mxu0 %v12778_v18 }
 0x5cc   :  { %11842 = vmatprep.subr.bf16.mxu0 %v12779_v40 }
 0x5cf   :  { %11843 = vmatpush3.bf16.msra.mxu0 %v12780_v41  ;;  %v11827_v41 = vld [vmem:[#allocation17] ss:$0 sm:$0xff] }
 0x5d0   :  { %11844 = vmatprep.subr.bf16.mxu0 %v12781_v43 }
 0x5d3   :  { %11845 = vmatpush3.bf16.msra.mxu0 %v12782_v45 }
 0x5d4   :  { %11846 = vmatprep.subr.bf16.mxu0 %v12783_v16 }
 0x5d7   :  { %11847 = vmatpush3.bf16.msra.mxu0 %v12784_v29 }
 0x5d8   :  { %11848 = vmatprep.subr.bf16.mxu0 %v12785_v1 }
 0x5db   :  { %11849 = vmatpush3.bf16.msra.mxu0 %v12786_v20 }
 0x5dc   :  { %11850 = vmatprep.subr.bf16.mxu0 %v12787_v54 }
 0x5df   :  { %11851 = vmatpush3.bf16.msra.mxu0 %v12788_v3 }
 0x602   :  { %v9535_v62 = vpop.f32.mrf.mxu0 }
 0x603   :  { %v9536_v50 = vadd.f32 %v9535_v62, %v9495_v5  ;;  %v9576_v31 = vpop.f32.mrf.mxu1  ;;  %v12790_v5 = vld [vmem:[#allocation10 + $0x30] sm:$0xff]  }
 0x604   :  { %v9537_v28 = vpop.f32.mrf.mxu0 }
 0x605   :  { %v9577_v27 = vadd.f32 %v9576_v31, %v9536_v50  ;;  %v9578_v6 = vpop.f32.mrf.mxu1  ;;  %v9538_v4 = vadd.f32 %v9537_v28, %v9497_v25  ;;  %v9742_v25 = vrot.slane %v9737_v46, %v13207_v7  ;;  %v12795_v7 = vld [vmem:[#allocation10 + $0x8] sm:$0xff]  }
 0x606   :  { %v9539_v32 = vpop.f32.mrf.mxu0 }
 0x607   :  { %v9580_v0 = vpop.f32.mrf.mxu1  ;;  %v9579_v63 = vadd.f32 %v9578_v6, %v9538_v4 }
 0x608   :  { %v9540_v24 = vpop.f32.mrf.mxu0  ;;  %v12794_v0 = vld [vmem:[#allocation10 + $0x10] sm:$0xff]  }
 0x609   :  { %v9581_v47 = vpop.f32.mrf.mxu1 }
 0x642   :  { %v9617_v35 = vpop.f32.mrf.mxu0 }
 0x643   :  { %v9618_v37 = vadd.f32 %v9617_v35, %v9577_v27  ;;  %v9658_v49 = vpop.f32.mrf.mxu1 }
 0x644   :  { %v9619_v9 = vpop.f32.mrf.mxu0 }
 0x645   :  { %v9659_v52 = vadd.f32 %v9658_v49, %v9618_v37  ;;  %v9620_v48 = vadd.f32 %v9619_v9, %v9579_v63  ;;  %v9660_v56 = vpop.f32.mrf.mxu1 }
 0x646   :  { %v9621_v10 = vpop.f32.mrf.mxu0 }
 0x647   :  { %v9661_v53 = vadd.f32 %v9660_v56, %v9620_v48  ;;  %v9662_v14 = vpop.f32.mrf.mxu1  ;;  %v9667_v58 = vmax.f32 %v9659_v52, 0.0 }
 0x648   :  { %v9622_v12 = vpop.f32.mrf.mxu0 }
 0x649   :  { %v9668_v30 = vmax.f32 %v9661_v53, 0.0  ;;  %v9663_v39 = vpop.f32.mrf.mxu1  ;;  %v9671_v57 = vpack.c.bf16 %v9667_v58, %v9667_v58 }
 0x64b   :  { %v9672_v55 = vpack.c.bf16 %v9668_v30, %v9668_v30 }
 0x64d   :  { %10142 = vmatprep.mubr.bf16.mxu1 %v9672_v55 }
 0x64e   :  { %10143 = vmatmul.mubr.bf16.vlgmr.msra.gmra.mxu1 %v9671_v57 }
 0x64f   :  { %11868 = vmatpush3.bf16.msra.mxu1 %v12789_v61  ;;  %11883 = vmatprep.mubr.msk.bf16.mxu1 %vm13054_vm0, %v13053_v2 }
 0x650   :  { %11869 = vmatprep.subr.bf16.mxu1 %v13053_v2 }
 0x653   :  { %11870 = vmatpush3.bf16.msra.mxu1 %v12790_v5 }
 0x654   :  { %11871 = vmatprep.subr.bf16.mxu1 %v13053_v2 }
 0x657   :  { %11872 = vmatpush3.bf16.msra.mxu1 %v12791_v8 }
 0x658   :  { %11873 = vmatprep.subr.bf16.mxu1 %v13053_v2 }
 0x65b   :  { %11874 = vmatpush3.bf16.msra.mxu1 %v12792_v11 }
 0x65c   :  { %11875 = vmatprep.subr.bf16.mxu1 %v13053_v2 }
 0x65f   :  { %11876 = vmatpush3.bf16.msra.mxu1 %v12793_v19 }
 0x660   :  { %11877 = vmatprep.subr.bf16.mxu1 %v13053_v2 }
 0x663   :  { %11878 = vmatpush3.bf16.msra.mxu1 %v12794_v0 }
 0x664   :  { %11879 = vmatprep.subr.bf16.mxu1 %v13053_v2 }
 0x667   :  { %11880 = vmatpush3.bf16.msra.mxu1 %v12795_v7 }
 0x668   :  { %11881 = vmatprep.subr.bf16.mxu1 %v13053_v2 }
 0x66b   :  { %11882 = vmatpush3.bf16.msra.mxu1 %v12796_v15 }
 0x682   :  { %v10103_v42 = vpop.f32.mrf.mxu0 }
 0x683   :  { %v10104_v17 = vadd.f32 %v10103_v42, %v9742_v25 }
 0x684   :  { %v10105_v22 = vpop.f32.mrf.mxu0 }
 0x685   :  { %v10106_v13 = vadd.f32 %v10105_v22, %v9746_v34 }
 0x686   :  { %v10107_v26 = vpop.f32.mrf.mxu0 }
 0x688   :  { %v10108_v33 = vpop.f32.mrf.mxu0 }
 0x70e   :  { %v10144_v51 = vpop.f32.mrf.mxu1 }
 0x70f   :  { %v10145_v60 = vadd.f32 %v10144_v51, %v10104_v17 }
 0x710   :  { %v10146_v21 = vpop.f32.mrf.mxu1 }
 0x711   :  { %v10147_v62 = vadd.f32 %v10146_v21, %v10106_v13  ;;  %v10151_v50 = vmax.f32 %v10145_v60, 0.0 }
 0x712   :  { %v10148_v31 = vpop.f32.mrf.mxu1 }
 0x713   :  { %v10152_v28 = vmax.f32 %v10147_v62, 0.0  ;;  %v10153_v32 = vpack.c.bf16 %v10151_v50, %v10151_v50 }
 0x714   :  { %v10149_v27 = vpop.f32.mrf.mxu1 }
 0x715   :  { %v10154_v6 = vpack.c.bf16 %v10152_v28, %v10152_v28 }
 0x717   :  { %10322 = vmatprep.mubr.bf16.mxu0 %v10154_v6 }
 0x718   :  { %10323 = vmatmul.mubr.bf16.vlgmr.msra.gmra.mxu0 %v10153_v32 }
 0x7d8   :  { %v11852_v24 = vpop.f32.mrf.mxu0 }
 0x7da   :  { %v11853_v23 = vpop.f32.mrf.mxu0 }
 0x7db   :  { %v11854_v59 = vadd.f32 %v11853_v23, %v11852_v24 }
 0x7dc   :  { %v11855_v47 = vpop.f32.mrf.mxu0 }
 0x7dd   :  { %v10325_v44 = vadd.f32 %v11854_v59, %v11810_v38 }
 0x7de   :  { %v11856_v36 = vpop.f32.mrf.mxu0 }
 0x7df   :  { %v10330_v18 = vmax.f32 %v10325_v44, 0.0 }
 0x7e1   :  { %v10331_v40 = vpack.c.bf16 %v10330_v18, %v10330_v18 }
 0x7e3   :  { %11884 = vmatmul.mubr.bf16.vlgmr.msra.gmra.mxu1 %v10331_v40 }
 0x8a3   :  { %v10437_v43 = vpop.f32.mrf.mxu1 }
 0x8a4   :  { %v10438_v45 = vadd.f32 %v11827_v41, %v10437_v43 }
 0x8a5   :  { %v11885_v16 = vpop.f32.mrf.mxu1 }
 0x8a6   :  { %v10443_v29 = vmax.f32 %v10438_v45, 0.0 }
 0x8a7   :  { %v10440_v4 = vpop.f32.mrf.mxu1 }
 0x8a8   :  { %10444 = vst [vmem:[#allocation19] sm:$0x3] %v10443_v29 }
 0x8a9   :  { %v11886_v35 = vpop.f32.mrf.mxu1 }
 0x8aa   :  { %13012 = shalt.err (!%p13009_p12)
}
 0x8ab   :  { %10454 = dma.vmem_to_hbm [thread:$0]  %s10452_s28, 32, %s13511_s11, [#allocation4]  }
 0x8ac   :  { %13033 = dma.done.wait [#allocation4], 32  }
 0x8ad   :  { %13034 = vsyncadd [#allocation4], 4294967264 }
 0x8ae   :  { %10458 = vsyncpa [#allocation3], 1 }
 0x8af   :  { %10459 = vsyncpa [#allocation6], 1 }
 0x8b0   :  { %10460 = vsyncpa [#allocation9], 1 }
 0x8b1   :  { %10461 = vsyncpa [#allocation12], 1 }
 0x8b2   :  { %10462 = vsyncpa [#allocation15], 1 }
 0x8b3   :  { %10463 = vsyncpa [#allocation18], 1 }
 0x8b4   :  { %10464 = vsyncpa [#allocation4], 1 }

</bundles_post_ra>
